<compile_context>
chip_gen: v7x
topology: tpu7x:2x2x1
jax: 0.10.0
libtpu: 0.0.40
codegen_flags: <defaults>
</compile_context>

<pallas_src>
import functools

import jax
import jax.numpy as jnp
from jax import lax
from jax.experimental import pallas as pl
from jax.experimental.pallas import tpu as pltpu


_WEIGHT_NAMES = (
    "sa_wqkv", "sa_bqkv", "sa_wo", "sa_bo",
    "ca_wq", "ca_bq", "ca_wkv", "ca_bkv", "ca_wo", "ca_bo",
    "ff_w1", "ff_b1", "ff_w2", "ff_b2",
    "ln1_g", "ln1_b", "ln2_g", "ln2_b", "ln3_g", "ln3_b",
)


# ----------------------------- shared math (kernel + reference) ------------- #

def _layernorm(x, gamma, beta, eps=1e-5):
    # x: (N, E) f32, gamma/beta: (1, E) f32
    mean = jnp.mean(x, axis=-1, keepdims=True)
    var = jnp.mean((x - mean) ** 2, axis=-1, keepdims=True)
    return (x - mean) * lax.rsqrt(var + eps) * gamma + beta


def _mha(q, k, v, nhead, *, bt, causal, kv_chunk, in_kernel, out_slab=None):
    """Multi-head attention on flattened tokens.

    q: (bt*Sq, E) f32, k/v: (bt*Sk, E) f32  ->  (bt*Sq, E) f32 (pre out-proj).

    Heads are lane slices (no stack/concat relayouts); score/PV matmuls are
    3-D single-batch-dim einsums batched over bt; KV is processed in chunks
    with an online softmax so the (Sq, Sk) score tile is never materialized
    at full Sk.  In-kernel, per-head outputs go straight into a VMEM slab.
    """
    n, e = q.shape
    nk = k.shape[0]
    sq = n // bt
    sk = nk // bt
    dh = e // nhead
    scale = 1.0 / (dh ** 0.5)
    bf = jnp.bfloat16
    f32 = jnp.float32

    # Fold 1/sqrt(Dh) into Q once instead of scaling the (H,Sq,Sk) scores.
    q3 = (q * scale).astype(bf).reshape(bt, sq, e)
    k3 = k.astype(bf).reshape(bt, sk, e)
    v3 = v.astype(bf).reshape(bt, sk, e)

    kc = min(kv_chunk, sk)
    nchunks = (sk + kc - 1) // kc

    head_outs = []
    for h in range(nhead):
        lo = h * dh
        qh = q3[:, :, lo:lo + dh]                              # (bt, Sq, Dh)
        m = jnp.full((bt, sq, 1), -jnp.inf, f32)
        l = jnp.zeros((bt, sq, 1), f32)
        acc = jnp.zeros((bt, sq, dh), f32)
        for c in range(nchunks):                               # online softmax
            c0 = c * kc
            cw = min(kc, sk - c0)
            kh = k3[:, c0:c0 + cw, lo:lo + dh]                 # (bt, cw, Dh)
            vh = v3[:, c0:c0 + cw, lo:lo + dh]
            s = jnp.einsum('bqd,bkd->bqk', qh, kh,
                           preferred_element_type=f32)         # (bt, Sq, cw)
            if causal:
                row = lax.broadcasted_iota(jnp.int32, (sq, cw), 0)
                col = c0 + lax.broadcasted_iota(jnp.int32, (sq, cw), 1)
                s = jnp.where(col <= row, s, -1e30)
            m_new = jnp.maximum(m, jnp.max(s, axis=-1, keepdims=True))
            alpha = jnp.exp(m - m_new)
            p = jnp.exp(s - m_new)
            l = alpha * l + jnp.sum(p, axis=-1, keepdims=True)
            acc = alpha * acc + jnp.einsum('bqk,bkd->bqd', p.astype(bf), vh,
                                           preferred_element_type=f32)
            m = m_new
        inv = pl.reciprocal(l, approx=True) if in_kernel else 1.0 / l
        oh = (acc * inv).reshape(n, dh)                        # (bt*Sq, Dh) f32
        if out_slab is not None:
            out_slab[:, lo:lo + dh] = oh                       # lane-offset slab
        else:
            head_outs.append(oh)

    if out_slab is not None:
        return out_slab[...]
    return jnp.concatenate(head_outs, axis=-1)                 # reference only


def _decoder_block(x, mem, p, nhead, *, bt, causal, in_kernel, kv_chunk,
                   slab=None):
    """One decoder layer on flattened tokens. x: (bt*S, E), mem: (bt*Sm, E)."""
    e = x.shape[-1]
    bf, f32 = jnp.bfloat16, jnp.float32

    # --- self attention: fused QKV projection (pre-transposed weights) ---
    qkv = jnp.dot(x.astype(bf), p['sa_wqkv'],
                  preferred_element_type=f32) + p['sa_bqkv']        # (N, 3E)
    q, k, v = qkv[:, :e], qkv[:, e:2 * e], qkv[:, 2 * e:]
    sa = _mha(q, k, v, nhead, bt=bt, causal=causal, kv_chunk=kv_chunk,
              in_kernel=in_kernel, out_slab=slab)
    sa = jnp.dot(sa.astype(bf), p['sa_wo'],
                 preferred_element_type=f32) + p['sa_bo']
    h1 = _layernorm(x + sa, p['ln1_g'], p['ln1_b'])

    # --- cross attention: fused KV projection of memory ---
    q = jnp.dot(h1.astype(bf), p['ca_wq'],
                preferred_element_type=f32) + p['ca_bq']            # (N, E)
    kv = jnp.dot(mem.astype(bf), p['ca_wkv'],
                 preferred_element_type=f32) + p['ca_bkv']          # (Nm, 2E)
    k, v = kv[:, :e], kv[:, e:]
    ca = _mha(q, k, v, nhead, bt=bt, causal=False, kv_chunk=kv_chunk,
              in_kernel=in_kernel, out_slab=slab)
    ca = jnp.dot(ca.astype(bf), p['ca_wo'],
                 preferred_element_type=f32) + p['ca_bo']
    h2 = _layernorm(h1 + ca, p['ln2_g'], p['ln2_b'])

    # --- feed-forward ---
    f = jnp.dot(h2.astype(bf), p['ff_w1'],
                preferred_element_type=f32) + p['ff_b1']
    f = jnp.maximum(f, 0.0)
    f = jnp.dot(f.astype(bf), p['ff_w2'],
                preferred_element_type=f32) + p['ff_b2']
    return _layernorm(h2 + f, p['ln3_g'], p['ln3_b'])


# --------------------------------- kernel ----------------------------------- #

def _decoder_kernel(x_ref, mem_ref, *rest, nhead, causal, kv_chunk):
    *w_refs, out_ref, slab_ref = rest
    # Load every weight once per grid step.
    p = {name: ref[...] for name, ref in zip(_WEIGHT_NAMES, w_refs)}
    bt, s, e = x_ref.shape
    sm = mem_ref.shape[1]
    # Flatten the batch tile so every dense op runs with M = bt*S.
    x = x_ref[...].reshape(bt * s, e)
    mem = mem_ref[...].reshape(bt * sm, e)
    out = _decoder_block(x, mem, p, nhead, bt=bt, causal=causal,
                         in_kernel=True, kv_chunk=kv_chunk, slab=slab_ref)
    out_ref[...] = out.reshape(bt, s, e)


# ------------------------------- host wrappers ------------------------------- #

def prepare_params(tp):
    """Pre-transpose / fuse / cast PyTorch-layout weights for the kernel.

    Matmul weights -> bf16 (MXU-native); biases & LN params stay f32.
    """
    e = tp["sa_out_w"].shape[0]
    bf, f32 = jnp.bfloat16, jnp.float32

    def t(w):
        return jnp.asarray(w).T.astype(bf)

    def b(v):
        return jnp.asarray(v).astype(f32).reshape(1, -1)

    return {
        "sa_wqkv": t(tp["sa_in_w"]),          # (E, 3E)
        "sa_bqkv": b(tp["sa_in_b"]),          # (1, 3E)
        "sa_wo":   t(tp["sa_out_w"]),         # (E, E)
        "sa_bo":   b(tp["sa_out_b"]),
        "ca_wq":   t(tp["ca_in_w"][:e]),      # (E, E)
        "ca_bq":   b(tp["ca_in_b"][:e]),
        "ca_wkv":  t(tp["ca_in_w"][e:]),      # (E, 2E)
        "ca_bkv":  b(tp["ca_in_b"][e:]),
        "ca_wo":   t(tp["ca_out_w"]),
        "ca_bo":   b(tp["ca_out_b"]),
        "ff_w1":   t(tp["ff_w1"]),            # (E, F)
        "ff_b1":   b(tp["ff_b1"]),
        "ff_w2":   t(tp["ff_w2"]),            # (F, E)
        "ff_b2":   b(tp["ff_b2"]),
        "ln1_g":   b(tp["ln1_g"]), "ln1_b": b(tp["ln1_b"]),
        "ln2_g":   b(tp["ln2_g"]), "ln2_b": b(tp["ln2_b"]),
        "ln3_g":   b(tp["ln3_g"]), "ln3_b": b(tp["ln3_b"]),
    }


def decoder_forward(x, memory, prepared, nhead, *, causal=True, batch_tile=1,
                    kv_chunk=512, vmem_limit_bytes=56 * 1024 * 1024):
    B, S, E = x.shape
    _, Sm, _ = memory.shape
    bt = batch_tile
    assert B % bt == 0, "batch must be divisible by batch_tile"

    weights = [prepared[k] for k in _WEIGHT_NAMES]
    kernel = functools.partial(_decoder_kernel, nhead=nhead, causal=causal,
                               kv_chunk=kv_chunk)

    def build(single_buffer_weights):
        def w_spec(arr):
            nd = arr.ndim
            idx = lambda b, _nd=nd: (0,) * _nd
            if single_buffer_weights:
                # Constant index_map across the grid -> one resident copy is
                # enough; halves weight VMEM vs default double buffering.
                return pl.BlockSpec(arr.shape, idx,
                                    pipeline_mode=pl.Buffered(1))
            return pl.BlockSpec(arr.shape, idx)

        in_specs = [
            pl.BlockSpec((bt, S, E), lambda b: (b, 0, 0)),      # x batch tile
            pl.BlockSpec((bt, Sm, E), lambda b: (b, 0, 0)),     # memory tile
        ] + [w_spec(w) for w in weights]

        return pl.pallas_call(
            kernel,
            out_shape=jax.ShapeDtypeStruct((B, S, E), jnp.float32),
            grid=(B // bt,),
            in_specs=in_specs,
            out_specs=pl.BlockSpec((bt, S, E), lambda b: (b, 0, 0)),
            scratch_shapes=[pltpu.VMEM((bt * S, E), jnp.float32)],  # head slab
            compiler_params=pltpu.CompilerParams(
                dimension_semantics=("parallel",),
                vmem_limit_bytes=vmem_limit_bytes,
            ),
        )

    try:
        return build(True)(x, memory, *weights)
    except Exception:
        # pl.Buffered(1) not supported on this jax version -> default buffering.
        return build(False)(x, memory, *weights)


# ------------------------- pure-JAX reference (check) ------------------------ #

def decoder_reference(x, memory, prepared, nhead, *, causal=True):
    B, S, E = x.shape
    Sm = memory.shape[1]
    out = _decoder_block(x.reshape(B * S, E), memory.reshape(B * Sm, E),
                         prepared, nhead, bt=B, causal=causal,
                         in_kernel=False, kv_chunk=max(S, Sm))
    return out.reshape(B, S, E)


# ----------------------------------- main ------------------------------------ #

if __name__ == "__main__":
    B, S, Sm = 4, 8, 8
    d_model, nhead, dim_ff = 32, 4, 64

    key = jax.random.PRNGKey(0)
    ks = jax.random.split(key, 16)

    def init(k, shape, scale=0.1):
        return (scale * jax.random.normal(k, shape)).astype(jnp.float32)

    # PyTorch-layout parameters (nn.MultiheadAttention / nn.Linear conventions).
    torch_params = {
        "sa_in_w": init(ks[0], (3 * d_model, d_model)),
        "sa_in_b": init(ks[1], (3 * d_model,)),
        "sa_out_w": init(ks[2], (d_model, d_model)),
        "sa_out_b": init(ks[3], (d_model,)),
        "ca_in_w": init(ks[4], (3 * d_model, d_model)),
        "ca_in_b": init(ks[5], (3 * d_model,)),
        "ca_out_w": init(ks[6], (d_model, d_model)),
        "ca_out_b": init(ks[7], (d_model,)),
        "ff_w1": init(ks[8], (dim_ff, d_model)),
        "ff_b1": init(ks[9], (dim_ff,)),
        "ff_w2": init(ks[10], (d_model, dim_ff)),
        "ff_b2": init(ks[11], (d_model,)),
        "ln1_g": jnp.ones((d_model,), jnp.float32),
        "ln1_b": jnp.zeros((d_model,), jnp.float32),
        "ln2_g": jnp.ones((d_model,), jnp.float32),
        "ln2_b": jnp.zeros((d_model,), jnp.float32),
        "ln3_g": jnp.ones((d_model,), jnp.float32),
        "ln3_b": jnp.zeros((d_model,), jnp.float32),
    }
    prepared = prepare_params(torch_params)

    x = jax.random.normal(ks[12], (B, S, d_model), jnp.float32)
    memory = jax.random.normal(ks[13], (B, Sm, d_model), jnp.float32)

    # Causal tgt_mask is generated in-kernel via iota (equivalent to the
    # PyTorch additive float causal mask).
    out = decoder_forward(x, memory, prepared, nhead, causal=True, batch_tile=2)
    out = jax.block_until_ready(out)

    ref = decoder_reference(x, memory, prepared, nhead, causal=True)
    assert out.shape == (B, S, d_model)
    assert jnp.allclose(out, ref, atol=1e-2, rtol=1e-2), "mismatch vs reference"

    print("KERNEL_OK")
</pallas_src>

<mosaic_0001>
module attributes {stable_mosaic.version = 11 : i64} {
  func.func @_decoder_kernel(%arg0: i32, %arg1: memref<2x8x32xf32, #tpu.memory_space<vmem>>, %arg2: memref<2x8x32xf32, #tpu.memory_space<vmem>>, %arg3: memref<32x96xbf16, #tpu.memory_space<vmem>>, %arg4: memref<1x96xf32, #tpu.memory_space<vmem>>, %arg5: memref<32x32xbf16, #tpu.memory_space<vmem>>, %arg6: memref<1x32xf32, #tpu.memory_space<vmem>>, %arg7: memref<32x32xbf16, #tpu.memory_space<vmem>>, %arg8: memref<1x32xf32, #tpu.memory_space<vmem>>, %arg9: memref<32x64xbf16, #tpu.memory_space<vmem>>, %arg10: memref<1x64xf32, #tpu.memory_space<vmem>>, %arg11: memref<32x32xbf16, #tpu.memory_space<vmem>>, %arg12: memref<1x32xf32, #tpu.memory_space<vmem>>, %arg13: memref<32x64xbf16, #tpu.memory_space<vmem>>, %arg14: memref<1x64xf32, #tpu.memory_space<vmem>>, %arg15: memref<64x32xbf16, #tpu.memory_space<vmem>>, %arg16: memref<1x32xf32, #tpu.memory_space<vmem>>, %arg17: memref<1x32xf32, #tpu.memory_space<vmem>>, %arg18: memref<1x32xf32, #tpu.memory_space<vmem>>, %arg19: memref<1x32xf32, #tpu.memory_space<vmem>>, %arg20: memref<1x32xf32, #tpu.memory_space<vmem>>, %arg21: memref<1x32xf32, #tpu.memory_space<vmem>>, %arg22: memref<1x32xf32, #tpu.memory_space<vmem>>, %arg23: memref<2x8x32xf32, #tpu.memory_space<vmem>>, %arg24: memref<16x32xf32, #tpu.memory_space<vmem>>) attributes {dimension_semantics = [#tpu.dimension_semantics<parallel>], iteration_bounds = array<i64: 2>, scalar_prefetch = 0 : i64, scratch_operands = 1 : i64, tpu.core_type = #tpu.core_type<tc>, window_params = [{transform_indices = @transform_0, window_bounds = array<i64: 2, 8, 32>}, {transform_indices = @transform_1, window_bounds = array<i64: 2, 8, 32>}, {pipeline_mode = #tpu.pipeline_mode<synchronous>, transform_indices = @transform_2, window_bounds = array<i64: 32, 96>}, {pipeline_mode = #tpu.pipeline_mode<synchronous>, transform_indices = @transform_3, window_bounds = array<i64: 1, 96>}, {pipeline_mode = #tpu.pipeline_mode<synchronous>, transform_indices = @transform_4, window_bounds = array<i64: 32, 32>}, {pipeline_mode = #tpu.pipeline_mode<synchronous>, transform_indices = @transform_5, window_bounds = array<i64: 1, 32>}, {pipeline_mode = #tpu.pipeline_mode<synchronous>, transform_indices = @transform_6, window_bounds = array<i64: 32, 32>}, {pipeline_mode = #tpu.pipeline_mode<synchronous>, transform_indices = @transform_7, window_bounds = array<i64: 1, 32>}, {pipeline_mode = #tpu.pipeline_mode<synchronous>, transform_indices = @transform_8, window_bounds = array<i64: 32, 64>}, {pipeline_mode = #tpu.pipeline_mode<synchronous>, transform_indices = @transform_9, window_bounds = array<i64: 1, 64>}, {pipeline_mode = #tpu.pipeline_mode<synchronous>, transform_indices = @transform_10, window_bounds = array<i64: 32, 32>}, {pipeline_mode = #tpu.pipeline_mode<synchronous>, transform_indices = @transform_11, window_bounds = array<i64: 1, 32>}, {pipeline_mode = #tpu.pipeline_mode<synchronous>, transform_indices = @transform_12, window_bounds = array<i64: 32, 64>}, {pipeline_mode = #tpu.pipeline_mode<synchronous>, transform_indices = @transform_13, window_bounds = array<i64: 1, 64>}, {pipeline_mode = #tpu.pipeline_mode<synchronous>, transform_indices = @transform_14, window_bounds = array<i64: 64, 32>}, {pipeline_mode = #tpu.pipeline_mode<synchronous>, transform_indices = @transform_15, window_bounds = array<i64: 1, 32>}, {pipeline_mode = #tpu.pipeline_mode<synchronous>, transform_indices = @transform_16, window_bounds = array<i64: 1, 32>}, {pipeline_mode = #tpu.pipeline_mode<synchronous>, transform_indices = @transform_17, window_bounds = array<i64: 1, 32>}, {pipeline_mode = #tpu.pipeline_mode<synchronous>, transform_indices = @transform_18, window_bounds = array<i64: 1, 32>}, {pipeline_mode = #tpu.pipeline_mode<synchronous>, transform_indices = @transform_19, window_bounds = array<i64: 1, 32>}, {pipeline_mode = #tpu.pipeline_mode<synchronous>, transform_indices = @transform_20, window_bounds = array<i64: 1, 32>}, {pipeline_mode = #tpu.pipeline_mode<synchronous>, transform_indices = @transform_21, window_bounds = array<i64: 1, 32>}, {transform_indices = @transform_22, window_bounds = array<i64: 2, 8, 32>}]} {
    %c0 = arith.constant 0 : index
    %c0_0 = arith.constant 0 : index
    %0 = vector.load %arg3[%c0, %c0_0] : memref<32x96xbf16, #tpu.memory_space<vmem>>, vector<32x96xbf16>
    %c0_1 = arith.constant 0 : index
    %c0_2 = arith.constant 0 : index
    %1 = vector.load %arg4[%c0_1, %c0_2] : memref<1x96xf32, #tpu.memory_space<vmem>>, vector<1x96xf32>
    %c0_3 = arith.constant 0 : index
    %c0_4 = arith.constant 0 : index
    %2 = vector.load %arg5[%c0_3, %c0_4] : memref<32x32xbf16, #tpu.memory_space<vmem>>, vector<32x32xbf16>
    %c0_5 = arith.constant 0 : index
    %c0_6 = arith.constant 0 : index
    %3 = vector.load %arg6[%c0_5, %c0_6] : memref<1x32xf32, #tpu.memory_space<vmem>>, vector<1x32xf32>
    %c0_7 = arith.constant 0 : index
    %c0_8 = arith.constant 0 : index
    %4 = vector.load %arg7[%c0_7, %c0_8] : memref<32x32xbf16, #tpu.memory_space<vmem>>, vector<32x32xbf16>
    %c0_9 = arith.constant 0 : index
    %c0_10 = arith.constant 0 : index
    %5 = vector.load %arg8[%c0_9, %c0_10] : memref<1x32xf32, #tpu.memory_space<vmem>>, vector<1x32xf32>
    %c0_11 = arith.constant 0 : index
    %c0_12 = arith.constant 0 : index
    %6 = vector.load %arg9[%c0_11, %c0_12] : memref<32x64xbf16, #tpu.memory_space<vmem>>, vector<32x64xbf16>
    %c0_13 = arith.constant 0 : index
    %c0_14 = arith.constant 0 : index
    %7 = vector.load %arg10[%c0_13, %c0_14] : memref<1x64xf32, #tpu.memory_space<vmem>>, vector<1x64xf32>
    %c0_15 = arith.constant 0 : index
    %c0_16 = arith.constant 0 : index
    %8 = vector.load %arg11[%c0_15, %c0_16] : memref<32x32xbf16, #tpu.memory_space<vmem>>, vector<32x32xbf16>
    %c0_17 = arith.constant 0 : index
    %c0_18 = arith.constant 0 : index
    %9 = vector.load %arg12[%c0_17, %c0_18] : memref<1x32xf32, #tpu.memory_space<vmem>>, vector<1x32xf32>
    %c0_19 = arith.constant 0 : index
    %c0_20 = arith.constant 0 : index
    %10 = vector.load %arg13[%c0_19, %c0_20] : memref<32x64xbf16, #tpu.memory_space<vmem>>, vector<32x64xbf16>
    %c0_21 = arith.constant 0 : index
    %c0_22 = arith.constant 0 : index
    %11 = vector.load %arg14[%c0_21, %c0_22] : memref<1x64xf32, #tpu.memory_space<vmem>>, vector<1x64xf32>
    %c0_23 = arith.constant 0 : index
    %c0_24 = arith.constant 0 : index
    %12 = vector.load %arg15[%c0_23, %c0_24] : memref<64x32xbf16, #tpu.memory_space<vmem>>, vector<64x32xbf16>
    %c0_25 = arith.constant 0 : index
    %c0_26 = arith.constant 0 : index
    %13 = vector.load %arg16[%c0_25, %c0_26] : memref<1x32xf32, #tpu.memory_space<vmem>>, vector<1x32xf32>
    %c0_27 = arith.constant 0 : index
    %c0_28 = arith.constant 0 : index
    %14 = vector.load %arg17[%c0_27, %c0_28] : memref<1x32xf32, #tpu.memory_space<vmem>>, vector<1x32xf32>
    %c0_29 = arith.constant 0 : index
    %c0_30 = arith.constant 0 : index
    %15 = vector.load %arg18[%c0_29, %c0_30] : memref<1x32xf32, #tpu.memory_space<vmem>>, vector<1x32xf32>
    %c0_31 = arith.constant 0 : index
    %c0_32 = arith.constant 0 : index
    %16 = vector.load %arg19[%c0_31, %c0_32] : memref<1x32xf32, #tpu.memory_space<vmem>>, vector<1x32xf32>
    %c0_33 = arith.constant 0 : index
    %c0_34 = arith.constant 0 : index
    %17 = vector.load %arg20[%c0_33, %c0_34] : memref<1x32xf32, #tpu.memory_space<vmem>>, vector<1x32xf32>
    %c0_35 = arith.constant 0 : index
    %c0_36 = arith.constant 0 : index
    %18 = vector.load %arg21[%c0_35, %c0_36] : memref<1x32xf32, #tpu.memory_space<vmem>>, vector<1x32xf32>
    %c0_37 = arith.constant 0 : index
    %c0_38 = arith.constant 0 : index
    %19 = vector.load %arg22[%c0_37, %c0_38] : memref<1x32xf32, #tpu.memory_space<vmem>>, vector<1x32xf32>
    %c0_39 = arith.constant 0 : index
    %c0_40 = arith.constant 0 : index
    %c0_41 = arith.constant 0 : index
    %20 = vector.load %arg1[%c0_39, %c0_40, %c0_41] : memref<2x8x32xf32, #tpu.memory_space<vmem>>, vector<2x8x32xf32>
    %21 = vector.shape_cast %20 : vector<2x8x32xf32> to vector<16x32xf32>
    %c0_42 = arith.constant 0 : index
    %c0_43 = arith.constant 0 : index
    %c0_44 = arith.constant 0 : index
    %22 = vector.load %arg2[%c0_42, %c0_43, %c0_44] : memref<2x8x32xf32, #tpu.memory_space<vmem>>, vector<2x8x32xf32>
    %23 = vector.shape_cast %22 : vector<2x8x32xf32> to vector<16x32xf32>
    %24 = arith.truncf %21 : vector<16x32xf32> to vector<16x32xbf16>
    %cst = arith.constant dense<0.000000e+00> : vector<16x96xf32>
    %25 = tpu.matmul %24, %0, %cst {dimension_numbers = #tpu.dot_dimension_numbers<[1], [0], [0], [1], [0, 0, 1, 1], [], []>} : vector<16x32xbf16>, vector<32x96xbf16>, vector<16x96xf32> -> vector<16x96xf32>
    %26 = vector.broadcast %1 : vector<1x96xf32> to vector<16x96xf32>
    %27 = arith.addf %25, %26 : vector<16x96xf32>
    %28 = vector.extract_strided_slice %27 {offsets = [0, 0], sizes = [16, 32], strides = [1, 1]} : vector<16x96xf32> to vector<16x32xf32>
    %29 = vector.extract_strided_slice %27 {offsets = [0, 32], sizes = [16, 32], strides = [1, 1]} : vector<16x96xf32> to vector<16x32xf32>
    %30 = vector.extract_strided_slice %27 {offsets = [0, 64], sizes = [16, 32], strides = [1, 1]} : vector<16x96xf32> to vector<16x32xf32>
    %cst_45 = arith.constant 0.353553385 : f32
    %31 = vector.broadcast %cst_45 : f32 to vector<16x32xf32>
    %32 = arith.mulf %28, %31 : vector<16x32xf32>
    %33 = arith.truncf %32 : vector<16x32xf32> to vector<16x32xbf16>
    %34 = vector.shape_cast %33 : vector<16x32xbf16> to vector<2x8x32xbf16>
    %35 = arith.truncf %29 : vector<16x32xf32> to vector<16x32xbf16>
    %36 = vector.shape_cast %35 : vector<16x32xbf16> to vector<2x8x32xbf16>
    %37 = arith.truncf %30 : vector<16x32xf32> to vector<16x32xbf16>
    %38 = vector.shape_cast %37 : vector<16x32xbf16> to vector<2x8x32xbf16>
    %39 = vector.extract_strided_slice %34 {offsets = [0, 0, 0], sizes = [2, 8, 8], strides = [1, 1, 1]} : vector<2x8x32xbf16> to vector<2x8x8xbf16>
    %cst_46 = arith.constant 0xFF800000 : f32
    %40 = vector.broadcast %cst_46 : f32 to vector<2x8x1xf32>
    %cst_47 = arith.constant 0.000000e+00 : f32
    %41 = vector.broadcast %cst_47 : f32 to vector<2x8x1xf32>
    %cst_48 = arith.constant 0.000000e+00 : f32
    %42 = vector.broadcast %cst_48 : f32 to vector<2x8x8xf32>
    %43 = vector.extract_strided_slice %36 {offsets = [0, 0, 0], sizes = [2, 8, 8], strides = [1, 1, 1]} : vector<2x8x32xbf16> to vector<2x8x8xbf16>
    %44 = vector.extract_strided_slice %38 {offsets = [0, 0, 0], sizes = [2, 8, 8], strides = [1, 1, 1]} : vector<2x8x32xbf16> to vector<2x8x8xbf16>
    "tpu.trace_start"() <{level = 10 : i32, message = "bqd,bkd->bqk"}> : () -> ()
    %cst_49 = arith.constant dense<0.000000e+00> : vector<2x8x8xf32>
    %45 = tpu.matmul %39, %43, %cst_49 {dimension_numbers = #tpu.dot_dimension_numbers<[2], [2], [1], [1], [0, 0, 0, 1, 1, 1], [0], [0]>} : vector<2x8x8xbf16>, vector<2x8x8xbf16>, vector<2x8x8xf32> -> vector<2x8x8xf32>
    "tpu.trace_stop"() : () -> ()
    %46 = tpu.iota {dimensions = array<i32: 0>} : vector<8x8xi32>
    %47 = tpu.iota {dimensions = array<i32: 1>} : vector<8x8xi32>
    %c0_i32 = arith.constant 0 : i32
    %48 = vector.broadcast %c0_i32 : i32 to vector<8x8xi32>
    %49 = arith.addi %48, %47 : vector<8x8xi32>
    %50 = arith.cmpi sle, %49, %46 : vector<8x8xi32>
    %cst_50 = arith.constant -1.000000e+30 : f32
    %51 = vector.shape_cast %50 : vector<8x8xi1> to vector<1x8x8xi1>
    %52 = vector.broadcast %51 : vector<1x8x8xi1> to vector<2x8x8xi1>
    %53 = vector.broadcast %cst_50 : f32 to vector<2x8x8xf32>
    %54 = arith.select %52, %45, %53 : vector<2x8x8xi1>, vector<2x8x8xf32>
    %cst_51 = arith.constant dense<0xFF800000> : vector<2x8xf32>
    %55 = vector.multi_reduction <maximumf>, %54, %cst_51 [2] : vector<2x8x8xf32> to vector<2x8xf32>
    %56 = vector.shape_cast %55 : vector<2x8xf32> to vector<2x8x1xf32>
    %57 = arith.maximumf %40, %56 : vector<2x8x1xf32>
    %58 = arith.subf %40, %57 : vector<2x8x1xf32>
    %59 = math.exp %58 : vector<2x8x1xf32>
    %60 = vector.broadcast %57 : vector<2x8x1xf32> to vector<2x8x8xf32>
    %61 = arith.subf %54, %60 : vector<2x8x8xf32>
    %62 = math.exp %61 : vector<2x8x8xf32>
    %63 = arith.mulf %59, %41 : vector<2x8x1xf32>
    %cst_52 = arith.constant dense<0.000000e+00> : vector<2x8xf32>
    %64 = vector.multi_reduction <add>, %62, %cst_52 [2] : vector<2x8x8xf32> to vector<2x8xf32>
    %65 = vector.shape_cast %64 : vector<2x8xf32> to vector<2x8x1xf32>
    %66 = arith.addf %63, %65 : vector<2x8x1xf32>
    %67 = vector.broadcast %59 : vector<2x8x1xf32> to vector<2x8x8xf32>
    %68 = arith.mulf %67, %42 : vector<2x8x8xf32>
    %69 = arith.truncf %62 : vector<2x8x8xf32> to vector<2x8x8xbf16>
    "tpu.trace_start"() <{level = 10 : i32, message = "bqk,bkd->bqd"}> : () -> ()
    %cst_53 = arith.constant dense<0.000000e+00> : vector<2x8x8xf32>
    %70 = tpu.matmul %69, %44, %cst_53 {dimension_numbers = #tpu.dot_dimension_numbers<[2], [1], [1], [2], [0, 0, 0, 1, 1, 2], [0], [0]>} : vector<2x8x8xbf16>, vector<2x8x8xbf16>, vector<2x8x8xf32> -> vector<2x8x8xf32>
    "tpu.trace_stop"() : () -> ()
    %71 = arith.addf %68, %70 : vector<2x8x8xf32>
    %72 = tpu.reciprocal %66 {approx = true} : vector<2x8x1xf32> -> vector<2x8x1xf32>
    %73 = vector.broadcast %72 : vector<2x8x1xf32> to vector<2x8x8xf32>
    %74 = arith.mulf %71, %73 : vector<2x8x8xf32>
    %75 = vector.shape_cast %74 : vector<2x8x8xf32> to vector<16x8xf32>
    %c0_54 = arith.constant 0 : index
    %c0_55 = arith.constant 0 : index
    %76 = vector.load %arg24[%c0_54, %c0_55] : memref<16x32xf32, #tpu.memory_space<vmem>>, vector<16x8xf32>
    tpu.vector_store %arg24[%c0_54, %c0_55], %75 {strides = array<i32>} : memref<16x32xf32, #tpu.memory_space<vmem>>, vector<16x8xf32>,
    %77 = vector.extract_strided_slice %34 {offsets = [0, 0, 8], sizes = [2, 8, 8], strides = [1, 1, 1]} : vector<2x8x32xbf16> to vector<2x8x8xbf16>
    %cst_56 = arith.constant 0xFF800000 : f32
    %78 = vector.broadcast %cst_56 : f32 to vector<2x8x1xf32>
    %cst_57 = arith.constant 0.000000e+00 : f32
    %79 = vector.broadcast %cst_57 : f32 to vector<2x8x1xf32>
    %cst_58 = arith.constant 0.000000e+00 : f32
    %80 = vector.broadcast %cst_58 : f32 to vector<2x8x8xf32>
    %81 = vector.extract_strided_slice %36 {offsets = [0, 0, 8], sizes = [2, 8, 8], strides = [1, 1, 1]} : vector<2x8x32xbf16> to vector<2x8x8xbf16>
    %82 = vector.extract_strided_slice %38 {offsets = [0, 0, 8], sizes = [2, 8, 8], strides = [1, 1, 1]} : vector<2x8x32xbf16> to vector<2x8x8xbf16>
    "tpu.trace_start"() <{level = 10 : i32, message = "bqd,bkd->bqk"}> : () -> ()
    %cst_59 = arith.constant dense<0.000000e+00> : vector<2x8x8xf32>
    %83 = tpu.matmul %77, %81, %cst_59 {dimension_numbers = #tpu.dot_dimension_numbers<[2], [2], [1], [1], [0, 0, 0, 1, 1, 1], [0], [0]>} : vector<2x8x8xbf16>, vector<2x8x8xbf16>, vector<2x8x8xf32> -> vector<2x8x8xf32>
    "tpu.trace_stop"() : () -> ()
    %84 = tpu.iota {dimensions = array<i32: 0>} : vector<8x8xi32>
    %85 = tpu.iota {dimensions = array<i32: 1>} : vector<8x8xi32>
    %c0_i32_60 = arith.constant 0 : i32
    %86 = vector.broadcast %c0_i32_60 : i32 to vector<8x8xi32>
    %87 = arith.addi %86, %85 : vector<8x8xi32>
    %88 = arith.cmpi sle, %87, %84 : vector<8x8xi32>
    %cst_61 = arith.constant -1.000000e+30 : f32
    %89 = vector.shape_cast %88 : vector<8x8xi1> to vector<1x8x8xi1>
    %90 = vector.broadcast %89 : vector<1x8x8xi1> to vector<2x8x8xi1>
    %91 = vector.broadcast %cst_61 : f32 to vector<2x8x8xf32>
    %92 = arith.select %90, %83, %91 : vector<2x8x8xi1>, vector<2x8x8xf32>
    %cst_62 = arith.constant dense<0xFF800000> : vector<2x8xf32>
    %93 = vector.multi_reduction <maximumf>, %92, %cst_62 [2] : vector<2x8x8xf32> to vector<2x8xf32>
    %94 = vector.shape_cast %93 : vector<2x8xf32> to vector<2x8x1xf32>
    %95 = arith.maximumf %78, %94 : vector<2x8x1xf32>
    %96 = arith.subf %78, %95 : vector<2x8x1xf32>
    %97 = math.exp %96 : vector<2x8x1xf32>
    %98 = vector.broadcast %95 : vector<2x8x1xf32> to vector<2x8x8xf32>
    %99 = arith.subf %92, %98 : vector<2x8x8xf32>
    %100 = math.exp %99 : vector<2x8x8xf32>
    %101 = arith.mulf %97, %79 : vector<2x8x1xf32>
    %cst_63 = arith.constant dense<0.000000e+00> : vector<2x8xf32>
    %102 = vector.multi_reduction <add>, %100, %cst_63 [2] : vector<2x8x8xf32> to vector<2x8xf32>
    %103 = vector.shape_cast %102 : vector<2x8xf32> to vector<2x8x1xf32>
    %104 = arith.addf %101, %103 : vector<2x8x1xf32>
    %105 = vector.broadcast %97 : vector<2x8x1xf32> to vector<2x8x8xf32>
    %106 = arith.mulf %105, %80 : vector<2x8x8xf32>
    %107 = arith.truncf %100 : vector<2x8x8xf32> to vector<2x8x8xbf16>
    "tpu.trace_start"() <{level = 10 : i32, message = "bqk,bkd->bqd"}> : () -> ()
    %cst_64 = arith.constant dense<0.000000e+00> : vector<2x8x8xf32>
    %108 = tpu.matmul %107, %82, %cst_64 {dimension_numbers = #tpu.dot_dimension_numbers<[2], [1], [1], [2], [0, 0, 0, 1, 1, 2], [0], [0]>} : vector<2x8x8xbf16>, vector<2x8x8xbf16>, vector<2x8x8xf32> -> vector<2x8x8xf32>
    "tpu.trace_stop"() : () -> ()
    %109 = arith.addf %106, %108 : vector<2x8x8xf32>
    %110 = tpu.reciprocal %104 {approx = true} : vector<2x8x1xf32> -> vector<2x8x1xf32>
    %111 = vector.broadcast %110 : vector<2x8x1xf32> to vector<2x8x8xf32>
    %112 = arith.mulf %109, %111 : vector<2x8x8xf32>
    %113 = vector.shape_cast %112 : vector<2x8x8xf32> to vector<16x8xf32>
    %c0_65 = arith.constant 0 : index
    %c8 = arith.constant 8 : index
    %114 = vector.load %arg24[%c0_65, %c8] : memref<16x32xf32, #tpu.memory_space<vmem>>, vector<16x8xf32>
    tpu.vector_store %arg24[%c0_65, %c8], %113 {strides = array<i32>} : memref<16x32xf32, #tpu.memory_space<vmem>>, vector<16x8xf32>,
    %115 = vector.extract_strided_slice %34 {offsets = [0, 0, 16], sizes = [2, 8, 8], strides = [1, 1, 1]} : vector<2x8x32xbf16> to vector<2x8x8xbf16>
    %cst_66 = arith.constant 0xFF800000 : f32
    %116 = vector.broadcast %cst_66 : f32 to vector<2x8x1xf32>
    %cst_67 = arith.constant 0.000000e+00 : f32
    %117 = vector.broadcast %cst_67 : f32 to vector<2x8x1xf32>
    %cst_68 = arith.constant 0.000000e+00 : f32
    %118 = vector.broadcast %cst_68 : f32 to vector<2x8x8xf32>
    %119 = vector.extract_strided_slice %36 {offsets = [0, 0, 16], sizes = [2, 8, 8], strides = [1, 1, 1]} : vector<2x8x32xbf16> to vector<2x8x8xbf16>
    %120 = vector.extract_strided_slice %38 {offsets = [0, 0, 16], sizes = [2, 8, 8], strides = [1, 1, 1]} : vector<2x8x32xbf16> to vector<2x8x8xbf16>
    "tpu.trace_start"() <{level = 10 : i32, message = "bqd,bkd->bqk"}> : () -> ()
    %cst_69 = arith.constant dense<0.000000e+00> : vector<2x8x8xf32>
    %121 = tpu.matmul %115, %119, %cst_69 {dimension_numbers = #tpu.dot_dimension_numbers<[2], [2], [1], [1], [0, 0, 0, 1, 1, 1], [0], [0]>} : vector<2x8x8xbf16>, vector<2x8x8xbf16>, vector<2x8x8xf32> -> vector<2x8x8xf32>
    "tpu.trace_stop"() : () -> ()
    %122 = tpu.iota {dimensions = array<i32: 0>} : vector<8x8xi32>
    %123 = tpu.iota {dimensions = array<i32: 1>} : vector<8x8xi32>
    %c0_i32_70 = arith.constant 0 : i32
    %124 = vector.broadcast %c0_i32_70 : i32 to vector<8x8xi32>
    %125 = arith.addi %124, %123 : vector<8x8xi32>
    %126 = arith.cmpi sle, %125, %122 : vector<8x8xi32>
    %cst_71 = arith.constant -1.000000e+30 : f32
    %127 = vector.shape_cast %126 : vector<8x8xi1> to vector<1x8x8xi1>
    %128 = vector.broadcast %127 : vector<1x8x8xi1> to vector<2x8x8xi1>
    %129 = vector.broadcast %cst_71 : f32 to vector<2x8x8xf32>
    %130 = arith.select %128, %121, %129 : vector<2x8x8xi1>, vector<2x8x8xf32>
    %cst_72 = arith.constant dense<0xFF800000> : vector<2x8xf32>
    %131 = vector.multi_reduction <maximumf>, %130, %cst_72 [2] : vector<2x8x8xf32> to vector<2x8xf32>
    %132 = vector.shape_cast %131 : vector<2x8xf32> to vector<2x8x1xf32>
    %133 = arith.maximumf %116, %132 : vector<2x8x1xf32>
    %134 = arith.subf %116, %133 : vector<2x8x1xf32>
    %135 = math.exp %134 : vector<2x8x1xf32>
    %136 = vector.broadcast %133 : vector<2x8x1xf32> to vector<2x8x8xf32>
    %137 = arith.subf %130, %136 : vector<2x8x8xf32>
    %138 = math.exp %137 : vector<2x8x8xf32>
    %139 = arith.mulf %135, %117 : vector<2x8x1xf32>
    %cst_73 = arith.constant dense<0.000000e+00> : vector<2x8xf32>
    %140 = vector.multi_reduction <add>, %138, %cst_73 [2] : vector<2x8x8xf32> to vector<2x8xf32>
    %141 = vector.shape_cast %140 : vector<2x8xf32> to vector<2x8x1xf32>
    %142 = arith.addf %139, %141 : vector<2x8x1xf32>
    %143 = vector.broadcast %135 : vector<2x8x1xf32> to vector<2x8x8xf32>
    %144 = arith.mulf %143, %118 : vector<2x8x8xf32>
    %145 = arith.truncf %138 : vector<2x8x8xf32> to vector<2x8x8xbf16>
    "tpu.trace_start"() <{level = 10 : i32, message = "bqk,bkd->bqd"}> : () -> ()
    %cst_74 = arith.constant dense<0.000000e+00> : vector<2x8x8xf32>
    %146 = tpu.matmul %145, %120, %cst_74 {dimension_numbers = #tpu.dot_dimension_numbers<[2], [1], [1], [2], [0, 0, 0, 1, 1, 2], [0], [0]>} : vector<2x8x8xbf16>, vector<2x8x8xbf16>, vector<2x8x8xf32> -> vector<2x8x8xf32>
    "tpu.trace_stop"() : () -> ()
    %147 = arith.addf %144, %146 : vector<2x8x8xf32>
    %148 = tpu.reciprocal %142 {approx = true} : vector<2x8x1xf32> -> vector<2x8x1xf32>
    %149 = vector.broadcast %148 : vector<2x8x1xf32> to vector<2x8x8xf32>
    %150 = arith.mulf %147, %149 : vector<2x8x8xf32>
    %151 = vector.shape_cast %150 : vector<2x8x8xf32> to vector<16x8xf32>
    %c0_75 = arith.constant 0 : index
    %c16 = arith.constant 16 : index
    %152 = vector.load %arg24[%c0_75, %c16] : memref<16x32xf32, #tpu.memory_space<vmem>>, vector<16x8xf32>
    tpu.vector_store %arg24[%c0_75, %c16], %151 {strides = array<i32>} : memref<16x32xf32, #tpu.memory_space<vmem>>, vector<16x8xf32>,
    %153 = vector.extract_strided_slice %34 {offsets = [0, 0, 24], sizes = [2, 8, 8], strides = [1, 1, 1]} : vector<2x8x32xbf16> to vector<2x8x8xbf16>
    %cst_76 = arith.constant 0xFF800000 : f32
    %154 = vector.broadcast %cst_76 : f32 to vector<2x8x1xf32>
    %cst_77 = arith.constant 0.000000e+00 : f32
    %155 = vector.broadcast %cst_77 : f32 to vector<2x8x1xf32>
    %cst_78 = arith.constant 0.000000e+00 : f32
    %156 = vector.broadcast %cst_78 : f32 to vector<2x8x8xf32>
    %157 = vector.extract_strided_slice %36 {offsets = [0, 0, 24], sizes = [2, 8, 8], strides = [1, 1, 1]} : vector<2x8x32xbf16> to vector<2x8x8xbf16>
    %158 = vector.extract_strided_slice %38 {offsets = [0, 0, 24], sizes = [2, 8, 8], strides = [1, 1, 1]} : vector<2x8x32xbf16> to vector<2x8x8xbf16>
    "tpu.trace_start"() <{level = 10 : i32, message = "bqd,bkd->bqk"}> : () -> ()
    %cst_79 = arith.constant dense<0.000000e+00> : vector<2x8x8xf32>
    %159 = tpu.matmul %153, %157, %cst_79 {dimension_numbers = #tpu.dot_dimension_numbers<[2], [2], [1], [1], [0, 0, 0, 1, 1, 1], [0], [0]>} : vector<2x8x8xbf16>, vector<2x8x8xbf16>, vector<2x8x8xf32> -> vector<2x8x8xf32>
    "tpu.trace_stop"() : () -> ()
    %160 = tpu.iota {dimensions = array<i32: 0>} : vector<8x8xi32>
    %161 = tpu.iota {dimensions = array<i32: 1>} : vector<8x8xi32>
    %c0_i32_80 = arith.constant 0 : i32
    %162 = vector.broadcast %c0_i32_80 : i32 to vector<8x8xi32>
    %163 = arith.addi %162, %161 : vector<8x8xi32>
    %164 = arith.cmpi sle, %163, %160 : vector<8x8xi32>
    %cst_81 = arith.constant -1.000000e+30 : f32
    %165 = vector.shape_cast %164 : vector<8x8xi1> to vector<1x8x8xi1>
    %166 = vector.broadcast %165 : vector<1x8x8xi1> to vector<2x8x8xi1>
    %167 = vector.broadcast %cst_81 : f32 to vector<2x8x8xf32>
    %168 = arith.select %166, %159, %167 : vector<2x8x8xi1>, vector<2x8x8xf32>
    %cst_82 = arith.constant dense<0xFF800000> : vector<2x8xf32>
    %169 = vector.multi_reduction <maximumf>, %168, %cst_82 [2] : vector<2x8x8xf32> to vector<2x8xf32>
    %170 = vector.shape_cast %169 : vector<2x8xf32> to vector<2x8x1xf32>
    %171 = arith.maximumf %154, %170 : vector<2x8x1xf32>
    %172 = arith.subf %154, %171 : vector<2x8x1xf32>
    %173 = math.exp %172 : vector<2x8x1xf32>
    %174 = vector.broadcast %171 : vector<2x8x1xf32> to vector<2x8x8xf32>
    %175 = arith.subf %168, %174 : vector<2x8x8xf32>
    %176 = math.exp %175 : vector<2x8x8xf32>
    %177 = arith.mulf %173, %155 : vector<2x8x1xf32>
    %cst_83 = arith.constant dense<0.000000e+00> : vector<2x8xf32>
    %178 = vector.multi_reduction <add>, %176, %cst_83 [2] : vector<2x8x8xf32> to vector<2x8xf32>
    %179 = vector.shape_cast %178 : vector<2x8xf32> to vector<2x8x1xf32>
    %180 = arith.addf %177, %179 : vector<2x8x1xf32>
    %181 = vector.broadcast %173 : vector<2x8x1xf32> to vector<2x8x8xf32>
    %182 = arith.mulf %181, %156 : vector<2x8x8xf32>
    %183 = arith.truncf %176 : vector<2x8x8xf32> to vector<2x8x8xbf16>
    "tpu.trace_start"() <{level = 10 : i32, message = "bqk,bkd->bqd"}> : () -> ()
    %cst_84 = arith.constant dense<0.000000e+00> : vector<2x8x8xf32>
    %184 = tpu.matmul %183, %158, %cst_84 {dimension_numbers = #tpu.dot_dimension_numbers<[2], [1], [1], [2], [0, 0, 0, 1, 1, 2], [0], [0]>} : vector<2x8x8xbf16>, vector<2x8x8xbf16>, vector<2x8x8xf32> -> vector<2x8x8xf32>
    "tpu.trace_stop"() : () -> ()
    %185 = arith.addf %182, %184 : vector<2x8x8xf32>
    %186 = tpu.reciprocal %180 {approx = true} : vector<2x8x1xf32> -> vector<2x8x1xf32>
    %187 = vector.broadcast %186 : vector<2x8x1xf32> to vector<2x8x8xf32>
    %188 = arith.mulf %185, %187 : vector<2x8x8xf32>
    %189 = vector.shape_cast %188 : vector<2x8x8xf32> to vector<16x8xf32>
    %c0_85 = arith.constant 0 : index
    %c24 = arith.constant 24 : index
    %190 = vector.load %arg24[%c0_85, %c24] : memref<16x32xf32, #tpu.memory_space<vmem>>, vector<16x8xf32>
    tpu.vector_store %arg24[%c0_85, %c24], %189 {strides = array<i32>} : memref<16x32xf32, #tpu.memory_space<vmem>>, vector<16x8xf32>,
    %c0_86 = arith.constant 0 : index
    %c0_87 = arith.constant 0 : index
    %191 = vector.load %arg24[%c0_86, %c0_87] : memref<16x32xf32, #tpu.memory_space<vmem>>, vector<16x32xf32>
    %192 = arith.truncf %191 : vector<16x32xf32> to vector<16x32xbf16>
    %cst_88 = arith.constant dense<0.000000e+00> : vector<16x32xf32>
    %193 = tpu.matmul %192, %2, %cst_88 {dimension_numbers = #tpu.dot_dimension_numbers<[1], [0], [0], [1], [0, 0, 1, 1], [], []>} : vector<16x32xbf16>, vector<32x32xbf16>, vector<16x32xf32> -> vector<16x32xf32>
    %194 = vector.broadcast %3 : vector<1x32xf32> to vector<16x32xf32>
    %195 = arith.addf %193, %194 : vector<16x32xf32>
    %196 = arith.addf %21, %195 : vector<16x32xf32>
    %cst_89 = arith.constant dense<0.000000e+00> : vector<16xf32>
    %197 = vector.multi_reduction <add>, %196, %cst_89 [1] : vector<16x32xf32> to vector<16xf32>
    %198 = vector.shape_cast %197 : vector<16xf32> to vector<16x1xf32>
    %cst_90 = arith.constant 3.200000e+01 : f32
    %199 = vector.broadcast %cst_90 : f32 to vector<16x1xf32>
    %200 = arith.divf %198, %199 : vector<16x1xf32>
    %201 = vector.broadcast %200 : vector<16x1xf32> to vector<16x32xf32>
    %202 = arith.subf %196, %201 : vector<16x32xf32>
    %203 = arith.mulf %202, %202 : vector<16x32xf32>
    %cst_91 = arith.constant dense<0.000000e+00> : vector<16xf32>
    %204 = vector.multi_reduction <add>, %203, %cst_91 [1] : vector<16x32xf32> to vector<16xf32>
    %205 = vector.shape_cast %204 : vector<16xf32> to vector<16x1xf32>
    %cst_92 = arith.constant 3.200000e+01 : f32
    %206 = vector.broadcast %cst_92 : f32 to vector<16x1xf32>
    %207 = arith.divf %205, %206 : vector<16x1xf32>
    %208 = vector.broadcast %200 : vector<16x1xf32> to vector<16x32xf32>
    %209 = arith.subf %196, %208 : vector<16x32xf32>
    %cst_93 = arith.constant 9.99999974E-6 : f32
    %210 = vector.broadcast %cst_93 : f32 to vector<16x1xf32>
    %211 = arith.addf %207, %210 : vector<16x1xf32>
    %212 = math.rsqrt %211 : vector<16x1xf32>
    %213 = vector.broadcast %212 : vector<16x1xf32> to vector<16x32xf32>
    %214 = arith.mulf %209, %213 : vector<16x32xf32>
    %215 = vector.broadcast %14 : vector<1x32xf32> to vector<16x32xf32>
    %216 = arith.mulf %214, %215 : vector<16x32xf32>
    %217 = vector.broadcast %15 : vector<1x32xf32> to vector<16x32xf32>
    %218 = arith.addf %216, %217 : vector<16x32xf32>
    %219 = arith.truncf %218 : vector<16x32xf32> to vector<16x32xbf16>
    %cst_94 = arith.constant dense<0.000000e+00> : vector<16x32xf32>
    %220 = tpu.matmul %219, %4, %cst_94 {dimension_numbers = #tpu.dot_dimension_numbers<[1], [0], [0], [1], [0, 0, 1, 1], [], []>} : vector<16x32xbf16>, vector<32x32xbf16>, vector<16x32xf32> -> vector<16x32xf32>
    %221 = vector.broadcast %5 : vector<1x32xf32> to vector<16x32xf32>
    %222 = arith.addf %220, %221 : vector<16x32xf32>
    %223 = arith.truncf %23 : vector<16x32xf32> to vector<16x32xbf16>
    %cst_95 = arith.constant dense<0.000000e+00> : vector<16x64xf32>
    %224 = tpu.matmul %223, %6, %cst_95 {dimension_numbers = #tpu.dot_dimension_numbers<[1], [0], [0], [1], [0, 0, 1, 1], [], []>} : vector<16x32xbf16>, vector<32x64xbf16>, vector<16x64xf32> -> vector<16x64xf32>
    %225 = vector.broadcast %7 : vector<1x64xf32> to vector<16x64xf32>
    %226 = arith.addf %224, %225 : vector<16x64xf32>
    %227 = vector.extract_strided_slice %226 {offsets = [0, 0], sizes = [16, 32], strides = [1, 1]} : vector<16x64xf32> to vector<16x32xf32>
    %228 = vector.extract_strided_slice %226 {offsets = [0, 32], sizes = [16, 32], strides = [1, 1]} : vector<16x64xf32> to vector<16x32xf32>
    %cst_96 = arith.constant 0.353553385 : f32
    %229 = vector.broadcast %cst_96 : f32 to vector<16x32xf32>
    %230 = arith.mulf %222, %229 : vector<16x32xf32>
    %231 = arith.truncf %230 : vector<16x32xf32> to vector<16x32xbf16>
    %232 = vector.shape_cast %231 : vector<16x32xbf16> to vector<2x8x32xbf16>
    %233 = arith.truncf %227 : vector<16x32xf32> to vector<16x32xbf16>
    %234 = vector.shape_cast %233 : vector<16x32xbf16> to vector<2x8x32xbf16>
    %235 = arith.truncf %228 : vector<16x32xf32> to vector<16x32xbf16>
    %236 = vector.shape_cast %235 : vector<16x32xbf16> to vector<2x8x32xbf16>
    %237 = vector.extract_strided_slice %232 {offsets = [0, 0, 0], sizes = [2, 8, 8], strides = [1, 1, 1]} : vector<2x8x32xbf16> to vector<2x8x8xbf16>
    %cst_97 = arith.constant 0xFF800000 : f32
    %238 = vector.broadcast %cst_97 : f32 to vector<2x8x1xf32>
    %cst_98 = arith.constant 0.000000e+00 : f32
    %239 = vector.broadcast %cst_98 : f32 to vector<2x8x1xf32>
    %cst_99 = arith.constant 0.000000e+00 : f32
    %240 = vector.broadcast %cst_99 : f32 to vector<2x8x8xf32>
    %241 = vector.extract_strided_slice %234 {offsets = [0, 0, 0], sizes = [2, 8, 8], strides = [1, 1, 1]} : vector<2x8x32xbf16> to vector<2x8x8xbf16>
    %242 = vector.extract_strided_slice %236 {offsets = [0, 0, 0], sizes = [2, 8, 8], strides = [1, 1, 1]} : vector<2x8x32xbf16> to vector<2x8x8xbf16>
    "tpu.trace_start"() <{level = 10 : i32, message = "bqd,bkd->bqk"}> : () -> ()
    %cst_100 = arith.constant dense<0.000000e+00> : vector<2x8x8xf32>
    %243 = tpu.matmul %237, %241, %cst_100 {dimension_numbers = #tpu.dot_dimension_numbers<[2], [2], [1], [1], [0, 0, 0, 1, 1, 1], [0], [0]>} : vector<2x8x8xbf16>, vector<2x8x8xbf16>, vector<2x8x8xf32> -> vector<2x8x8xf32>
    "tpu.trace_stop"() : () -> ()
    %cst_101 = arith.constant dense<0xFF800000> : vector<2x8xf32>
    %244 = vector.multi_reduction <maximumf>, %243, %cst_101 [2] : vector<2x8x8xf32> to vector<2x8xf32>
    %245 = vector.shape_cast %244 : vector<2x8xf32> to vector<2x8x1xf32>
    %246 = arith.maximumf %238, %245 : vector<2x8x1xf32>
    %247 = arith.subf %238, %246 : vector<2x8x1xf32>
    %248 = math.exp %247 : vector<2x8x1xf32>
    %249 = vector.broadcast %246 : vector<2x8x1xf32> to vector<2x8x8xf32>
    %250 = arith.subf %243, %249 : vector<2x8x8xf32>
    %251 = math.exp %250 : vector<2x8x8xf32>
    %252 = arith.mulf %248, %239 : vector<2x8x1xf32>
    %cst_102 = arith.constant dense<0.000000e+00> : vector<2x8xf32>
    %253 = vector.multi_reduction <add>, %251, %cst_102 [2] : vector<2x8x8xf32> to vector<2x8xf32>
    %254 = vector.shape_cast %253 : vector<2x8xf32> to vector<2x8x1xf32>
    %255 = arith.addf %252, %254 : vector<2x8x1xf32>
    %256 = vector.broadcast %248 : vector<2x8x1xf32> to vector<2x8x8xf32>
    %257 = arith.mulf %256, %240 : vector<2x8x8xf32>
    %258 = arith.truncf %251 : vector<2x8x8xf32> to vector<2x8x8xbf16>
    "tpu.trace_start"() <{level = 10 : i32, message = "bqk,bkd->bqd"}> : () -> ()
    %cst_103 = arith.constant dense<0.000000e+00> : vector<2x8x8xf32>
    %259 = tpu.matmul %258, %242, %cst_103 {dimension_numbers = #tpu.dot_dimension_numbers<[2], [1], [1], [2], [0, 0, 0, 1, 1, 2], [0], [0]>} : vector<2x8x8xbf16>, vector<2x8x8xbf16>, vector<2x8x8xf32> -> vector<2x8x8xf32>
    "tpu.trace_stop"() : () -> ()
    %260 = arith.addf %257, %259 : vector<2x8x8xf32>
    %261 = tpu.reciprocal %255 {approx = true} : vector<2x8x1xf32> -> vector<2x8x1xf32>
    %262 = vector.broadcast %261 : vector<2x8x1xf32> to vector<2x8x8xf32>
    %263 = arith.mulf %260, %262 : vector<2x8x8xf32>
    %264 = vector.shape_cast %263 : vector<2x8x8xf32> to vector<16x8xf32>
    %c0_104 = arith.constant 0 : index
    %c0_105 = arith.constant 0 : index
    %265 = vector.load %arg24[%c0_104, %c0_105] : memref<16x32xf32, #tpu.memory_space<vmem>>, vector<16x8xf32>
    tpu.vector_store %arg24[%c0_104, %c0_105], %264 {strides = array<i32>} : memref<16x32xf32, #tpu.memory_space<vmem>>, vector<16x8xf32>,
    %266 = vector.extract_strided_slice %232 {offsets = [0, 0, 8], sizes = [2, 8, 8], strides = [1, 1, 1]} : vector<2x8x32xbf16> to vector<2x8x8xbf16>
    %cst_106 = arith.constant 0xFF800000 : f32
    %267 = vector.broadcast %cst_106 : f32 to vector<2x8x1xf32>
    %cst_107 = arith.constant 0.000000e+00 : f32
    %268 = vector.broadcast %cst_107 : f32 to vector<2x8x1xf32>
    %cst_108 = arith.constant 0.000000e+00 : f32
    %269 = vector.broadcast %cst_108 : f32 to vector<2x8x8xf32>
    %270 = vector.extract_strided_slice %234 {offsets = [0, 0, 8], sizes = [2, 8, 8], strides = [1, 1, 1]} : vector<2x8x32xbf16> to vector<2x8x8xbf16>
    %271 = vector.extract_strided_slice %236 {offsets = [0, 0, 8], sizes = [2, 8, 8], strides = [1, 1, 1]} : vector<2x8x32xbf16> to vector<2x8x8xbf16>
    "tpu.trace_start"() <{level = 10 : i32, message = "bqd,bkd->bqk"}> : () -> ()
    %cst_109 = arith.constant dense<0.000000e+00> : vector<2x8x8xf32>
    %272 = tpu.matmul %266, %270, %cst_109 {dimension_numbers = #tpu.dot_dimension_numbers<[2], [2], [1], [1], [0, 0, 0, 1, 1, 1], [0], [0]>} : vector<2x8x8xbf16>, vector<2x8x8xbf16>, vector<2x8x8xf32> -> vector<2x8x8xf32>
    "tpu.trace_stop"() : () -> ()
    %cst_110 = arith.constant dense<0xFF800000> : vector<2x8xf32>
    %273 = vector.multi_reduction <maximumf>, %272, %cst_110 [2] : vector<2x8x8xf32> to vector<2x8xf32>
    %274 = vector.shape_cast %273 : vector<2x8xf32> to vector<2x8x1xf32>
    %275 = arith.maximumf %267, %274 : vector<2x8x1xf32>
    %276 = arith.subf %267, %275 : vector<2x8x1xf32>
    %277 = math.exp %276 : vector<2x8x1xf32>
    %278 = vector.broadcast %275 : vector<2x8x1xf32> to vector<2x8x8xf32>
    %279 = arith.subf %272, %278 : vector<2x8x8xf32>
    %280 = math.exp %279 : vector<2x8x8xf32>
    %281 = arith.mulf %277, %268 : vector<2x8x1xf32>
    %cst_111 = arith.constant dense<0.000000e+00> : vector<2x8xf32>
    %282 = vector.multi_reduction <add>, %280, %cst_111 [2] : vector<2x8x8xf32> to vector<2x8xf32>
    %283 = vector.shape_cast %282 : vector<2x8xf32> to vector<2x8x1xf32>
    %284 = arith.addf %281, %283 : vector<2x8x1xf32>
    %285 = vector.broadcast %277 : vector<2x8x1xf32> to vector<2x8x8xf32>
    %286 = arith.mulf %285, %269 : vector<2x8x8xf32>
    %287 = arith.truncf %280 : vector<2x8x8xf32> to vector<2x8x8xbf16>
    "tpu.trace_start"() <{level = 10 : i32, message = "bqk,bkd->bqd"}> : () -> ()
    %cst_112 = arith.constant dense<0.000000e+00> : vector<2x8x8xf32>
    %288 = tpu.matmul %287, %271, %cst_112 {dimension_numbers = #tpu.dot_dimension_numbers<[2], [1], [1], [2], [0, 0, 0, 1, 1, 2], [0], [0]>} : vector<2x8x8xbf16>, vector<2x8x8xbf16>, vector<2x8x8xf32> -> vector<2x8x8xf32>
    "tpu.trace_stop"() : () -> ()
    %289 = arith.addf %286, %288 : vector<2x8x8xf32>
    %290 = tpu.reciprocal %284 {approx = true} : vector<2x8x1xf32> -> vector<2x8x1xf32>
    %291 = vector.broadcast %290 : vector<2x8x1xf32> to vector<2x8x8xf32>
    %292 = arith.mulf %289, %291 : vector<2x8x8xf32>
    %293 = vector.shape_cast %292 : vector<2x8x8xf32> to vector<16x8xf32>
    %c0_113 = arith.constant 0 : index
    %c8_114 = arith.constant 8 : index
    %294 = vector.load %arg24[%c0_113, %c8_114] : memref<16x32xf32, #tpu.memory_space<vmem>>, vector<16x8xf32>
    tpu.vector_store %arg24[%c0_113, %c8_114], %293 {strides = array<i32>} : memref<16x32xf32, #tpu.memory_space<vmem>>, vector<16x8xf32>,
    %295 = vector.extract_strided_slice %232 {offsets = [0, 0, 16], sizes = [2, 8, 8], strides = [1, 1, 1]} : vector<2x8x32xbf16> to vector<2x8x8xbf16>
    %cst_115 = arith.constant 0xFF800000 : f32
    %296 = vector.broadcast %cst_115 : f32 to vector<2x8x1xf32>
    %cst_116 = arith.constant 0.000000e+00 : f32
    %297 = vector.broadcast %cst_116 : f32 to vector<2x8x1xf32>
    %cst_117 = arith.constant 0.000000e+00 : f32
    %298 = vector.broadcast %cst_117 : f32 to vector<2x8x8xf32>
    %299 = vector.extract_strided_slice %234 {offsets = [0, 0, 16], sizes = [2, 8, 8], strides = [1, 1, 1]} : vector<2x8x32xbf16> to vector<2x8x8xbf16>
    %300 = vector.extract_strided_slice %236 {offsets = [0, 0, 16], sizes = [2, 8, 8], strides = [1, 1, 1]} : vector<2x8x32xbf16> to vector<2x8x8xbf16>
    "tpu.trace_start"() <{level = 10 : i32, message = "bqd,bkd->bqk"}> : () -> ()
    %cst_118 = arith.constant dense<0.000000e+00> : vector<2x8x8xf32>
    %301 = tpu.matmul %295, %299, %cst_118 {dimension_numbers = #tpu.dot_dimension_numbers<[2], [2], [1], [1], [0, 0, 0, 1, 1, 1], [0], [0]>} : vector<2x8x8xbf16>, vector<2x8x8xbf16>, vector<2x8x8xf32> -> vector<2x8x8xf32>
    "tpu.trace_stop"() : () -> ()
    %cst_119 = arith.constant dense<0xFF800000> : vector<2x8xf32>
    %302 = vector.multi_reduction <maximumf>, %301, %cst_119 [2] : vector<2x8x8xf32> to vector<2x8xf32>
    %303 = vector.shape_cast %302 : vector<2x8xf32> to vector<2x8x1xf32>
    %304 = arith.maximumf %296, %303 : vector<2x8x1xf32>
    %305 = arith.subf %296, %304 : vector<2x8x1xf32>
    %306 = math.exp %305 : vector<2x8x1xf32>
    %307 = vector.broadcast %304 : vector<2x8x1xf32> to vector<2x8x8xf32>
    %308 = arith.subf %301, %307 : vector<2x8x8xf32>
    %309 = math.exp %308 : vector<2x8x8xf32>
    %310 = arith.mulf %306, %297 : vector<2x8x1xf32>
    %cst_120 = arith.constant dense<0.000000e+00> : vector<2x8xf32>
    %311 = vector.multi_reduction <add>, %309, %cst_120 [2] : vector<2x8x8xf32> to vector<2x8xf32>
    %312 = vector.shape_cast %311 : vector<2x8xf32> to vector<2x8x1xf32>
    %313 = arith.addf %310, %312 : vector<2x8x1xf32>
    %314 = vector.broadcast %306 : vector<2x8x1xf32> to vector<2x8x8xf32>
    %315 = arith.mulf %314, %298 : vector<2x8x8xf32>
    %316 = arith.truncf %309 : vector<2x8x8xf32> to vector<2x8x8xbf16>
    "tpu.trace_start"() <{level = 10 : i32, message = "bqk,bkd->bqd"}> : () -> ()
    %cst_121 = arith.constant dense<0.000000e+00> : vector<2x8x8xf32>
    %317 = tpu.matmul %316, %300, %cst_121 {dimension_numbers = #tpu.dot_dimension_numbers<[2], [1], [1], [2], [0, 0, 0, 1, 1, 2], [0], [0]>} : vector<2x8x8xbf16>, vector<2x8x8xbf16>, vector<2x8x8xf32> -> vector<2x8x8xf32>
    "tpu.trace_stop"() : () -> ()
    %318 = arith.addf %315, %317 : vector<2x8x8xf32>
    %319 = tpu.reciprocal %313 {approx = true} : vector<2x8x1xf32> -> vector<2x8x1xf32>
    %320 = vector.broadcast %319 : vector<2x8x1xf32> to vector<2x8x8xf32>
    %321 = arith.mulf %318, %320 : vector<2x8x8xf32>
    %322 = vector.shape_cast %321 : vector<2x8x8xf32> to vector<16x8xf32>
    %c0_122 = arith.constant 0 : index
    %c16_123 = arith.constant 16 : index
    %323 = vector.load %arg24[%c0_122, %c16_123] : memref<16x32xf32, #tpu.memory_space<vmem>>, vector<16x8xf32>
    tpu.vector_store %arg24[%c0_122, %c16_123], %322 {strides = array<i32>} : memref<16x32xf32, #tpu.memory_space<vmem>>, vector<16x8xf32>,
    %324 = vector.extract_strided_slice %232 {offsets = [0, 0, 24], sizes = [2, 8, 8], strides = [1, 1, 1]} : vector<2x8x32xbf16> to vector<2x8x8xbf16>
    %cst_124 = arith.constant 0xFF800000 : f32
    %325 = vector.broadcast %cst_124 : f32 to vector<2x8x1xf32>
    %cst_125 = arith.constant 0.000000e+00 : f32
    %326 = vector.broadcast %cst_125 : f32 to vector<2x8x1xf32>
    %cst_126 = arith.constant 0.000000e+00 : f32
    %327 = vector.broadcast %cst_126 : f32 to vector<2x8x8xf32>
    %328 = vector.extract_strided_slice %234 {offsets = [0, 0, 24], sizes = [2, 8, 8], strides = [1, 1, 1]} : vector<2x8x32xbf16> to vector<2x8x8xbf16>
    %329 = vector.extract_strided_slice %236 {offsets = [0, 0, 24], sizes = [2, 8, 8], strides = [1, 1, 1]} : vector<2x8x32xbf16> to vector<2x8x8xbf16>
    "tpu.trace_start"() <{level = 10 : i32, message = "bqd,bkd->bqk"}> : () -> ()
    %cst_127 = arith.constant dense<0.000000e+00> : vector<2x8x8xf32>
    %330 = tpu.matmul %324, %328, %cst_127 {dimension_numbers = #tpu.dot_dimension_numbers<[2], [2], [1], [1], [0, 0, 0, 1, 1, 1], [0], [0]>} : vector<2x8x8xbf16>, vector<2x8x8xbf16>, vector<2x8x8xf32> -> vector<2x8x8xf32>
    "tpu.trace_stop"() : () -> ()
    %cst_128 = arith.constant dense<0xFF800000> : vector<2x8xf32>
    %331 = vector.multi_reduction <maximumf>, %330, %cst_128 [2] : vector<2x8x8xf32> to vector<2x8xf32>
    %332 = vector.shape_cast %331 : vector<2x8xf32> to vector<2x8x1xf32>
    %333 = arith.maximumf %325, %332 : vector<2x8x1xf32>
    %334 = arith.subf %325, %333 : vector<2x8x1xf32>
    %335 = math.exp %334 : vector<2x8x1xf32>
    %336 = vector.broadcast %333 : vector<2x8x1xf32> to vector<2x8x8xf32>
    %337 = arith.subf %330, %336 : vector<2x8x8xf32>
    %338 = math.exp %337 : vector<2x8x8xf32>
    %339 = arith.mulf %335, %326 : vector<2x8x1xf32>
    %cst_129 = arith.constant dense<0.000000e+00> : vector<2x8xf32>
    %340 = vector.multi_reduction <add>, %338, %cst_129 [2] : vector<2x8x8xf32> to vector<2x8xf32>
    %341 = vector.shape_cast %340 : vector<2x8xf32> to vector<2x8x1xf32>
    %342 = arith.addf %339, %341 : vector<2x8x1xf32>
    %343 = vector.broadcast %335 : vector<2x8x1xf32> to vector<2x8x8xf32>
    %344 = arith.mulf %343, %327 : vector<2x8x8xf32>
    %345 = arith.truncf %338 : vector<2x8x8xf32> to vector<2x8x8xbf16>
    "tpu.trace_start"() <{level = 10 : i32, message = "bqk,bkd->bqd"}> : () -> ()
    %cst_130 = arith.constant dense<0.000000e+00> : vector<2x8x8xf32>
    %346 = tpu.matmul %345, %329, %cst_130 {dimension_numbers = #tpu.dot_dimension_numbers<[2], [1], [1], [2], [0, 0, 0, 1, 1, 2], [0], [0]>} : vector<2x8x8xbf16>, vector<2x8x8xbf16>, vector<2x8x8xf32> -> vector<2x8x8xf32>
    "tpu.trace_stop"() : () -> ()
    %347 = arith.addf %344, %346 : vector<2x8x8xf32>
    %348 = tpu.reciprocal %342 {approx = true} : vector<2x8x1xf32> -> vector<2x8x1xf32>
    %349 = vector.broadcast %348 : vector<2x8x1xf32> to vector<2x8x8xf32>
    %350 = arith.mulf %347, %349 : vector<2x8x8xf32>
    %351 = vector.shape_cast %350 : vector<2x8x8xf32> to vector<16x8xf32>
    %c0_131 = arith.constant 0 : index
    %c24_132 = arith.constant 24 : index
    %352 = vector.load %arg24[%c0_131, %c24_132] : memref<16x32xf32, #tpu.memory_space<vmem>>, vector<16x8xf32>
    tpu.vector_store %arg24[%c0_131, %c24_132], %351 {strides = array<i32>} : memref<16x32xf32, #tpu.memory_space<vmem>>, vector<16x8xf32>,
    %c0_133 = arith.constant 0 : index
    %c0_134 = arith.constant 0 : index
    %353 = vector.load %arg24[%c0_133, %c0_134] : memref<16x32xf32, #tpu.memory_space<vmem>>, vector<16x32xf32>
    %354 = arith.truncf %353 : vector<16x32xf32> to vector<16x32xbf16>
    %cst_135 = arith.constant dense<0.000000e+00> : vector<16x32xf32>
    %355 = tpu.matmul %354, %8, %cst_135 {dimension_numbers = #tpu.dot_dimension_numbers<[1], [0], [0], [1], [0, 0, 1, 1], [], []>} : vector<16x32xbf16>, vector<32x32xbf16>, vector<16x32xf32> -> vector<16x32xf32>
    %356 = vector.broadcast %9 : vector<1x32xf32> to vector<16x32xf32>
    %357 = arith.addf %355, %356 : vector<16x32xf32>
    %358 = arith.addf %218, %357 : vector<16x32xf32>
    %cst_136 = arith.constant dense<0.000000e+00> : vector<16xf32>
    %359 = vector.multi_reduction <add>, %358, %cst_136 [1] : vector<16x32xf32> to vector<16xf32>
    %360 = vector.shape_cast %359 : vector<16xf32> to vector<16x1xf32>
    %cst_137 = arith.constant 3.200000e+01 : f32
    %361 = vector.broadcast %cst_137 : f32 to vector<16x1xf32>
    %362 = arith.divf %360, %361 : vector<16x1xf32>
    %363 = vector.broadcast %362 : vector<16x1xf32> to vector<16x32xf32>
    %364 = arith.subf %358, %363 : vector<16x32xf32>
    %365 = arith.mulf %364, %364 : vector<16x32xf32>
    %cst_138 = arith.constant dense<0.000000e+00> : vector<16xf32>
    %366 = vector.multi_reduction <add>, %365, %cst_138 [1] : vector<16x32xf32> to vector<16xf32>
    %367 = vector.shape_cast %366 : vector<16xf32> to vector<16x1xf32>
    %cst_139 = arith.constant 3.200000e+01 : f32
    %368 = vector.broadcast %cst_139 : f32 to vector<16x1xf32>
    %369 = arith.divf %367, %368 : vector<16x1xf32>
    %370 = vector.broadcast %362 : vector<16x1xf32> to vector<16x32xf32>
    %371 = arith.subf %358, %370 : vector<16x32xf32>
    %cst_140 = arith.constant 9.99999974E-6 : f32
    %372 = vector.broadcast %cst_140 : f32 to vector<16x1xf32>
    %373 = arith.addf %369, %372 : vector<16x1xf32>
    %374 = math.rsqrt %373 : vector<16x1xf32>
    %375 = vector.broadcast %374 : vector<16x1xf32> to vector<16x32xf32>
    %376 = arith.mulf %371, %375 : vector<16x32xf32>
    %377 = vector.broadcast %16 : vector<1x32xf32> to vector<16x32xf32>
    %378 = arith.mulf %376, %377 : vector<16x32xf32>
    %379 = vector.broadcast %17 : vector<1x32xf32> to vector<16x32xf32>
    %380 = arith.addf %378, %379 : vector<16x32xf32>
    %381 = arith.truncf %380 : vector<16x32xf32> to vector<16x32xbf16>
    %cst_141 = arith.constant dense<0.000000e+00> : vector<16x64xf32>
    %382 = tpu.matmul %381, %10, %cst_141 {dimension_numbers = #tpu.dot_dimension_numbers<[1], [0], [0], [1], [0, 0, 1, 1], [], []>} : vector<16x32xbf16>, vector<32x64xbf16>, vector<16x64xf32> -> vector<16x64xf32>
    %383 = vector.broadcast %11 : vector<1x64xf32> to vector<16x64xf32>
    %384 = arith.addf %382, %383 : vector<16x64xf32>
    %cst_142 = arith.constant 0.000000e+00 : f32
    %385 = vector.broadcast %cst_142 : f32 to vector<16x64xf32>
    %386 = arith.maximumf %384, %385 : vector<16x64xf32>
    %387 = arith.truncf %386 : vector<16x64xf32> to vector<16x64xbf16>
    %cst_143 = arith.constant dense<0.000000e+00> : vector<16x32xf32>
    %388 = tpu.matmul %387, %12, %cst_143 {dimension_numbers = #tpu.dot_dimension_numbers<[1], [0], [0], [1], [0, 0, 1, 1], [], []>} : vector<16x64xbf16>, vector<64x32xbf16>, vector<16x32xf32> -> vector<16x32xf32>
    %389 = vector.broadcast %13 : vector<1x32xf32> to vector<16x32xf32>
    %390 = arith.addf %388, %389 : vector<16x32xf32>
    %391 = arith.addf %380, %390 : vector<16x32xf32>
    %cst_144 = arith.constant dense<0.000000e+00> : vector<16xf32>
    %392 = vector.multi_reduction <add>, %391, %cst_144 [1] : vector<16x32xf32> to vector<16xf32>
    %393 = vector.shape_cast %392 : vector<16xf32> to vector<16x1xf32>
    %cst_145 = arith.constant 3.200000e+01 : f32
    %394 = vector.broadcast %cst_145 : f32 to vector<16x1xf32>
    %395 = arith.divf %393, %394 : vector<16x1xf32>
    %396 = vector.broadcast %395 : vector<16x1xf32> to vector<16x32xf32>
    %397 = arith.subf %391, %396 : vector<16x32xf32>
    %398 = arith.mulf %397, %397 : vector<16x32xf32>
    %cst_146 = arith.constant dense<0.000000e+00> : vector<16xf32>
    %399 = vector.multi_reduction <add>, %398, %cst_146 [1] : vector<16x32xf32> to vector<16xf32>
    %400 = vector.shape_cast %399 : vector<16xf32> to vector<16x1xf32>
    %cst_147 = arith.constant 3.200000e+01 : f32
    %401 = vector.broadcast %cst_147 : f32 to vector<16x1xf32>
    %402 = arith.divf %400, %401 : vector<16x1xf32>
    %403 = vector.broadcast %395 : vector<16x1xf32> to vector<16x32xf32>
    %404 = arith.subf %391, %403 : vector<16x32xf32>
    %cst_148 = arith.constant 9.99999974E-6 : f32
    %405 = vector.broadcast %cst_148 : f32 to vector<16x1xf32>
    %406 = arith.addf %402, %405 : vector<16x1xf32>
    %407 = math.rsqrt %406 : vector<16x1xf32>
    %408 = vector.broadcast %407 : vector<16x1xf32> to vector<16x32xf32>
    %409 = arith.mulf %404, %408 : vector<16x32xf32>
    %410 = vector.broadcast %18 : vector<1x32xf32> to vector<16x32xf32>
    %411 = arith.mulf %409, %410 : vector<16x32xf32>
    %412 = vector.broadcast %19 : vector<1x32xf32> to vector<16x32xf32>
    %413 = arith.addf %411, %412 : vector<16x32xf32>
    %414 = vector.shape_cast %413 : vector<16x32xf32> to vector<2x8x32xf32>
    %c0_149 = arith.constant 0 : index
    %c0_150 = arith.constant 0 : index
    %c0_151 = arith.constant 0 : index
    %415 = vector.load %arg23[%c0_149, %c0_150, %c0_151] : memref<2x8x32xf32, #tpu.memory_space<vmem>>, vector<2x8x32xf32>
    tpu.vector_store %arg23[%c0_149, %c0_150, %c0_151], %414 {strides = array<i32>} : memref<2x8x32xf32, #tpu.memory_space<vmem>>, vector<2x8x32xf32>,
    return
  }
  func.func @transform_0(%arg0: i32) -> (i32, i32, i32) {
    %c0_i32 = arith.constant 0 : i32
    %c0_i32_0 = arith.constant 0 : i32
    %c0_i32_1 = arith.constant 0 : i32
    return %arg0, %c0_i32, %c0_i32_0 : i32, i32, i32
  }
  func.func @transform_1(%arg0: i32) -> (i32, i32, i32) {
    %c0_i32 = arith.constant 0 : i32
    %c0_i32_0 = arith.constant 0 : i32
    %c0_i32_1 = arith.constant 0 : i32
    return %arg0, %c0_i32, %c0_i32_0 : i32, i32, i32
  }
  func.func @transform_2(%arg0: i32) -> (i32, i32) {
    %c0_i32 = arith.constant 0 : i32
    %c0_i32_0 = arith.constant 0 : i32
    %c0_i32_1 = arith.constant 0 : i32
    return %c0_i32, %c0_i32_0 : i32, i32
  }
  func.func @transform_3(%arg0: i32) -> (i32, i32) {
    %c0_i32 = arith.constant 0 : i32
    %c0_i32_0 = arith.constant 0 : i32
    %c0_i32_1 = arith.constant 0 : i32
    return %c0_i32, %c0_i32_0 : i32, i32
  }
  func.func @transform_4(%arg0: i32) -> (i32, i32) {
    %c0_i32 = arith.constant 0 : i32
    %c0_i32_0 = arith.constant 0 : i32
    %c0_i32_1 = arith.constant 0 : i32
    return %c0_i32, %c0_i32_0 : i32, i32
  }
  func.func @transform_5(%arg0: i32) -> (i32, i32) {
    %c0_i32 = arith.constant 0 : i32
    %c0_i32_0 = arith.constant 0 : i32
    %c0_i32_1 = arith.constant 0 : i32
    return %c0_i32, %c0_i32_0 : i32, i32
  }
  func.func @transform_6(%arg0: i32) -> (i32, i32) {
    %c0_i32 = arith.constant 0 : i32
    %c0_i32_0 = arith.constant 0 : i32
    %c0_i32_1 = arith.constant 0 : i32
    return %c0_i32, %c0_i32_0 : i32, i32
  }
  func.func @transform_7(%arg0: i32) -> (i32, i32) {
    %c0_i32 = arith.constant 0 : i32
    %c0_i32_0 = arith.constant 0 : i32
    %c0_i32_1 = arith.constant 0 : i32
    return %c0_i32, %c0_i32_0 : i32, i32
  }
  func.func @transform_8(%arg0: i32) -> (i32, i32) {
    %c0_i32 = arith.constant 0 : i32
    %c0_i32_0 = arith.constant 0 : i32
    %c0_i32_1 = arith.constant 0 : i32
    return %c0_i32, %c0_i32_0 : i32, i32
  }
  func.func @transform_9(%arg0: i32) -> (i32, i32) {
    %c0_i32 = arith.constant 0 : i32
    %c0_i32_0 = arith.constant 0 : i32
    %c0_i32_1 = arith.constant 0 : i32
    return %c0_i32, %c0_i32_0 : i32, i32
  }
  func.func @transform_10(%arg0: i32) -> (i32, i32) {
    %c0_i32 = arith.constant 0 : i32
    %c0_i32_0 = arith.constant 0 : i32
    %c0_i32_1 = arith.constant 0 : i32
    return %c0_i32, %c0_i32_0 : i32, i32
  }
  func.func @transform_11(%arg0: i32) -> (i32, i32) {
    %c0_i32 = arith.constant 0 : i32
    %c0_i32_0 = arith.constant 0 : i32
    %c0_i32_1 = arith.constant 0 : i32
    return %c0_i32, %c0_i32_0 : i32, i32
  }
  func.func @transform_12(%arg0: i32) -> (i32, i32) {
    %c0_i32 = arith.constant 0 : i32
    %c0_i32_0 = arith.constant 0 : i32
    %c0_i32_1 = arith.constant 0 : i32
    return %c0_i32, %c0_i32_0 : i32, i32
  }
  func.func @transform_13(%arg0: i32) -> (i32, i32) {
    %c0_i32 = arith.constant 0 : i32
    %c0_i32_0 = arith.constant 0 : i32
    %c0_i32_1 = arith.constant 0 : i32
    return %c0_i32, %c0_i32_0 : i32, i32
  }
  func.func @transform_14(%arg0: i32) -> (i32, i32) {
    %c0_i32 = arith.constant 0 : i32
    %c0_i32_0 = arith.constant 0 : i32
    %c0_i32_1 = arith.constant 0 : i32
    return %c0_i32, %c0_i32_0 : i32, i32
  }
  func.func @transform_15(%arg0: i32) -> (i32, i32) {
    %c0_i32 = arith.constant 0 : i32
    %c0_i32_0 = arith.constant 0 : i32
    %c0_i32_1 = arith.constant 0 : i32
    return %c0_i32, %c0_i32_0 : i32, i32
  }
  func.func @transform_16(%arg0: i32) -> (i32, i32) {
    %c0_i32 = arith.constant 0 : i32
    %c0_i32_0 = arith.constant 0 : i32
    %c0_i32_1 = arith.constant 0 : i32
    return %c0_i32, %c0_i32_0 : i32, i32
  }
  func.func @transform_17(%arg0: i32) -> (i32, i32) {
    %c0_i32 = arith.constant 0 : i32
    %c0_i32_0 = arith.constant 0 : i32
    %c0_i32_1 = arith.constant 0 : i32
    return %c0_i32, %c0_i32_0 : i32, i32
  }
  func.func @transform_18(%arg0: i32) -> (i32, i32) {
    %c0_i32 = arith.constant 0 : i32
    %c0_i32_0 = arith.constant 0 : i32
    %c0_i32_1 = arith.constant 0 : i32
    return %c0_i32, %c0_i32_0 : i32, i32
  }
  func.func @transform_19(%arg0: i32) -> (i32, i32) {
    %c0_i32 = arith.constant 0 : i32
    %c0_i32_0 = arith.constant 0 : i32
    %c0_i32_1 = arith.constant 0 : i32
    return %c0_i32, %c0_i32_0 : i32, i32
  }
  func.func @transform_20(%arg0: i32) -> (i32, i32) {
    %c0_i32 = arith.constant 0 : i32
    %c0_i32_0 = arith.constant 0 : i32
    %c0_i32_1 = arith.constant 0 : i32
    return %c0_i32, %c0_i32_0 : i32, i32
  }
  func.func @transform_21(%arg0: i32) -> (i32, i32) {
    %c0_i32 = arith.constant 0 : i32
    %c0_i32_0 = arith.constant 0 : i32
    %c0_i32_1 = arith.constant 0 : i32
    return %c0_i32, %c0_i32_0 : i32, i32
  }
  func.func @transform_22(%arg0: i32) -> (i32, i32, i32) {
    %c0_i32 = arith.constant 0 : i32
    %c0_i32_0 = arith.constant 0 : i32
    %c0_i32_1 = arith.constant 0 : i32
    return %arg0, %c0_i32, %c0_i32_0 : i32, i32, i32
  }
}

module attributes {stable_mosaic.version = 11 : i64} {
  func.func @_decoder_kernel(%arg0: i32, %arg1: memref<2x8x32xf32, #tpu.memory_space<vmem>>, %arg2: memref<2x8x32xf32, #tpu.memory_space<vmem>>, %arg3: memref<32x96xbf16, #tpu.memory_space<vmem>>, %arg4: memref<1x96xf32, #tpu.memory_space<vmem>>, %arg5: memref<32x32xbf16, #tpu.memory_space<vmem>>, %arg6: memref<1x32xf32, #tpu.memory_space<vmem>>, %arg7: memref<32x32xbf16, #tpu.memory_space<vmem>>, %arg8: memref<1x32xf32, #tpu.memory_space<vmem>>, %arg9: memref<32x64xbf16, #tpu.memory_space<vmem>>, %arg10: memref<1x64xf32, #tpu.memory_space<vmem>>, %arg11: memref<32x32xbf16, #tpu.memory_space<vmem>>, %arg12: memref<1x32xf32, #tpu.memory_space<vmem>>, %arg13: memref<32x64xbf16, #tpu.memory_space<vmem>>, %arg14: memref<1x64xf32, #tpu.memory_space<vmem>>, %arg15: memref<64x32xbf16, #tpu.memory_space<vmem>>, %arg16: memref<1x32xf32, #tpu.memory_space<vmem>>, %arg17: memref<1x32xf32, #tpu.memory_space<vmem>>, %arg18: memref<1x32xf32, #tpu.memory_space<vmem>>, %arg19: memref<1x32xf32, #tpu.memory_space<vmem>>, %arg20: memref<1x32xf32, #tpu.memory_space<vmem>>, %arg21: memref<1x32xf32, #tpu.memory_space<vmem>>, %arg22: memref<1x32xf32, #tpu.memory_space<vmem>>, %arg23: memref<2x8x32xf32, #tpu.memory_space<vmem>>, %arg24: memref<16x32xf32, #tpu.memory_space<vmem>>) attributes {dimension_semantics = [#tpu.dimension_semantics<parallel>], iteration_bounds = array<i64: 2>, scalar_prefetch = 0 : i64, scratch_operands = 1 : i64, tpu.core_type = #tpu.core_type<tc>, window_params = [{transform_indices = @transform_0, window_bounds = array<i64: 2, 8, 32>}, {transform_indices = @transform_1, window_bounds = array<i64: 2, 8, 32>}, {pipeline_mode = #tpu.pipeline_mode<synchronous>, transform_indices = @transform_2, window_bounds = array<i64: 32, 96>}, {pipeline_mode = #tpu.pipeline_mode<synchronous>, transform_indices = @transform_3, window_bounds = array<i64: 1, 96>}, {pipeline_mode = #tpu.pipeline_mode<synchronous>, transform_indices = @transform_4, window_bounds = array<i64: 32, 32>}, {pipeline_mode = #tpu.pipeline_mode<synchronous>, transform_indices = @transform_5, window_bounds = array<i64: 1, 32>}, {pipeline_mode = #tpu.pipeline_mode<synchronous>, transform_indices = @transform_6, window_bounds = array<i64: 32, 32>}, {pipeline_mode = #tpu.pipeline_mode<synchronous>, transform_indices = @transform_7, window_bounds = array<i64: 1, 32>}, {pipeline_mode = #tpu.pipeline_mode<synchronous>, transform_indices = @transform_8, window_bounds = array<i64: 32, 64>}, {pipeline_mode = #tpu.pipeline_mode<synchronous>, transform_indices = @transform_9, window_bounds = array<i64: 1, 64>}, {pipeline_mode = #tpu.pipeline_mode<synchronous>, transform_indices = @transform_10, window_bounds = array<i64: 32, 32>}, {pipeline_mode = #tpu.pipeline_mode<synchronous>, transform_indices = @transform_11, window_bounds = array<i64: 1, 32>}, {pipeline_mode = #tpu.pipeline_mode<synchronous>, transform_indices = @transform_12, window_bounds = array<i64: 32, 64>}, {pipeline_mode = #tpu.pipeline_mode<synchronous>, transform_indices = @transform_13, window_bounds = array<i64: 1, 64>}, {pipeline_mode = #tpu.pipeline_mode<synchronous>, transform_indices = @transform_14, window_bounds = array<i64: 64, 32>}, {pipeline_mode = #tpu.pipeline_mode<synchronous>, transform_indices = @transform_15, window_bounds = array<i64: 1, 32>}, {pipeline_mode = #tpu.pipeline_mode<synchronous>, transform_indices = @transform_16, window_bounds = array<i64: 1, 32>}, {pipeline_mode = #tpu.pipeline_mode<synchronous>, transform_indices = @transform_17, window_bounds = array<i64: 1, 32>}, {pipeline_mode = #tpu.pipeline_mode<synchronous>, transform_indices = @transform_18, window_bounds = array<i64: 1, 32>}, {pipeline_mode = #tpu.pipeline_mode<synchronous>, transform_indices = @transform_19, window_bounds = array<i64: 1, 32>}, {pipeline_mode = #tpu.pipeline_mode<synchronous>, transform_indices = @transform_20, window_bounds = array<i64: 1, 32>}, {pipeline_mode = #tpu.pipeline_mode<synchronous>, transform_indices = @transform_21, window_bounds = array<i64: 1, 32>}, {transform_indices = @transform_22, window_bounds = array<i64: 2, 8, 32>}]} {
    %c0 = arith.constant 0 : index
    %c0_0 = arith.constant 0 : index
    %0 = vector.load %arg3[%c0, %c0_0] : memref<32x96xbf16, #tpu.memory_space<vmem>>, vector<32x96xbf16>
    %c0_1 = arith.constant 0 : index
    %c0_2 = arith.constant 0 : index
    %1 = vector.load %arg4[%c0_1, %c0_2] : memref<1x96xf32, #tpu.memory_space<vmem>>, vector<1x96xf32>
    %c0_3 = arith.constant 0 : index
    %c0_4 = arith.constant 0 : index
    %2 = vector.load %arg5[%c0_3, %c0_4] : memref<32x32xbf16, #tpu.memory_space<vmem>>, vector<32x32xbf16>
    %c0_5 = arith.constant 0 : index
    %c0_6 = arith.constant 0 : index
    %3 = vector.load %arg6[%c0_5, %c0_6] : memref<1x32xf32, #tpu.memory_space<vmem>>, vector<1x32xf32>
    %c0_7 = arith.constant 0 : index
    %c0_8 = arith.constant 0 : index
    %4 = vector.load %arg7[%c0_7, %c0_8] : memref<32x32xbf16, #tpu.memory_space<vmem>>, vector<32x32xbf16>
    %c0_9 = arith.constant 0 : index
    %c0_10 = arith.constant 0 : index
    %5 = vector.load %arg8[%c0_9, %c0_10] : memref<1x32xf32, #tpu.memory_space<vmem>>, vector<1x32xf32>
    %c0_11 = arith.constant 0 : index
    %c0_12 = arith.constant 0 : index
    %6 = vector.load %arg9[%c0_11, %c0_12] : memref<32x64xbf16, #tpu.memory_space<vmem>>, vector<32x64xbf16>
    %c0_13 = arith.constant 0 : index
    %c0_14 = arith.constant 0 : index
    %7 = vector.load %arg10[%c0_13, %c0_14] : memref<1x64xf32, #tpu.memory_space<vmem>>, vector<1x64xf32>
    %c0_15 = arith.constant 0 : index
    %c0_16 = arith.constant 0 : index
    %8 = vector.load %arg11[%c0_15, %c0_16] : memref<32x32xbf16, #tpu.memory_space<vmem>>, vector<32x32xbf16>
    %c0_17 = arith.constant 0 : index
    %c0_18 = arith.constant 0 : index
    %9 = vector.load %arg12[%c0_17, %c0_18] : memref<1x32xf32, #tpu.memory_space<vmem>>, vector<1x32xf32>
    %c0_19 = arith.constant 0 : index
    %c0_20 = arith.constant 0 : index
    %10 = vector.load %arg13[%c0_19, %c0_20] : memref<32x64xbf16, #tpu.memory_space<vmem>>, vector<32x64xbf16>
    %c0_21 = arith.constant 0 : index
    %c0_22 = arith.constant 0 : index
    %11 = vector.load %arg14[%c0_21, %c0_22] : memref<1x64xf32, #tpu.memory_space<vmem>>, vector<1x64xf32>
    %c0_23 = arith.constant 0 : index
    %c0_24 = arith.constant 0 : index
    %12 = vector.load %arg15[%c0_23, %c0_24] : memref<64x32xbf16, #tpu.memory_space<vmem>>, vector<64x32xbf16>
    %c0_25 = arith.constant 0 : index
    %c0_26 = arith.constant 0 : index
    %13 = vector.load %arg16[%c0_25, %c0_26] : memref<1x32xf32, #tpu.memory_space<vmem>>, vector<1x32xf32>
    %c0_27 = arith.constant 0 : index
    %c0_28 = arith.constant 0 : index
    %14 = vector.load %arg17[%c0_27, %c0_28] : memref<1x32xf32, #tpu.memory_space<vmem>>, vector<1x32xf32>
    %c0_29 = arith.constant 0 : index
    %c0_30 = arith.constant 0 : index
    %15 = vector.load %arg18[%c0_29, %c0_30] : memref<1x32xf32, #tpu.memory_space<vmem>>, vector<1x32xf32>
    %c0_31 = arith.constant 0 : index
    %c0_32 = arith.constant 0 : index
    %16 = vector.load %arg19[%c0_31, %c0_32] : memref<1x32xf32, #tpu.memory_space<vmem>>, vector<1x32xf32>
    %c0_33 = arith.constant 0 : index
    %c0_34 = arith.constant 0 : index
    %17 = vector.load %arg20[%c0_33, %c0_34] : memref<1x32xf32, #tpu.memory_space<vmem>>, vector<1x32xf32>
    %c0_35 = arith.constant 0 : index
    %c0_36 = arith.constant 0 : index
    %18 = vector.load %arg21[%c0_35, %c0_36] : memref<1x32xf32, #tpu.memory_space<vmem>>, vector<1x32xf32>
    %c0_37 = arith.constant 0 : index
    %c0_38 = arith.constant 0 : index
    %19 = vector.load %arg22[%c0_37, %c0_38] : memref<1x32xf32, #tpu.memory_space<vmem>>, vector<1x32xf32>
    %c0_39 = arith.constant 0 : index
    %c0_40 = arith.constant 0 : index
    %c0_41 = arith.constant 0 : index
    %20 = vector.load %arg1[%c0_39, %c0_40, %c0_41] : memref<2x8x32xf32, #tpu.memory_space<vmem>>, vector<2x8x32xf32>
    %21 = vector.shape_cast %20 : vector<2x8x32xf32> to vector<16x32xf32>
    %c0_42 = arith.constant 0 : index
    %c0_43 = arith.constant 0 : index
    %c0_44 = arith.constant 0 : index
    %22 = vector.load %arg2[%c0_42, %c0_43, %c0_44] : memref<2x8x32xf32, #tpu.memory_space<vmem>>, vector<2x8x32xf32>
    %23 = vector.shape_cast %22 : vector<2x8x32xf32> to vector<16x32xf32>
    %24 = arith.truncf %21 : vector<16x32xf32> to vector<16x32xbf16>
    %cst = arith.constant dense<0.000000e+00> : vector<16x96xf32>
    %25 = tpu.matmul %24, %0, %cst {dimension_numbers = #tpu.dot_dimension_numbers<[1], [0], [0], [1], [0, 0, 1, 1], [], []>} : vector<16x32xbf16>, vector<32x96xbf16>, vector<16x96xf32> -> vector<16x96xf32>
    %26 = vector.broadcast %1 : vector<1x96xf32> to vector<16x96xf32>
    %27 = arith.addf %25, %26 : vector<16x96xf32>
    %28 = vector.extract_strided_slice %27 {offsets = [0, 0], sizes = [16, 32], strides = [1, 1]} : vector<16x96xf32> to vector<16x32xf32>
    %29 = vector.extract_strided_slice %27 {offsets = [0, 32], sizes = [16, 32], strides = [1, 1]} : vector<16x96xf32> to vector<16x32xf32>
    %30 = vector.extract_strided_slice %27 {offsets = [0, 64], sizes = [16, 32], strides = [1, 1]} : vector<16x96xf32> to vector<16x32xf32>
    %cst_45 = arith.constant 0.353553385 : f32
    %31 = vector.broadcast %cst_45 : f32 to vector<16x32xf32>
    %32 = arith.mulf %28, %31 : vector<16x32xf32>
    %33 = arith.truncf %32 : vector<16x32xf32> to vector<16x32xbf16>
    %34 = vector.shape_cast %33 : vector<16x32xbf16> to vector<2x8x32xbf16>
    %35 = arith.truncf %29 : vector<16x32xf32> to vector<16x32xbf16>
    %36 = vector.shape_cast %35 : vector<16x32xbf16> to vector<2x8x32xbf16>
    %37 = arith.truncf %30 : vector<16x32xf32> to vector<16x32xbf16>
    %38 = vector.shape_cast %37 : vector<16x32xbf16> to vector<2x8x32xbf16>
    %39 = vector.extract_strided_slice %34 {offsets = [0, 0, 0], sizes = [2, 8, 8], strides = [1, 1, 1]} : vector<2x8x32xbf16> to vector<2x8x8xbf16>
    %cst_46 = arith.constant 0xFF800000 : f32
    %40 = vector.broadcast %cst_46 : f32 to vector<2x8x1xf32>
    %cst_47 = arith.constant 0.000000e+00 : f32
    %41 = vector.broadcast %cst_47 : f32 to vector<2x8x1xf32>
    %cst_48 = arith.constant 0.000000e+00 : f32
    %42 = vector.broadcast %cst_48 : f32 to vector<2x8x8xf32>
    %43 = vector.extract_strided_slice %36 {offsets = [0, 0, 0], sizes = [2, 8, 8], strides = [1, 1, 1]} : vector<2x8x32xbf16> to vector<2x8x8xbf16>
    %44 = vector.extract_strided_slice %38 {offsets = [0, 0, 0], sizes = [2, 8, 8], strides = [1, 1, 1]} : vector<2x8x32xbf16> to vector<2x8x8xbf16>
    "tpu.trace_start"() <{level = 10 : i32, message = "bqd,bkd->bqk"}> : () -> ()
    %cst_49 = arith.constant dense<0.000000e+00> : vector<2x8x8xf32>
    %45 = tpu.matmul %39, %43, %cst_49 {dimension_numbers = #tpu.dot_dimension_numbers<[2], [2], [1], [1], [0, 0, 0, 1, 1, 1], [0], [0]>} : vector<2x8x8xbf16>, vector<2x8x8xbf16>, vector<2x8x8xf32> -> vector<2x8x8xf32>
    "tpu.trace_stop"() : () -> ()
    %46 = tpu.iota {dimensions = array<i32: 0>} : vector<8x8xi32>
    %47 = tpu.iota {dimensions = array<i32: 1>} : vector<8x8xi32>
    %c0_i32 = arith.constant 0 : i32
    %48 = vector.broadcast %c0_i32 : i32 to vector<8x8xi32>
    %49 = arith.addi %48, %47 : vector<8x8xi32>
    %50 = arith.cmpi sle, %49, %46 : vector<8x8xi32>
    %cst_50 = arith.constant -1.000000e+30 : f32
    %51 = vector.shape_cast %50 : vector<8x8xi1> to vector<1x8x8xi1>
    %52 = vector.broadcast %51 : vector<1x8x8xi1> to vector<2x8x8xi1>
    %53 = vector.broadcast %cst_50 : f32 to vector<2x8x8xf32>
    %54 = arith.select %52, %45, %53 : vector<2x8x8xi1>, vector<2x8x8xf32>
    %cst_51 = arith.constant dense<0xFF800000> : vector<2x8xf32>
    %55 = vector.multi_reduction <maximumf>, %54, %cst_51 [2] : vector<2x8x8xf32> to vector<2x8xf32>
    %56 = vector.shape_cast %55 : vector<2x8xf32> to vector<2x8x1xf32>
    %57 = arith.maximumf %40, %56 : vector<2x8x1xf32>
    %58 = arith.subf %40, %57 : vector<2x8x1xf32>
    %59 = math.exp %58 : vector<2x8x1xf32>
    %60 = vector.broadcast %57 : vector<2x8x1xf32> to vector<2x8x8xf32>
    %61 = arith.subf %54, %60 : vector<2x8x8xf32>
    %62 = math.exp %61 : vector<2x8x8xf32>
    %63 = arith.mulf %59, %41 : vector<2x8x1xf32>
    %cst_52 = arith.constant dense<0.000000e+00> : vector<2x8xf32>
    %64 = vector.multi_reduction <add>, %62, %cst_52 [2] : vector<2x8x8xf32> to vector<2x8xf32>
    %65 = vector.shape_cast %64 : vector<2x8xf32> to vector<2x8x1xf32>
    %66 = arith.addf %63, %65 : vector<2x8x1xf32>
    %67 = vector.broadcast %59 : vector<2x8x1xf32> to vector<2x8x8xf32>
    %68 = arith.mulf %67, %42 : vector<2x8x8xf32>
    %69 = arith.truncf %62 : vector<2x8x8xf32> to vector<2x8x8xbf16>
    "tpu.trace_start"() <{level = 10 : i32, message = "bqk,bkd->bqd"}> : () -> ()
    %cst_53 = arith.constant dense<0.000000e+00> : vector<2x8x8xf32>
    %70 = tpu.matmul %69, %44, %cst_53 {dimension_numbers = #tpu.dot_dimension_numbers<[2], [1], [1], [2], [0, 0, 0, 1, 1, 2], [0], [0]>} : vector<2x8x8xbf16>, vector<2x8x8xbf16>, vector<2x8x8xf32> -> vector<2x8x8xf32>
    "tpu.trace_stop"() : () -> ()
    %71 = arith.addf %68, %70 : vector<2x8x8xf32>
    %72 = tpu.reciprocal %66 {approx = true} : vector<2x8x1xf32> -> vector<2x8x1xf32>
    %73 = vector.broadcast %72 : vector<2x8x1xf32> to vector<2x8x8xf32>
    %74 = arith.mulf %71, %73 : vector<2x8x8xf32>
    %75 = vector.shape_cast %74 : vector<2x8x8xf32> to vector<16x8xf32>
    %c0_54 = arith.constant 0 : index
    %c0_55 = arith.constant 0 : index
    %76 = vector.load %arg24[%c0_54, %c0_55] : memref<16x32xf32, #tpu.memory_space<vmem>>, vector<16x8xf32>
    tpu.vector_store %arg24[%c0_54, %c0_55], %75 {strides = array<i32>} : memref<16x32xf32, #tpu.memory_space<vmem>>, vector<16x8xf32>,
    %77 = vector.extract_strided_slice %34 {offsets = [0, 0, 8], sizes = [2, 8, 8], strides = [1, 1, 1]} : vector<2x8x32xbf16> to vector<2x8x8xbf16>
    %cst_56 = arith.constant 0xFF800000 : f32
    %78 = vector.broadcast %cst_56 : f32 to vector<2x8x1xf32>
    %cst_57 = arith.constant 0.000000e+00 : f32
    %79 = vector.broadcast %cst_57 : f32 to vector<2x8x1xf32>
    %cst_58 = arith.constant 0.000000e+00 : f32
    %80 = vector.broadcast %cst_58 : f32 to vector<2x8x8xf32>
    %81 = vector.extract_strided_slice %36 {offsets = [0, 0, 8], sizes = [2, 8, 8], strides = [1, 1, 1]} : vector<2x8x32xbf16> to vector<2x8x8xbf16>
    %82 = vector.extract_strided_slice %38 {offsets = [0, 0, 8], sizes = [2, 8, 8], strides = [1, 1, 1]} : vector<2x8x32xbf16> to vector<2x8x8xbf16>
    "tpu.trace_start"() <{level = 10 : i32, message = "bqd,bkd->bqk"}> : () -> ()
    %cst_59 = arith.constant dense<0.000000e+00> : vector<2x8x8xf32>
    %83 = tpu.matmul %77, %81, %cst_59 {dimension_numbers = #tpu.dot_dimension_numbers<[2], [2], [1], [1], [0, 0, 0, 1, 1, 1], [0], [0]>} : vector<2x8x8xbf16>, vector<2x8x8xbf16>, vector<2x8x8xf32> -> vector<2x8x8xf32>
    "tpu.trace_stop"() : () -> ()
    %84 = tpu.iota {dimensions = array<i32: 0>} : vector<8x8xi32>
    %85 = tpu.iota {dimensions = array<i32: 1>} : vector<8x8xi32>
    %c0_i32_60 = arith.constant 0 : i32
    %86 = vector.broadcast %c0_i32_60 : i32 to vector<8x8xi32>
    %87 = arith.addi %86, %85 : vector<8x8xi32>
    %88 = arith.cmpi sle, %87, %84 : vector<8x8xi32>
    %cst_61 = arith.constant -1.000000e+30 : f32
    %89 = vector.shape_cast %88 : vector<8x8xi1> to vector<1x8x8xi1>
    %90 = vector.broadcast %89 : vector<1x8x8xi1> to vector<2x8x8xi1>
    %91 = vector.broadcast %cst_61 : f32 to vector<2x8x8xf32>
    %92 = arith.select %90, %83, %91 : vector<2x8x8xi1>, vector<2x8x8xf32>
    %cst_62 = arith.constant dense<0xFF800000> : vector<2x8xf32>
    %93 = vector.multi_reduction <maximumf>, %92, %cst_62 [2] : vector<2x8x8xf32> to vector<2x8xf32>
    %94 = vector.shape_cast %93 : vector<2x8xf32> to vector<2x8x1xf32>
    %95 = arith.maximumf %78, %94 : vector<2x8x1xf32>
    %96 = arith.subf %78, %95 : vector<2x8x1xf32>
    %97 = math.exp %96 : vector<2x8x1xf32>
    %98 = vector.broadcast %95 : vector<2x8x1xf32> to vector<2x8x8xf32>
    %99 = arith.subf %92, %98 : vector<2x8x8xf32>
    %100 = math.exp %99 : vector<2x8x8xf32>
    %101 = arith.mulf %97, %79 : vector<2x8x1xf32>
    %cst_63 = arith.constant dense<0.000000e+00> : vector<2x8xf32>
    %102 = vector.multi_reduction <add>, %100, %cst_63 [2] : vector<2x8x8xf32> to vector<2x8xf32>
    %103 = vector.shape_cast %102 : vector<2x8xf32> to vector<2x8x1xf32>
    %104 = arith.addf %101, %103 : vector<2x8x1xf32>
    %105 = vector.broadcast %97 : vector<2x8x1xf32> to vector<2x8x8xf32>
    %106 = arith.mulf %105, %80 : vector<2x8x8xf32>
    %107 = arith.truncf %100 : vector<2x8x8xf32> to vector<2x8x8xbf16>
    "tpu.trace_start"() <{level = 10 : i32, message = "bqk,bkd->bqd"}> : () -> ()
    %cst_64 = arith.constant dense<0.000000e+00> : vector<2x8x8xf32>
    %108 = tpu.matmul %107, %82, %cst_64 {dimension_numbers = #tpu.dot_dimension_numbers<[2], [1], [1], [2], [0, 0, 0, 1, 1, 2], [0], [0]>} : vector<2x8x8xbf16>, vector<2x8x8xbf16>, vector<2x8x8xf32> -> vector<2x8x8xf32>
    "tpu.trace_stop"() : () -> ()
    %109 = arith.addf %106, %108 : vector<2x8x8xf32>
    %110 = tpu.reciprocal %104 {approx = true} : vector<2x8x1xf32> -> vector<2x8x1xf32>
    %111 = vector.broadcast %110 : vector<2x8x1xf32> to vector<2x8x8xf32>
    %112 = arith.mulf %109, %111 : vector<2x8x8xf32>
    %113 = vector.shape_cast %112 : vector<2x8x8xf32> to vector<16x8xf32>
    %c0_65 = arith.constant 0 : index
    %c8 = arith.constant 8 : index
    %114 = vector.load %arg24[%c0_65, %c8] : memref<16x32xf32, #tpu.memory_space<vmem>>, vector<16x8xf32>
    tpu.vector_store %arg24[%c0_65, %c8], %113 {strides = array<i32>} : memref<16x32xf32, #tpu.memory_space<vmem>>, vector<16x8xf32>,
    %115 = vector.extract_strided_slice %34 {offsets = [0, 0, 16], sizes = [2, 8, 8], strides = [1, 1, 1]} : vector<2x8x32xbf16> to vector<2x8x8xbf16>
    %cst_66 = arith.constant 0xFF800000 : f32
    %116 = vector.broadcast %cst_66 : f32 to vector<2x8x1xf32>
    %cst_67 = arith.constant 0.000000e+00 : f32
    %117 = vector.broadcast %cst_67 : f32 to vector<2x8x1xf32>
    %cst_68 = arith.constant 0.000000e+00 : f32
    %118 = vector.broadcast %cst_68 : f32 to vector<2x8x8xf32>
    %119 = vector.extract_strided_slice %36 {offsets = [0, 0, 16], sizes = [2, 8, 8], strides = [1, 1, 1]} : vector<2x8x32xbf16> to vector<2x8x8xbf16>
    %120 = vector.extract_strided_slice %38 {offsets = [0, 0, 16], sizes = [2, 8, 8], strides = [1, 1, 1]} : vector<2x8x32xbf16> to vector<2x8x8xbf16>
    "tpu.trace_start"() <{level = 10 : i32, message = "bqd,bkd->bqk"}> : () -> ()
    %cst_69 = arith.constant dense<0.000000e+00> : vector<2x8x8xf32>
    %121 = tpu.matmul %115, %119, %cst_69 {dimension_numbers = #tpu.dot_dimension_numbers<[2], [2], [1], [1], [0, 0, 0, 1, 1, 1], [0], [0]>} : vector<2x8x8xbf16>, vector<2x8x8xbf16>, vector<2x8x8xf32> -> vector<2x8x8xf32>
    "tpu.trace_stop"() : () -> ()
    %122 = tpu.iota {dimensions = array<i32: 0>} : vector<8x8xi32>
    %123 = tpu.iota {dimensions = array<i32: 1>} : vector<8x8xi32>
    %c0_i32_70 = arith.constant 0 : i32
    %124 = vector.broadcast %c0_i32_70 : i32 to vector<8x8xi32>
    %125 = arith.addi %124, %123 : vector<8x8xi32>
    %126 = arith.cmpi sle, %125, %122 : vector<8x8xi32>
    %cst_71 = arith.constant -1.000000e+30 : f32
    %127 = vector.shape_cast %126 : vector<8x8xi1> to vector<1x8x8xi1>
    %128 = vector.broadcast %127 : vector<1x8x8xi1> to vector<2x8x8xi1>
    %129 = vector.broadcast %cst_71 : f32 to vector<2x8x8xf32>
    %130 = arith.select %128, %121, %129 : vector<2x8x8xi1>, vector<2x8x8xf32>
    %cst_72 = arith.constant dense<0xFF800000> : vector<2x8xf32>
    %131 = vector.multi_reduction <maximumf>, %130, %cst_72 [2] : vector<2x8x8xf32> to vector<2x8xf32>
    %132 = vector.shape_cast %131 : vector<2x8xf32> to vector<2x8x1xf32>
    %133 = arith.maximumf %116, %132 : vector<2x8x1xf32>
    %134 = arith.subf %116, %133 : vector<2x8x1xf32>
    %135 = math.exp %134 : vector<2x8x1xf32>
    %136 = vector.broadcast %133 : vector<2x8x1xf32> to vector<2x8x8xf32>
    %137 = arith.subf %130, %136 : vector<2x8x8xf32>
    %138 = math.exp %137 : vector<2x8x8xf32>
    %139 = arith.mulf %135, %117 : vector<2x8x1xf32>
    %cst_73 = arith.constant dense<0.000000e+00> : vector<2x8xf32>
    %140 = vector.multi_reduction <add>, %138, %cst_73 [2] : vector<2x8x8xf32> to vector<2x8xf32>
    %141 = vector.shape_cast %140 : vector<2x8xf32> to vector<2x8x1xf32>
    %142 = arith.addf %139, %141 : vector<2x8x1xf32>
    %143 = vector.broadcast %135 : vector<2x8x1xf32> to vector<2x8x8xf32>
    %144 = arith.mulf %143, %118 : vector<2x8x8xf32>
    %145 = arith.truncf %138 : vector<2x8x8xf32> to vector<2x8x8xbf16>
    "tpu.trace_start"() <{level = 10 : i32, message = "bqk,bkd->bqd"}> : () -> ()
    %cst_74 = arith.constant dense<0.000000e+00> : vector<2x8x8xf32>
    %146 = tpu.matmul %145, %120, %cst_74 {dimension_numbers = #tpu.dot_dimension_numbers<[2], [1], [1], [2], [0, 0, 0, 1, 1, 2], [0], [0]>} : vector<2x8x8xbf16>, vector<2x8x8xbf16>, vector<2x8x8xf32> -> vector<2x8x8xf32>
    "tpu.trace_stop"() : () -> ()
    %147 = arith.addf %144, %146 : vector<2x8x8xf32>
    %148 = tpu.reciprocal %142 {approx = true} : vector<2x8x1xf32> -> vector<2x8x1xf32>
    %149 = vector.broadcast %148 : vector<2x8x1xf32> to vector<2x8x8xf32>
    %150 = arith.mulf %147, %149 : vector<2x8x8xf32>
    %151 = vector.shape_cast %150 : vector<2x8x8xf32> to vector<16x8xf32>
    %c0_75 = arith.constant 0 : index
    %c16 = arith.constant 16 : index
    %152 = vector.load %arg24[%c0_75, %c16] : memref<16x32xf32, #tpu.memory_space<vmem>>, vector<16x8xf32>
    tpu.vector_store %arg24[%c0_75, %c16], %151 {strides = array<i32>} : memref<16x32xf32, #tpu.memory_space<vmem>>, vector<16x8xf32>,
    %153 = vector.extract_strided_slice %34 {offsets = [0, 0, 24], sizes = [2, 8, 8], strides = [1, 1, 1]} : vector<2x8x32xbf16> to vector<2x8x8xbf16>
    %cst_76 = arith.constant 0xFF800000 : f32
    %154 = vector.broadcast %cst_76 : f32 to vector<2x8x1xf32>
    %cst_77 = arith.constant 0.000000e+00 : f32
    %155 = vector.broadcast %cst_77 : f32 to vector<2x8x1xf32>
    %cst_78 = arith.constant 0.000000e+00 : f32
    %156 = vector.broadcast %cst_78 : f32 to vector<2x8x8xf32>
    %157 = vector.extract_strided_slice %36 {offsets = [0, 0, 24], sizes = [2, 8, 8], strides = [1, 1, 1]} : vector<2x8x32xbf16> to vector<2x8x8xbf16>
    %158 = vector.extract_strided_slice %38 {offsets = [0, 0, 24], sizes = [2, 8, 8], strides = [1, 1, 1]} : vector<2x8x32xbf16> to vector<2x8x8xbf16>
    "tpu.trace_start"() <{level = 10 : i32, message = "bqd,bkd->bqk"}> : () -> ()
    %cst_79 = arith.constant dense<0.000000e+00> : vector<2x8x8xf32>
    %159 = tpu.matmul %153, %157, %cst_79 {dimension_numbers = #tpu.dot_dimension_numbers<[2], [2], [1], [1], [0, 0, 0, 1, 1, 1], [0], [0]>} : vector<2x8x8xbf16>, vector<2x8x8xbf16>, vector<2x8x8xf32> -> vector<2x8x8xf32>
    "tpu.trace_stop"() : () -> ()
    %160 = tpu.iota {dimensions = array<i32: 0>} : vector<8x8xi32>
    %161 = tpu.iota {dimensions = array<i32: 1>} : vector<8x8xi32>
    %c0_i32_80 = arith.constant 0 : i32
    %162 = vector.broadcast %c0_i32_80 : i32 to vector<8x8xi32>
    %163 = arith.addi %162, %161 : vector<8x8xi32>
    %164 = arith.cmpi sle, %163, %160 : vector<8x8xi32>
    %cst_81 = arith.constant -1.000000e+30 : f32
    %165 = vector.shape_cast %164 : vector<8x8xi1> to vector<1x8x8xi1>
    %166 = vector.broadcast %165 : vector<1x8x8xi1> to vector<2x8x8xi1>
    %167 = vector.broadcast %cst_81 : f32 to vector<2x8x8xf32>
    %168 = arith.select %166, %159, %167 : vector<2x8x8xi1>, vector<2x8x8xf32>
    %cst_82 = arith.constant dense<0xFF800000> : vector<2x8xf32>
    %169 = vector.multi_reduction <maximumf>, %168, %cst_82 [2] : vector<2x8x8xf32> to vector<2x8xf32>
    %170 = vector.shape_cast %169 : vector<2x8xf32> to vector<2x8x1xf32>
    %171 = arith.maximumf %154, %170 : vector<2x8x1xf32>
    %172 = arith.subf %154, %171 : vector<2x8x1xf32>
    %173 = math.exp %172 : vector<2x8x1xf32>
    %174 = vector.broadcast %171 : vector<2x8x1xf32> to vector<2x8x8xf32>
    %175 = arith.subf %168, %174 : vector<2x8x8xf32>
    %176 = math.exp %175 : vector<2x8x8xf32>
    %177 = arith.mulf %173, %155 : vector<2x8x1xf32>
    %cst_83 = arith.constant dense<0.000000e+00> : vector<2x8xf32>
    %178 = vector.multi_reduction <add>, %176, %cst_83 [2] : vector<2x8x8xf32> to vector<2x8xf32>
    %179 = vector.shape_cast %178 : vector<2x8xf32> to vector<2x8x1xf32>
    %180 = arith.addf %177, %179 : vector<2x8x1xf32>
    %181 = vector.broadcast %173 : vector<2x8x1xf32> to vector<2x8x8xf32>
    %182 = arith.mulf %181, %156 : vector<2x8x8xf32>
    %183 = arith.truncf %176 : vector<2x8x8xf32> to vector<2x8x8xbf16>
    "tpu.trace_start"() <{level = 10 : i32, message = "bqk,bkd->bqd"}> : () -> ()
    %cst_84 = arith.constant dense<0.000000e+00> : vector<2x8x8xf32>
    %184 = tpu.matmul %183, %158, %cst_84 {dimension_numbers = #tpu.dot_dimension_numbers<[2], [1], [1], [2], [0, 0, 0, 1, 1, 2], [0], [0]>} : vector<2x8x8xbf16>, vector<2x8x8xbf16>, vector<2x8x8xf32> -> vector<2x8x8xf32>
    "tpu.trace_stop"() : () -> ()
    %185 = arith.addf %182, %184 : vector<2x8x8xf32>
    %186 = tpu.reciprocal %180 {approx = true} : vector<2x8x1xf32> -> vector<2x8x1xf32>
    %187 = vector.broadcast %186 : vector<2x8x1xf32> to vector<2x8x8xf32>
    %188 = arith.mulf %185, %187 : vector<2x8x8xf32>
    %189 = vector.shape_cast %188 : vector<2x8x8xf32> to vector<16x8xf32>
    %c0_85 = arith.constant 0 : index
    %c24 = arith.constant 24 : index
    %190 = vector.load %arg24[%c0_85, %c24] : memref<16x32xf32, #tpu.memory_space<vmem>>, vector<16x8xf32>
    tpu.vector_store %arg24[%c0_85, %c24], %189 {strides = array<i32>} : memref<16x32xf32, #tpu.memory_space<vmem>>, vector<16x8xf32>,
    %c0_86 = arith.constant 0 : index
    %c0_87 = arith.constant 0 : index
    %191 = vector.load %arg24[%c0_86, %c0_87] : memref<16x32xf32, #tpu.memory_space<vmem>>, vector<16x32xf32>
    %192 = arith.truncf %191 : vector<16x32xf32> to vector<16x32xbf16>
    %cst_88 = arith.constant dense<0.000000e+00> : vector<16x32xf32>
    %193 = tpu.matmul %192, %2, %cst_88 {dimension_numbers = #tpu.dot_dimension_numbers<[1], [0], [0], [1], [0, 0, 1, 1], [], []>} : vector<16x32xbf16>, vector<32x32xbf16>, vector<16x32xf32> -> vector<16x32xf32>
    %194 = vector.broadcast %3 : vector<1x32xf32> to vector<16x32xf32>
    %195 = arith.addf %193, %194 : vector<16x32xf32>
    %196 = arith.addf %21, %195 : vector<16x32xf32>
    %cst_89 = arith.constant dense<0.000000e+00> : vector<16xf32>
    %197 = vector.multi_reduction <add>, %196, %cst_89 [1] : vector<16x32xf32> to vector<16xf32>
    %198 = vector.shape_cast %197 : vector<16xf32> to vector<16x1xf32>
    %cst_90 = arith.constant 3.200000e+01 : f32
    %199 = vector.broadcast %cst_90 : f32 to vector<16x1xf32>
    %200 = arith.divf %198, %199 : vector<16x1xf32>
    %201 = vector.broadcast %200 : vector<16x1xf32> to vector<16x32xf32>
    %202 = arith.subf %196, %201 : vector<16x32xf32>
    %203 = arith.mulf %202, %202 : vector<16x32xf32>
    %cst_91 = arith.constant dense<0.000000e+00> : vector<16xf32>
    %204 = vector.multi_reduction <add>, %203, %cst_91 [1] : vector<16x32xf32> to vector<16xf32>
    %205 = vector.shape_cast %204 : vector<16xf32> to vector<16x1xf32>
    %cst_92 = arith.constant 3.200000e+01 : f32
    %206 = vector.broadcast %cst_92 : f32 to vector<16x1xf32>
    %207 = arith.divf %205, %206 : vector<16x1xf32>
    %208 = vector.broadcast %200 : vector<16x1xf32> to vector<16x32xf32>
    %209 = arith.subf %196, %208 : vector<16x32xf32>
    %cst_93 = arith.constant 9.99999974E-6 : f32
    %210 = vector.broadcast %cst_93 : f32 to vector<16x1xf32>
    %211 = arith.addf %207, %210 : vector<16x1xf32>
    %212 = math.rsqrt %211 : vector<16x1xf32>
    %213 = vector.broadcast %212 : vector<16x1xf32> to vector<16x32xf32>
    %214 = arith.mulf %209, %213 : vector<16x32xf32>
    %215 = vector.broadcast %14 : vector<1x32xf32> to vector<16x32xf32>
    %216 = arith.mulf %214, %215 : vector<16x32xf32>
    %217 = vector.broadcast %15 : vector<1x32xf32> to vector<16x32xf32>
    %218 = arith.addf %216, %217 : vector<16x32xf32>
    %219 = arith.truncf %218 : vector<16x32xf32> to vector<16x32xbf16>
    %cst_94 = arith.constant dense<0.000000e+00> : vector<16x32xf32>
    %220 = tpu.matmul %219, %4, %cst_94 {dimension_numbers = #tpu.dot_dimension_numbers<[1], [0], [0], [1], [0, 0, 1, 1], [], []>} : vector<16x32xbf16>, vector<32x32xbf16>, vector<16x32xf32> -> vector<16x32xf32>
    %221 = vector.broadcast %5 : vector<1x32xf32> to vector<16x32xf32>
    %222 = arith.addf %220, %221 : vector<16x32xf32>
    %223 = arith.truncf %23 : vector<16x32xf32> to vector<16x32xbf16>
    %cst_95 = arith.constant dense<0.000000e+00> : vector<16x64xf32>
    %224 = tpu.matmul %223, %6, %cst_95 {dimension_numbers = #tpu.dot_dimension_numbers<[1], [0], [0], [1], [0, 0, 1, 1], [], []>} : vector<16x32xbf16>, vector<32x64xbf16>, vector<16x64xf32> -> vector<16x64xf32>
    %225 = vector.broadcast %7 : vector<1x64xf32> to vector<16x64xf32>
    %226 = arith.addf %224, %225 : vector<16x64xf32>
    %227 = vector.extract_strided_slice %226 {offsets = [0, 0], sizes = [16, 32], strides = [1, 1]} : vector<16x64xf32> to vector<16x32xf32>
    %228 = vector.extract_strided_slice %226 {offsets = [0, 32], sizes = [16, 32], strides = [1, 1]} : vector<16x64xf32> to vector<16x32xf32>
    %cst_96 = arith.constant 0.353553385 : f32
    %229 = vector.broadcast %cst_96 : f32 to vector<16x32xf32>
    %230 = arith.mulf %222, %229 : vector<16x32xf32>
    %231 = arith.truncf %230 : vector<16x32xf32> to vector<16x32xbf16>
    %232 = vector.shape_cast %231 : vector<16x32xbf16> to vector<2x8x32xbf16>
    %233 = arith.truncf %227 : vector<16x32xf32> to vector<16x32xbf16>
    %234 = vector.shape_cast %233 : vector<16x32xbf16> to vector<2x8x32xbf16>
    %235 = arith.truncf %228 : vector<16x32xf32> to vector<16x32xbf16>
    %236 = vector.shape_cast %235 : vector<16x32xbf16> to vector<2x8x32xbf16>
    %237 = vector.extract_strided_slice %232 {offsets = [0, 0, 0], sizes = [2, 8, 8], strides = [1, 1, 1]} : vector<2x8x32xbf16> to vector<2x8x8xbf16>
    %cst_97 = arith.constant 0xFF800000 : f32
    %238 = vector.broadcast %cst_97 : f32 to vector<2x8x1xf32>
    %cst_98 = arith.constant 0.000000e+00 : f32
    %239 = vector.broadcast %cst_98 : f32 to vector<2x8x1xf32>
    %cst_99 = arith.constant 0.000000e+00 : f32
    %240 = vector.broadcast %cst_99 : f32 to vector<2x8x8xf32>
    %241 = vector.extract_strided_slice %234 {offsets = [0, 0, 0], sizes = [2, 8, 8], strides = [1, 1, 1]} : vector<2x8x32xbf16> to vector<2x8x8xbf16>
    %242 = vector.extract_strided_slice %236 {offsets = [0, 0, 0], sizes = [2, 8, 8], strides = [1, 1, 1]} : vector<2x8x32xbf16> to vector<2x8x8xbf16>
    "tpu.trace_start"() <{level = 10 : i32, message = "bqd,bkd->bqk"}> : () -> ()
    %cst_100 = arith.constant dense<0.000000e+00> : vector<2x8x8xf32>
    %243 = tpu.matmul %237, %241, %cst_100 {dimension_numbers = #tpu.dot_dimension_numbers<[2], [2], [1], [1], [0, 0, 0, 1, 1, 1], [0], [0]>} : vector<2x8x8xbf16>, vector<2x8x8xbf16>, vector<2x8x8xf32> -> vector<2x8x8xf32>
    "tpu.trace_stop"() : () -> ()
    %cst_101 = arith.constant dense<0xFF800000> : vector<2x8xf32>
    %244 = vector.multi_reduction <maximumf>, %243, %cst_101 [2] : vector<2x8x8xf32> to vector<2x8xf32>
    %245 = vector.shape_cast %244 : vector<2x8xf32> to vector<2x8x1xf32>
    %246 = arith.maximumf %238, %245 : vector<2x8x1xf32>
    %247 = arith.subf %238, %246 : vector<2x8x1xf32>
    %248 = math.exp %247 : vector<2x8x1xf32>
    %249 = vector.broadcast %246 : vector<2x8x1xf32> to vector<2x8x8xf32>
    %250 = arith.subf %243, %249 : vector<2x8x8xf32>
    %251 = math.exp %250 : vector<2x8x8xf32>
    %252 = arith.mulf %248, %239 : vector<2x8x1xf32>
    %cst_102 = arith.constant dense<0.000000e+00> : vector<2x8xf32>
    %253 = vector.multi_reduction <add>, %251, %cst_102 [2] : vector<2x8x8xf32> to vector<2x8xf32>
    %254 = vector.shape_cast %253 : vector<2x8xf32> to vector<2x8x1xf32>
    %255 = arith.addf %252, %254 : vector<2x8x1xf32>
    %256 = vector.broadcast %248 : vector<2x8x1xf32> to vector<2x8x8xf32>
    %257 = arith.mulf %256, %240 : vector<2x8x8xf32>
    %258 = arith.truncf %251 : vector<2x8x8xf32> to vector<2x8x8xbf16>
    "tpu.trace_start"() <{level = 10 : i32, message = "bqk,bkd->bqd"}> : () -> ()
    %cst_103 = arith.constant dense<0.000000e+00> : vector<2x8x8xf32>
    %259 = tpu.matmul %258, %242, %cst_103 {dimension_numbers = #tpu.dot_dimension_numbers<[2], [1], [1], [2], [0, 0, 0, 1, 1, 2], [0], [0]>} : vector<2x8x8xbf16>, vector<2x8x8xbf16>, vector<2x8x8xf32> -> vector<2x8x8xf32>
    "tpu.trace_stop"() : () -> ()
    %260 = arith.addf %257, %259 : vector<2x8x8xf32>
    %261 = tpu.reciprocal %255 {approx = true} : vector<2x8x1xf32> -> vector<2x8x1xf32>
    %262 = vector.broadcast %261 : vector<2x8x1xf32> to vector<2x8x8xf32>
    %263 = arith.mulf %260, %262 : vector<2x8x8xf32>
    %264 = vector.shape_cast %263 : vector<2x8x8xf32> to vector<16x8xf32>
    %c0_104 = arith.constant 0 : index
    %c0_105 = arith.constant 0 : index
    %265 = vector.load %arg24[%c0_104, %c0_105] : memref<16x32xf32, #tpu.memory_space<vmem>>, vector<16x8xf32>
    tpu.vector_store %arg24[%c0_104, %c0_105], %264 {strides = array<i32>} : memref<16x32xf32, #tpu.memory_space<vmem>>, vector<16x8xf32>,
    %266 = vector.extract_strided_slice %232 {offsets = [0, 0, 8], sizes = [2, 8, 8], strides = [1, 1, 1]} : vector<2x8x32xbf16> to vector<2x8x8xbf16>
    %cst_106 = arith.constant 0xFF800000 : f32
    %267 = vector.broadcast %cst_106 : f32 to vector<2x8x1xf32>
    %cst_107 = arith.constant 0.000000e+00 : f32
    %268 = vector.broadcast %cst_107 : f32 to vector<2x8x1xf32>
    %cst_108 = arith.constant 0.000000e+00 : f32
    %269 = vector.broadcast %cst_108 : f32 to vector<2x8x8xf32>
    %270 = vector.extract_strided_slice %234 {offsets = [0, 0, 8], sizes = [2, 8, 8], strides = [1, 1, 1]} : vector<2x8x32xbf16> to vector<2x8x8xbf16>
    %271 = vector.extract_strided_slice %236 {offsets = [0, 0, 8], sizes = [2, 8, 8], strides = [1, 1, 1]} : vector<2x8x32xbf16> to vector<2x8x8xbf16>
    "tpu.trace_start"() <{level = 10 : i32, message = "bqd,bkd->bqk"}> : () -> ()
    %cst_109 = arith.constant dense<0.000000e+00> : vector<2x8x8xf32>
    %272 = tpu.matmul %266, %270, %cst_109 {dimension_numbers = #tpu.dot_dimension_numbers<[2], [2], [1], [1], [0, 0, 0, 1, 1, 1], [0], [0]>} : vector<2x8x8xbf16>, vector<2x8x8xbf16>, vector<2x8x8xf32> -> vector<2x8x8xf32>
    "tpu.trace_stop"() : () -> ()
    %cst_110 = arith.constant dense<0xFF800000> : vector<2x8xf32>
    %273 = vector.multi_reduction <maximumf>, %272, %cst_110 [2] : vector<2x8x8xf32> to vector<2x8xf32>
    %274 = vector.shape_cast %273 : vector<2x8xf32> to vector<2x8x1xf32>
    %275 = arith.maximumf %267, %274 : vector<2x8x1xf32>
    %276 = arith.subf %267, %275 : vector<2x8x1xf32>
    %277 = math.exp %276 : vector<2x8x1xf32>
    %278 = vector.broadcast %275 : vector<2x8x1xf32> to vector<2x8x8xf32>
    %279 = arith.subf %272, %278 : vector<2x8x8xf32>
    %280 = math.exp %279 : vector<2x8x8xf32>
    %281 = arith.mulf %277, %268 : vector<2x8x1xf32>
    %cst_111 = arith.constant dense<0.000000e+00> : vector<2x8xf32>
    %282 = vector.multi_reduction <add>, %280, %cst_111 [2] : vector<2x8x8xf32> to vector<2x8xf32>
    %283 = vector.shape_cast %282 : vector<2x8xf32> to vector<2x8x1xf32>
    %284 = arith.addf %281, %283 : vector<2x8x1xf32>
    %285 = vector.broadcast %277 : vector<2x8x1xf32> to vector<2x8x8xf32>
    %286 = arith.mulf %285, %269 : vector<2x8x8xf32>
    %287 = arith.truncf %280 : vector<2x8x8xf32> to vector<2x8x8xbf16>
    "tpu.trace_start"() <{level = 10 : i32, message = "bqk,bkd->bqd"}> : () -> ()
    %cst_112 = arith.constant dense<0.000000e+00> : vector<2x8x8xf32>
    %288 = tpu.matmul %287, %271, %cst_112 {dimension_numbers = #tpu.dot_dimension_numbers<[2], [1], [1], [2], [0, 0, 0, 1, 1, 2], [0], [0]>} : vector<2x8x8xbf16>, vector<2x8x8xbf16>, vector<2x8x8xf32> -> vector<2x8x8xf32>
    "tpu.trace_stop"() : () -> ()
    %289 = arith.addf %286, %288 : vector<2x8x8xf32>
    %290 = tpu.reciprocal %284 {approx = true} : vector<2x8x1xf32> -> vector<2x8x1xf32>
    %291 = vector.broadcast %290 : vector<2x8x1xf32> to vector<2x8x8xf32>
    %292 = arith.mulf %289, %291 : vector<2x8x8xf32>
    %293 = vector.shape_cast %292 : vector<2x8x8xf32> to vector<16x8xf32>
    %c0_113 = arith.constant 0 : index
    %c8_114 = arith.constant 8 : index
    %294 = vector.load %arg24[%c0_113, %c8_114] : memref<16x32xf32, #tpu.memory_space<vmem>>, vector<16x8xf32>
    tpu.vector_store %arg24[%c0_113, %c8_114], %293 {strides = array<i32>} : memref<16x32xf32, #tpu.memory_space<vmem>>, vector<16x8xf32>,
    %295 = vector.extract_strided_slice %232 {offsets = [0, 0, 16], sizes = [2, 8, 8], strides = [1, 1, 1]} : vector<2x8x32xbf16> to vector<2x8x8xbf16>
    %cst_115 = arith.constant 0xFF800000 : f32
    %296 = vector.broadcast %cst_115 : f32 to vector<2x8x1xf32>
    %cst_116 = arith.constant 0.000000e+00 : f32
    %297 = vector.broadcast %cst_116 : f32 to vector<2x8x1xf32>
    %cst_117 = arith.constant 0.000000e+00 : f32
    %298 = vector.broadcast %cst_117 : f32 to vector<2x8x8xf32>
    %299 = vector.extract_strided_slice %234 {offsets = [0, 0, 16], sizes = [2, 8, 8], strides = [1, 1, 1]} : vector<2x8x32xbf16> to vector<2x8x8xbf16>
    %300 = vector.extract_strided_slice %236 {offsets = [0, 0, 16], sizes = [2, 8, 8], strides = [1, 1, 1]} : vector<2x8x32xbf16> to vector<2x8x8xbf16>
    "tpu.trace_start"() <{level = 10 : i32, message = "bqd,bkd->bqk"}> : () -> ()
    %cst_118 = arith.constant dense<0.000000e+00> : vector<2x8x8xf32>
    %301 = tpu.matmul %295, %299, %cst_118 {dimension_numbers = #tpu.dot_dimension_numbers<[2], [2], [1], [1], [0, 0, 0, 1, 1, 1], [0], [0]>} : vector<2x8x8xbf16>, vector<2x8x8xbf16>, vector<2x8x8xf32> -> vector<2x8x8xf32>
    "tpu.trace_stop"() : () -> ()
    %cst_119 = arith.constant dense<0xFF800000> : vector<2x8xf32>
    %302 = vector.multi_reduction <maximumf>, %301, %cst_119 [2] : vector<2x8x8xf32> to vector<2x8xf32>
    %303 = vector.shape_cast %302 : vector<2x8xf32> to vector<2x8x1xf32>
    %304 = arith.maximumf %296, %303 : vector<2x8x1xf32>
    %305 = arith.subf %296, %304 : vector<2x8x1xf32>
    %306 = math.exp %305 : vector<2x8x1xf32>
    %307 = vector.broadcast %304 : vector<2x8x1xf32> to vector<2x8x8xf32>
    %308 = arith.subf %301, %307 : vector<2x8x8xf32>
    %309 = math.exp %308 : vector<2x8x8xf32>
    %310 = arith.mulf %306, %297 : vector<2x8x1xf32>
    %cst_120 = arith.constant dense<0.000000e+00> : vector<2x8xf32>
    %311 = vector.multi_reduction <add>, %309, %cst_120 [2] : vector<2x8x8xf32> to vector<2x8xf32>
    %312 = vector.shape_cast %311 : vector<2x8xf32> to vector<2x8x1xf32>
    %313 = arith.addf %310, %312 : vector<2x8x1xf32>
    %314 = vector.broadcast %306 : vector<2x8x1xf32> to vector<2x8x8xf32>
    %315 = arith.mulf %314, %298 : vector<2x8x8xf32>
    %316 = arith.truncf %309 : vector<2x8x8xf32> to vector<2x8x8xbf16>
    "tpu.trace_start"() <{level = 10 : i32, message = "bqk,bkd->bqd"}> : () -> ()
    %cst_121 = arith.constant dense<0.000000e+00> : vector<2x8x8xf32>
    %317 = tpu.matmul %316, %300, %cst_121 {dimension_numbers = #tpu.dot_dimension_numbers<[2], [1], [1], [2], [0, 0, 0, 1, 1, 2], [0], [0]>} : vector<2x8x8xbf16>, vector<2x8x8xbf16>, vector<2x8x8xf32> -> vector<2x8x8xf32>
    "tpu.trace_stop"() : () -> ()
    %318 = arith.addf %315, %317 : vector<2x8x8xf32>
    %319 = tpu.reciprocal %313 {approx = true} : vector<2x8x1xf32> -> vector<2x8x1xf32>
    %320 = vector.broadcast %319 : vector<2x8x1xf32> to vector<2x8x8xf32>
    %321 = arith.mulf %318, %320 : vector<2x8x8xf32>
    %322 = vector.shape_cast %321 : vector<2x8x8xf32> to vector<16x8xf32>
    %c0_122 = arith.constant 0 : index
    %c16_123 = arith.constant 16 : index
    %323 = vector.load %arg24[%c0_122, %c16_123] : memref<16x32xf32, #tpu.memory_space<vmem>>, vector<16x8xf32>
    tpu.vector_store %arg24[%c0_122, %c16_123], %322 {strides = array<i32>} : memref<16x32xf32, #tpu.memory_space<vmem>>, vector<16x8xf32>,
    %324 = vector.extract_strided_slice %232 {offsets = [0, 0, 24], sizes = [2, 8, 8], strides = [1, 1, 1]} : vector<2x8x32xbf16> to vector<2x8x8xbf16>
    %cst_124 = arith.constant 0xFF800000 : f32
    %325 = vector.broadcast %cst_124 : f32 to vector<2x8x1xf32>
    %cst_125 = arith.constant 0.000000e+00 : f32
    %326 = vector.broadcast %cst_125 : f32 to vector<2x8x1xf32>
    %cst_126 = arith.constant 0.000000e+00 : f32
    %327 = vector.broadcast %cst_126 : f32 to vector<2x8x8xf32>
    %328 = vector.extract_strided_slice %234 {offsets = [0, 0, 24], sizes = [2, 8, 8], strides = [1, 1, 1]} : vector<2x8x32xbf16> to vector<2x8x8xbf16>
    %329 = vector.extract_strided_slice %236 {offsets = [0, 0, 24], sizes = [2, 8, 8], strides = [1, 1, 1]} : vector<2x8x32xbf16> to vector<2x8x8xbf16>
    "tpu.trace_start"() <{level = 10 : i32, message = "bqd,bkd->bqk"}> : () -> ()
    %cst_127 = arith.constant dense<0.000000e+00> : vector<2x8x8xf32>
    %330 = tpu.matmul %324, %328, %cst_127 {dimension_numbers = #tpu.dot_dimension_numbers<[2], [2], [1], [1], [0, 0, 0, 1, 1, 1], [0], [0]>} : vector<2x8x8xbf16>, vector<2x8x8xbf16>, vector<2x8x8xf32> -> vector<2x8x8xf32>
    "tpu.trace_stop"() : () -> ()
    %cst_128 = arith.constant dense<0xFF800000> : vector<2x8xf32>
    %331 = vector.multi_reduction <maximumf>, %330, %cst_128 [2] : vector<2x8x8xf32> to vector<2x8xf32>
    %332 = vector.shape_cast %331 : vector<2x8xf32> to vector<2x8x1xf32>
    %333 = arith.maximumf %325, %332 : vector<2x8x1xf32>
    %334 = arith.subf %325, %333 : vector<2x8x1xf32>
    %335 = math.exp %334 : vector<2x8x1xf32>
    %336 = vector.broadcast %333 : vector<2x8x1xf32> to vector<2x8x8xf32>
    %337 = arith.subf %330, %336 : vector<2x8x8xf32>
    %338 = math.exp %337 : vector<2x8x8xf32>
    %339 = arith.mulf %335, %326 : vector<2x8x1xf32>
    %cst_129 = arith.constant dense<0.000000e+00> : vector<2x8xf32>
    %340 = vector.multi_reduction <add>, %338, %cst_129 [2] : vector<2x8x8xf32> to vector<2x8xf32>
    %341 = vector.shape_cast %340 : vector<2x8xf32> to vector<2x8x1xf32>
    %342 = arith.addf %339, %341 : vector<2x8x1xf32>
    %343 = vector.broadcast %335 : vector<2x8x1xf32> to vector<2x8x8xf32>
    %344 = arith.mulf %343, %327 : vector<2x8x8xf32>
    %345 = arith.truncf %338 : vector<2x8x8xf32> to vector<2x8x8xbf16>
    "tpu.trace_start"() <{level = 10 : i32, message = "bqk,bkd->bqd"}> : () -> ()
    %cst_130 = arith.constant dense<0.000000e+00> : vector<2x8x8xf32>
    %346 = tpu.matmul %345, %329, %cst_130 {dimension_numbers = #tpu.dot_dimension_numbers<[2], [1], [1], [2], [0, 0, 0, 1, 1, 2], [0], [0]>} : vector<2x8x8xbf16>, vector<2x8x8xbf16>, vector<2x8x8xf32> -> vector<2x8x8xf32>
    "tpu.trace_stop"() : () -> ()
    %347 = arith.addf %344, %346 : vector<2x8x8xf32>
    %348 = tpu.reciprocal %342 {approx = true} : vector<2x8x1xf32> -> vector<2x8x1xf32>
    %349 = vector.broadcast %348 : vector<2x8x1xf32> to vector<2x8x8xf32>
    %350 = arith.mulf %347, %349 : vector<2x8x8xf32>
    %351 = vector.shape_cast %350 : vector<2x8x8xf32> to vector<16x8xf32>
    %c0_131 = arith.constant 0 : index
    %c24_132 = arith.constant 24 : index
    %352 = vector.load %arg24[%c0_131, %c24_132] : memref<16x32xf32, #tpu.memory_space<vmem>>, vector<16x8xf32>
    tpu.vector_store %arg24[%c0_131, %c24_132], %351 {strides = array<i32>} : memref<16x32xf32, #tpu.memory_space<vmem>>, vector<16x8xf32>,
    %c0_133 = arith.constant 0 : index
    %c0_134 = arith.constant 0 : index
    %353 = vector.load %arg24[%c0_133, %c0_134] : memref<16x32xf32, #tpu.memory_space<vmem>>, vector<16x32xf32>
    %354 = arith.truncf %353 : vector<16x32xf32> to vector<16x32xbf16>
    %cst_135 = arith.constant dense<0.000000e+00> : vector<16x32xf32>
    %355 = tpu.matmul %354, %8, %cst_135 {dimension_numbers = #tpu.dot_dimension_numbers<[1], [0], [0], [1], [0, 0, 1, 1], [], []>} : vector<16x32xbf16>, vector<32x32xbf16>, vector<16x32xf32> -> vector<16x32xf32>
    %356 = vector.broadcast %9 : vector<1x32xf32> to vector<16x32xf32>
    %357 = arith.addf %355, %356 : vector<16x32xf32>
    %358 = arith.addf %218, %357 : vector<16x32xf32>
    %cst_136 = arith.constant dense<0.000000e+00> : vector<16xf32>
    %359 = vector.multi_reduction <add>, %358, %cst_136 [1] : vector<16x32xf32> to vector<16xf32>
    %360 = vector.shape_cast %359 : vector<16xf32> to vector<16x1xf32>
    %cst_137 = arith.constant 3.200000e+01 : f32
    %361 = vector.broadcast %cst_137 : f32 to vector<16x1xf32>
    %362 = arith.divf %360, %361 : vector<16x1xf32>
    %363 = vector.broadcast %362 : vector<16x1xf32> to vector<16x32xf32>
    %364 = arith.subf %358, %363 : vector<16x32xf32>
    %365 = arith.mulf %364, %364 : vector<16x32xf32>
    %cst_138 = arith.constant dense<0.000000e+00> : vector<16xf32>
    %366 = vector.multi_reduction <add>, %365, %cst_138 [1] : vector<16x32xf32> to vector<16xf32>
    %367 = vector.shape_cast %366 : vector<16xf32> to vector<16x1xf32>
    %cst_139 = arith.constant 3.200000e+01 : f32
    %368 = vector.broadcast %cst_139 : f32 to vector<16x1xf32>
    %369 = arith.divf %367, %368 : vector<16x1xf32>
    %370 = vector.broadcast %362 : vector<16x1xf32> to vector<16x32xf32>
    %371 = arith.subf %358, %370 : vector<16x32xf32>
    %cst_140 = arith.constant 9.99999974E-6 : f32
    %372 = vector.broadcast %cst_140 : f32 to vector<16x1xf32>
    %373 = arith.addf %369, %372 : vector<16x1xf32>
    %374 = math.rsqrt %373 : vector<16x1xf32>
    %375 = vector.broadcast %374 : vector<16x1xf32> to vector<16x32xf32>
    %376 = arith.mulf %371, %375 : vector<16x32xf32>
    %377 = vector.broadcast %16 : vector<1x32xf32> to vector<16x32xf32>
    %378 = arith.mulf %376, %377 : vector<16x32xf32>
    %379 = vector.broadcast %17 : vector<1x32xf32> to vector<16x32xf32>
    %380 = arith.addf %378, %379 : vector<16x32xf32>
    %381 = arith.truncf %380 : vector<16x32xf32> to vector<16x32xbf16>
    %cst_141 = arith.constant dense<0.000000e+00> : vector<16x64xf32>
    %382 = tpu.matmul %381, %10, %cst_141 {dimension_numbers = #tpu.dot_dimension_numbers<[1], [0], [0], [1], [0, 0, 1, 1], [], []>} : vector<16x32xbf16>, vector<32x64xbf16>, vector<16x64xf32> -> vector<16x64xf32>
    %383 = vector.broadcast %11 : vector<1x64xf32> to vector<16x64xf32>
    %384 = arith.addf %382, %383 : vector<16x64xf32>
    %cst_142 = arith.constant 0.000000e+00 : f32
    %385 = vector.broadcast %cst_142 : f32 to vector<16x64xf32>
    %386 = arith.maximumf %384, %385 : vector<16x64xf32>
    %387 = arith.truncf %386 : vector<16x64xf32> to vector<16x64xbf16>
    %cst_143 = arith.constant dense<0.000000e+00> : vector<16x32xf32>
    %388 = tpu.matmul %387, %12, %cst_143 {dimension_numbers = #tpu.dot_dimension_numbers<[1], [0], [0], [1], [0, 0, 1, 1], [], []>} : vector<16x64xbf16>, vector<64x32xbf16>, vector<16x32xf32> -> vector<16x32xf32>
    %389 = vector.broadcast %13 : vector<1x32xf32> to vector<16x32xf32>
    %390 = arith.addf %388, %389 : vector<16x32xf32>
    %391 = arith.addf %380, %390 : vector<16x32xf32>
    %cst_144 = arith.constant dense<0.000000e+00> : vector<16xf32>
    %392 = vector.multi_reduction <add>, %391, %cst_144 [1] : vector<16x32xf32> to vector<16xf32>
    %393 = vector.shape_cast %392 : vector<16xf32> to vector<16x1xf32>
    %cst_145 = arith.constant 3.200000e+01 : f32
    %394 = vector.broadcast %cst_145 : f32 to vector<16x1xf32>
    %395 = arith.divf %393, %394 : vector<16x1xf32>
    %396 = vector.broadcast %395 : vector<16x1xf32> to vector<16x32xf32>
    %397 = arith.subf %391, %396 : vector<16x32xf32>
    %398 = arith.mulf %397, %397 : vector<16x32xf32>
    %cst_146 = arith.constant dense<0.000000e+00> : vector<16xf32>
    %399 = vector.multi_reduction <add>, %398, %cst_146 [1] : vector<16x32xf32> to vector<16xf32>
    %400 = vector.shape_cast %399 : vector<16xf32> to vector<16x1xf32>
    %cst_147 = arith.constant 3.200000e+01 : f32
    %401 = vector.broadcast %cst_147 : f32 to vector<16x1xf32>
    %402 = arith.divf %400, %401 : vector<16x1xf32>
    %403 = vector.broadcast %395 : vector<16x1xf32> to vector<16x32xf32>
    %404 = arith.subf %391, %403 : vector<16x32xf32>
    %cst_148 = arith.constant 9.99999974E-6 : f32
    %405 = vector.broadcast %cst_148 : f32 to vector<16x1xf32>
    %406 = arith.addf %402, %405 : vector<16x1xf32>
    %407 = math.rsqrt %406 : vector<16x1xf32>
    %408 = vector.broadcast %407 : vector<16x1xf32> to vector<16x32xf32>
    %409 = arith.mulf %404, %408 : vector<16x32xf32>
    %410 = vector.broadcast %18 : vector<1x32xf32> to vector<16x32xf32>
    %411 = arith.mulf %409, %410 : vector<16x32xf32>
    %412 = vector.broadcast %19 : vector<1x32xf32> to vector<16x32xf32>
    %413 = arith.addf %411, %412 : vector<16x32xf32>
    %414 = vector.shape_cast %413 : vector<16x32xf32> to vector<2x8x32xf32>
    %c0_149 = arith.constant 0 : index
    %c0_150 = arith.constant 0 : index
    %c0_151 = arith.constant 0 : index
    %415 = vector.load %arg23[%c0_149, %c0_150, %c0_151] : memref<2x8x32xf32, #tpu.memory_space<vmem>>, vector<2x8x32xf32>
    tpu.vector_store %arg23[%c0_149, %c0_150, %c0_151], %414 {strides = array<i32>} : memref<2x8x32xf32, #tpu.memory_space<vmem>>, vector<2x8x32xf32>,
    return
  }
  func.func @transform_0(%arg0: i32) -> (i32, i32, i32) {
    %c0_i32 = arith.constant 0 : i32
    %c0_i32_0 = arith.constant 0 : i32
    %c0_i32_1 = arith.constant 0 : i32
    return %arg0, %c0_i32, %c0_i32_0 : i32, i32, i32
  }
  func.func @transform_1(%arg0: i32) -> (i32, i32, i32) {
    %c0_i32 = arith.constant 0 : i32
    %c0_i32_0 = arith.constant 0 : i32
    %c0_i32_1 = arith.constant 0 : i32
    return %arg0, %c0_i32, %c0_i32_0 : i32, i32, i32
  }
  func.func @transform_2(%arg0: i32) -> (i32, i32) {
    %c0_i32 = arith.constant 0 : i32
    %c0_i32_0 = arith.constant 0 : i32
    %c0_i32_1 = arith.constant 0 : i32
    return %c0_i32, %c0_i32_0 : i32, i32
  }
  func.func @transform_3(%arg0: i32) -> (i32, i32) {
    %c0_i32 = arith.constant 0 : i32
    %c0_i32_0 = arith.constant 0 : i32
    %c0_i32_1 = arith.constant 0 : i32
    return %c0_i32, %c0_i32_0 : i32, i32
  }
  func.func @transform_4(%arg0: i32) -> (i32, i32) {
    %c0_i32 = arith.constant 0 : i32
    %c0_i32_0 = arith.constant 0 : i32
    %c0_i32_1 = arith.constant 0 : i32
    return %c0_i32, %c0_i32_0 : i32, i32
  }
  func.func @transform_5(%arg0: i32) -> (i32, i32) {
    %c0_i32 = arith.constant 0 : i32
    %c0_i32_0 = arith.constant 0 : i32
    %c0_i32_1 = arith.constant 0 : i32
    return %c0_i32, %c0_i32_0 : i32, i32
  }
  func.func @transform_6(%arg0: i32) -> (i32, i32) {
    %c0_i32 = arith.constant 0 : i32
    %c0_i32_0 = arith.constant 0 : i32
    %c0_i32_1 = arith.constant 0 : i32
    return %c0_i32, %c0_i32_0 : i32, i32
  }
  func.func @transform_7(%arg0: i32) -> (i32, i32) {
    %c0_i32 = arith.constant 0 : i32
    %c0_i32_0 = arith.constant 0 : i32
    %c0_i32_1 = arith.constant 0 : i32
    return %c0_i32, %c0_i32_0 : i32, i32
  }
  func.func @transform_8(%arg0: i32) -> (i32, i32) {
    %c0_i32 = arith.constant 0 : i32
    %c0_i32_0 = arith.constant 0 : i32
    %c0_i32_1 = arith.constant 0 : i32
    return %c0_i32, %c0_i32_0 : i32, i32
  }
  func.func @transform_9(%arg0: i32) -> (i32, i32) {
    %c0_i32 = arith.constant 0 : i32
    %c0_i32_0 = arith.constant 0 : i32
    %c0_i32_1 = arith.constant 0 : i32
    return %c0_i32, %c0_i32_0 : i32, i32
  }
  func.func @transform_10(%arg0: i32) -> (i32, i32) {
    %c0_i32 = arith.constant 0 : i32
    %c0_i32_0 = arith.constant 0 : i32
    %c0_i32_1 = arith.constant 0 : i32
    return %c0_i32, %c0_i32_0 : i32, i32
  }
  func.func @transform_11(%arg0: i32) -> (i32, i32) {
    %c0_i32 = arith.constant 0 : i32
    %c0_i32_0 = arith.constant 0 : i32
    %c0_i32_1 = arith.constant 0 : i32
    return %c0_i32, %c0_i32_0 : i32, i32
  }
  func.func @transform_12(%arg0: i32) -> (i32, i32) {
    %c0_i32 = arith.constant 0 : i32
    %c0_i32_0 = arith.constant 0 : i32
    %c0_i32_1 = arith.constant 0 : i32
    return %c0_i32, %c0_i32_0 : i32, i32
  }
  func.func @transform_13(%arg0: i32) -> (i32, i32) {
    %c0_i32 = arith.constant 0 : i32
    %c0_i32_0 = arith.constant 0 : i32
    %c0_i32_1 = arith.constant 0 : i32
    return %c0_i32, %c0_i32_0 : i32, i32
  }
  func.func @transform_14(%arg0: i32) -> (i32, i32) {
    %c0_i32 = arith.constant 0 : i32
    %c0_i32_0 = arith.constant 0 : i32
    %c0_i32_1 = arith.constant 0 : i32
    return %c0_i32, %c0_i32_0 : i32, i32
  }
  func.func @transform_15(%arg0: i32) -> (i32, i32) {
    %c0_i32 = arith.constant 0 : i32
    %c0_i32_0 = arith.constant 0 : i32
    %c0_i32_1 = arith.constant 0 : i32
    return %c0_i32, %c0_i32_0 : i32, i32
  }
  func.func @transform_16(%arg0: i32) -> (i32, i32) {
    %c0_i32 = arith.constant 0 : i32
    %c0_i32_0 = arith.constant 0 : i32
    %c0_i32_1 = arith.constant 0 : i32
    return %c0_i32, %c0_i32_0 : i32, i32
  }
  func.func @transform_17(%arg0: i32) -> (i32, i32) {
    %c0_i32 = arith.constant 0 : i32
    %c0_i32_0 = arith.constant 0 : i32
    %c0_i32_1 = arith.constant 0 : i32
    return %c0_i32, %c0_i32_0 : i32, i32
  }
  func.func @transform_18(%arg0: i32) -> (i32, i32) {
    %c0_i32 = arith.constant 0 : i32
    %c0_i32_0 = arith.constant 0 : i32
    %c0_i32_1 = arith.constant 0 : i32
    return %c0_i32, %c0_i32_0 : i32, i32
  }
  func.func @transform_19(%arg0: i32) -> (i32, i32) {
    %c0_i32 = arith.constant 0 : i32
    %c0_i32_0 = arith.constant 0 : i32
    %c0_i32_1 = arith.constant 0 : i32
    return %c0_i32, %c0_i32_0 : i32, i32
  }
  func.func @transform_20(%arg0: i32) -> (i32, i32) {
    %c0_i32 = arith.constant 0 : i32
    %c0_i32_0 = arith.constant 0 : i32
    %c0_i32_1 = arith.constant 0 : i32
    return %c0_i32, %c0_i32_0 : i32, i32
  }
  func.func @transform_21(%arg0: i32) -> (i32, i32) {
    %c0_i32 = arith.constant 0 : i32
    %c0_i32_0 = arith.constant 0 : i32
    %c0_i32_1 = arith.constant 0 : i32
    return %c0_i32, %c0_i32_0 : i32, i32
  }
  func.func @transform_22(%arg0: i32) -> (i32, i32, i32) {
    %c0_i32 = arith.constant 0 : i32
    %c0_i32_0 = arith.constant 0 : i32
    %c0_i32_1 = arith.constant 0 : i32
    return %arg0, %c0_i32, %c0_i32_0 : i32, i32, i32
  }
}

</mosaic_0001>

<bundles_post_ra>
// kernel: tpu_custom_call.1
= control target key start
LH: loop header
LB: loop body
LE: loop exit
PB: predicated region body
PF: predicated region fallthrough
CT: control target
= control target key end

     0   :  { %s5656_s0 = inlined_call_operand.vmem [shape: f32[4,8,32], index: 0, kind: input, shape index: {}]   ;;  %s5657_s1 = inlined_call_operand.hbm [shape: f32[4,8,32], index: 1, kind: input, shape index: {}]   ;;  %s5658_s2 = inlined_call_operand.vmem [shape: bf16[32,96], index: 2, kind: input, shape index: {}]   ;;  %s5659_s3 = inlined_call_operand.vmem [shape: f32[1,96], index: 3, kind: input, shape index: {}]   ;;  %s5660_s4 = inlined_call_operand.hbm [shape: bf16[32,32], index: 4, kind: input, shape index: {}]   ;;  %s5661_s5 = inlined_call_operand.vmem [shape: f32[1,32], index: 5, kind: input, shape index: {}]   ;;  %s5662_s6 = inlined_call_operand.hbm [shape: bf16[32,32], index: 6, kind: input, shape index: {}]   ;;  %s5663_s7 = inlined_call_operand.hbm [shape: f32[1,32], index: 7, kind: input, shape index: {}]   ;;  %s5664_s8 = inlined_call_operand.hbm [shape: bf16[32,64], index: 8, kind: input, shape index: {}]   ;;  %s5665_s9 = inlined_call_operand.hbm [shape: f32[1,64], index: 9, kind: input, shape index: {}]   ;;  %s5666_s10 = inlined_call_operand.vmem [shape: bf16[32,32], index: 10, kind: input, shape index: {}]   ;;  %s5667_s11 = inlined_call_operand.vmem [shape: f32[1,32], index: 11, kind: input, shape index: {}]   ;;  %s5668_s12 = inlined_call_operand.hbm [shape: bf16[32,64], index: 12, kind: input, shape index: {}]   ;;  %s5669_s13 = inlined_call_operand.vmem [shape: f32[1,64], index: 13, kind: input, shape index: {}]   ;;  %s5670_s14 = inlined_call_operand.vmem [shape: bf16[64,32], index: 14, kind: input, shape index: {}]   ;;  %s5671_s15 = inlined_call_operand.vmem [shape: f32[1,32], index: 15, kind: input, shape index: {}]   ;;  %s5672_s16 = inlined_call_operand.vmem [shape: f32[1,32], index: 16, kind: input, shape index: {}]   ;;  %s5673_s17 = inlined_call_operand.vmem [shape: f32[1,32], index: 17, kind: input, shape index: {}]   ;;  %s5674_s18 = inlined_call_operand.vmem [shape: f32[1,32], index: 18, kind: input, shape index: {}]   ;;  %s5675_s19 = inlined_call_operand.vmem [shape: f32[1,32], index: 19, kind: input, shape index: {}]   ;;  %s5676_s20 = inlined_call_operand.vmem [shape: f32[1,32], index: 20, kind: input, shape index: {}]   ;;  %s5677_s21 = inlined_call_operand.vmem [shape: f32[1,32], index: 21, kind: input, shape index: {}]   ;;  %s5678_s22 = inlined_call_operand.hbm [shape: f32[4,8,32], index: 22, kind: output, shape index: {}]  }
   0x1   :  { %5702 = sst [smem:[#allocation21_spill]] %s5656_s0 }
   0x2   :  { %5703 = sst [smem:[#allocation22_spill]] %s5657_s1 }
   0x3   :  { %5704 = sst [smem:[#allocation23_spill]] %s5658_s2 }
   0x4   :  { %5705 = sst [smem:[#allocation24_spill]] %s5659_s3 }
   0x5   :  { %5706 = sst [smem:[#allocation25_spill]] %s5660_s4 }
   0x6   :  { %5707 = sst [smem:[#allocation26_spill]] %s5661_s5 }
   0x7   :  { %5708 = sst [smem:[#allocation27_spill]] %s5662_s6 }
   0x8   :  { %5709 = sst [smem:[#allocation28_spill]] %s5663_s7 }
   0x9   :  { %5710 = sst [smem:[#allocation29_spill]] %s5664_s8 }
   0xa   :  { %5711 = sst [smem:[#allocation30_spill]] %s5669_s13 }
   0xb   :  { %5712 = sst [smem:[#allocation31_spill]] %s5670_s14 }
   0xc   :  { %5713 = sst [smem:[#allocation32_spill]] %s5671_s15 }
   0xd   :  { %5714 = sst [smem:[#allocation33_spill]] %s5674_s18 }
   0xe   :  { %5715 = sst [smem:[#allocation34_spill]] %s5675_s19 }
   0xf   :  { %5716 = sst [smem:[#allocation35_spill]] %s5676_s20 }
  0x10   :  { %5717 = sst [smem:[#allocation36_spill]] %s5677_s21 }
  0x11   :  { %5718 = sst [smem:[#allocation37_spill]] %s5678_s22 }
  0x12   :  { %27 = vsyncpa [#allocation4], 0 }
  0x13   :  { %29 = vsyncpa [#allocation4 + $0x1], 0 }
  0x14   :  { %30 = vsyncpa [#allocation7], 0 }
  0x15   :  { %31 = vsyncpa [#allocation10], 0 }
  0x16   :  { %32 = vsyncpa [#allocation13], 0 }
  0x17   :  { %33 = vsyncpa [#allocation5], 0 }
  0x18   :  { %35 = vsyncpa [#allocation5 + $0x1], 0  ;;  %s4694_s3 = smov 0   ;;  %s4696_s28 = smov 0  }
  0x19   :  { %s4698_s29 = smov 0   ;;  %s4700_s30 = smov 0  }
  0x1a LB: > { %s4550_s4 = smov [#allocation6]   ;;  %s4715_s23 = sadd.s32 4294967295, %s4548_s30   ;;  %s4548_s30 = sphi %s4700_s30, %s5766_s30   ;;  %s4544_s29 = sphi %s4698_s29, %s5765_s29   ;;  %s4540_s28 = sphi %s4696_s28, %s5764_s28   ;;  %s4536_s3 = sphi %s4694_s3, %s5763_s3  }
  0x1b   : > { %s562_s0 = sshll.u32 %s4550_s4, 4  ;;  %p3568_p0 = scmp.ge.s32.totalorder %s4548_s30, 1  ;;  %s4720_s0 = int_to_ptr.vmem [resolvable:$true] %s562_s0 }
  0x1c   : > { %p5689_p1 = scmp.eq.s32.totalorder %s4715_s23, 0  ;;  %p544_p2 = scmp.lt.s32.totalorder %s4548_s30, 3 }
  0x1d   : > { %s4551_s5 = smov [#allocation9]   ;;  %s4552_s25 = smov [#allocation12]  }
  0x1e   : > { %p4722_p3 = pnand %p3568_p0, %p544_p2  ;;  %s592_s24 = sshll.u32 %s4551_s5, 4  ;;  %s4735_s24 = int_to_ptr.vmem [resolvable:$true] %s592_s24 }
  0x1f   : > { %s616_s26 = sshll.u32 %s4552_s25, 4  ;;  %s5721_s4 = sld [smem:[#allocation25_spill]]  ;;  %s4737_s26 = int_to_ptr.vmem [resolvable:$true] %s616_s26 }
  0x20   : > { %s5719_s1 = scalar_select %p4722_p3, 1, 0 }
  0x21   : > { %p4048_p5 = pneg %p4722_p3 }
  0x23   : > { %p4731_p6 = pnand %p4048_p5, %p5689_p1 }
  0x25   : > { %s4272_s22 = scalar_lea.hbm %s5721_s4, 256  ;;  %p4747_p8 = pneg %p4731_p6 }
  0x26   : > { %p4273_p7 = scmp.ne.s32.totalorder %s5721_s4, %s4272_s22  ;;  %p4279_p11 = scmp.lt.u32.totalorder %s4272_s22, %s5721_s4 }
  0x28   : > { %p4275_p9 = pnand %p4747_p8, %p4273_p7 }
  0x2a   : > { %p4276_p10 = pneg %p4275_p9 }
  0x2c   : > { %p4281_p12 = pnand %p4279_p11, %p4276_p10 }
  0x2e   : > { %4284 = shalt.err (!%p4281_p12)
}
  0x2f   : > { %s4285_s20 = scalar_lea.vmem %s4720_s0, 256  ;;  %p4293_p5 = scmp.lt.s32.totalorder %s4720_s0, %s4720_s0 }
  0x30   : > { %p4286_p13 = scmp.ne.s32.totalorder %s4720_s0, %s4285_s20  ;;  %p4294_p4 = scmp.lt.s32.totalorder %s4285_s20, %s4285_s20 }
  0x32   : > { %p4288_p0 = pnand %p4286_p13, %p4747_p8  ;;  %p4295_p7 = por %p4294_p4, %p4293_p5 }
  0x34   : > { %p4289_p2 = pneg %p4288_p0 }
  0x36   : > { %p4296_p9 = pnand %p4295_p7, %p4289_p2 }
  0x38   : > { %4299 = shalt.err (!%p4296_p9)
}
  0x39   : > { %s5685_s21 = smov 64   ;;  %s5687_s15 = smov 4  }
  0x3a   : > { %4051 = dma.hbm_to_vmem [thread:$0]  (!%p4731_p6), %s5721_s4, 256, %s4720_s0, [#allocation7], %s5685_s21, %s5685_s21, %s5687_s15  }
  0x3b   : > { %s5723_s7 = sld [smem:[#allocation28_spill]] }
  0x41   : > { %s4300_s20 = scalar_lea.hbm %s5723_s7, 16 }
  0x42   : > { %p4301_p4 = scmp.ne.s32.totalorder %s5723_s7, %s4300_s20  ;;  %p4307_p12 = scmp.lt.u32.totalorder %s4300_s20, %s5723_s7 }
  0x44   : > { %p4303_p10 = pnand %p4301_p4, %p4747_p8 }
  0x46   : > { %p4304_p11 = pneg %p4303_p10 }
  0x48   : > { %p4309_p13 = pnand %p4307_p12, %p4304_p11 }
  0x4a   : > { %4312 = shalt.err (!%p4309_p13)
}
  0x4b   : > { %s4313_s0 = scalar_lea.vmem %s4735_s24, 16  ;;  %s4320_s13 = scalar_lea.vmem %s4735_s24, 32 }
  0x4c   : > { %p4314_p0 = scmp.ne.s32.totalorder %s4735_s24, %s4313_s0  ;;  %p4321_p7 = scmp.lt.s32.totalorder %s4735_s24, %s4735_s24 }
  0x4d   : > { %p4322_p9 = scmp.lt.s32.totalorder %s4320_s13, %s4313_s0 }
  0x4e   : > { %p4316_p2 = pnand %p4314_p0, %p4747_p8 }
  0x4f   : > { %p4323_p4 = por %p4322_p9, %p4321_p7 }
  0x50   : > { %p4317_p5 = pneg %p4316_p2 }
  0x52   : > { %p4324_p10 = pnand %p4323_p4, %p4317_p5 }
  0x54   : > { %4327 = shalt.err (!%p4324_p10)
}
  0x55   : > { %4057 = dma.hbm_to_vmem [thread:$0]  (!%p4731_p6), %s5723_s7, 16, %s4735_s24, [#allocation10]  }
  0x56   : > { %s4328_s2 = scalar_lea.hbm %s5665_s9, 16 }
  0x57   : > { %p4329_p11 = scmp.ne.s32.totalorder %s5665_s9, %s4328_s2  ;;  %p4335_p0 = scmp.lt.u32.totalorder %s4328_s2, %s5665_s9 }
  0x59   : > { %p4331_p12 = pnand %p4329_p11, %p4747_p8 }
  0x5b   : > { %p4332_p13 = pneg %p4331_p12 }
  0x5d   : > { %p4337_p2 = pnand %p4335_p0, %p4332_p13 }
  0x5f   : > { %4340 = shalt.err (!%p4337_p2)
}
  0x60   : > { %s4341_s24 = scalar_lea.vmem %s4737_s26, 16  ;;  %s4348_s13 = scalar_lea.vmem %s4737_s26, 32 }
  0x61   : > { %p4342_p5 = scmp.ne.s32.totalorder %s4737_s26, %s4341_s24  ;;  %p4349_p4 = scmp.lt.s32.totalorder %s4737_s26, %s4737_s26 }
  0x62   : > { %p4350_p10 = scmp.lt.s32.totalorder %s4348_s13, %s4341_s24 }
  0x63   : > { %p4344_p7 = pnand %p4342_p5, %p4747_p8 }
  0x64   : > { %p4351_p11 = por %p4350_p10, %p4349_p4 }
  0x65   : > { %p4345_p9 = pneg %p4344_p7 }
  0x67   : > { %p4352_p12 = pnand %p4351_p11, %p4345_p9 }
  0x69   : > { %4355 = shalt.err (!%p4352_p12)
}
  0x6a   : > { %4063 = dma.hbm_to_vmem [thread:$0]  (!%p4731_p6), %s5665_s9, 16, %s4737_s26, [#allocation13]  }
  0x6b   : > { %s4555_s19 = smov [#allocation8]   ;;  %s4556_s2 = smov [#allocation11]  }
  0x6c   : > { %s578_s22 = sshll.u32 %s4555_s19, 4  ;;  %s602_s27 = sshll.u32 %s4556_s2, 4  ;;  %s579_s22 = int_to_ptr.vmem [resolvable:$true] %s578_s22  ;;  %s603_s27 = int_to_ptr.vmem [resolvable:$true] %s602_s27 }
  0x6d   : > { %s5724_s0 = sld [smem:[#allocation27_spill]] }
  0x73   : > { %s4356_s24 = scalar_lea.hbm %s5724_s0, 256 }
  0x74   : > { %p4357_p13 = scmp.ne.s32.totalorder %s5724_s0, %s4356_s24  ;;  %p4363_p5 = scmp.lt.u32.totalorder %s4356_s24, %s5724_s0 }
  0x76   : > { %p4359_p0 = pnand %p4357_p13, %p4747_p8 }
  0x78   : > { %p4360_p2 = pneg %p4359_p0 }
  0x7a   : > { %p4365_p7 = pnand %p4363_p5, %p4360_p2 }
  0x7c   : > { %4368 = shalt.err (!%p4365_p7)
}
  0x7d   : > { %s4369_s26 = scalar_lea.vmem %s579_s22, 256  ;;  %p4377_p11 = scmp.lt.s32.totalorder %s579_s22, %s579_s22 }
  0x7e   : > { %p4370_p9 = scmp.ne.s32.totalorder %s579_s22, %s4369_s26  ;;  %p4378_p12 = scmp.lt.s32.totalorder %s4369_s26, %s4369_s26 }
  0x80   : > { %p4372_p4 = pnand %p4370_p9, %p4747_p8  ;;  %p4379_p1 = por %p4378_p12, %p4377_p11 }
  0x82   : > { %p4373_p10 = pneg %p4372_p4 }
  0x84   : > { %p4380_p3 = pnand %p4379_p1, %p4373_p10 }
  0x86   : > { %4383 = shalt.err (!%p4380_p3)
}
  0x87   : > { %s5725_s21 = smov 4   ;;  %s5726_s18 = smov 64  }
  0x88   : > { %4054 = dma.hbm_to_vmem [thread:$0]  (!%p4731_p6), %s5724_s0, 256, %s579_s22, [#allocation7], %s5726_s18, %s5726_s18, %s5725_s21  }
  0x89   : > { %s5727_s8 = sld [smem:[#allocation29_spill]] }
  0x8f   : > { %s4384_s20 = scalar_lea.hbm %s5727_s8, 256 }
  0x90   : > { %p4385_p1 = scmp.ne.s32.totalorder %s5727_s8, %s4384_s20  ;;  %p4391_p0 = scmp.lt.u32.totalorder %s4384_s20, %s5727_s8 }
  0x92   : > { %p4387_p3 = pnand %p4385_p1, %p4747_p8 }
  0x94   : > { %p4388_p13 = pneg %p4387_p3 }
  0x96   : > { %p4393_p2 = pnand %p4391_p0, %p4388_p13 }
  0x98   : > { %4396 = shalt.err (!%p4393_p2)
}
  0x99   : > { %s4397_s15 = scalar_lea.vmem %s603_s27, 256  ;;  %p4405_p4 = scmp.lt.s32.totalorder %s603_s27, %s603_s27 }
  0x9a   : > { %p4398_p5 = scmp.ne.s32.totalorder %s603_s27, %s4397_s15  ;;  %p4406_p10 = scmp.lt.s32.totalorder %s4397_s15, %s4397_s15 }
  0x9c   : > { %p4400_p7 = pnand %p4398_p5, %p4747_p8  ;;  %p4407_p11 = por %p4406_p10, %p4405_p4 }
  0x9e   : > { %p4401_p9 = pneg %p4400_p7 }
  0xa0   : > { %p4408_p12 = pnand %p4407_p11, %p4401_p9 }
  0xa2   : > { %4411 = shalt.err (!%p4408_p12)
}
  0xa3   : > { %4060 = dma.hbm_to_vmem [thread:$0]  (!%p4731_p6), %s5727_s8, 256, %s603_s27, [#allocation10], %s5726_s18, %s5726_s18, %s5725_s21  }
  0xa4   : > { %s4557_s2 = smov [#allocation14]   ;;  %s4412_s13 = scalar_lea.hbm %s5668_s12, 256 }
  0xa5   : > { %s632_s25 = sshll.u32 %s4557_s2, 4  ;;  %p4413_p1 = scmp.ne.s32.totalorder %s5668_s12, %s4412_s13  ;;  %s633_s25 = int_to_ptr.vmem [resolvable:$true] %s632_s25 }
  0xa6   : > { %p4419_p0 = scmp.lt.u32.totalorder %s4412_s13, %s5668_s12 }
  0xa7   : > { %p4415_p3 = pnand %p4413_p1, %p4747_p8 }
  0xa9   : > { %p4416_p13 = pneg %p4415_p3 }
  0xab   : > { %p4421_p2 = pnand %p4419_p0, %p4416_p13 }
  0xad   : > { %4424 = shalt.err (!%p4421_p2)
}
  0xae   : > { %s4425_s27 = scalar_lea.vmem %s633_s25, 256  ;;  %p4433_p4 = scmp.lt.s32.totalorder %s633_s25, %s633_s25 }
  0xaf   : > { %p4426_p5 = scmp.ne.s32.totalorder %s633_s25, %s4425_s27  ;;  %p4434_p10 = scmp.lt.s32.totalorder %s4425_s27, %s4425_s27 }
  0xb1   : > { %p4428_p7 = pnand %p4426_p5, %p4747_p8  ;;  %p4435_p11 = por %p4434_p10, %p4433_p4 }
  0xb3   : > { %p4429_p9 = pneg %p4428_p7 }
  0xb5   : > { %p4436_p12 = pnand %p4435_p11, %p4429_p9 }
  0xb7   : > { %4439 = shalt.err (!%p4436_p12)
}
  0xb8   : > { %4066 = dma.hbm_to_vmem [thread:$0]  (!%p4731_p6), %s5668_s12, 256, %s633_s25, [#allocation13], %s5726_s18, %s5726_s18, %s5725_s21  }
  0xb9   : > { %s3567_s6 = sadd.s32 4294967294, %s4548_s30   ;;  %s4884_s5 = sadd.s32 1, %s4548_s30  }
  0xba   : > { %s71_s19 = ssub.s32 %s4548_s30, %s4884_s5  ;;  %s74_s2 = sadd.s32 1, %s4544_s29 }
  0xbb   : > { %p72_p8 = scmp.eq.s32.totalorder %s71_s19, 0  ;;  %p81_p1 = scmp.ne.s32.totalorder %s4544_s29, %s4540_s28 }
  0xbc   : > { %p82_p3 = scmp.eq.s32.totalorder %s4548_s30, 0  ;;  %p87_p13 = scmp.ne.s32.totalorder %s4540_s28, %s4536_s3 }
  0xbd   : > { %s4895_s20 = scalar_select %p72_p8, %s4544_s29, %s74_s2  }
  0xbe   : > { %p4897_p0 = por %p82_p3, %p81_p1  ;;  %p5729_p2 = scmp.eq.s32.totalorder %s4715_s23, 0 }
  0xbf   : > { %p531_p5 = scmp.eq.s32.totalorder %s4715_s23, 1  ;;  %p537_p7 = scmp.eq.s32.totalorder %s3567_s6, 1 }
  0xc0   : > { %p4903_p6 = por %p5729_p2, %p87_p13  ;;  %p4081_p9 = scmp.lt.s32.totalorder %s4548_s30, 2 }
  0xc1   : > { %s682_s18 = sand.u32 1, %s4544_s29   ;;  %p4910_p4 = por %p531_p5, %p81_p1 }
  0xc2   : > { %p4914_p10 = por %p537_p7, %p87_p13  ;;  %s3576_s14 = sshll.u32 %s682_s18, 4 }
  0xc3   : > { %s5731_s25 = scalar_select %p4910_p4, 1, 0 }
  0xc4   : > { %s5732_s13 = scalar_select %p4914_p10, 1, 0 }
  0xc5   : > { %s3671_s26 = sshll.u32 %s4548_s30, 8  ;;  %s5733_s0 = sld [smem:[#allocation22_spill]] }
  0xc6   : > { %s686_s6 = scalar_lea.vmem [#allocation3], %s3576_s14  ;;  %p4928_p11 = pnand %p4081_p9, %p4897_p0 }
  0xc7   : > { %s693_s19 = sshll.u32 %s686_s6, 4  ;;  %s4932_s4 = scalar_lea.sflag [#allocation4], %s682_s18  ;;  %s4924_s19 = int_to_ptr.vmem [resolvable:$true] %s693_s19 }
  0xc8   : > { %p4442_p8 = pneg %p4928_p11 }
  0xcb   : > { %s4922_s22 = scalar_lea.hbm %s5733_s0, %s3671_s26  ;;  %s4445_s24 = scalar_lea.hbm %s5733_s0, 512 }
  0xcc   : > { %s4440_s15 = scalar_lea.hbm %s4922_s22, 256  ;;  %p4446_p13 = scmp.lt.u32.totalorder %s4922_s22, %s5733_s0 }
  0xcd   : > { %p4441_p12 = scmp.ne.s32.totalorder %s4922_s22, %s4440_s15  ;;  %p4447_p0 = scmp.lt.u32.totalorder %s4445_s24, %s4440_s15 }
  0xce   : > { %p4449_p5 = scmp.lt.u32.totalorder %s4440_s15, %s4922_s22 }
  0xcf   : > { %p4443_p1 = pnand %p4442_p8, %p4441_p12  ;;  %p4448_p2 = por %p4447_p0, %p4446_p13 }
  0xd1   : > { %p4444_p3 = pneg %p4443_p1  ;;  %p4450_p7 = por %p4449_p5, %p4448_p2 }
  0xd3   : > { %p4451_p9 = pnand %p4450_p7, %p4444_p3 }
  0xd5   : > { %4454 = shalt.err (!%p4451_p9)
}
  0xd6   : > { %s4455_s18 = scalar_lea.vmem %s4924_s19, 256  ;;  %s4558_s14 = smov [#allocation3]  }
  0xd7   : > { %p4456_p12 = scmp.ne.s32.totalorder %s4924_s19, %s4455_s18  ;;  %s4460_s26 = sshll.u32 %s4558_s14, 4  ;;  %s4461_s26 = int_to_ptr.vmem [resolvable:$false] %s4460_s26 }
  0xd8   : > { %s4462_s27 = scalar_lea.vmem %s4461_s26, 512  ;;  %p4463_p4 = scmp.lt.s32.totalorder %s4924_s19, %s4461_s26 }
  0xd9   : > { %p4458_p1 = pnand %p4456_p12, %p4442_p8  ;;  %p4464_p13 = scmp.lt.s32.totalorder %s4462_s27, %s4455_s18 }
  0xdb   : > { %p4459_p10 = pneg %p4458_p1  ;;  %p4465_p0 = por %p4464_p13, %p4463_p4 }
  0xdd   : > { %p4466_p2 = pnand %p4465_p0, %p4459_p10 }
  0xdf   : > { %4469 = shalt.err (!%p4466_p2)
}
  0xe0   : > { %s4559_s15 = smov 128   ;;  %s4560_s24 = smov 8  }
  0xe1   : > { %4070 = dma.hbm_to_vmem [thread:$0]  (!%p4928_p11), %s4922_s22, 256, %s4924_s19, %s4932_s4, %s4559_s15, %s4559_s15, %s4560_s24  }
  0xe2   : > { %p5735_p8 = scmp.ne.s32.totalorder %s5719_s1, 0 }
  0xe3   : > { %s4963_s6 = sand.u32 (!%p5735_p8), 1, %s4540_s28  }
  0xe4   : > { %705 = sbr.rel (%p5735_p8) target bundleno = 6366 (0x18de), region = 108  ;;  %s5694_s18 = sshll.u32 (!%p5735_p8), %s4963_s6, 4 }
  0xe5   : > { %s708_s14 = scalar_lea.sflag (!%p5735_p8), [#allocation4], %s4963_s6  ;;  %s4969_s26 = scalar_lea.vmem (!%p5735_p8), [#allocation3], %s5694_s18 }
  0xeb   : > { %4515 = dma.done.wait (%p4903_p6), %s708_s14, 256  }
  0xec   : > { %4517 = vsyncadd (%p4903_p6), %s708_s14, 4294967040  ;;  %p5736_p4 = scmp.eq.s32.totalorder %s4715_s23, 0 }
  0xee   : > { %4519 = dma.done.wait (%p5736_p4), [#allocation7], 512   ;;  %p5737_p10 = pmov %p5736_p4 }
  0xef   : > { %p5738_p11 = pmov %p5736_p4 }
  0xf0   : > { %4521 = vsyncadd (%p5737_p10), [#allocation7], 4294966784 }
  0xf1   : > { %4523 = dma.done.wait (%p5738_p11), [#allocation10], 272   ;;  %p5739_p3 = pmov %p5736_p4 }
  0xf3   : > { %4525 = vsyncadd (%p5739_p3), [#allocation10], 4294967024  ;;  %p5740_p5 = pmov %p5739_p3 }
  0xf4   : > { %p5741_p7 = pmov %p5739_p3 }
  0xf5   : > { %4527 = dma.done.wait (%p5740_p5), [#allocation13], 272  }
  0xf6   : > { %4529 = vsyncadd (%p5741_p7), [#allocation13], 4294967024  ;;  %s3588_s1 = sshll.u32 %s4715_s23, 1  ;;  %v4561_v0 = vmov 0.0   ;;  %vm4562_vm0 = vmmov 0   ;;  %s5742_s19 = sld [smem:[#allocation21_spill]]  ;;  %v1034_v25 = vlaneseq }
  0xf7   : > { %3768 = vmatprep.subr.bf16.mxu1 %v4561_v0  ;;  %3772 = vmatprep.mubr.msk.bf16.mxu1 %vm4562_vm0, %v4561_v0  ;;  %p802_p6 = scmp.lt.s32.totalorder %s3588_s1, 3  ;;  %s5743_s24 = sld [smem:[#allocation23_spill]]  ;;  %vm878_vm1 = vcmask 261120   ;;  %vm938_vm2 = vcmask 64512   ;;  %vm1078_vm3 = vcmask 1043456   ;;  %vm1420_vm5 = vcmask 130112  }
  0xf8   : > { %3782 = vmatprep.subr.bf16.mxu0 %v4561_v0  ;;  %3784 = vmatprep.mubr.msk.bf16.mxu0 %vm4562_vm0, %v4561_v0  ;;  %s4563_s21 = smov 96   ;;  %s4564_s22 = smov 64   ;;  %v1035_v26 = vshrl.u32 %v1034_v25, 7  ;;  %v1037_v27 = vand.u32 127, %v1034_v25  ;;  %vm1665_vm6 = vcmask 195712   ;;  %vm1910_vm7 = vcmask 261312  }
  0xf9   : > { %s5768_s1 = smov (!%p802_p6, %s3588_s1), 3  ;;  %s4567_s27 = smov 56   ;;  %vm3320_vm8 = vcmask 523264  }
  0xfa   : > { %s3589_s4 = sshll.u32 %s5768_s1, 3  ;;  %vm5055_vm4 = vcmp.le.s32.totalorder %v1037_v27, %v1035_v26  ;;  %s4568_s15 = smov 80  }
  0xfb   : > { %s4569_s14 = smov 112   ;;  %s4570_s18 = smov 48  }
  0xfc   : > { %s805_s2 = scalar_lea.vmem %s5742_s19, %s3589_s4  ;;  %s5744_s4 = sld [smem:[#allocation24_spill]] }
  0xfd   : > { %v4148_v1 = vld [vmem:[%s5743_s24] sm:$0xff]   ;;  %v4149_v2 = vld [vmem:[%s5743_s24 + $0x8] sm:$0xff]   ;;  %s4565_s19 = smov 88   ;;  %s5699_s1 = smov 72  }
  0xfe   : > { %3769 = vmatpush3.bf16.msra.mxu1 %v4148_v1  ;;  %v5003_v3 = vld [vmem:[%s805_s2] sm:$0xff]  ;;  %v5005_v4 = vld [vmem:[%s805_s2 + $0x8] sm:$0xff]  ;;  %s4566_s2 = smov 120   ;;  %p5760_p12 = scmp.ne.s32.totalorder %s5731_s25, 0 }
  0xff   : > { %3770 = vmatprep.subr.bf16.mxu1 %v4561_v0  ;;  %v859_v5 = vpack.c.bf16 %v5005_v4, %v5003_v3 }
 0x102   : > { %3771 = vmatpush3.bf16.msra.mxu1 %v4149_v2  ;;  %v3590_v6 = vld [vmem:[%s5744_s4] ss:$0 sm:$0xff]  ;;  %s4572_s4 = smov 104  }
 0x103   : > { %3776 = vmatprep.subr.bf16.mxu1 %v4561_v0 }
 0x105   : > { %3773 = vmatmul.mubr.msk.bf16.vlgmr.msra.gmra.mrb[0].mxu1 %vm878_vm1, %v859_v5 }
 0x106   : > { %3778 = vmatprep.mubr.msk.bf16.mxu1 %vm4562_vm0, %v4561_v0 }
 0x1d8   : > { %v916_v7 = vpop.f32.mrb[0].mxu1 }
 0x1d9   : > { %v917_v8 = vadd.f32 %v3590_v6, %v916_v7  ;;  %v3774_v9 = vpop.f32.mrb[1].mxu1 }
 0x1da   : > { %v919_v10 = vpop.f32.mrb[2].mxu1 }
 0x1db   : > { %v5017_v11 = vpack.c.bf16 %v917_v8, %v917_v8  ;;  %v920_v12 = vadd.f32 %v3590_v6, %v919_v10  ;;  %v3775_v13 = vpop.f32.mrb[3].mxu1  ;;  %v923_v15 = vmul.f32 0.35355338, %v917_v8 }
 0x1dd   : > { %936 = vrot.lane.b32.xlu0 %v5017_v11, %s4563_s21  ;;  %v5021_v14 = vpack.c.bf16 %v920_v12, %v920_v12  ;;  %v5031_v16 = vpack.c.bf16 %v923_v15, %v923_v15  ;;  %v924_v17 = vmul.f32 0.35355338, %v920_v12 }
 0x1df   : > { %v5035_v18 = vpack.c.bf16 %v924_v17, %v924_v17 }
 0x1e1   : > { %986 = vrot.lane.b32.xlu0 %v5021_v14, %s4563_s21 }
 0x1e5   : > { %1073 = vrot.lane.b32.xlu0 %v5017_v11, %s4564_s22 }
 0x1e9   : > { %1180 = vrot.lane.b32.xlu0 %v5017_v11, %s4565_s19 }
 0x1ed   : > { %1230 = vrot.lane.b32.xlu0 %v5021_v14, %s4565_s19 }
 0x1f1   : > { %1178 = vrot.lane.b32.xlu0 %v5031_v16, %s4566_s2 }
 0x1f5   : > { %1228 = vrot.lane.b32.xlu0 %v5035_v18, %s4566_s2 }
 0x1f9   : > { %1310 = vrot.lane.b32.xlu0 %v5017_v11, %s4567_s27 }
 0x24f   : > { %v937_v19 = vpop.permute.xlu0 %936 }
 0x250   : > { %v943_v20 = vsel %vm938_vm2, %v937_v19, 0 }
 0x251   : > { %3777 = vmatpush3.bf16.xpose.msra.mxu1 %v943_v20 }
 0x252   : > { %3788 = vmatprep.subr.bf16.mxu1 %v4561_v0 }
 0x253   : > { %v987_v21 = vpop.permute.xlu0 %986 }
 0x254   : > { %v992_v22 = vsel %vm938_vm2, %v987_v21, 0 }
 0x255   : > { %3783 = vmatpush3.bf16.xpose.msra.mxu0 %v992_v22 }
 0x256   : > { %3794 = vmatprep.subr.bf16.mxu0 %v4561_v0 }
 0x257   : > { %v1074_v23 = vpop.permute.xlu0 %1073 }
 0x258   : > { %v1080_v24 = vsel %vm1078_vm3, %v1074_v23, 0  ;;  %3779 = vmatmul.mubr.msk.bf16.vlgmr.msra.gmra.mrb[4].mxu1 %vm938_vm2, %v5031_v16 }
 0x259   : > { %3789 = vmatpush3.bf16.msra.mxu1 %v1080_v24  ;;  %3790 = vmatprep.mubr.msk.bf16.mxu1 %vm4562_vm0, %v4561_v0 }
 0x25a   : > { %3800 = vmatprep.subr.bf16.mxu1 %v4561_v0 }
 0x25b   : > { %v1181_v41 = vpop.permute.xlu0 %1180 }
 0x25c   : > { %3785 = vmatmul.mubr.msk.bf16.vlgmr.msra.gmra.mrb[0].mxu0 %vm938_vm2, %v5035_v18  ;;  %v1186_v55 = vsel %vm938_vm2, %v1181_v41, 0 }
 0x25d   : > { %3796 = vmatprep.mubr.msk.bf16.mxu0 %vm4562_vm0, %v4561_v0 }
 0x25f   : > { %v1231_v47 = vpop.permute.xlu0 %1230 }
 0x260   : > { %v1236_v58 = vsel %vm938_vm2, %v1231_v47, 0 }
 0x263   : > { %v1179_v51 = vpop.permute.xlu0 %1178 }
 0x267   : > { %v1229_v54 = vpop.permute.xlu0 %1228 }
 0x26b   : > { %v1311_v59 = vpop.permute.xlu0 %1310 }
 0x26c   : > { %v1316_v60 = vsel %vm1078_vm3, %v1311_v59, 0 }
 0x32b   : > { %v979_v29 = vpop.f32.mrb[4].mxu1 }
 0x32c   : > { %v1041_v30 = vsel %vm5055_vm4, %v979_v29, -1e+30  ;;  %v3780_v31 = vpop.f32.mrb[5].mxu1 }
 0x32d   : > { %v982_v32 = vpop.f32.mrb[6].mxu1  ;;  %v1043_v33 = vsel %vm938_vm2, %v1041_v30, -inf }
 0x32e   : > { %1044 = vmax.xlane.f32.xlu1 %v1043_v33  ;;  %v3781_v34 = vpop.f32.mrb[7].mxu1 }
 0x32f   : > { %v1028_v35 = vpop.f32.mrb[0].mxu0 }
 0x330   : > { %v1042_v36 = vsel %vm5055_vm4, %v1028_v35, -1e+30  ;;  %v3786_v37 = vpop.f32.mrb[1].mxu0 }
 0x331   : > { %v1031_v38 = vpop.f32.mrb[2].mxu0  ;;  %v1046_v39 = vsel %vm938_vm2, %v1042_v36, -inf }
 0x332   : > { %v3787_v40 = vpop.f32.mrb[3].mxu0  ;;  %1047 = vmax.xlane.f32.xlu1 %v1046_v39 }
 0x343   : > { %1122 = vrot.lane.b32.xlu1 %v5021_v14, %s4564_s22  ;;  %s4573_s22 = smov 40  }
 0x347   : > { %1358 = vrot.lane.b32.xlu1 %v5021_v14, %s4567_s27  ;;  %s5697_s27 = smov 8  }
 0x3bb   : > { %v1045_v42 = vpop.xlane.xlu1 %1044 }
 0x3bc   : > { %v1055_v43 = vsub.f32 %v1041_v30, %v1045_v42  ;;  %v1049_v63 = vsub.f32 -inf, %v1045_v42 }
 0x3be   : > { %v1057_v44 = vmul.f32 1.442695, %v1055_v43  ;;  %v1051_v1 = vmul.f32 1.442695, %v1049_v63 }
 0x3bf   : > { %v1048_v45 = vpop.xlane.xlu1 %1047 }
 0x3c0   : > { %v1056_v46 = vsub.f32 %v1042_v36, %v1048_v45  ;;  %4164 = vpow2.f32 %v1057_v44  ;;  %v1050_v2 = vsub.f32 -inf, %v1048_v45 }
 0x3c2   : > { %v1059_v48 = vmul.f32 1.442695, %v1056_v46  ;;  %v1053_v5 = vmul.f32 1.442695, %v1050_v2 }
 0x3c3   : > { %v1123_v49 = vpop.permute.xlu1 %1122 }
 0x3c4   : > { %v1128_v50 = vsel %vm1078_vm3, %v1123_v49, 0  ;;  %4166 = vpow2.f32 %v1059_v48 }
 0x3c5   : > { %3795 = vmatpush3.bf16.msra.mxu0 %v1128_v50  ;;  %4168 = vpow2.f32 %v1051_v1 }
 0x3c6   : > { %3806 = vmatprep.subr.bf16.mxu0 %v4561_v0  ;;  %4170 = vpow2.f32 %v1053_v5 }
 0x3c7   : > { %v1359_v61 = vpop.permute.xlu1 %1358 }
 0x3c8   : > { %v1364_v62 = vsel %vm1078_vm3, %v1359_v61, 0 }
 0x3ca   : > { %v5071_v52 = vpop.eup %4164 }
 0x3cb   : > { %v1071_v53 = vpack.c.bf16 %v5071_v52, %v5071_v52 }
 0x3cd   : > { %3791 = vmatmul.mubr.msk.bf16.vlgmr.msra.gmra.mrb[8].mxu1 %vm938_vm2, %v1071_v53 }
 0x3ce   : > { %v5077_v56 = vpop.eup %4166  ;;  %3801 = vmatpush3.bf16.xpose.msra.mxu1 %v1186_v55  ;;  %3802 = vmatprep.mubr.msk.bf16.mxu1 %vm4562_vm0, %v4561_v0 }
 0x3cf   : > { %v1072_v57 = vpack.c.bf16 %v5077_v56, %v5077_v56  ;;  %3812 = vmatprep.subr.bf16.mxu1 %v4561_v0  ;;  %v4169_v6 = vpop.eup %4168 }
 0x3d0   : > { %v5099_v7 = vmul.f32 0.0, %v4169_v6  ;;  %v4171_v8 = vpop.eup %4170 }
 0x3d1   : > { %3797 = vmatmul.mubr.msk.bf16.vlgmr.msra.gmra.mrb[4].mxu0 %vm938_vm2, %v1072_v57  ;;  %v5104_v17 = vmul.f32 0.0, %v4171_v8 }
 0x3d2   : > { %3807 = vmatpush3.bf16.xpose.msra.mxu0 %v1236_v58  ;;  %3808 = vmatprep.mubr.msk.bf16.mxu0 %vm4562_vm0, %v4561_v0 }
 0x3d3   : > { %3818 = vmatprep.subr.bf16.mxu0 %v4561_v0 }
 0x3d5   : > { %3803 = vmatmul.mubr.msk.bf16.vlgmr.msra.gmra.mrb[12].mxu1 %vm938_vm2, %v1179_v51 }
 0x3d6   : > { %3813 = vmatpush3.bf16.msra.mxu1 %v1316_v60  ;;  %3814 = vmatprep.mubr.msk.bf16.mxu1 %vm4562_vm0, %v4561_v0 }
 0x3d7   : > { %3824 = vmatprep.subr.bf16.mxu1 %v4561_v0 }
 0x3d9   : > { %3809 = vmatmul.mubr.msk.bf16.vlgmr.msra.gmra.mrb[8].mxu0 %vm938_vm2, %v1229_v54 }
 0x3da   : > { %3819 = vmatpush3.bf16.msra.mxu0 %v1364_v62  ;;  %3820 = vmatprep.mubr.msk.bf16.mxu0 %vm4562_vm0, %v4561_v0 }
 0x3db   : > { %3830 = vmatprep.subr.bf16.mxu0 %v4561_v0 }
 0x4a0   : > { %v1116_v9 = vpop.f32.mrb[8].mxu1 }
 0x4a1   : > { %v5102_v10 = vadd.f32 %v1116_v9, %v5099_v7  ;;  %v3792_v12 = vpop.f32.mrb[9].mxu1 }
 0x4a2   : > { %v1119_v13 = vpop.f32.mrb[10].mxu1 }
 0x4a3   : > { %v3793_v15 = vpop.f32.mrb[11].mxu1 }
 0x4a4   : > { %v1164_v19 = vpop.f32.mrb[4].mxu0 }
 0x4a5   : > { %v5107_v20 = vadd.f32 %v1164_v19, %v5104_v17  ;;  %v3798_v21 = vpop.f32.mrb[5].mxu0 }
 0x4a6   : > { %v1167_v22 = vpop.f32.mrb[6].mxu0 }
 0x4a7   : > { %v3799_v23 = vpop.f32.mrb[7].mxu0 }
 0x4a8   : > { %v1222_v24 = vpop.f32.mrb[12].mxu1 }
 0x4a9   : > { %v1278_v25 = vsel %vm5055_vm4, %v1222_v24, -1e+30  ;;  %v3804_v26 = vpop.f32.mrb[13].mxu1 }
 0x4aa   : > { %v1225_v27 = vpop.f32.mrb[14].mxu1  ;;  %v1280_v29 = vsel %vm938_vm2, %v1278_v25, -inf }
 0x4ab   : > { %1281 = vmax.xlane.f32.xlu1 %v1280_v29  ;;  %v3805_v30 = vpop.f32.mrb[15].mxu1 }
 0x4ac   : > { %v1272_v31 = vpop.f32.mrb[8].mxu0 }
 0x4ad   : > { %v1279_v32 = vsel %vm5055_vm4, %v1272_v31, -1e+30  ;;  %v3810_v33 = vpop.f32.mrb[9].mxu0 }
 0x4ae   : > { %v1275_v34 = vpop.f32.mrb[10].mxu0  ;;  %v1283_v35 = vsel %vm938_vm2, %v1279_v32, -inf }
 0x4af   : > { %1284 = vmax.xlane.f32.xlu0 %v1283_v35  ;;  %v3811_v36 = vpop.f32.mrb[11].mxu0 }
 0x4bc   : > { %1425 = vrot.lane.b32.xlu1 %v5017_v11, %s4568_s15 }
 0x4c0   : > { %1423 = vrot.lane.b32.xlu1 %v5031_v16, %s4569_s14 }
 0x4c4   : > { %1603 = vrot.lane.b32.xlu1 %v5021_v14, %s4570_s18 }
 0x4c5   : > { %1475 = vrot.lane.b32.xlu0 %v5021_v14, %s4568_s15 }
 0x4c9   : > { %1473 = vrot.lane.b32.xlu0 %v5035_v18, %s4569_s14 }
 0x4cd   : > { %1555 = vrot.lane.b32.xlu0 %v5017_v11, %s4570_s18  ;;  %s5695_s18 = smov 16  }
 0x538   : > { %v1282_v37 = vpop.xlane.xlu1 %1281 }
 0x539   : > { %v1292_v38 = vsub.f32 %v1278_v25, %v1282_v37  ;;  %v1286_v59 = vsub.f32 -inf, %v1282_v37 }
 0x53b   : > { %v1294_v39 = vmul.f32 1.442695, %v1292_v38  ;;  %v1288_v60 = vmul.f32 1.442695, %v1286_v59 }
 0x53c   : > { %v1285_v40 = vpop.xlane.xlu0 %1284  ;;  %v1426_v45 = vpop.permute.xlu1 %1425 }
 0x53d   : > { %v1293_v41 = vsub.f32 %v1279_v32, %v1285_v40  ;;  %4172 = vpow2.f32 %v1294_v39  ;;  %v1431_v48 = vsel %vm938_vm2, %v1426_v45, 0  ;;  %v1287_v61 = vsub.f32 -inf, %v1285_v40 }
 0x53f   : > { %v1296_v42 = vmul.f32 1.442695, %v1293_v41  ;;  %v1290_v62 = vmul.f32 1.442695, %v1287_v61 }
 0x540   : > { %v1476_v43 = vpop.permute.xlu0 %1475  ;;  %v1424_v51 = vpop.permute.xlu1 %1423 }
 0x541   : > { %4174 = vpow2.f32 %v1296_v42  ;;  %v1481_v53 = vsel %vm938_vm2, %v1476_v43, 0 }
 0x542   : > { %4176 = vpow2.f32 %v1288_v60 }
 0x543   : > { %4178 = vpow2.f32 %v1290_v62 }
 0x544   : > { %v1474_v47 = vpop.permute.xlu0 %1473  ;;  %v1604_v57 = vpop.permute.xlu1 %1603 }
 0x545   : > { %v1609_v58 = vsel %vm1078_vm3, %v1604_v57, 0 }
 0x547   : > { %v5125_v44 = vpop.eup %4172 }
 0x548   : > { %v1308_v46 = vpack.c.bf16 %v5125_v44, %v5125_v44  ;;  %v1556_v54 = vpop.permute.xlu0 %1555 }
 0x549   : > { %v1561_v55 = vsel %vm1078_vm3, %v1556_v54, 0 }
 0x54a   : > { %3815 = vmatmul.mubr.msk.bf16.vlgmr.msra.gmra.mrb[16].mxu1 %vm938_vm2, %v1308_v46 }
 0x54b   : > { %v5131_v49 = vpop.eup %4174  ;;  %3825 = vmatpush3.bf16.xpose.msra.mxu1 %v1431_v48  ;;  %3826 = vmatprep.mubr.msk.bf16.mxu1 %vm4562_vm0, %v4561_v0 }
 0x54c   : > { %v1309_v50 = vpack.c.bf16 %v5131_v49, %v5131_v49  ;;  %3836 = vmatprep.subr.bf16.mxu1 %v4561_v0  ;;  %v4177_v63 = vpop.eup %4176 }
 0x54d   : > { %v5153_v1 = vmul.f32 0.0, %v4177_v63  ;;  %v4179_v2 = vpop.eup %4178 }
 0x54e   : > { %3821 = vmatmul.mubr.msk.bf16.vlgmr.msra.gmra.mrb[12].mxu0 %vm938_vm2, %v1309_v50  ;;  %v5158_v13 = vmul.f32 0.0, %v4179_v2 }
 0x54f   : > { %3831 = vmatpush3.bf16.xpose.msra.mxu0 %v1481_v53  ;;  %3832 = vmatprep.mubr.msk.bf16.mxu0 %vm4562_vm0, %v4561_v0 }
 0x550   : > { %3842 = vmatprep.subr.bf16.mxu0 %v4561_v0 }
 0x552   : > { %3827 = vmatmul.mubr.msk.bf16.vlgmr.msra.gmra.mrb[20].mxu1 %vm938_vm2, %v1424_v51 }
 0x553   : > { %3837 = vmatpush3.bf16.msra.mxu1 %v1561_v55  ;;  %3838 = vmatprep.mubr.msk.bf16.mxu1 %vm4562_vm0, %v4561_v0 }
 0x554   : > { %3848 = vmatprep.subr.bf16.mxu1 %v4561_v0 }
 0x556   : > { %3833 = vmatmul.mubr.msk.bf16.vlgmr.msra.gmra.mrb[16].mxu0 %vm938_vm2, %v1474_v47 }
 0x557   : > { %3843 = vmatpush3.bf16.msra.mxu0 %v1609_v58  ;;  %3844 = vmatprep.mubr.msk.bf16.mxu0 %vm4562_vm0, %v4561_v0 }
 0x558   : > { %3854 = vmatprep.subr.bf16.mxu0 %v4561_v0 }
 0x61d   : > { %v1352_v5 = vpop.f32.mrb[16].mxu1 }
 0x61e   : > { %v5156_v6 = vadd.f32 %v1352_v5, %v5153_v1  ;;  %v3816_v8 = vpop.f32.mrb[17].mxu1 }
 0x61f   : > { %v1355_v9 = vpop.f32.mrb[18].mxu1 }
 0x620   : > { %v3817_v12 = vpop.f32.mrb[19].mxu1 }
 0x621   : > { %v1400_v15 = vpop.f32.mrb[12].mxu0 }
 0x622   : > { %v5161_v19 = vadd.f32 %v1400_v15, %v5158_v13  ;;  %v3822_v21 = vpop.f32.mrb[13].mxu0 }
 0x623   : > { %v1403_v22 = vpop.f32.mrb[14].mxu0 }
 0x624   : > { %v3823_v23 = vpop.f32.mrb[15].mxu0 }
 0x625   : > { %v1467_v24 = vpop.f32.mrb[20].mxu1 }
 0x626   : > { %v1523_v25 = vsel %vm5055_vm4, %v1467_v24, -1e+30  ;;  %v3828_v26 = vpop.f32.mrb[21].mxu1 }
 0x627   : > { %v1470_v27 = vpop.f32.mrb[22].mxu1  ;;  %v1525_v29 = vsel %vm938_vm2, %v1523_v25, -inf }
 0x628   : > { %1526 = vmax.xlane.f32.xlu1 %v1525_v29  ;;  %v3829_v30 = vpop.f32.mrb[23].mxu1 }
 0x629   : > { %v1517_v31 = vpop.f32.mrb[16].mxu0 }
 0x62a   : > { %v1524_v32 = vsel %vm5055_vm4, %v1517_v31, -1e+30  ;;  %v3834_v33 = vpop.f32.mrb[17].mxu0 }
 0x62b   : > { %v1520_v34 = vpop.f32.mrb[18].mxu0  ;;  %v1528_v35 = vsel %vm938_vm2, %v1524_v32, -inf }
 0x62c   : > { %1529 = vmax.xlane.f32.xlu0 %v1528_v35  ;;  %v3835_v36 = vpop.f32.mrb[19].mxu0 }
 0x639   : > { %1670 = vrot.lane.b32.xlu1 %v5017_v11, %s5699_s1 }
 0x63d   : > { %1668 = vrot.lane.b32.xlu1 %v5031_v16, %s4572_s4 }
 0x642   : > { %1720 = vrot.lane.b32.xlu0 %v5021_v14, %s5699_s1  ;;  %s5747_s1 = sld [smem:[#allocation26_spill]] }
 0x646   : > { %1718 = vrot.lane.b32.xlu0 %v5035_v18, %s4572_s4 }
 0x6b5   : > { %v1527_v37 = vpop.xlane.xlu1 %1526 }
 0x6b6   : > { %v1537_v38 = vsub.f32 %v1523_v25, %v1527_v37  ;;  %v1531_v54 = vsub.f32 -inf, %v1527_v37  ;;  %v1300_v37 = vsel %vm938_vm2, %v5125_v44, 0.0 }
 0x6b8   : > { %v1539_v39 = vmul.f32 1.442695, %v1537_v38  ;;  %v1533_v55 = vmul.f32 1.442695, %v1531_v54  ;;  %v1303_v38 = vsel %vm938_vm2, %v5131_v49, 0.0  ;;  %v1066_v54 = vsel %vm938_vm2, %v5077_v56, 0.0 }
 0x6b9   : > { %v1530_v40 = vpop.xlane.xlu0 %1529  ;;  %v1671_v45 = vpop.permute.xlu1 %1670 }
 0x6ba   : > { %v1538_v41 = vsub.f32 %v1524_v32, %v1530_v40  ;;  %4180 = vpow2.f32 %v1539_v39  ;;  %v1676_v46 = vsel %vm938_vm2, %v1671_v45, 0  ;;  %v1532_v57 = vsub.f32 -inf, %v1530_v40 }
 0x6bc   : > { %v1541_v42 = vmul.f32 1.442695, %v1538_v41  ;;  %v1535_v58 = vmul.f32 1.442695, %v1532_v57 }
 0x6bd   : > { %v1721_v18 = vpop.permute.xlu0 %1720  ;;  %v1669_v51 = vpop.permute.xlu1 %1668 }
 0x6be   : > { %4182 = vpow2.f32 %v1541_v42  ;;  %v1726_v50 = vsel %vm938_vm2, %v1721_v18, 0 }
 0x6bf   : > { %4184 = vpow2.f32 %v1533_v55 }
 0x6c0   : > { %4186 = vpow2.f32 %v1535_v58 }
 0x6c1   : > { %v1719_v53 = vpop.permute.xlu0 %1718 }
 0x6c4   : > { %v5177_v43 = vpop.eup %4180 }
 0x6c5   : > { %v1553_v16 = vpack.c.bf16 %v5177_v43, %v5177_v43  ;;  %v1545_v39 = vsel %vm938_vm2, %v5177_v43, 0.0 }
 0x6c7   : > { %3839 = vmatmul.mubr.msk.bf16.vlgmr.msra.gmra.mrb[24].mxu1 %vm938_vm2, %v1553_v16 }
 0x6c8   : > { %v4183_v47 = vpop.eup %4182  ;;  %3849 = vmatpush3.bf16.xpose.msra.mxu1 %v1676_v46  ;;  %3850 = vmatprep.mubr.msk.bf16.mxu1 %vm4562_vm0, %v4561_v0 }
 0x6c9   : > { %v1554_v48 = vpack.c.bf16 %v4183_v47, %v4183_v47  ;;  %3860 = vmatprep.subr.bf16.mxu1 %v4561_v0  ;;  %v4185_v59 = vpop.eup %4184  ;;  %v1548_v28 = vsel %vm938_vm2, %v4183_v47, 0.0 }
 0x6ca   : > { %v5197_v60 = vmul.f32 0.0, %v4185_v59  ;;  %v4187_v61 = vpop.eup %4186 }
 0x6cb   : > { %3845 = vmatmul.mubr.msk.bf16.vlgmr.msra.gmra.mrb[20].mxu0 %vm938_vm2, %v1554_v48  ;;  %v5202_v9 = vmul.f32 0.0, %v4187_v61 }
 0x6cc   : > { %3855 = vmatpush3.bf16.xpose.msra.mxu0 %v1726_v50  ;;  %3856 = vmatprep.mubr.msk.bf16.mxu0 %vm4562_vm0, %v4561_v0 }
 0x6cd   : > { %3866 = vmatprep.subr.bf16.mxu0 %v4561_v0 }
 0x6cf   : > { %3851 = vmatmul.mubr.msk.bf16.vlgmr.msra.gmra.mrb[28].mxu1 %vm938_vm2, %v1669_v51  ;;  %v1063_v51 = vsel %vm938_vm2, %v5071_v52, 0.0 }
 0x6d0   : > { %3862 = vmatprep.mubr.msk.bf16.mxu1 %vm4562_vm0, %v4561_v0 }
 0x6d3   : > { %3857 = vmatmul.mubr.msk.bf16.vlgmr.msra.gmra.mrb[24].mxu0 %vm938_vm2, %v1719_v53 }
 0x6d4   : > { %3868 = vmatprep.mubr.msk.bf16.mxu0 %vm4562_vm0, %v4561_v0 }
 0x79a   : > { %v1597_v62 = vpop.f32.mrb[24].mxu1 }
 0x79b   : > { %v5200_v63 = vadd.f32 %v1597_v62, %v5197_v60  ;;  %v3840_v2 = vpop.f32.mrb[25].mxu1 }
 0x79c   : > { %v1600_v5 = vpop.f32.mrb[26].mxu1 }
 0x79d   : > { %v3841_v8 = vpop.f32.mrb[27].mxu1 }
 0x79e   : > { %v1645_v12 = vpop.f32.mrb[20].mxu0 }
 0x79f   : > { %v5205_v15 = vadd.f32 %v1645_v12, %v5202_v9  ;;  %v3846_v21 = vpop.f32.mrb[21].mxu0 }
 0x7a0   : > { %v1648_v22 = vpop.f32.mrb[22].mxu0 }
 0x7a1   : > { %v3847_v23 = vpop.f32.mrb[23].mxu0 }
 0x7a2   : > { %v1712_v24 = vpop.f32.mrb[28].mxu1 }
 0x7a3   : > { %v1768_v25 = vsel %vm5055_vm4, %v1712_v24, -1e+30  ;;  %v3852_v26 = vpop.f32.mrb[29].mxu1 }
 0x7a4   : > { %v1715_v27 = vpop.f32.mrb[30].mxu1  ;;  %v1770_v29 = vsel %vm938_vm2, %v1768_v25, -inf }
 0x7a5   : > { %1771 = vmax.xlane.f32.xlu1 %v1770_v29  ;;  %v3853_v30 = vpop.f32.mrb[31].mxu1 }
 0x7a6   : > { %v1762_v31 = vpop.f32.mrb[24].mxu0 }
 0x7a7   : > { %v1769_v32 = vsel %vm5055_vm4, %v1762_v31, -1e+30  ;;  %v3858_v33 = vpop.f32.mrb[25].mxu0 }
 0x7a8   : > { %v1765_v34 = vpop.f32.mrb[26].mxu0  ;;  %v1773_v35 = vsel %vm938_vm2, %v1769_v32, -inf }
 0x7a9   : > { %1774 = vmax.xlane.f32.xlu0 %v1773_v35  ;;  %v3859_v36 = vpop.f32.mrb[27].mxu0 }
 0x7b6   : > { %1848 = vrot.lane.b32.xlu1 %v5021_v14, %s4573_s22 }
 0x7bf   : > { %1800 = vrot.lane.b32.xlu0 %v5017_v11, %s4573_s22  ;;  %s4576_s22 = smov 24  }
 0x7da   : > { %1301 = vadd.xlane.f32.xlu1 %v1300_v37 }
 0x7de   : > { %1304 = vadd.xlane.f32.xlu0 %v1303_v38  ;;  %1549 = vadd.xlane.f32.xlu1 %v1548_v28  ;;  %v4150_v38 = vld [vmem:[#allocation6] sm:$0xff]   ;;  %v4151_v28 = vld [vmem:[#allocation6 + $0x8] sm:$0xff]  }
 0x7e2   : > { %1546 = vadd.xlane.f32.xlu0 %v1545_v39 }
 0x832   : > { %v5222_v40 = vpop.xlane.xlu1 %1771 }
 0x833   : > { %v1782_v14 = vsub.f32 %v1768_v25, %v5222_v40 }
 0x835   : > { %v1784_v11 = vmul.f32 1.442695, %v1782_v14 }
 0x836   : > { %v5225_v41 = vpop.xlane.xlu0 %1774  ;;  %v1849_v44 = vpop.permute.xlu1 %1848 }
 0x837   : > { %v1783_v42 = vsub.f32 %v1769_v32, %v5225_v41  ;;  %v1854_v49 = vsel %vm1078_vm3, %v1849_v44, 0  ;;  %4188 = vpow2.f32 %v1784_v11 }
 0x838   : > { %3867 = vmatpush3.bf16.msra.mxu0 %v1854_v49 }
 0x839   : > { %v1786_v45 = vmul.f32 1.442695, %v1783_v42  ;;  %3880 = vmatprep.subr.bf16.mxu0 %v4561_v0 }
 0x83a   : > { %v1801_v16 = vpop.permute.xlu0 %1800 }
 0x83b   : > { %v1806_v43 = vsel %vm1078_vm3, %v1801_v16, 0  ;;  %4190 = vpow2.f32 %v1786_v45 }
 0x83c   : > { %3861 = vmatpush3.bf16.msra.mxu1 %v1806_v43 }
 0x83d   : > { %3872 = vmatprep.subr.bf16.mxu1 %v4561_v0 }
 0x841   : > { %v4189_v46 = vpop.eup %4188 }
 0x842   : > { %v1790_v47 = vsel %vm938_vm2, %v4189_v46, 0.0  ;;  %v1798_v18 = vpack.c.bf16 %v4189_v46, %v4189_v46 }
 0x843   : > { %1791 = vadd.xlane.f32.xlu0 %v1790_v47 }
 0x844   : > { %3863 = vmatmul.mubr.msk.bf16.vlgmr.msra.gmra.mrb[32].mxu1 %vm938_vm2, %v1798_v18 }
 0x845   : > { %v4191_v48 = vpop.eup %4190  ;;  %3876 = vmatprep.mubr.msk.bf16.mxu1 %vm4562_vm0, %v4561_v0  ;;  %3873 = vmatpush3.bf16.msra.mxu1 %v4150_v38 }
 0x846   : > { %v1793_v50 = vsel %vm938_vm2, %v4191_v48, 0.0  ;;  %v1799_v53 = vpack.c.bf16 %v4191_v48, %v4191_v48  ;;  %3874 = vmatprep.subr.bf16.mxu1 %v4561_v0 }
 0x847   : > { %1794 = vadd.xlane.f32.xlu1 %v1793_v50  ;;  %1064 = vadd.xlane.f32.xlu0 %v1063_v51 }
 0x848   : > { %3869 = vmatmul.mubr.msk.bf16.vlgmr.msra.gmra.mrb[28].mxu0 %vm938_vm2, %v1799_v53 }
 0x849   : > { %3884 = vmatprep.mubr.msk.bf16.mxu0 %vm4562_vm0, %v4561_v0  ;;  %3875 = vmatpush3.bf16.msra.mxu1 %v4151_v28 }
 0x84a   : > { %3888 = vmatprep.subr.bf16.mxu1 %v4561_v0 }
 0x84b   : > { %1067 = vadd.xlane.f32.xlu1 %v1066_v54 }
 0x867   : > { %v1302_v55 = vpop.xlane.xlu1 %1301 }
 0x868   : > { %v1306_v57 = vadd.f32 %v1302_v55, %v5153_v1  ;;  %v3614_v55 = vld [vmem:[%s5747_s1] ss:$0 sm:$0xff]  ;;  %s5754_s1 = sld [smem:[#allocation30_spill]] }
 0x86a   : > { %4192 = vrcp.f32 %v1306_v57 }
 0x86b   : > { %v1305_v58 = vpop.xlane.xlu0 %1304  ;;  %v1550_v59 = vpop.xlane.xlu1 %1549 }
 0x86c   : > { %v1307_v52 = vadd.f32 %v1305_v58, %v5158_v13  ;;  %v1552_v61 = vadd.f32 %v1550_v59, %v5202_v9 }
 0x86e   : > { %4194 = vrcp.f32 %v1307_v52 }
 0x86f   : > { %4196 = vrcp.f32 %v1552_v61  ;;  %v1547_v62 = vpop.xlane.xlu0 %1546 }
 0x870   : > { %v1551_v2 = vadd.f32 %v1547_v62, %v5197_v60 }
 0x872   : > { %4198 = vrcp.f32 %v1551_v2 }
 0x874   : > { %v4193_v5 = vpop.eup %4192 }
 0x875   : > { %v1410_v56 = vmul.f32 %v4193_v5, %v5156_v6 }
 0x877   : > { %1414 = vrot.lane.b32.xlu0 %v1410_v56, %s5697_s27 }
 0x878   : > { %v4195_v1 = vpop.eup %4194 }
 0x879   : > { %v4197_v8 = vpop.eup %4196  ;;  %v1411_v12 = vmul.f32 %v4195_v1, %v5161_v19 }
 0x87a   : > { %v1656_v13 = vmul.f32 %v4197_v8, %v5205_v15 }
 0x87b   : > { %1416 = vrot.lane.b32.xlu1 %v1411_v12, %s5697_s27  ;;  %s3680_s27 = sshll.u32 %s4715_s23, 8  ;;  %s3412_s23 = scalar_lea.sflag [#allocation5], %s4963_s6 }
 0x87c   : > { %v4199_v9 = vpop.eup %4198  ;;  %1661 = vrot.lane.b32.xlu0 %v1656_v13, %s5695_s18 }
 0x87d   : > { %v1655_v60 = vmul.f32 %v4199_v9, %v5200_v63 }
 0x87f   : > { %1659 = vrot.lane.b32.xlu1 %v1655_v60, %s5695_s18  ;;  %s5755_s18 = sld [smem:[#allocation32_spill]] }
 0x8d0   : > { %v1792_v6 = vpop.xlane.xlu0 %1791 }
 0x8d4   : > { %v1065_v21 = vpop.xlane.xlu0 %1064  ;;  %v1795_v22 = vpop.xlane.xlu1 %1794 }
 0x8d5   : > { %v1069_v23 = vadd.f32 %v1065_v21, %v5099_v7 }
 0x8d7   : > { %4200 = vrcp.f32 %v1069_v23 }
 0x8d8   : > { %v1068_v24 = vpop.xlane.xlu1 %1067 }
 0x8d9   : > { %v1070_v19 = vadd.f32 %v1068_v24, %v5104_v17  ;;  %v4153_v24 = vld [vmem:[#allocation11 + $0x8] sm:$0xff]  }
 0x8db   : > { %4202 = vrcp.f32 %v1070_v19  ;;  %v857_v19 = vld [vmem:[%s4969_s26] sm:$0xff] }
 0x8e1   : > { %v4201_v15 = vpop.eup %4200 }
 0x8e2   : > { %v1174_v25 = vmul.f32 %v4201_v15, %v5102_v10  ;;  %v1776_v10 = vsub.f32 -inf, %v5222_v40  ;;  %v858_v15 = vld [vmem:[%s4969_s26 + $0x8] sm:$0xff]  ;;  %s5752_s26 = sld [smem:[#allocation33_spill]] }
 0x8e4   : > { %1176 = vst.msk [vmem:[#allocation2] sm:$0xff] %vm938_vm2, %v1174_v25  ;;  %v1778_v30 = vmul.f32 1.442695, %v1776_v10  ;;  %v2086_v25 = vpack.c.bf16 %v858_v15, %v857_v19 }
 0x8e5   : > { %v4203_v26 = vpop.eup %4202 }
 0x8e6   : > { %v1175_v63 = vmul.f32 %v4203_v26, %v5107_v20  ;;  %v1777_v20 = vsub.f32 -inf, %v5225_v41  ;;  %4204 = vpow2.f32 %v1778_v30  ;;  %v4154_v26 = vld [vmem:[#allocation8] sm:$0xff]  }
 0x8e7   : > { %3881 = vmatpush3.bf16.msra.mxu0 %v4154_v26 }
 0x8e8   : > { %1177 = vst.msk [vmem:[#allocation2 + $0x8] sm:$0xff] %vm938_vm2, %v1175_v63  ;;  %v1780_v31 = vmul.f32 1.442695, %v1777_v20  ;;  %v4155_v63 = vld [vmem:[#allocation8 + $0x8] sm:$0xff]   ;;  %3882 = vmatprep.subr.bf16.mxu0 %v4561_v0 }
 0x8e9   : > { %v1415_v27 = vpop.permute.xlu0 %1414 }
 0x8ea   : > { %1421 = vst.msk [vmem:[#allocation2] sm:$0xff] %vm1420_vm5, %v1415_v27  ;;  %4206 = vpow2.f32 %v1780_v31  ;;  %v3618_v31 = vld [vmem:[%s5672_s16] ss:$0 sm:$0xff] }
 0x8eb   : > { %3883 = vmatpush3.bf16.msra.mxu0 %v4155_v63 }
 0x8ec   : > { %3896 = vmatprep.subr.bf16.mxu0 %v4561_v0 }
 0x8ed   : > { %v1417_v7 = vpop.permute.xlu1 %1416 }
 0x8ee   : > { %v1662_v29 = vpop.permute.xlu0 %1661  ;;  %1422 = vst.msk [vmem:[#allocation2 + $0x8] sm:$0xff] %vm1420_vm5, %v1417_v7 }
 0x8ef   : > { %1667 = vst.msk [vmem:[#allocation2 + $0x8] sm:$0xff] %vm1665_vm6, %v1662_v29 }
 0x8f0   : > { %v4205_v32 = vpop.eup %4204 }
 0x8f1   : > { %v1660_v17 = vpop.permute.xlu1 %1659  ;;  %v1788_v33 = vmul.f32 0.0, %v4205_v32 }
 0x8f2   : > { %1666 = vst.msk [vmem:[#allocation2] sm:$0xff] %vm1665_vm6, %v1660_v17 }
 0x8f3   : > { %v1796_v35 = vadd.f32 %v1792_v6, %v1788_v33 }
 0x8f4   : > { %v4207_v34 = vpop.eup %4206 }
 0x8f5   : > { %v1789_v36 = vmul.f32 0.0, %v4207_v34  ;;  %4208 = vrcp.f32 %v1796_v35 }
 0x8f7   : > { %v1797_v37 = vadd.f32 %v1795_v22, %v1789_v36 }
 0x8f9   : > { %4210 = vrcp.f32 %v1797_v37 }
 0x8ff   : > { %v4209_v11 = vpop.eup %4208 }
 0x903   : > { %v4211_v43 = vpop.eup %4210 }
 0x917   : > { %v1842_v39 = vpop.f32.mrb[32].mxu1 }
 0x918   : > { %v1896_v40 = vadd.f32 %v1842_v39, %v1788_v33  ;;  %v3864_v14 = vpop.f32.mrb[33].mxu1 }
 0x919   : > { %v1845_v41 = vpop.f32.mrb[34].mxu1 }
 0x91a   : > { %v1900_v44 = vmul.f32 %v4209_v11, %v1896_v40  ;;  %v3865_v42 = vpop.f32.mrb[35].mxu1  ;;  %v3624_v40 = vld [vmem:[#allocation12] ss:$0 sm:$0xff] }
 0x91b   : > { %v1890_v49 = vpop.f32.mrb[28].mxu0 }
 0x91c   : > { %v1897_v45 = vadd.f32 %v1890_v49, %v1789_v36  ;;  %v3870_v16 = vpop.f32.mrb[29].mxu0  ;;  %1904 = vrot.lane.b32.xlu1 %v1900_v44, %s4576_s22  ;;  %v3619_v36 = vld [vmem:[%s5673_s17] ss:$0 sm:$0xff] }
 0x91d   : > { %v1893_v46 = vpop.f32.mrb[30].mxu0 }
 0x91e   : > { %v1901_v47 = vmul.f32 %v4211_v43, %v1897_v45  ;;  %v3871_v18 = vpop.f32.mrb[31].mxu0 }
 0x920   : > { %1906 = vrot.lane.b32.xlu0 %v1901_v47, %s4576_s22  ;;  %v3620_v47 = vld [vmem:[#allocation9] ss:$0 sm:$0xff] }
 0x98e   : > { %v1905_v48 = vpop.permute.xlu1 %1904 }
 0x98f   : > { %1911 = vst.msk [vmem:[#allocation2] sm:$0xff] %vm1910_vm7, %v1905_v48 }
 0x992   : > { %v1907_v50 = vpop.permute.xlu0 %1906 }
 0x993   : > { %1912 = vst.msk [vmem:[#allocation2 + $0x8] sm:$0xff] %vm1910_vm7, %v1907_v50 }
 0x996   : > { %v1913_v51 = vld [vmem:[#allocation2] sm:$0xff] }
 0x99a   : > { %v1914_v53 = vld [vmem:[#allocation2 + $0x8] sm:$0xff] }
 0x99b   : > { %v1915_v54 = vpack.c.bf16 %v1914_v53, %v1913_v51 }
 0x99d   : > { %3877 = vmatmul.mubr.msk.bf16.vlgmr.msra.gmra.mrb[36].mxu1 %vm878_vm1, %v1915_v54 }
 0x99e   : > { %3892 = vmatprep.mubr.msk.bf16.mxu1 %vm4562_vm0, %v4561_v0 }
 0xa70   : > { %v1971_v57 = vpop.f32.mrb[36].mxu1 }
 0xa71   : > { %v1972_v58 = vadd.f32 %v3614_v55, %v1971_v57  ;;  %v3878_v59 = vpop.f32.mrb[37].mxu1 }
 0xa72   : > { %v1974_v52 = vpop.f32.mrb[38].mxu1 }
 0xa73   : > { %v1975_v61 = vadd.f32 %v3614_v55, %v1974_v52  ;;  %v3879_v62 = vpop.f32.mrb[39].mxu1  ;;  %v1978_v2 = vadd.f32 %v1972_v58, %v5003_v3 }
 0xa75   : > { %v1980_v5 = vsel %vm878_vm1, %v1978_v2, 0.0  ;;  %v1979_v56 = vadd.f32 %v1975_v61, %v5005_v4  ;;  %v4152_v4 = vld [vmem:[#allocation11] sm:$0xff]  }
 0xa76   : > { %1981 = vadd.xlane.f32.xlu1 %v1980_v5  ;;  %3889 = vmatpush3.bf16.msra.mxu1 %v4152_v4 }
 0xa77   : > { %v1983_v1 = vsel %vm878_vm1, %v1979_v56, 0.0  ;;  %3890 = vmatprep.subr.bf16.mxu1 %v4561_v0 }
 0xa78   : > { %1984 = vadd.xlane.f32.xlu0 %v1983_v1 }
 0xa7a   : > { %3891 = vmatpush3.bf16.msra.mxu1 %v4153_v24 }
 0xa7b   : > { %3902 = vmatprep.subr.bf16.mxu1 %v4561_v0 }
 0xa7d   : > { %3893 = vmatmul.mubr.msk.bf16.vlgmr.msra.gmra.mrb[40].mxu1 %vm878_vm1, %v2086_v25 }
 0xa7e   : > { %3904 = vmatprep.mubr.msk.bf16.mxu1 %vm4562_vm0, %v4561_v0 }
 0xb03   : > { %v1982_v8 = vpop.xlane.xlu1 %1981 }
 0xb04   : > { %v1987_v12 = vmul.f32 0.03125, %v1982_v8 }
 0xb05   : > { %v1985_v13 = vpop.xlane.xlu0 %1984 }
 0xb06   : > { %v1989_v9 = vsub.f32 %v1978_v2, %v1987_v12  ;;  %v1988_v60 = vmul.f32 0.03125, %v1985_v13 }
 0xb08   : > { %v1990_v6 = vsub.f32 %v1979_v56, %v1988_v60  ;;  %v1991_v21 = vmul.f32 %v1989_v9, %v1989_v9 }
 0xb0a   : > { %v1993_v22 = vsel %vm878_vm1, %v1991_v21, 0.0  ;;  %v1992_v3 = vmul.f32 %v1990_v6, %v1990_v6 }
 0xb0b   : > { %1994 = vadd.xlane.f32.xlu0 %v1993_v22 }
 0xb0c   : > { %v1996_v23 = vsel %vm878_vm1, %v1992_v3, 0.0 }
 0xb0d   : > { %1997 = vadd.xlane.f32.xlu1 %v1996_v23 }
 0xb50   : > { %v2142_v14 = vpop.f32.mrb[40].mxu1 }
 0xb51   : > { %v2143_v11 = vadd.f32 %v3624_v40, %v2142_v14  ;;  %v3894_v41 = vpop.f32.mrb[41].mxu1 }
 0xb52   : > { %v2145_v44 = vpop.f32.mrb[42].mxu1 }
 0xb53   : > { %v5310_v42 = vpack.c.bf16 %v2143_v11, %v2143_v11  ;;  %v2146_v49 = vadd.f32 %v3624_v40, %v2145_v44  ;;  %v3895_v45 = vpop.f32.mrb[43].mxu1 }
 0xb55   : > { %v5312_v16 = vpack.c.bf16 %v2146_v49, %v2146_v49  ;;  %2285 = vrot.lane.b32.xlu0 %v5310_v42, %s4563_s21  ;;  %v2167_v43 = vsel %vm938_vm2, %v5310_v42, 0 }
 0xb57   : > { %2333 = vrot.lane.b32.xlu1 %v5312_v16, %s4563_s21  ;;  %v2213_v46 = vsel %vm938_vm2, %v5312_v16, 0  ;;  %s5748_s21 = smov 72  }
 0xb58   : > { %3903 = vmatpush3.bf16.xpose.msra.mxu1 %v2213_v46 }
 0xb59   : > { %3914 = vmatprep.subr.bf16.mxu1 %v4561_v0 }
 0xb98   : > { %v1995_v27 = vpop.xlane.xlu0 %1994 }
 0xb99   : > { %v1999_v7 = vmul.f32 0.03125, %v1995_v27 }
 0xb9a   : > { %v1998_v29 = vpop.xlane.xlu1 %1997 }
 0xb9b   : > { %v2001_v17 = vadd.f32 1e-05, %v1999_v7  ;;  %v2000_v10 = vmul.f32 0.03125, %v1998_v29 }
 0xb9d   : > { %4212 = vrsqrt.f32 %v2001_v17  ;;  %v2002_v30 = vadd.f32 1e-05, %v2000_v10 }
 0xb9f   : > { %4214 = vrsqrt.f32 %v2002_v30 }
 0xba7   : > { %v4213_v20 = vpop.eup %4212 }
 0xba8   : > { %v2005_v32 = vmul.f32 %v4213_v20, %v1989_v9 }
 0xba9   : > { %v4215_v33 = vpop.eup %4214 }
 0xbaa   : > { %v2013_v34 = vmul.f32 %v3618_v31, %v2005_v32  ;;  %v2006_v35 = vmul.f32 %v4215_v33, %v1990_v6 }
 0xbac   : > { %v2014_v37 = vmul.f32 %v3618_v31, %v2006_v35  ;;  %v5301_v38 = vadd.f32 %v3619_v36, %v2013_v34 }
 0xbae   : > { %v5303_v28 = vadd.f32 %v3619_v36, %v2014_v37 }
 0xbb0   : > { %v2023_v39 = vpack.c.bf16 %v5303_v28, %v5301_v38 }
 0xbb2   : > { %3885 = vmatmul.mubr.msk.bf16.vlgmr.msra.gmra.mrb[32].mxu0 %vm878_vm1, %v2023_v39 }
 0xbb3   : > { %3898 = vmatprep.mubr.msk.bf16.mxu0 %vm4562_vm0, %v4561_v0  ;;  %3897 = vmatpush3.bf16.xpose.msra.mxu0 %v2167_v43 }
 0xbb4   : > { %3908 = vmatprep.subr.bf16.mxu0 %v4561_v0 }
 0xbc7   : > { %v2286_v53 = vpop.permute.xlu0 %2285 }
 0xbc8   : > { %v2291_v61 = vsel %vm1078_vm3, %v2286_v53, 0 }
 0xbc9   : > { %v2334_v58 = vpop.permute.xlu1 %2333 }
 0xbca   : > { %v2339_v2 = vsel %vm1078_vm3, %v2334_v58, 0 }
 0xc85   : > { %v2079_v18 = vpop.f32.mrb[32].mxu0 }
 0xc86   : > { %v2080_v48 = vadd.f32 %v3620_v47, %v2079_v18  ;;  %v3886_v50 = vpop.f32.mrb[33].mxu0 }
 0xc87   : > { %v2082_v51 = vpop.f32.mrb[34].mxu0 }
 0xc88   : > { %v2149_v54 = vmul.f32 0.35355338, %v2080_v48  ;;  %v2083_v55 = vadd.f32 %v3620_v47, %v2082_v51  ;;  %v3887_v57 = vpop.f32.mrb[35].mxu0 }
 0xc8a   : > { %v5324_v59 = vpack.c.bf16 %v2149_v54, %v2149_v54  ;;  %v2150_v52 = vmul.f32 0.35355338, %v2083_v55 }
 0xc8c   : > { %v5327_v62 = vpack.c.bf16 %v2150_v52, %v2150_v52  ;;  %3899 = vmatmul.mubr.msk.bf16.vlgmr.msra.gmra.mrb[36].mxu0 %vm938_vm2, %v5324_v59 }
 0xc8d   : > { %3909 = vmatpush3.bf16.msra.mxu0 %v2291_v61  ;;  %3910 = vmatprep.mubr.msk.bf16.mxu0 %vm4562_vm0, %v4561_v0 }
 0xc8e   : > { %3905 = vmatmul.mubr.msk.bf16.vlgmr.msra.gmra.mrb[44].mxu1 %vm938_vm2, %v5327_v62  ;;  %3920 = vmatprep.subr.bf16.mxu0 %v4561_v0 }
 0xc8f   : > { %3915 = vmatpush3.bf16.msra.mxu1 %v2339_v2  ;;  %3916 = vmatprep.mubr.msk.bf16.mxu1 %vm4562_vm0, %v4561_v0 }
 0xc90   : > { %3926 = vmatprep.subr.bf16.mxu1 %v4561_v0 }
 0xd5f   : > { %v2203_v5 = vpop.f32.mrb[36].mxu0 }
 0xd60   : > { %v3900_v56 = vpop.f32.mrb[37].mxu0  ;;  %v2255_v1 = vsel %vm938_vm2, %v2203_v5, -inf }
 0xd61   : > { %2256 = vmax.xlane.f32.xlu0 %v2255_v1  ;;  %v2206_v8 = vpop.f32.mrb[38].mxu0  ;;  %v2249_v12 = vpop.f32.mrb[44].mxu1 }
 0xd62   : > { %v3901_v13 = vpop.f32.mrb[39].mxu0  ;;  %v3906_v9 = vpop.f32.mrb[45].mxu1  ;;  %v2258_v60 = vsel %vm938_vm2, %v2249_v12, -inf }
 0xd63   : > { %2259 = vmax.xlane.f32.xlu1 %v2258_v60  ;;  %v2252_v6 = vpop.f32.mrb[46].mxu1 }
 0xd64   : > { %v3907_v21 = vpop.f32.mrb[47].mxu1 }
 0xd74   : > { %2391 = vrot.lane.b32.xlu1 %v5310_v42, %s4566_s2 }
 0xd77   : > { %2441 = vrot.lane.b32.xlu0 %v5312_v16, %s4566_s2 }
 0xd78   : > { %2389 = vrot.lane.b32.xlu1 %v5324_v59, %s4566_s2 }
 0xd7b   : > { %2439 = vrot.lane.b32.xlu0 %v5327_v62, %s4566_s2  ;;  %s5750_s2 = smov 16  }
 0xd7c   : > { %2567 = vrot.lane.b32.xlu1 %v5312_v16, %s4565_s19 }
 0xd7f   : > { %2519 = vrot.lane.b32.xlu0 %v5310_v42, %s4565_s19  ;;  %s5749_s19 = smov 8  }
 0xdee   : > { %v2257_v22 = vpop.xlane.xlu0 %2256 }
 0xdef   : > { %v2267_v3 = vsub.f32 %v2203_v5, %v2257_v22  ;;  %v2261_v34 = vsub.f32 -inf, %v2257_v22 }
 0xdf0   : > { %v2260_v23 = vpop.xlane.xlu1 %2259 }
 0xdf1   : > { %v2269_v4 = vmul.f32 1.442695, %v2267_v3  ;;  %v2268_v24 = vsub.f32 %v2249_v12, %v2260_v23  ;;  %v2262_v35 = vsub.f32 -inf, %v2260_v23  ;;  %v2263_v36 = vmul.f32 1.442695, %v2261_v34 }
 0xdf2   : > { %v2442_v15 = vpop.permute.xlu0 %2441 }
 0xdf3   : > { %v2271_v19 = vmul.f32 1.442695, %v2268_v24  ;;  %4216 = vpow2.f32 %v2269_v4  ;;  %v2447_v30 = vsel %vm938_vm2, %v2442_v15, 0  ;;  %v2265_v37 = vmul.f32 1.442695, %v2262_v35 }
 0xdf4   : > { %v2392_v25 = vpop.permute.xlu1 %2391 }
 0xdf5   : > { %4218 = vpow2.f32 %v2271_v19  ;;  %v2397_v29 = vsel %vm938_vm2, %v2392_v25, 0 }
 0xdf6   : > { %v2440_v7 = vpop.permute.xlu0 %2439  ;;  %4220 = vpow2.f32 %v2263_v36 }
 0xdf7   : > { %4222 = vpow2.f32 %v2265_v37 }
 0xdf8   : > { %v2390_v10 = vpop.permute.xlu1 %2389 }
 0xdfa   : > { %v2520_v20 = vpop.permute.xlu0 %2519 }
 0xdfb   : > { %v2525_v32 = vsel %vm1078_vm3, %v2520_v20, 0 }
 0xdfc   : > { %v2568_v31 = vpop.permute.xlu1 %2567 }
 0xdfd   : > { %v5354_v26 = vpop.eup %4216  ;;  %v2573_v33 = vsel %vm1078_vm3, %v2568_v31, 0 }
 0xdfe   : > { %v2283_v63 = vpack.c.bf16 %v5354_v26, %v5354_v26 }
 0xdff   : > { %v5358_v27 = vpop.eup %4218 }
 0xe00   : > { %3911 = vmatmul.mubr.msk.bf16.vlgmr.msra.gmra.mrb[40].mxu0 %vm938_vm2, %v2283_v63  ;;  %v2284_v17 = vpack.c.bf16 %v5358_v27, %v5358_v27  ;;  %v4221_v39 = vpop.eup %4220 }
 0xe01   : > { %3921 = vmatpush3.bf16.xpose.msra.mxu0 %v2397_v29  ;;  %3922 = vmatprep.mubr.msk.bf16.mxu0 %vm4562_vm0, %v4561_v0  ;;  %v4223_v40 = vpop.eup %4222  ;;  %v5382_v14 = vmul.f32 0.0, %v4221_v39 }
 0xe02   : > { %3917 = vmatmul.mubr.msk.bf16.vlgmr.msra.gmra.mrb[48].mxu1 %vm938_vm2, %v2284_v17  ;;  %3932 = vmatprep.subr.bf16.mxu0 %v4561_v0  ;;  %v5387_v49 = vmul.f32 0.0, %v4223_v40 }
 0xe03   : > { %3927 = vmatpush3.bf16.xpose.msra.mxu1 %v2447_v30  ;;  %3928 = vmatprep.mubr.msk.bf16.mxu1 %vm4562_vm0, %v4561_v0 }
 0xe04   : > { %3938 = vmatprep.subr.bf16.mxu1 %v4561_v0 }
 0xe08   : > { %3923 = vmatmul.mubr.msk.bf16.vlgmr.msra.gmra.mrb[44].mxu0 %vm938_vm2, %v2390_v10 }
 0xe09   : > { %3933 = vmatpush3.bf16.msra.mxu0 %v2525_v32  ;;  %3934 = vmatprep.mubr.msk.bf16.mxu0 %vm4562_vm0, %v4561_v0 }
 0xe0a   : > { %3929 = vmatmul.mubr.msk.bf16.vlgmr.msra.gmra.mrb[52].mxu1 %vm938_vm2, %v2440_v7  ;;  %3944 = vmatprep.subr.bf16.mxu0 %v4561_v0 }
 0xe0b   : > { %3939 = vmatpush3.bf16.msra.mxu1 %v2573_v33  ;;  %3940 = vmatprep.mubr.msk.bf16.mxu1 %vm4562_vm0, %v4561_v0 }
 0xe0c   : > { %3950 = vmatprep.subr.bf16.mxu1 %v4561_v0 }
 0xed3   : > { %v2327_v11 = vpop.f32.mrb[40].mxu0 }
 0xed4   : > { %v5385_v41 = vadd.f32 %v2327_v11, %v5382_v14  ;;  %v3912_v44 = vpop.f32.mrb[41].mxu0 }
 0xed5   : > { %v2330_v45 = vpop.f32.mrb[42].mxu0  ;;  %v2375_v43 = vpop.f32.mrb[48].mxu1 }
 0xed6   : > { %v5390_v46 = vadd.f32 %v2375_v43, %v5387_v49  ;;  %v3913_v47 = vpop.f32.mrb[43].mxu0  ;;  %v3918_v18 = vpop.f32.mrb[49].mxu1 }
 0xed7   : > { %v2378_v48 = vpop.f32.mrb[50].mxu1 }
 0xed8   : > { %v3919_v50 = vpop.f32.mrb[51].mxu1 }
 0xedb   : > { %v2433_v51 = vpop.f32.mrb[44].mxu0 }
 0xedc   : > { %v3924_v53 = vpop.f32.mrb[45].mxu0  ;;  %v2489_v54 = vsel %vm938_vm2, %v2433_v51, -inf }
 0xedd   : > { %2490 = vmax.xlane.f32.xlu1 %v2489_v54  ;;  %v2436_v55 = vpop.f32.mrb[46].mxu0  ;;  %v2483_v57 = vpop.f32.mrb[52].mxu1 }
 0xede   : > { %v3925_v58 = vpop.f32.mrb[47].mxu0  ;;  %v3930_v52 = vpop.f32.mrb[53].mxu1  ;;  %v2492_v61 = vsel %vm938_vm2, %v2483_v57, -inf }
 0xedf   : > { %2493 = vmax.xlane.f32.xlu0 %v2492_v61  ;;  %v2486_v2 = vpop.f32.mrb[54].mxu1 }
 0xee0   : > { %v3931_v5 = vpop.f32.mrb[55].mxu1 }
 0xeee   : > { %2633 = vrot.lane.b32.xlu1 %v5310_v42, %s4569_s14 }
 0xef2   : > { %2631 = vrot.lane.b32.xlu1 %v5324_v59, %s4569_s14 }
 0xef5   : > { %2683 = vrot.lane.b32.xlu0 %v5312_v16, %s4569_s14 }
 0xef6   : > { %2809 = vrot.lane.b32.xlu1 %v5312_v16, %s4568_s15 }
 0xef9   : > { %2681 = vrot.lane.b32.xlu0 %v5327_v62, %s4569_s14  ;;  %s5756_s14 = sld [smem:[#allocation35_spill]] }
 0xefd   : > { %2761 = vrot.lane.b32.xlu0 %v5310_v42, %s4568_s15 }
 0xf6a   : > { %v2491_v56 = vpop.xlane.xlu1 %2490 }
 0xf6b   : > { %v2501_v1 = vsub.f32 %v2433_v51, %v2491_v56  ;;  %v2495_v17 = vsub.f32 -inf, %v2491_v56 }
 0xf6c   : > { %v2494_v8 = vpop.xlane.xlu0 %2493 }
 0xf6d   : > { %v2503_v12 = vmul.f32 1.442695, %v2501_v1  ;;  %v2502_v13 = vsub.f32 %v2483_v57, %v2494_v8  ;;  %v2496_v10 = vsub.f32 -inf, %v2494_v8  ;;  %v2497_v30 = vmul.f32 1.442695, %v2495_v17 }
 0xf6e   : > { %v2634_v6 = vpop.permute.xlu1 %2633 }
 0xf6f   : > { %v2505_v9 = vmul.f32 1.442695, %v2502_v13  ;;  %4224 = vpow2.f32 %v2503_v12  ;;  %v2639_v4 = vsel %vm938_vm2, %v2634_v6, 0  ;;  %v2499_v20 = vmul.f32 1.442695, %v2496_v10 }
 0xf70   : > { %v2684_v60 = vpop.permute.xlu0 %2683 }
 0xf71   : > { %4226 = vpow2.f32 %v2505_v9  ;;  %v2689_v15 = vsel %vm938_vm2, %v2684_v60, 0 }
 0xf72   : > { %v2632_v19 = vpop.permute.xlu1 %2631  ;;  %4228 = vpow2.f32 %v2497_v30 }
 0xf73   : > { %4230 = vpow2.f32 %v2499_v20 }
 0xf74   : > { %v2682_v23 = vpop.permute.xlu0 %2681 }
 0xf76   : > { %v2810_v63 = vpop.permute.xlu1 %2809 }
 0xf77   : > { %v2815_v29 = vsel %vm1078_vm3, %v2810_v63, 0 }
 0xf78   : > { %v2762_v25 = vpop.permute.xlu0 %2761 }
 0xf79   : > { %v5406_v21 = vpop.eup %4224  ;;  %v2767_v7 = vsel %vm1078_vm3, %v2762_v25, 0 }
 0xf7a   : > { %v2517_v22 = vpack.c.bf16 %v5406_v21, %v5406_v21 }
 0xf7b   : > { %v5410_v3 = vpop.eup %4226 }
 0xf7c   : > { %3935 = vmatmul.mubr.msk.bf16.vlgmr.msra.gmra.mrb[48].mxu0 %vm938_vm2, %v2517_v22  ;;  %v2518_v24 = vpack.c.bf16 %v5410_v3, %v5410_v3  ;;  %v4229_v31 = vpop.eup %4228 }
 0xf7d   : > { %3945 = vmatpush3.bf16.xpose.msra.mxu0 %v2639_v4  ;;  %3946 = vmatprep.mubr.msk.bf16.mxu0 %vm4562_vm0, %v4561_v0  ;;  %v4231_v32 = vpop.eup %4230  ;;  %v5434_v33 = vmul.f32 0.0, %v4229_v31 }
 0xf7e   : > { %3941 = vmatmul.mubr.msk.bf16.vlgmr.msra.gmra.mrb[56].mxu1 %vm938_vm2, %v2518_v24  ;;  %3956 = vmatprep.subr.bf16.mxu0 %v4561_v0  ;;  %v5439_v37 = vmul.f32 0.0, %v4231_v32 }
 0xf7f   : > { %3951 = vmatpush3.bf16.xpose.msra.mxu1 %v2689_v15  ;;  %3952 = vmatprep.mubr.msk.bf16.mxu1 %vm4562_vm0, %v4561_v0 }
 0xf80   : > { %3962 = vmatprep.subr.bf16.mxu1 %v4561_v0 }
 0xf84   : > { %3947 = vmatmul.mubr.msk.bf16.vlgmr.msra.gmra.mrb[52].mxu0 %vm938_vm2, %v2632_v19 }
 0xf85   : > { %3957 = vmatpush3.bf16.msra.mxu0 %v2767_v7  ;;  %3958 = vmatprep.mubr.msk.bf16.mxu0 %vm4562_vm0, %v4561_v0 }
 0xf86   : > { %3953 = vmatmul.mubr.msk.bf16.vlgmr.msra.gmra.mrb[60].mxu1 %vm938_vm2, %v2682_v23  ;;  %3968 = vmatprep.subr.bf16.mxu0 %v4561_v0 }
 0xf87   : > { %3963 = vmatpush3.bf16.msra.mxu1 %v2815_v29  ;;  %3964 = vmatprep.mubr.msk.bf16.mxu1 %vm4562_vm0, %v4561_v0 }
 0xf88   : > { %3974 = vmatprep.subr.bf16.mxu1 %v4561_v0 }
0x104f   : > { %v2561_v34 = vpop.f32.mrb[48].mxu0 }
0x1050   : > { %v5437_v35 = vadd.f32 %v2561_v34, %v5434_v33  ;;  %v3936_v36 = vpop.f32.mrb[49].mxu0 }
0x1051   : > { %v2564_v39 = vpop.f32.mrb[50].mxu0  ;;  %v2609_v40 = vpop.f32.mrb[56].mxu1 }
0x1052   : > { %v5442_v11 = vadd.f32 %v2609_v40, %v5439_v37  ;;  %v3937_v44 = vpop.f32.mrb[51].mxu0  ;;  %v3942_v45 = vpop.f32.mrb[57].mxu1 }
0x1053   : > { %v2612_v43 = vpop.f32.mrb[58].mxu1 }
0x1054   : > { %v3943_v47 = vpop.f32.mrb[59].mxu1 }
0x1057   : > { %v2675_v18 = vpop.f32.mrb[52].mxu0 }
0x1058   : > { %v3948_v48 = vpop.f32.mrb[53].mxu0  ;;  %v2731_v50 = vsel %vm938_vm2, %v2675_v18, -inf }
0x1059   : > { %2732 = vmax.xlane.f32.xlu1 %v2731_v50  ;;  %v2678_v51 = vpop.f32.mrb[54].mxu0  ;;  %v2725_v53 = vpop.f32.mrb[60].mxu1 }
0x105a   : > { %v3949_v54 = vpop.f32.mrb[55].mxu0  ;;  %v3954_v55 = vpop.f32.mrb[61].mxu1  ;;  %v2734_v57 = vsel %vm938_vm2, %v2725_v53, -inf }
0x105b   : > { %2735 = vmax.xlane.f32.xlu0 %v2734_v57  ;;  %v2728_v58 = vpop.f32.mrb[62].mxu1  ;;  %v2509_v57 = vsel %vm938_vm2, %v5406_v21, 0.0 }
0x105c   : > { %v3955_v52 = vpop.f32.mrb[63].mxu1  ;;  %v2512_v58 = vsel %vm938_vm2, %v5410_v3, 0.0 }
0x106a   : > { %2875 = vrot.lane.b32.xlu1 %v5310_v42, %s4572_s4 }
0x106e   : > { %2873 = vrot.lane.b32.xlu1 %v5324_v59, %s4572_s4 }
0x1071   : > { %2925 = vrot.lane.b32.xlu0 %v5312_v16, %s4572_s4 }
0x1075   : > { %2923 = vrot.lane.b32.xlu0 %v5327_v62, %s4572_s4  ;;  %s4577_s4 = smov [#allocation15]  }
0x1076   : > { %s4474_s7 = sshll.u32 %s4577_s4, 4  ;;  %s4475_s7 = int_to_ptr.vmem [resolvable:$false] %s4474_s7 }
0x1077   : > { %s4476_s8 = scalar_lea.vmem %s4475_s7, 512 }
0x10e6   : > { %v2733_v61 = vpop.xlane.xlu1 %2732 }
0x10e7   : > { %v2743_v2 = vsub.f32 %v2675_v18, %v2733_v61  ;;  %v2737_v24 = vsub.f32 -inf, %v2733_v61 }
0x10e8   : > { %v2736_v5 = vpop.xlane.xlu0 %2735 }
0x10e9   : > { %v2745_v56 = vmul.f32 1.442695, %v2743_v2  ;;  %v2744_v1 = vsub.f32 %v2725_v53, %v2736_v5  ;;  %v2738_v19 = vsub.f32 -inf, %v2736_v5  ;;  %v2739_v15 = vmul.f32 1.442695, %v2737_v24 }
0x10ea   : > { %v2876_v13 = vpop.permute.xlu1 %2875 }
0x10eb   : > { %v2747_v8 = vmul.f32 1.442695, %v2744_v1  ;;  %4232 = vpow2.f32 %v2745_v56  ;;  %v2881_v59 = vsel %vm938_vm2, %v2876_v13, 0  ;;  %v2741_v25 = vmul.f32 1.442695, %v2738_v19 }
0x10ec   : > { %v2926_v6 = vpop.permute.xlu0 %2925 }
0x10ed   : > { %4234 = vpow2.f32 %v2747_v8  ;;  %v2931_v62 = vsel %vm938_vm2, %v2926_v6, 0 }
0x10ee   : > { %v2874_v23 = vpop.permute.xlu1 %2873  ;;  %4236 = vpow2.f32 %v2739_v15 }
0x10ef   : > { %4238 = vpow2.f32 %v2741_v25 }
0x10f0   : > { %v2924_v4 = vpop.permute.xlu0 %2923 }
0x10f5   : > { %v4233_v12 = vpop.eup %4232 }
0x10f6   : > { %v2759_v9 = vpack.c.bf16 %v4233_v12, %v4233_v12  ;;  %v2751_v61 = vsel %vm938_vm2, %v4233_v12, 0.0 }
0x10f7   : > { %v4235_v60 = vpop.eup %4234 }
0x10f8   : > { %3959 = vmatmul.mubr.msk.bf16.vlgmr.msra.gmra.mrb[56].mxu0 %vm938_vm2, %v2759_v9  ;;  %v2760_v22 = vpack.c.bf16 %v4235_v60, %v4235_v60  ;;  %v4237_v63 = vpop.eup %4236  ;;  %v2754_v52 = vsel %vm938_vm2, %v4235_v60, 0.0 }
0x10f9   : > { %3969 = vmatpush3.bf16.xpose.msra.mxu0 %v2881_v59  ;;  %3970 = vmatprep.mubr.msk.bf16.mxu0 %vm4562_vm0, %v4561_v0  ;;  %v4239_v7 = vpop.eup %4238  ;;  %v5470_v29 = vmul.f32 0.0, %v4237_v63 }
0x10fa   : > { %3965 = vmatmul.mubr.msk.bf16.vlgmr.msra.gmra.mrb[64].mxu1 %vm938_vm2, %v2760_v22  ;;  %3980 = vmatprep.subr.bf16.mxu0 %v4561_v0  ;;  %v5475_v20 = vmul.f32 0.0, %v4239_v7 }
0x10fb   : > { %3975 = vmatpush3.bf16.xpose.msra.mxu1 %v2931_v62  ;;  %3976 = vmatprep.mubr.msk.bf16.mxu1 %vm4562_vm0, %v4561_v0  ;;  %v2275_v62 = vsel %vm938_vm2, %v5354_v26, 0.0 }
0x10fc   : > { %3986 = vmatprep.subr.bf16.mxu1 %v4561_v0 }
0x1100   : > { %3971 = vmatmul.mubr.msk.bf16.vlgmr.msra.gmra.mrb[60].mxu0 %vm938_vm2, %v2874_v23  ;;  %v2278_v23 = vsel %vm938_vm2, %v5358_v27, 0.0 }
0x1101   : > { %3982 = vmatprep.mubr.msk.bf16.mxu0 %vm4562_vm0, %v4561_v0 }
0x1102   : > { %3977 = vmatmul.mubr.msk.bf16.vlgmr.msra.gmra.mrb[68].mxu1 %vm938_vm2, %v2924_v4 }
0x1103   : > { %3988 = vmatprep.mubr.msk.bf16.mxu1 %vm4562_vm0, %v4561_v0 }
0x11cb   : > { %v2803_v17 = vpop.f32.mrb[56].mxu0 }
0x11cc   : > { %v5473_v10 = vadd.f32 %v2803_v17, %v5470_v29  ;;  %v3960_v30 = vpop.f32.mrb[57].mxu0 }
0x11cd   : > { %v2806_v31 = vpop.f32.mrb[58].mxu0  ;;  %v2851_v32 = vpop.f32.mrb[64].mxu1 }
0x11ce   : > { %v5478_v34 = vadd.f32 %v2851_v32, %v5475_v20  ;;  %v3961_v36 = vpop.f32.mrb[59].mxu0  ;;  %v3966_v39 = vpop.f32.mrb[65].mxu1 }
0x11cf   : > { %v2854_v40 = vpop.f32.mrb[66].mxu1 }
0x11d0   : > { %v3967_v44 = vpop.f32.mrb[67].mxu1 }
0x11d3   : > { %v2917_v45 = vpop.f32.mrb[60].mxu0 }
0x11d4   : > { %v3972_v43 = vpop.f32.mrb[61].mxu0  ;;  %v2973_v47 = vsel %vm938_vm2, %v2917_v45, -inf }
0x11d5   : > { %2974 = vmax.xlane.f32.xlu1 %v2973_v47  ;;  %v2920_v18 = vpop.f32.mrb[62].mxu0  ;;  %v2967_v48 = vpop.f32.mrb[68].mxu1 }
0x11d6   : > { %v3973_v50 = vpop.f32.mrb[63].mxu0  ;;  %v3978_v51 = vpop.f32.mrb[69].mxu1  ;;  %v2976_v53 = vsel %vm938_vm2, %v2967_v48, -inf }
0x11d7   : > { %2977 = vmax.xlane.f32.xlu0 %v2976_v53  ;;  %v2970_v54 = vpop.f32.mrb[70].mxu1 }
0x11d8   : > { %v3979_v55 = vpop.f32.mrb[71].mxu1 }
0x11e6   : > { %3051 = vrot.lane.b32.xlu1 %v5312_v16, %s5748_s21 }
0x11ed   : > { %3003 = vrot.lane.b32.xlu0 %v5310_v42, %s5748_s21  ;;  %s5751_s21 = sld [smem:[#allocation31_spill]] }
0x120a   : > { %2510 = vadd.xlane.f32.xlu1 %v2509_v57 }
0x120c   : > { %2513 = vadd.xlane.f32.xlu0 %v2512_v58  ;;  %v4156_v58 = vld [vmem:[%s5666_s10] sm:$0xff]  }
0x120e   : > { %2755 = vadd.xlane.f32.xlu1 %v2754_v52  ;;  %v4157_v52 = vld [vmem:[%s5666_s10 + $0x8] sm:$0xff]  }
0x1210   : > { %2752 = vadd.xlane.f32.xlu0 %v2751_v61 }
0x1262   : > { %v5492_v2 = vpop.xlane.xlu1 %2974 }
0x1263   : > { %v2985_v16 = vsub.f32 %v2917_v45, %v5492_v2 }
0x1264   : > { %v5495_v5 = vpop.xlane.xlu0 %2977 }
0x1265   : > { %v2987_v42 = vmul.f32 1.442695, %v2985_v16  ;;  %v2986_v21 = vsub.f32 %v2967_v48, %v5495_v5  ;;  %v2980_v18 = vsub.f32 -inf, %v5495_v5 }
0x1266   : > { %v3052_v56 = vpop.permute.xlu1 %3051 }
0x1267   : > { %v2989_v1 = vmul.f32 1.442695, %v2986_v21  ;;  %v3057_v3 = vsel %vm1078_vm3, %v3052_v56, 0  ;;  %4240 = vpow2.f32 %v2987_v42 }
0x1268   : > { %3987 = vmatpush3.bf16.msra.mxu1 %v3057_v3  ;;  %v3004_v8 = vpop.permute.xlu0 %3003 }
0x1269   : > { %v3009_v13 = vsel %vm1078_vm3, %v3004_v8, 0  ;;  %4000 = vmatprep.subr.bf16.mxu1 %v4561_v0  ;;  %4242 = vpow2.f32 %v2989_v1 }
0x126a   : > { %3981 = vmatpush3.bf16.msra.mxu0 %v3009_v13 }
0x126b   : > { %3992 = vmatprep.subr.bf16.mxu0 %v4561_v0 }
0x1271   : > { %v4241_v12 = vpop.eup %4240 }
0x1272   : > { %v2993_v9 = vsel %vm938_vm2, %v4241_v12, 0.0  ;;  %v3001_v60 = vpack.c.bf16 %v4241_v12, %v4241_v12 }
0x1273   : > { %v4243_v6 = vpop.eup %4242  ;;  %2994 = vadd.xlane.f32.xlu0 %v2993_v9 }
0x1274   : > { %3983 = vmatmul.mubr.msk.bf16.vlgmr.msra.gmra.mrb[64].mxu0 %vm938_vm2, %v3001_v60  ;;  %v2996_v59 = vsel %vm938_vm2, %v4243_v6, 0.0  ;;  %v3002_v22 = vpack.c.bf16 %v4243_v6, %v4243_v6 }
0x1275   : > { %2997 = vadd.xlane.f32.xlu1 %v2996_v59  ;;  %3996 = vmatprep.mubr.msk.bf16.mxu0 %vm4562_vm0, %v4561_v0 }
0x1276   : > { %3989 = vmatmul.mubr.msk.bf16.vlgmr.msra.gmra.mrb[72].mxu1 %vm938_vm2, %v3002_v22  ;;  %3993 = vmatpush3.bf16.msra.mxu0 %v4156_v58  ;;  %v4162_v58 = vld [vmem:[%s5751_s21 + $0x10] sm:$0xff]  }
0x1277   : > { %2276 = vadd.xlane.f32.xlu0 %v2275_v62  ;;  %4004 = vmatprep.mubr.msk.bf16.mxu1 %vm4562_vm0, %v4561_v0 }
0x1278   : > { %3994 = vmatprep.subr.bf16.mxu0 %v4561_v0 }
0x1279   : > { %2279 = vadd.xlane.f32.xlu1 %v2278_v23 }
0x127a   : > { %3995 = vmatpush3.bf16.msra.mxu0 %v4157_v52  ;;  %v4163_v52 = vld [vmem:[%s5751_s21 + $0x18] sm:$0xff]  }
0x127b   : > { %4008 = vmatprep.subr.bf16.mxu0 %v4561_v0 }
0x1297   : > { %v2511_v4 = vpop.xlane.xlu1 %2510 }
0x1298   : > { %v2515_v24 = vadd.f32 %v2511_v4, %v5434_v33  ;;  %v3648_v4 = vld [vmem:[%s5667_s11] ss:$0 sm:$0xff] }
0x1299   : > { %v2514_v19 = vpop.xlane.xlu0 %2513 }
0x129a   : > { %4244 = vrcp.f32 %v2515_v24  ;;  %v2516_v15 = vadd.f32 %v2514_v19, %v5439_v37 }
0x129b   : > { %v2756_v25 = vpop.xlane.xlu1 %2755 }
0x129c   : > { %4246 = vrcp.f32 %v2516_v15  ;;  %v2758_v63 = vadd.f32 %v2756_v25, %v5475_v20 }
0x129d   : > { %v2753_v26 = vpop.xlane.xlu0 %2752 }
0x129e   : > { %4248 = vrcp.f32 %v2758_v63  ;;  %v2757_v7 = vadd.f32 %v2753_v26, %v5470_v29 }
0x12a0   : > { %4250 = vrcp.f32 %v2757_v7 }
0x12a4   : > { %v4245_v17 = vpop.eup %4244 }
0x12a5   : > { %v2619_v27 = vmul.f32 %v4245_v17, %v5437_v35 }
0x12a6   : > { %v4247_v30 = vpop.eup %4246 }
0x12a7   : > { %2623 = vrot.lane.b32.xlu0 %v2619_v27, %s5749_s19  ;;  %v2620_v33 = vmul.f32 %v4247_v30, %v5442_v11 }
0x12a8   : > { %v4249_v31 = vpop.eup %4248 }
0x12a9   : > { %2625 = vrot.lane.b32.xlu1 %v2620_v33, %s5749_s19  ;;  %v2862_v37 = vmul.f32 %v4249_v31, %v5478_v34 }
0x12aa   : > { %v4251_v32 = vpop.eup %4250 }
0x12ab   : > { %2867 = vrot.lane.b32.xlu0 %v2862_v37, %s5750_s2  ;;  %v2861_v20 = vmul.f32 %v4251_v32, %v5473_v10 }
0x12ad   : > { %2865 = vrot.lane.b32.xlu1 %v2861_v20, %s5750_s2  ;;  %s5759_s2 = sld [smem:[#allocation37_spill]] }
0x12b3   : > { %s5607_s15 = scalar_lea.hbm %s5759_s2, %s3680_s27 }
0x1300   : > { %v2995_v29 = vpop.xlane.xlu0 %2994 }
0x1302   : > { %v2998_v36 = vpop.xlane.xlu1 %2997 }
0x1304   : > { %v2277_v35 = vpop.xlane.xlu0 %2276 }
0x1305   : > { %v2281_v39 = vadd.f32 %v2277_v35, %v5382_v14 }
0x1306   : > { %v2280_v40 = vpop.xlane.xlu1 %2279 }
0x1307   : > { %4252 = vrcp.f32 %v2281_v39  ;;  %v2282_v11 = vadd.f32 %v2280_v40, %v5387_v49  ;;  %v4158_v40 = vld [vmem:[#allocation14] sm:$0xff]  }
0x1308   : > { %4001 = vmatpush3.bf16.msra.mxu1 %v4158_v40 }
0x1309   : > { %4254 = vrcp.f32 %v2282_v11  ;;  %4002 = vmatprep.subr.bf16.mxu1 %v4561_v0  ;;  %v4160_v11 = vld [vmem:[%s5751_s21] sm:$0xff]  }
0x1311   : > { %v4253_v44 = vpop.eup %4252 }
0x1312   : > { %v2385_v34 = vmul.f32 %v4253_v44, %v5385_v41  ;;  %v2979_v41 = vsub.f32 -inf, %v5492_v2  ;;  %v4161_v44 = vld [vmem:[%s5751_s21 + $0x8] sm:$0xff]  }
0x1313   : > { %v4255_v45 = vpop.eup %4254 }
0x1314   : > { %2387 = vst.msk [vmem:[#allocation2] sm:$0xff] %vm938_vm2, %v2385_v34  ;;  %v2386_v10 = vmul.f32 %v4255_v45, %v5390_v46  ;;  %v2981_v48 = vmul.f32 1.442695, %v2979_v41  ;;  %v2983_v46 = vmul.f32 1.442695, %v2980_v18 }
0x1315   : > { %v3652_v41 = vld [vmem:[%s5752_s26] ss:$0 sm:$0xff] }
0x1316   : > { %2388 = vst.msk [vmem:[#allocation2 + $0x8] sm:$0xff] %vm938_vm2, %v2386_v10  ;;  %4256 = vpow2.f32 %v2981_v48 }
0x1317   : > { %4258 = vpow2.f32 %v2983_v46 }
0x1319   : > { %v2624_v43 = vpop.permute.xlu0 %2623 }
0x131a   : > { %2629 = vst.msk [vmem:[#allocation2] sm:$0xff] %vm1420_vm5, %v2624_v43 }
0x131b   : > { %v2626_v47 = vpop.permute.xlu1 %2625 }
0x131c   : > { %2630 = vst.msk [vmem:[#allocation2 + $0x8] sm:$0xff] %vm1420_vm5, %v2626_v47 }
0x131d   : > { %v2868_v14 = vpop.permute.xlu0 %2867 }
0x131e   : > { %2872 = vst.msk [vmem:[#allocation2 + $0x8] sm:$0xff] %vm1665_vm6, %v2868_v14 }
0x131f   : > { %v2866_v49 = vpop.permute.xlu1 %2865 }
0x1320   : > { %2871 = vst.msk [vmem:[#allocation2] sm:$0xff] %vm1665_vm6, %v2866_v49  ;;  %v4257_v50 = vpop.eup %4256 }
0x1321   : > { %v4259_v51 = vpop.eup %4258  ;;  %v2991_v53 = vmul.f32 0.0, %v4257_v50 }
0x1322   : > { %v2992_v55 = vmul.f32 0.0, %v4259_v51 }
0x1323   : > { %v2999_v54 = vadd.f32 %v2995_v29, %v2991_v53 }
0x1324   : > { %v3000_v57 = vadd.f32 %v2998_v36, %v2992_v55 }
0x1325   : > { %4260 = vrcp.f32 %v2999_v54 }
0x1326   : > { %4262 = vrcp.f32 %v3000_v57 }
0x132f   : > { %v4261_v5 = vpop.eup %4260 }
0x1330   : > { %v4263_v13 = vpop.eup %4262 }
0x1347   : > { %v3045_v61 = vpop.f32.mrb[64].mxu0 }
0x1348   : > { %v3099_v2 = vadd.f32 %v3045_v61, %v2991_v53  ;;  %v3984_v16 = vpop.f32.mrb[65].mxu0  ;;  %v3654_v61 = vld [vmem:[%s5754_s1] ss:$0 sm:$0xff]  ;;  %s5757_s1 = sld [smem:[#allocation36_spill]] }
0x1349   : > { %v3048_v42 = vpop.f32.mrb[66].mxu0  ;;  %v3093_v21 = vpop.f32.mrb[72].mxu1 }
0x134a   : > { %v3103_v56 = vmul.f32 %v4261_v5, %v3099_v2  ;;  %v3100_v1 = vadd.f32 %v3093_v21, %v2992_v55  ;;  %v3985_v3 = vpop.f32.mrb[67].mxu0  ;;  %v3990_v8 = vpop.f32.mrb[73].mxu1 }
0x134b   : > { %v3096_v12 = vpop.f32.mrb[74].mxu1 }
0x134c   : > { %v3104_v9 = vmul.f32 %v4263_v13, %v3100_v1  ;;  %3107 = vrot.lane.b32.xlu1 %v3103_v56, %s4576_s22  ;;  %v3991_v60 = vpop.f32.mrb[75].mxu1 }
0x134e   : > { %3109 = vrot.lane.b32.xlu0 %v3104_v9, %s4576_s22  ;;  %s5753_s22 = sld [smem:[#allocation34_spill]]  ;;  %v3665_v40 = vld [vmem:[%s5757_s1] ss:$0 sm:$0xff] }
0x1354   : > { %v3653_v51 = vld [vmem:[%s5753_s22] ss:$0 sm:$0xff]  ;;  %s5758_s22 = sshll.u32 %s4963_s6, 4 }
0x13be   : > { %v3108_v6 = vpop.permute.xlu1 %3107 }
0x13bf   : > { %3113 = vst.msk [vmem:[#allocation2] sm:$0xff] %vm1910_vm7, %v3108_v6 }
0x13c0   : > { %v3110_v59 = vpop.permute.xlu0 %3109 }
0x13c1   : > { %3114 = vst.msk [vmem:[#allocation2 + $0x8] sm:$0xff] %vm1910_vm7, %v3110_v59 }
0x13c6   : > { %v3115_v22 = vld [vmem:[#allocation2] sm:$0xff] }
0x13c8   : > { %v3116_v62 = vld [vmem:[#allocation2 + $0x8] sm:$0xff] }
0x13c9   : > { %v3117_v23 = vpack.c.bf16 %v3116_v62, %v3115_v22 }
0x13cb   : > { %3997 = vmatmul.mubr.msk.bf16.vlgmr.msra.gmra.mrb[68].mxu0 %vm878_vm1, %v3117_v23 }
0x13cc   : > { %4016 = vmatprep.mubr.msk.bf16.mxu0 %vm4562_vm0, %v4561_v0  ;;  %4009 = vmatpush3.bf16.msra.mxu0 %v4160_v11 }
0x13cd   : > { %4010 = vmatprep.subr.bf16.mxu0 %v4561_v0 }
0x13d0   : > { %4011 = vmatpush3.bf16.msra.mxu0 %v4161_v44 }
0x13d1   : > { %4012 = vmatprep.subr.bf16.mxu0 %v4561_v0 }
0x13d4   : > { %4013 = vmatpush3.bf16.msra.mxu0 %v4162_v58 }
0x13d5   : > { %4014 = vmatprep.subr.bf16.mxu0 %v4561_v0  ;;  %v3658_v0 = vld [vmem:[%s5755_s18] ss:$0 sm:$0xff]  ;;  %s800_s18 = scalar_lea.vmem [#allocation15], %s5758_s22 }
0x13d6   : > { %s3425_s0 = sshll.u32 %s800_s18, 4  ;;  %s5610_s0 = int_to_ptr.vmem [resolvable:$true] %s3425_s0 }
0x13d7   : > { %p4477_p0 = scmp.lt.s32.totalorder %s5610_s0, %s4475_s7 }
0x13d8   : > { %4015 = vmatpush3.bf16.msra.mxu0 %v4163_v52 }
0x149e   : > { %v3173_v24 = vpop.f32.mrb[68].mxu0 }
0x149f   : > { %v3174_v19 = vadd.f32 %v3648_v4, %v3173_v24  ;;  %v3998_v15 = vpop.f32.mrb[69].mxu0 }
0x14a0   : > { %v3176_v25 = vpop.f32.mrb[70].mxu0 }
0x14a1   : > { %v3177_v63 = vadd.f32 %v3648_v4, %v3176_v25  ;;  %v3999_v26 = vpop.f32.mrb[71].mxu0  ;;  %v3180_v7 = vadd.f32 %v3174_v19, %v5301_v38 }
0x14a3   : > { %v3182_v17 = vsel %vm878_vm1, %v3180_v7, 0.0  ;;  %v3181_v27 = vadd.f32 %v3177_v63, %v5303_v28  ;;  %v4159_v28 = vld [vmem:[#allocation14 + $0x8] sm:$0xff]  }
0x14a4   : > { %3183 = vadd.xlane.f32.xlu1 %v3182_v17  ;;  %4003 = vmatpush3.bf16.msra.mxu1 %v4159_v28 }
0x14a5   : > { %v3185_v30 = vsel %vm878_vm1, %v3181_v27, 0.0 }
0x14a6   : > { %3186 = vadd.xlane.f32.xlu0 %v3185_v30 }
0x1531   : > { %v3184_v33 = vpop.xlane.xlu1 %3183 }
0x1532   : > { %v3188_v31 = vmul.f32 0.03125, %v3184_v33 }
0x1533   : > { %v3187_v37 = vpop.xlane.xlu0 %3186 }
0x1534   : > { %v3190_v32 = vsub.f32 %v3180_v7, %v3188_v31  ;;  %v3189_v20 = vmul.f32 0.03125, %v3187_v37 }
0x1536   : > { %v3191_v29 = vsub.f32 %v3181_v27, %v3189_v20  ;;  %v3192_v36 = vmul.f32 %v3190_v32, %v3190_v32 }
0x1538   : > { %v3194_v35 = vsel %vm878_vm1, %v3192_v36, 0.0  ;;  %v3193_v39 = vmul.f32 %v3191_v29, %v3191_v29 }
0x1539   : > { %3195 = vadd.xlane.f32.xlu0 %v3194_v35  ;;  %v3664_v35 = vld [vmem:[%s5756_s14] ss:$0 sm:$0xff]  ;;  %s4470_s14 = scalar_lea.vmem %s5610_s0, 256 }
0x153a   : > { %v3197_v38 = vsel %vm878_vm1, %v3193_v39, 0.0  ;;  %p4471_p9 = scmp.ne.s32.totalorder %s5610_s0, %s4470_s14  ;;  %p4478_p2 = scmp.lt.s32.totalorder %s4476_s8, %s4470_s14 }
0x153b   : > { %3198 = vadd.xlane.f32.xlu1 %v3197_v38 }
0x153c   : > { %p4472_p1 = pnand %p4471_p9, %p5760_p12  ;;  %p4479_p8 = por %p4478_p2, %p4477_p0 }
0x153e   : > { %p4473_p13 = pneg %p4472_p1 }
0x1540   : > { %p4480_p4 = pnand %p4479_p8, %p4473_p13 }
0x15c6   : > { %v3196_v34 = vpop.xlane.xlu0 %3195 }
0x15c7   : > { %v3200_v45 = vmul.f32 0.03125, %v3196_v34 }
0x15c8   : > { %v3199_v10 = vpop.xlane.xlu1 %3198 }
0x15c9   : > { %v3202_v43 = vadd.f32 1e-05, %v3200_v45  ;;  %v3201_v47 = vmul.f32 0.03125, %v3199_v10 }
0x15cb   : > { %4264 = vrsqrt.f32 %v3202_v43  ;;  %v3203_v14 = vadd.f32 1e-05, %v3201_v47 }
0x15cd   : > { %4266 = vrsqrt.f32 %v3203_v14 }
0x15d5   : > { %v4265_v49 = vpop.eup %4264 }
0x15d6   : > { %v3206_v18 = vmul.f32 %v4265_v49, %v3190_v32 }
0x15d7   : > { %v4267_v48 = vpop.eup %4266 }
0x15d8   : > { %v3214_v46 = vmul.f32 %v3652_v41, %v3206_v18  ;;  %v3207_v50 = vmul.f32 %v4267_v48, %v3191_v29 }
0x15da   : > { %v3215_v53 = vmul.f32 %v3652_v41, %v3207_v50  ;;  %v3222_v54 = vadd.f32 %v3653_v51, %v3214_v46 }
0x15dc   : > { %v3223_v55 = vadd.f32 %v3653_v51, %v3215_v53 }
0x15de   : > { %v3224_v57 = vpack.c.bf16 %v3223_v55, %v3222_v54 }
0x15e0   : > { %4005 = vmatmul.mubr.msk.bf16.vlgmr.msra.gmra.mrb[76].mxu1 %vm878_vm1, %v3224_v57 }
0x16b3   : > { %v3280_v2 = vpop.f32.mrb[76].mxu1 }
0x16b4   : > { %v3281_v16 = vadd.f32 %v3654_v61, %v3280_v2  ;;  %v4006_v5 = vpop.f32.mrb[77].mxu1 }
0x16b5   : > { %v3283_v42 = vpop.f32.mrb[78].mxu1 }
0x16b6   : > { %v3284_v21 = vadd.f32 %v3654_v61, %v3283_v42  ;;  %v4007_v56 = vpop.f32.mrb[79].mxu1  ;;  %v3287_v1 = vmax.f32 %v3281_v16, 0.0 }
0x16b8   : > { %v3288_v3 = vmax.f32 %v3284_v21, 0.0 }
0x16ba   : > { %v3289_v8 = vpack.c.bf16 %v3288_v3, %v3287_v1 }
0x16bc   : > { %4017 = vmatmul.mubr.msk.bf16.vlgmr.msra.gmra.mrb[72].mxu0 %vm3320_vm8, %v3289_v8 }
0x178f   : > { %v3358_v13 = vpop.f32.mrb[72].mxu0 }
0x1790   : > { %v3359_v12 = vadd.f32 %v3658_v0, %v3358_v13  ;;  %v4018_v9 = vpop.f32.mrb[73].mxu0 }
0x1791   : > { %v3361_v60 = vpop.f32.mrb[74].mxu0 }
0x1792   : > { %v3365_v6 = vadd.f32 %v3359_v12, %v3222_v54  ;;  %v3362_v59 = vadd.f32 %v3658_v0, %v3361_v60  ;;  %v4019_v22 = vpop.f32.mrb[75].mxu0 }
0x1794   : > { %v3367_v62 = vsel %vm878_vm1, %v3365_v6, 0.0  ;;  %v3366_v23 = vadd.f32 %v3362_v59, %v3223_v55 }
0x1795   : > { %3368 = vadd.xlane.f32.xlu0 %v3367_v62 }
0x1796   : > { %v3370_v4 = vsel %vm878_vm1, %v3366_v23, 0.0 }
0x1797   : > { %3371 = vadd.xlane.f32.xlu1 %v3370_v4 }
0x1822   : > { %v3369_v24 = vpop.xlane.xlu0 %3368 }
0x1823   : > { %v3373_v19 = vmul.f32 0.03125, %v3369_v24 }
0x1824   : > { %v3372_v15 = vpop.xlane.xlu1 %3371 }
0x1825   : > { %v3375_v25 = vsub.f32 %v3365_v6, %v3373_v19  ;;  %v3374_v63 = vmul.f32 0.03125, %v3372_v15 }
0x1827   : > { %v3376_v26 = vsub.f32 %v3366_v23, %v3374_v63  ;;  %v3377_v7 = vmul.f32 %v3375_v25, %v3375_v25 }
0x1829   : > { %v3379_v17 = vsel %vm878_vm1, %v3377_v7, 0.0  ;;  %v3378_v27 = vmul.f32 %v3376_v26, %v3376_v26 }
0x182a   : > { %3380 = vadd.xlane.f32.xlu0 %v3379_v17 }
0x182b   : > { %v3382_v30 = vsel %vm878_vm1, %v3378_v27, 0.0 }
0x182c   : > { %3383 = vadd.xlane.f32.xlu1 %v3382_v30 }
0x18b7   : > { %v3381_v33 = vpop.xlane.xlu0 %3380 }
0x18b8   : > { %v3385_v31 = vmul.f32 0.03125, %v3381_v33 }
0x18b9   : > { %v3384_v37 = vpop.xlane.xlu1 %3383 }
0x18ba   : > { %v3387_v32 = vadd.f32 1e-05, %v3385_v31  ;;  %v3386_v20 = vmul.f32 0.03125, %v3384_v37 }
0x18bc   : > { %4268 = vrsqrt.f32 %v3387_v32  ;;  %v3388_v29 = vadd.f32 1e-05, %v3386_v20 }
0x18be   : > { %4270 = vrsqrt.f32 %v3388_v29 }
0x18c6   : > { %v4269_v36 = vpop.eup %4268 }
0x18c7   : > { %v3391_v39 = vmul.f32 %v4269_v36, %v3375_v25 }
0x18c8   : > { %v4271_v38 = vpop.eup %4270 }
0x18c9   : > { %v3399_v28 = vmul.f32 %v3664_v35, %v3391_v39  ;;  %v3392_v11 = vmul.f32 %v4271_v38, %v3376_v26 }
0x18cb   : > { %v3407_v44 = vadd.f32 %v3665_v40, %v3399_v28  ;;  %v3400_v34 = vmul.f32 %v3664_v35, %v3392_v11 }
0x18cd   : > { %v3408_v45 = vadd.f32 %v3665_v40, %v3400_v34  ;;  %3409 = vst.msk [vmem:[%s800_s18] sm:$0xff] %vm878_vm1, %v3407_v44 }
0x18cf   : > { %3410 = vst.msk [vmem:[%s800_s18 + $0x8] sm:$0xff] %vm878_vm1, %v3408_v45 }
0x18d0   : > { %4483 = shalt.err (!%p4480_p4)
}
0x18d1   : > { %s4484_s26 = scalar_lea.hbm %s5607_s15, 256  ;;  %s4488_s22 = scalar_lea.hbm %s5759_s2, 512 }
0x18d2   : > { %p4485_p10 = scmp.ne.s32.totalorder %s5607_s15, %s4484_s26  ;;  %p4489_p5 = scmp.lt.u32.totalorder %s5607_s15, %s5759_s2 }
0x18d3   : > { %p4490_p7 = scmp.lt.u32.totalorder %s4488_s22, %s4484_s26  ;;  %p4492_p9 = scmp.lt.u32.totalorder %s4484_s26, %s5607_s15 }
0x18d4   : > { %p4486_p11 = pnand %p4485_p10, %p5760_p12 }
0x18d5   : > { %p4491_p6 = por %p4490_p7, %p4489_p5 }
0x18d6   : > { %p4487_p3 = pneg %p4486_p11 }
0x18d7   : > { %p4493_p1 = por %p4492_p9, %p4491_p6 }
0x18d9   : > { %p4494_p13 = pnand %p4493_p1, %p4487_p3 }
0x18db   : > { %4497 = shalt.err (!%p4494_p13)
}
0x18dc   : > { %s4578_s14 = smov 128  }
0x18dd   : > { %4046 = dma.vmem_to_hbm [thread:$0]  (%p5760_p12), %s5610_s0, 256, %s5607_s15, %s3412_s23, %s4578_s14, %s4578_s14, %s5749_s19  }
0x18de PF: > { %s3440_s7 = sand.u32 1, %s4536_s3   ;;  %p5761_p0 = scmp.ne.s32.totalorder %s5732_s13, 0 }
0x18df   : > { %p5762_p2 = scmp.ge.s32.totalorder %s4548_s30, 2  ;;  %s3441_s8 = scalar_lea.sflag [#allocation5], %s3440_s7 }
0x18e1   : > { %p4072_p8 = pnand %p5762_p2, %p5761_p0 }
0x18e3   : > { %4531 = dma.done.wait (!%p4072_p8), %s3441_s8, 256  }
0x18e4   : > { %4533 = vsyncadd (!%p4072_p8), %s3441_s8, 4294967040  ;;  %p38_p4 = scmp.ge.s32.totalorder %s4884_s5, 4   ;;  %s5763_s3 = smov %s4540_s28 }
0x18e5   : > { %s5764_s28 = smov %s4544_s29  ;;  %s5765_s29 = smov %s4895_s20 }
0x18e6   : > { %s5766_s30 = smov %s4884_s5  ;;  %40 = sbr.rel (!%p38_p4) target bundleno = 26 (0x1a), region = 180 }
0x18ed   :  { %3446 = vsyncpa [#allocation4], 1 }
0x18ee   :  { %3448 = vsyncpa [#allocation4 + $0x1], 1 }
0x18ef   :  { %3449 = vsyncpa [#allocation7], 1 }
0x18f0   :  { %3450 = vsyncpa [#allocation10], 1 }
0x18f1   :  { %3451 = vsyncpa [#allocation13], 1 }
0x18f2   :  { %3452 = vsyncpa [#allocation5], 1 }
0x18f3   :  { %3454 = vsyncpa [#allocation5 + $0x1], 1 }

// kernel: tpu_custom_call.1
= control target key start
LH: loop header
LB: loop body
LE: loop exit
PB: predicated region body
PF: predicated region fallthrough
CT: control target
= control target key end

     0   :  { %s5656_s0 = inlined_call_operand.vmem [shape: f32[4,8,32], index: 0, kind: input, shape index: {}]   ;;  %s5657_s1 = inlined_call_operand.hbm [shape: f32[4,8,32], index: 1, kind: input, shape index: {}]   ;;  %s5658_s2 = inlined_call_operand.vmem [shape: bf16[32,96], index: 2, kind: input, shape index: {}]   ;;  %s5659_s3 = inlined_call_operand.vmem [shape: f32[1,96], index: 3, kind: input, shape index: {}]   ;;  %s5660_s4 = inlined_call_operand.hbm [shape: bf16[32,32], index: 4, kind: input, shape index: {}]   ;;  %s5661_s5 = inlined_call_operand.vmem [shape: f32[1,32], index: 5, kind: input, shape index: {}]   ;;  %s5662_s6 = inlined_call_operand.hbm [shape: bf16[32,32], index: 6, kind: input, shape index: {}]   ;;  %s5663_s7 = inlined_call_operand.hbm [shape: f32[1,32], index: 7, kind: input, shape index: {}]   ;;  %s5664_s8 = inlined_call_operand.hbm [shape: bf16[32,64], index: 8, kind: input, shape index: {}]   ;;  %s5665_s9 = inlined_call_operand.hbm [shape: f32[1,64], index: 9, kind: input, shape index: {}]   ;;  %s5666_s10 = inlined_call_operand.vmem [shape: bf16[32,32], index: 10, kind: input, shape index: {}]   ;;  %s5667_s11 = inlined_call_operand.vmem [shape: f32[1,32], index: 11, kind: input, shape index: {}]   ;;  %s5668_s12 = inlined_call_operand.hbm [shape: bf16[32,64], index: 12, kind: input, shape index: {}]   ;;  %s5669_s13 = inlined_call_operand.vmem [shape: f32[1,64], index: 13, kind: input, shape index: {}]   ;;  %s5670_s14 = inlined_call_operand.vmem [shape: bf16[64,32], index: 14, kind: input, shape index: {}]   ;;  %s5671_s15 = inlined_call_operand.vmem [shape: f32[1,32], index: 15, kind: input, shape index: {}]   ;;  %s5672_s16 = inlined_call_operand.vmem [shape: f32[1,32], index: 16, kind: input, shape index: {}]   ;;  %s5673_s17 = inlined_call_operand.vmem [shape: f32[1,32], index: 17, kind: input, shape index: {}]   ;;  %s5674_s18 = inlined_call_operand.vmem [shape: f32[1,32], index: 18, kind: input, shape index: {}]   ;;  %s5675_s19 = inlined_call_operand.vmem [shape: f32[1,32], index: 19, kind: input, shape index: {}]   ;;  %s5676_s20 = inlined_call_operand.vmem [shape: f32[1,32], index: 20, kind: input, shape index: {}]   ;;  %s5677_s21 = inlined_call_operand.vmem [shape: f32[1,32], index: 21, kind: input, shape index: {}]   ;;  %s5678_s22 = inlined_call_operand.hbm [shape: f32[4,8,32], index: 22, kind: output, shape index: {}]  }
   0x1   :  { %5702 = sst [smem:[#allocation21_spill]] %s5656_s0 }
   0x2   :  { %5703 = sst [smem:[#allocation22_spill]] %s5657_s1 }
   0x3   :  { %5704 = sst [smem:[#allocation23_spill]] %s5658_s2 }
   0x4   :  { %5705 = sst [smem:[#allocation24_spill]] %s5659_s3 }
   0x5   :  { %5706 = sst [smem:[#allocation25_spill]] %s5660_s4 }
   0x6   :  { %5707 = sst [smem:[#allocation26_spill]] %s5661_s5 }
   0x7   :  { %5708 = sst [smem:[#allocation27_spill]] %s5662_s6 }
   0x8   :  { %5709 = sst [smem:[#allocation28_spill]] %s5663_s7 }
   0x9   :  { %5710 = sst [smem:[#allocation29_spill]] %s5664_s8 }
   0xa   :  { %5711 = sst [smem:[#allocation30_spill]] %s5669_s13 }
   0xb   :  { %5712 = sst [smem:[#allocation31_spill]] %s5670_s14 }
   0xc   :  { %5713 = sst [smem:[#allocation32_spill]] %s5671_s15 }
   0xd   :  { %5714 = sst [smem:[#allocation33_spill]] %s5674_s18 }
   0xe   :  { %5715 = sst [smem:[#allocation34_spill]] %s5675_s19 }
   0xf   :  { %5716 = sst [smem:[#allocation35_spill]] %s5676_s20 }
  0x10   :  { %5717 = sst [smem:[#allocation36_spill]] %s5677_s21 }
  0x11   :  { %5718 = sst [smem:[#allocation37_spill]] %s5678_s22 }
  0x12   :  { %27 = vsyncpa [#allocation4], 0 }
  0x13   :  { %29 = vsyncpa [#allocation4 + $0x1], 0 }
  0x14   :  { %30 = vsyncpa [#allocation7], 0 }
  0x15   :  { %31 = vsyncpa [#allocation10], 0 }
  0x16   :  { %32 = vsyncpa [#allocation13], 0 }
  0x17   :  { %33 = vsyncpa [#allocation5], 0 }
  0x18   :  { %35 = vsyncpa [#allocation5 + $0x1], 0  ;;  %s4694_s3 = smov 0   ;;  %s4696_s28 = smov 0  }
  0x19   :  { %s4698_s29 = smov 0   ;;  %s4700_s30 = smov 0  }
  0x1a LB: > { %s4550_s4 = smov [#allocation6]   ;;  %s4715_s23 = sadd.s32 4294967295, %s4548_s30   ;;  %s4548_s30 = sphi %s4700_s30, %s5766_s30   ;;  %s4544_s29 = sphi %s4698_s29, %s5765_s29   ;;  %s4540_s28 = sphi %s4696_s28, %s5764_s28   ;;  %s4536_s3 = sphi %s4694_s3, %s5763_s3  }
  0x1b   : > { %s562_s0 = sshll.u32 %s4550_s4, 4  ;;  %p3568_p0 = scmp.ge.s32.totalorder %s4548_s30, 1  ;;  %s4720_s0 = int_to_ptr.vmem [resolvable:$true] %s562_s0 }
  0x1c   : > { %p5689_p1 = scmp.eq.s32.totalorder %s4715_s23, 0  ;;  %p544_p2 = scmp.lt.s32.totalorder %s4548_s30, 3 }
  0x1d   : > { %s4551_s5 = smov [#allocation9]   ;;  %s4552_s25 = smov [#allocation12]  }
  0x1e   : > { %p4722_p3 = pnand %p3568_p0, %p544_p2  ;;  %s592_s24 = sshll.u32 %s4551_s5, 4  ;;  %s4735_s24 = int_to_ptr.vmem [resolvable:$true] %s592_s24 }
  0x1f   : > { %s616_s26 = sshll.u32 %s4552_s25, 4  ;;  %s5721_s4 = sld [smem:[#allocation25_spill]]  ;;  %s4737_s26 = int_to_ptr.vmem [resolvable:$true] %s616_s26 }
  0x20   : > { %s5719_s1 = scalar_select %p4722_p3, 1, 0 }
  0x21   : > { %p4048_p5 = pneg %p4722_p3 }
  0x23   : > { %p4731_p6 = pnand %p4048_p5, %p5689_p1 }
  0x25   : > { %s4272_s22 = scalar_lea.hbm %s5721_s4, 256  ;;  %p4747_p8 = pneg %p4731_p6 }
  0x26   : > { %p4273_p7 = scmp.ne.s32.totalorder %s5721_s4, %s4272_s22  ;;  %p4279_p11 = scmp.lt.u32.totalorder %s4272_s22, %s5721_s4 }
  0x28   : > { %p4275_p9 = pnand %p4747_p8, %p4273_p7 }
  0x2a   : > { %p4276_p10 = pneg %p4275_p9 }
  0x2c   : > { %p4281_p12 = pnand %p4279_p11, %p4276_p10 }
  0x2e   : > { %4284 = shalt.err (!%p4281_p12)
}
  0x2f   : > { %s4285_s20 = scalar_lea.vmem %s4720_s0, 256  ;;  %p4293_p5 = scmp.lt.s32.totalorder %s4720_s0, %s4720_s0 }
  0x30   : > { %p4286_p13 = scmp.ne.s32.totalorder %s4720_s0, %s4285_s20  ;;  %p4294_p4 = scmp.lt.s32.totalorder %s4285_s20, %s4285_s20 }
  0x32   : > { %p4288_p0 = pnand %p4286_p13, %p4747_p8  ;;  %p4295_p7 = por %p4294_p4, %p4293_p5 }
  0x34   : > { %p4289_p2 = pneg %p4288_p0 }
  0x36   : > { %p4296_p9 = pnand %p4295_p7, %p4289_p2 }
  0x38   : > { %4299 = shalt.err (!%p4296_p9)
}
  0x39   : > { %s5685_s21 = smov 64   ;;  %s5687_s15 = smov 4  }
  0x3a   : > { %4051 = dma.hbm_to_vmem [thread:$0]  (!%p4731_p6), %s5721_s4, 256, %s4720_s0, [#allocation7], %s5685_s21, %s5685_s21, %s5687_s15  }
  0x3b   : > { %s5723_s7 = sld [smem:[#allocation28_spill]] }
  0x41   : > { %s4300_s20 = scalar_lea.hbm %s5723_s7, 16 }
  0x42   : > { %p4301_p4 = scmp.ne.s32.totalorder %s5723_s7, %s4300_s20  ;;  %p4307_p12 = scmp.lt.u32.totalorder %s4300_s20, %s5723_s7 }
  0x44   : > { %p4303_p10 = pnand %p4301_p4, %p4747_p8 }
  0x46   : > { %p4304_p11 = pneg %p4303_p10 }
  0x48   : > { %p4309_p13 = pnand %p4307_p12, %p4304_p11 }
  0x4a   : > { %4312 = shalt.err (!%p4309_p13)
}
  0x4b   : > { %s4313_s0 = scalar_lea.vmem %s4735_s24, 16  ;;  %s4320_s13 = scalar_lea.vmem %s4735_s24, 32 }
  0x4c   : > { %p4314_p0 = scmp.ne.s32.totalorder %s4735_s24, %s4313_s0  ;;  %p4321_p7 = scmp.lt.s32.totalorder %s4735_s24, %s4735_s24 }
  0x4d   : > { %p4322_p9 = scmp.lt.s32.totalorder %s4320_s13, %s4313_s0 }
  0x4e   : > { %p4316_p2 = pnand %p4314_p0, %p4747_p8 }
  0x4f   : > { %p4323_p4 = por %p4322_p9, %p4321_p7 }
  0x50   : > { %p4317_p5 = pneg %p4316_p2 }
  0x52   : > { %p4324_p10 = pnand %p4323_p4, %p4317_p5 }
  0x54   : > { %4327 = shalt.err (!%p4324_p10)
}
  0x55   : > { %4057 = dma.hbm_to_vmem [thread:$0]  (!%p4731_p6), %s5723_s7, 16, %s4735_s24, [#allocation10]  }
  0x56   : > { %s4328_s2 = scalar_lea.hbm %s5665_s9, 16 }
  0x57   : > { %p4329_p11 = scmp.ne.s32.totalorder %s5665_s9, %s4328_s2  ;;  %p4335_p0 = scmp.lt.u32.totalorder %s4328_s2, %s5665_s9 }
  0x59   : > { %p4331_p12 = pnand %p4329_p11, %p4747_p8 }
  0x5b   : > { %p4332_p13 = pneg %p4331_p12 }
  0x5d   : > { %p4337_p2 = pnand %p4335_p0, %p4332_p13 }
  0x5f   : > { %4340 = shalt.err (!%p4337_p2)
}
  0x60   : > { %s4341_s24 = scalar_lea.vmem %s4737_s26, 16  ;;  %s4348_s13 = scalar_lea.vmem %s4737_s26, 32 }
  0x61   : > { %p4342_p5 = scmp.ne.s32.totalorder %s4737_s26, %s4341_s24  ;;  %p4349_p4 = scmp.lt.s32.totalorder %s4737_s26, %s4737_s26 }
  0x62   : > { %p4350_p10 = scmp.lt.s32.totalorder %s4348_s13, %s4341_s24 }
  0x63   : > { %p4344_p7 = pnand %p4342_p5, %p4747_p8 }
  0x64   : > { %p4351_p11 = por %p4350_p10, %p4349_p4 }
  0x65   : > { %p4345_p9 = pneg %p4344_p7 }
  0x67   : > { %p4352_p12 = pnand %p4351_p11, %p4345_p9 }
  0x69   : > { %4355 = shalt.err (!%p4352_p12)
}
  0x6a   : > { %4063 = dma.hbm_to_vmem [thread:$0]  (!%p4731_p6), %s5665_s9, 16, %s4737_s26, [#allocation13]  }
  0x6b   : > { %s4555_s19 = smov [#allocation8]   ;;  %s4556_s2 = smov [#allocation11]  }
  0x6c   : > { %s578_s22 = sshll.u32 %s4555_s19, 4  ;;  %s602_s27 = sshll.u32 %s4556_s2, 4  ;;  %s579_s22 = int_to_ptr.vmem [resolvable:$true] %s578_s22  ;;  %s603_s27 = int_to_ptr.vmem [resolvable:$true] %s602_s27 }
  0x6d   : > { %s5724_s0 = sld [smem:[#allocation27_spill]] }
  0x73   : > { %s4356_s24 = scalar_lea.hbm %s5724_s0, 256 }
  0x74   : > { %p4357_p13 = scmp.ne.s32.totalorder %s5724_s0, %s4356_s24  ;;  %p4363_p5 = scmp.lt.u32.totalorder %s4356_s24, %s5724_s0 }
  0x76   : > { %p4359_p0 = pnand %p4357_p13, %p4747_p8 }
  0x78   : > { %p4360_p2 = pneg %p4359_p0 }
  0x7a   : > { %p4365_p7 = pnand %p4363_p5, %p4360_p2 }
  0x7c   : > { %4368 = shalt.err (!%p4365_p7)
}
  0x7d   : > { %s4369_s26 = scalar_lea.vmem %s579_s22, 256  ;;  %p4377_p11 = scmp.lt.s32.totalorder %s579_s22, %s579_s22 }
  0x7e   : > { %p4370_p9 = scmp.ne.s32.totalorder %s579_s22, %s4369_s26  ;;  %p4378_p12 = scmp.lt.s32.totalorder %s4369_s26, %s4369_s26 }
  0x80   : > { %p4372_p4 = pnand %p4370_p9, %p4747_p8  ;;  %p4379_p1 = por %p4378_p12, %p4377_p11 }
  0x82   : > { %p4373_p10 = pneg %p4372_p4 }
  0x84   : > { %p4380_p3 = pnand %p4379_p1, %p4373_p10 }
  0x86   : > { %4383 = shalt.err (!%p4380_p3)
}
  0x87   : > { %s5725_s21 = smov 4   ;;  %s5726_s18 = smov 64  }
  0x88   : > { %4054 = dma.hbm_to_vmem [thread:$0]  (!%p4731_p6), %s5724_s0, 256, %s579_s22, [#allocation7], %s5726_s18, %s5726_s18, %s5725_s21  }
  0x89   : > { %s5727_s8 = sld [smem:[#allocation29_spill]] }
  0x8f   : > { %s4384_s20 = scalar_lea.hbm %s5727_s8, 256 }
  0x90   : > { %p4385_p1 = scmp.ne.s32.totalorder %s5727_s8, %s4384_s20  ;;  %p4391_p0 = scmp.lt.u32.totalorder %s4384_s20, %s5727_s8 }
  0x92   : > { %p4387_p3 = pnand %p4385_p1, %p4747_p8 }
  0x94   : > { %p4388_p13 = pneg %p4387_p3 }
  0x96   : > { %p4393_p2 = pnand %p4391_p0, %p4388_p13 }
  0x98   : > { %4396 = shalt.err (!%p4393_p2)
}
  0x99   : > { %s4397_s15 = scalar_lea.vmem %s603_s27, 256  ;;  %p4405_p4 = scmp.lt.s32.totalorder %s603_s27, %s603_s27 }
  0x9a   : > { %p4398_p5 = scmp.ne.s32.totalorder %s603_s27, %s4397_s15  ;;  %p4406_p10 = scmp.lt.s32.totalorder %s4397_s15, %s4397_s15 }
  0x9c   : > { %p4400_p7 = pnand %p4398_p5, %p4747_p8  ;;  %p4407_p11 = por %p4406_p10, %p4405_p4 }
  0x9e   : > { %p4401_p9 = pneg %p4400_p7 }
  0xa0   : > { %p4408_p12 = pnand %p4407_p11, %p4401_p9 }
  0xa2   : > { %4411 = shalt.err (!%p4408_p12)
}
  0xa3   : > { %4060 = dma.hbm_to_vmem [thread:$0]  (!%p4731_p6), %s5727_s8, 256, %s603_s27, [#allocation10], %s5726_s18, %s5726_s18, %s5725_s21  }
  0xa4   : > { %s4557_s2 = smov [#allocation14]   ;;  %s4412_s13 = scalar_lea.hbm %s5668_s12, 256 }
  0xa5   : > { %s632_s25 = sshll.u32 %s4557_s2, 4  ;;  %p4413_p1 = scmp.ne.s32.totalorder %s5668_s12, %s4412_s13  ;;  %s633_s25 = int_to_ptr.vmem [resolvable:$true] %s632_s25 }
  0xa6   : > { %p4419_p0 = scmp.lt.u32.totalorder %s4412_s13, %s5668_s12 }
  0xa7   : > { %p4415_p3 = pnand %p4413_p1, %p4747_p8 }
  0xa9   : > { %p4416_p13 = pneg %p4415_p3 }
  0xab   : > { %p4421_p2 = pnand %p4419_p0, %p4416_p13 }
  0xad   : > { %4424 = shalt.err (!%p4421_p2)
}
  0xae   : > { %s4425_s27 = scalar_lea.vmem %s633_s25, 256  ;;  %p4433_p4 = scmp.lt.s32.totalorder %s633_s25, %s633_s25 }
  0xaf   : > { %p4426_p5 = scmp.ne.s32.totalorder %s633_s25, %s4425_s27  ;;  %p4434_p10 = scmp.lt.s32.totalorder %s4425_s27, %s4425_s27 }
  0xb1   : > { %p4428_p7 = pnand %p4426_p5, %p4747_p8  ;;  %p4435_p11 = por %p4434_p10, %p4433_p4 }
  0xb3   : > { %p4429_p9 = pneg %p4428_p7 }
  0xb5   : > { %p4436_p12 = pnand %p4435_p11, %p4429_p9 }
  0xb7   : > { %4439 = shalt.err (!%p4436_p12)
}
  0xb8   : > { %4066 = dma.hbm_to_vmem [thread:$0]  (!%p4731_p6), %s5668_s12, 256, %s633_s25, [#allocation13], %s5726_s18, %s5726_s18, %s5725_s21  }
  0xb9   : > { %s3567_s6 = sadd.s32 4294967294, %s4548_s30   ;;  %s4884_s5 = sadd.s32 1, %s4548_s30  }
  0xba   : > { %s71_s19 = ssub.s32 %s4548_s30, %s4884_s5  ;;  %s74_s2 = sadd.s32 1, %s4544_s29 }
  0xbb   : > { %p72_p8 = scmp.eq.s32.totalorder %s71_s19, 0  ;;  %p81_p1 = scmp.ne.s32.totalorder %s4544_s29, %s4540_s28 }
  0xbc   : > { %p82_p3 = scmp.eq.s32.totalorder %s4548_s30, 0  ;;  %p87_p13 = scmp.ne.s32.totalorder %s4540_s28, %s4536_s3 }
  0xbd   : > { %s4895_s20 = scalar_select %p72_p8, %s4544_s29, %s74_s2  }
  0xbe   : > { %p4897_p0 = por %p82_p3, %p81_p1  ;;  %p5729_p2 = scmp.eq.s32.totalorder %s4715_s23, 0 }
  0xbf   : > { %p531_p5 = scmp.eq.s32.totalorder %s4715_s23, 1  ;;  %p537_p7 = scmp.eq.s32.totalorder %s3567_s6, 1 }
  0xc0   : > { %p4903_p6 = por %p5729_p2, %p87_p13  ;;  %p4081_p9 = scmp.lt.s32.totalorder %s4548_s30, 2 }
  0xc1   : > { %s682_s18 = sand.u32 1, %s4544_s29   ;;  %p4910_p4 = por %p531_p5, %p81_p1 }
  0xc2   : > { %p4914_p10 = por %p537_p7, %p87_p13  ;;  %s3576_s14 = sshll.u32 %s682_s18, 4 }
  0xc3   : > { %s5731_s25 = scalar_select %p4910_p4, 1, 0 }
  0xc4   : > { %s5732_s13 = scalar_select %p4914_p10, 1, 0 }
  0xc5   : > { %s3671_s26 = sshll.u32 %s4548_s30, 8  ;;  %s5733_s0 = sld [smem:[#allocation22_spill]] }
  0xc6   : > { %s686_s6 = scalar_lea.vmem [#allocation3], %s3576_s14  ;;  %p4928_p11 = pnand %p4081_p9, %p4897_p0 }
  0xc7   : > { %s693_s19 = sshll.u32 %s686_s6, 4  ;;  %s4932_s4 = scalar_lea.sflag [#allocation4], %s682_s18  ;;  %s4924_s19 = int_to_ptr.vmem [resolvable:$true] %s693_s19 }
  0xc8   : > { %p4442_p8 = pneg %p4928_p11 }
  0xcb   : > { %s4922_s22 = scalar_lea.hbm %s5733_s0, %s3671_s26  ;;  %s4445_s24 = scalar_lea.hbm %s5733_s0, 512 }
  0xcc   : > { %s4440_s15 = scalar_lea.hbm %s4922_s22, 256  ;;  %p4446_p13 = scmp.lt.u32.totalorder %s4922_s22, %s5733_s0 }
  0xcd   : > { %p4441_p12 = scmp.ne.s32.totalorder %s4922_s22, %s4440_s15  ;;  %p4447_p0 = scmp.lt.u32.totalorder %s4445_s24, %s4440_s15 }
  0xce   : > { %p4449_p5 = scmp.lt.u32.totalorder %s4440_s15, %s4922_s22 }
  0xcf   : > { %p4443_p1 = pnand %p4442_p8, %p4441_p12  ;;  %p4448_p2 = por %p4447_p0, %p4446_p13 }
  0xd1   : > { %p4444_p3 = pneg %p4443_p1  ;;  %p4450_p7 = por %p4449_p5, %p4448_p2 }
  0xd3   : > { %p4451_p9 = pnand %p4450_p7, %p4444_p3 }
  0xd5   : > { %4454 = shalt.err (!%p4451_p9)
}
  0xd6   : > { %s4455_s18 = scalar_lea.vmem %s4924_s19, 256  ;;  %s4558_s14 = smov [#allocation3]  }
  0xd7   : > { %p4456_p12 = scmp.ne.s32.totalorder %s4924_s19, %s4455_s18  ;;  %s4460_s26 = sshll.u32 %s4558_s14, 4  ;;  %s4461_s26 = int_to_ptr.vmem [resolvable:$false] %s4460_s26 }
  0xd8   : > { %s4462_s27 = scalar_lea.vmem %s4461_s26, 512  ;;  %p4463_p4 = scmp.lt.s32.totalorder %s4924_s19, %s4461_s26 }
  0xd9   : > { %p4458_p1 = pnand %p4456_p12, %p4442_p8  ;;  %p4464_p13 = scmp.lt.s32.totalorder %s4462_s27, %s4455_s18 }
  0xdb   : > { %p4459_p10 = pneg %p4458_p1  ;;  %p4465_p0 = por %p4464_p13, %p4463_p4 }
  0xdd   : > { %p4466_p2 = pnand %p4465_p0, %p4459_p10 }
  0xdf   : > { %4469 = shalt.err (!%p4466_p2)
}
  0xe0   : > { %s4559_s15 = smov 128   ;;  %s4560_s24 = smov 8  }
  0xe1   : > { %4070 = dma.hbm_to_vmem [thread:$0]  (!%p4928_p11), %s4922_s22, 256, %s4924_s19, %s4932_s4, %s4559_s15, %s4559_s15, %s4560_s24  }
  0xe2   : > { %p5735_p8 = scmp.ne.s32.totalorder %s5719_s1, 0 }
  0xe3   : > { %s4963_s6 = sand.u32 (!%p5735_p8), 1, %s4540_s28  }
  0xe4   : > { %705 = sbr.rel (%p5735_p8) target bundleno = 6366 (0x18de), region = 108  ;;  %s5694_s18 = sshll.u32 (!%p5735_p8), %s4963_s6, 4 }
  0xe5   : > { %s708_s14 = scalar_lea.sflag (!%p5735_p8), [#allocation4], %s4963_s6  ;;  %s4969_s26 = scalar_lea.vmem (!%p5735_p8), [#allocation3], %s5694_s18 }
  0xeb   : > { %4515 = dma.done.wait (%p4903_p6), %s708_s14, 256  }
  0xec   : > { %4517 = vsyncadd (%p4903_p6), %s708_s14, 4294967040  ;;  %p5736_p4 = scmp.eq.s32.totalorder %s4715_s23, 0 }
  0xee   : > { %4519 = dma.done.wait (%p5736_p4), [#allocation7], 512   ;;  %p5737_p10 = pmov %p5736_p4 }
  0xef   : > { %p5738_p11 = pmov %p5736_p4 }
  0xf0   : > { %4521 = vsyncadd (%p5737_p10), [#allocation7], 4294966784 }
  0xf1   : > { %4523 = dma.done.wait (%p5738_p11), [#allocation10], 272   ;;  %p5739_p3 = pmov %p5736_p4 }
  0xf3   : > { %4525 = vsyncadd (%p5739_p3), [#allocation10], 4294967024  ;;  %p5740_p5 = pmov %p5739_p3 }
  0xf4   : > { %p5741_p7 = pmov %p5739_p3 }
  0xf5   : > { %4527 = dma.done.wait (%p5740_p5), [#allocation13], 272  }
  0xf6   : > { %4529 = vsyncadd (%p5741_p7), [#allocation13], 4294967024  ;;  %s3588_s1 = sshll.u32 %s4715_s23, 1  ;;  %v4561_v0 = vmov 0.0   ;;  %vm4562_vm0 = vmmov 0   ;;  %s5742_s19 = sld [smem:[#allocation21_spill]]  ;;  %v1034_v25 = vlaneseq }
  0xf7   : > { %3768 = vmatprep.subr.bf16.mxu1 %v4561_v0  ;;  %3772 = vmatprep.mubr.msk.bf16.mxu1 %vm4562_vm0, %v4561_v0  ;;  %p802_p6 = scmp.lt.s32.totalorder %s3588_s1, 3  ;;  %s5743_s24 = sld [smem:[#allocation23_spill]]  ;;  %vm878_vm1 = vcmask 261120   ;;  %vm938_vm2 = vcmask 64512   ;;  %vm1078_vm3 = vcmask 1043456   ;;  %vm1420_vm5 = vcmask 130112  }
  0xf8   : > { %3782 = vmatprep.subr.bf16.mxu0 %v4561_v0  ;;  %3784 = vmatprep.mubr.msk.bf16.mxu0 %vm4562_vm0, %v4561_v0  ;;  %s4563_s21 = smov 96   ;;  %s4564_s22 = smov 64   ;;  %v1035_v26 = vshrl.u32 %v1034_v25, 7  ;;  %v1037_v27 = vand.u32 127, %v1034_v25  ;;  %vm1665_vm6 = vcmask 195712   ;;  %vm1910_vm7 = vcmask 261312  }
  0xf9   : > { %s5768_s1 = smov (!%p802_p6, %s3588_s1), 3  ;;  %s4567_s27 = smov 56   ;;  %vm3320_vm8 = vcmask 523264  }
  0xfa   : > { %s3589_s4 = sshll.u32 %s5768_s1, 3  ;;  %vm5055_vm4 = vcmp.le.s32.totalorder %v1037_v27, %v1035_v26  ;;  %s4568_s15 = smov 80  }
  0xfb   : > { %s4569_s14 = smov 112   ;;  %s4570_s18 = smov 48  }
  0xfc   : > { %s805_s2 = scalar_lea.vmem %s5742_s19, %s3589_s4  ;;  %s5744_s4 = sld [smem:[#allocation24_spill]] }
  0xfd   : > { %v4148_v1 = vld [vmem:[%s5743_s24] sm:$0xff]   ;;  %v4149_v2 = vld [vmem:[%s5743_s24 + $0x8] sm:$0xff]   ;;  %s4565_s19 = smov 88   ;;  %s5699_s1 = smov 72  }
  0xfe   : > { %3769 = vmatpush3.bf16.msra.mxu1 %v4148_v1  ;;  %v5003_v3 = vld [vmem:[%s805_s2] sm:$0xff]  ;;  %v5005_v4 = vld [vmem:[%s805_s2 + $0x8] sm:$0xff]  ;;  %s4566_s2 = smov 120   ;;  %p5760_p12 = scmp.ne.s32.totalorder %s5731_s25, 0 }
  0xff   : > { %3770 = vmatprep.subr.bf16.mxu1 %v4561_v0  ;;  %v859_v5 = vpack.c.bf16 %v5005_v4, %v5003_v3 }
 0x102   : > { %3771 = vmatpush3.bf16.msra.mxu1 %v4149_v2  ;;  %v3590_v6 = vld [vmem:[%s5744_s4] ss:$0 sm:$0xff]  ;;  %s4572_s4 = smov 104  }
 0x103   : > { %3776 = vmatprep.subr.bf16.mxu1 %v4561_v0 }
 0x105   : > { %3773 = vmatmul.mubr.msk.bf16.vlgmr.msra.gmra.mrb[0].mxu1 %vm878_vm1, %v859_v5 }
 0x106   : > { %3778 = vmatprep.mubr.msk.bf16.mxu1 %vm4562_vm0, %v4561_v0 }
 0x1d8   : > { %v916_v7 = vpop.f32.mrb[0].mxu1 }
 0x1d9   : > { %v917_v8 = vadd.f32 %v3590_v6, %v916_v7  ;;  %v3774_v9 = vpop.f32.mrb[1].mxu1 }
 0x1da   : > { %v919_v10 = vpop.f32.mrb[2].mxu1 }
 0x1db   : > { %v5017_v11 = vpack.c.bf16 %v917_v8, %v917_v8  ;;  %v920_v12 = vadd.f32 %v3590_v6, %v919_v10  ;;  %v3775_v13 = vpop.f32.mrb[3].mxu1  ;;  %v923_v15 = vmul.f32 0.35355338, %v917_v8 }
 0x1dd   : > { %936 = vrot.lane.b32.xlu0 %v5017_v11, %s4563_s21  ;;  %v5021_v14 = vpack.c.bf16 %v920_v12, %v920_v12  ;;  %v5031_v16 = vpack.c.bf16 %v923_v15, %v923_v15  ;;  %v924_v17 = vmul.f32 0.35355338, %v920_v12 }
 0x1df   : > { %v5035_v18 = vpack.c.bf16 %v924_v17, %v924_v17 }
 0x1e1   : > { %986 = vrot.lane.b32.xlu0 %v5021_v14, %s4563_s21 }
 0x1e5   : > { %1073 = vrot.lane.b32.xlu0 %v5017_v11, %s4564_s22 }
 0x1e9   : > { %1180 = vrot.lane.b32.xlu0 %v5017_v11, %s4565_s19 }
 0x1ed   : > { %1230 = vrot.lane.b32.xlu0 %v5021_v14, %s4565_s19 }
 0x1f1   : > { %1178 = vrot.lane.b32.xlu0 %v5031_v16, %s4566_s2 }
 0x1f5   : > { %1228 = vrot.lane.b32.xlu0 %v5035_v18, %s4566_s2 }
 0x1f9   : > { %1310 = vrot.lane.b32.xlu0 %v5017_v11, %s4567_s27 }
 0x24f   : > { %v937_v19 = vpop.permute.xlu0 %936 }
 0x250   : > { %v943_v20 = vsel %vm938_vm2, %v937_v19, 0 }
 0x251   : > { %3777 = vmatpush3.bf16.xpose.msra.mxu1 %v943_v20 }
 0x252   : > { %3788 = vmatprep.subr.bf16.mxu1 %v4561_v0 }
 0x253   : > { %v987_v21 = vpop.permute.xlu0 %986 }
 0x254   : > { %v992_v22 = vsel %vm938_vm2, %v987_v21, 0 }
 0x255   : > { %3783 = vmatpush3.bf16.xpose.msra.mxu0 %v992_v22 }
 0x256   : > { %3794 = vmatprep.subr.bf16.mxu0 %v4561_v0 }
 0x257   : > { %v1074_v23 = vpop.permute.xlu0 %1073 }
 0x258   : > { %v1080_v24 = vsel %vm1078_vm3, %v1074_v23, 0  ;;  %3779 = vmatmul.mubr.msk.bf16.vlgmr.msra.gmra.mrb[4].mxu1 %vm938_vm2, %v5031_v16 }
 0x259   : > { %3789 = vmatpush3.bf16.msra.mxu1 %v1080_v24  ;;  %3790 = vmatprep.mubr.msk.bf16.mxu1 %vm4562_vm0, %v4561_v0 }
 0x25a   : > { %3800 = vmatprep.subr.bf16.mxu1 %v4561_v0 }
 0x25b   : > { %v1181_v41 = vpop.permute.xlu0 %1180 }
 0x25c   : > { %3785 = vmatmul.mubr.msk.bf16.vlgmr.msra.gmra.mrb[0].mxu0 %vm938_vm2, %v5035_v18  ;;  %v1186_v55 = vsel %vm938_vm2, %v1181_v41, 0 }
 0x25d   : > { %3796 = vmatprep.mubr.msk.bf16.mxu0 %vm4562_vm0, %v4561_v0 }
 0x25f   : > { %v1231_v47 = vpop.permute.xlu0 %1230 }
 0x260   : > { %v1236_v58 = vsel %vm938_vm2, %v1231_v47, 0 }
 0x263   : > { %v1179_v51 = vpop.permute.xlu0 %1178 }
 0x267   : > { %v1229_v54 = vpop.permute.xlu0 %1228 }
 0x26b   : > { %v1311_v59 = vpop.permute.xlu0 %1310 }
 0x26c   : > { %v1316_v60 = vsel %vm1078_vm3, %v1311_v59, 0 }
 0x32b   : > { %v979_v29 = vpop.f32.mrb[4].mxu1 }
 0x32c   : > { %v1041_v30 = vsel %vm5055_vm4, %v979_v29, -1e+30  ;;  %v3780_v31 = vpop.f32.mrb[5].mxu1 }
 0x32d   : > { %v982_v32 = vpop.f32.mrb[6].mxu1  ;;  %v1043_v33 = vsel %vm938_vm2, %v1041_v30, -inf }
 0x32e   : > { %1044 = vmax.xlane.f32.xlu1 %v1043_v33  ;;  %v3781_v34 = vpop.f32.mrb[7].mxu1 }
 0x32f   : > { %v1028_v35 = vpop.f32.mrb[0].mxu0 }
 0x330   : > { %v1042_v36 = vsel %vm5055_vm4, %v1028_v35, -1e+30  ;;  %v3786_v37 = vpop.f32.mrb[1].mxu0 }
 0x331   : > { %v1031_v38 = vpop.f32.mrb[2].mxu0  ;;  %v1046_v39 = vsel %vm938_vm2, %v1042_v36, -inf }
 0x332   : > { %v3787_v40 = vpop.f32.mrb[3].mxu0  ;;  %1047 = vmax.xlane.f32.xlu1 %v1046_v39 }
 0x343   : > { %1122 = vrot.lane.b32.xlu1 %v5021_v14, %s4564_s22  ;;  %s4573_s22 = smov 40  }
 0x347   : > { %1358 = vrot.lane.b32.xlu1 %v5021_v14, %s4567_s27  ;;  %s5697_s27 = smov 8  }
 0x3bb   : > { %v1045_v42 = vpop.xlane.xlu1 %1044 }
 0x3bc   : > { %v1055_v43 = vsub.f32 %v1041_v30, %v1045_v42  ;;  %v1049_v63 = vsub.f32 -inf, %v1045_v42 }
 0x3be   : > { %v1057_v44 = vmul.f32 1.442695, %v1055_v43  ;;  %v1051_v1 = vmul.f32 1.442695, %v1049_v63 }
 0x3bf   : > { %v1048_v45 = vpop.xlane.xlu1 %1047 }
 0x3c0   : > { %v1056_v46 = vsub.f32 %v1042_v36, %v1048_v45  ;;  %4164 = vpow2.f32 %v1057_v44  ;;  %v1050_v2 = vsub.f32 -inf, %v1048_v45 }
 0x3c2   : > { %v1059_v48 = vmul.f32 1.442695, %v1056_v46  ;;  %v1053_v5 = vmul.f32 1.442695, %v1050_v2 }
 0x3c3   : > { %v1123_v49 = vpop.permute.xlu1 %1122 }
 0x3c4   : > { %v1128_v50 = vsel %vm1078_vm3, %v1123_v49, 0  ;;  %4166 = vpow2.f32 %v1059_v48 }
 0x3c5   : > { %3795 = vmatpush3.bf16.msra.mxu0 %v1128_v50  ;;  %4168 = vpow2.f32 %v1051_v1 }
 0x3c6   : > { %3806 = vmatprep.subr.bf16.mxu0 %v4561_v0  ;;  %4170 = vpow2.f32 %v1053_v5 }
 0x3c7   : > { %v1359_v61 = vpop.permute.xlu1 %1358 }
 0x3c8   : > { %v1364_v62 = vsel %vm1078_vm3, %v1359_v61, 0 }
 0x3ca   : > { %v5071_v52 = vpop.eup %4164 }
 0x3cb   : > { %v1071_v53 = vpack.c.bf16 %v5071_v52, %v5071_v52 }
 0x3cd   : > { %3791 = vmatmul.mubr.msk.bf16.vlgmr.msra.gmra.mrb[8].mxu1 %vm938_vm2, %v1071_v53 }
 0x3ce   : > { %v5077_v56 = vpop.eup %4166  ;;  %3801 = vmatpush3.bf16.xpose.msra.mxu1 %v1186_v55  ;;  %3802 = vmatprep.mubr.msk.bf16.mxu1 %vm4562_vm0, %v4561_v0 }
 0x3cf   : > { %v1072_v57 = vpack.c.bf16 %v5077_v56, %v5077_v56  ;;  %3812 = vmatprep.subr.bf16.mxu1 %v4561_v0  ;;  %v4169_v6 = vpop.eup %4168 }
 0x3d0   : > { %v5099_v7 = vmul.f32 0.0, %v4169_v6  ;;  %v4171_v8 = vpop.eup %4170 }
 0x3d1   : > { %3797 = vmatmul.mubr.msk.bf16.vlgmr.msra.gmra.mrb[4].mxu0 %vm938_vm2, %v1072_v57  ;;  %v5104_v17 = vmul.f32 0.0, %v4171_v8 }
 0x3d2   : > { %3807 = vmatpush3.bf16.xpose.msra.mxu0 %v1236_v58  ;;  %3808 = vmatprep.mubr.msk.bf16.mxu0 %vm4562_vm0, %v4561_v0 }
 0x3d3   : > { %3818 = vmatprep.subr.bf16.mxu0 %v4561_v0 }
 0x3d5   : > { %3803 = vmatmul.mubr.msk.bf16.vlgmr.msra.gmra.mrb[12].mxu1 %vm938_vm2, %v1179_v51 }
 0x3d6   : > { %3813 = vmatpush3.bf16.msra.mxu1 %v1316_v60  ;;  %3814 = vmatprep.mubr.msk.bf16.mxu1 %vm4562_vm0, %v4561_v0 }
 0x3d7   : > { %3824 = vmatprep.subr.bf16.mxu1 %v4561_v0 }
 0x3d9   : > { %3809 = vmatmul.mubr.msk.bf16.vlgmr.msra.gmra.mrb[8].mxu0 %vm938_vm2, %v1229_v54 }
 0x3da   : > { %3819 = vmatpush3.bf16.msra.mxu0 %v1364_v62  ;;  %3820 = vmatprep.mubr.msk.bf16.mxu0 %vm4562_vm0, %v4561_v0 }
 0x3db   : > { %3830 = vmatprep.subr.bf16.mxu0 %v4561_v0 }
 0x4a0   : > { %v1116_v9 = vpop.f32.mrb[8].mxu1 }
 0x4a1   : > { %v5102_v10 = vadd.f32 %v1116_v9, %v5099_v7  ;;  %v3792_v12 = vpop.f32.mrb[9].mxu1 }
 0x4a2   : > { %v1119_v13 = vpop.f32.mrb[10].mxu1 }
 0x4a3   : > { %v3793_v15 = vpop.f32.mrb[11].mxu1 }
 0x4a4   : > { %v1164_v19 = vpop.f32.mrb[4].mxu0 }
 0x4a5   : > { %v5107_v20 = vadd.f32 %v1164_v19, %v5104_v17  ;;  %v3798_v21 = vpop.f32.mrb[5].mxu0 }
 0x4a6   : > { %v1167_v22 = vpop.f32.mrb[6].mxu0 }
 0x4a7   : > { %v3799_v23 = vpop.f32.mrb[7].mxu0 }
 0x4a8   : > { %v1222_v24 = vpop.f32.mrb[12].mxu1 }
 0x4a9   : > { %v1278_v25 = vsel %vm5055_vm4, %v1222_v24, -1e+30  ;;  %v3804_v26 = vpop.f32.mrb[13].mxu1 }
 0x4aa   : > { %v1225_v27 = vpop.f32.mrb[14].mxu1  ;;  %v1280_v29 = vsel %vm938_vm2, %v1278_v25, -inf }
 0x4ab   : > { %1281 = vmax.xlane.f32.xlu1 %v1280_v29  ;;  %v3805_v30 = vpop.f32.mrb[15].mxu1 }
 0x4ac   : > { %v1272_v31 = vpop.f32.mrb[8].mxu0 }
 0x4ad   : > { %v1279_v32 = vsel %vm5055_vm4, %v1272_v31, -1e+30  ;;  %v3810_v33 = vpop.f32.mrb[9].mxu0 }
 0x4ae   : > { %v1275_v34 = vpop.f32.mrb[10].mxu0  ;;  %v1283_v35 = vsel %vm938_vm2, %v1279_v32, -inf }
 0x4af   : > { %1284 = vmax.xlane.f32.xlu0 %v1283_v35  ;;  %v3811_v36 = vpop.f32.mrb[11].mxu0 }
 0x4bc   : > { %1425 = vrot.lane.b32.xlu1 %v5017_v11, %s4568_s15 }
 0x4c0   : > { %1423 = vrot.lane.b32.xlu1 %v5031_v16, %s4569_s14 }
 0x4c4   : > { %1603 = vrot.lane.b32.xlu1 %v5021_v14, %s4570_s18 }
 0x4c5   : > { %1475 = vrot.lane.b32.xlu0 %v5021_v14, %s4568_s15 }
 0x4c9   : > { %1473 = vrot.lane.b32.xlu0 %v5035_v18, %s4569_s14 }
 0x4cd   : > { %1555 = vrot.lane.b32.xlu0 %v5017_v11, %s4570_s18  ;;  %s5695_s18 = smov 16  }
 0x538   : > { %v1282_v37 = vpop.xlane.xlu1 %1281 }
 0x539   : > { %v1292_v38 = vsub.f32 %v1278_v25, %v1282_v37  ;;  %v1286_v59 = vsub.f32 -inf, %v1282_v37 }
 0x53b   : > { %v1294_v39 = vmul.f32 1.442695, %v1292_v38  ;;  %v1288_v60 = vmul.f32 1.442695, %v1286_v59 }
 0x53c   : > { %v1285_v40 = vpop.xlane.xlu0 %1284  ;;  %v1426_v45 = vpop.permute.xlu1 %1425 }
 0x53d   : > { %v1293_v41 = vsub.f32 %v1279_v32, %v1285_v40  ;;  %4172 = vpow2.f32 %v1294_v39  ;;  %v1431_v48 = vsel %vm938_vm2, %v1426_v45, 0  ;;  %v1287_v61 = vsub.f32 -inf, %v1285_v40 }
 0x53f   : > { %v1296_v42 = vmul.f32 1.442695, %v1293_v41  ;;  %v1290_v62 = vmul.f32 1.442695, %v1287_v61 }
 0x540   : > { %v1476_v43 = vpop.permute.xlu0 %1475  ;;  %v1424_v51 = vpop.permute.xlu1 %1423 }
 0x541   : > { %4174 = vpow2.f32 %v1296_v42  ;;  %v1481_v53 = vsel %vm938_vm2, %v1476_v43, 0 }
 0x542   : > { %4176 = vpow2.f32 %v1288_v60 }
 0x543   : > { %4178 = vpow2.f32 %v1290_v62 }
 0x544   : > { %v1474_v47 = vpop.permute.xlu0 %1473  ;;  %v1604_v57 = vpop.permute.xlu1 %1603 }
 0x545   : > { %v1609_v58 = vsel %vm1078_vm3, %v1604_v57, 0 }
 0x547   : > { %v5125_v44 = vpop.eup %4172 }
 0x548   : > { %v1308_v46 = vpack.c.bf16 %v5125_v44, %v5125_v44  ;;  %v1556_v54 = vpop.permute.xlu0 %1555 }
 0x549   : > { %v1561_v55 = vsel %vm1078_vm3, %v1556_v54, 0 }
 0x54a   : > { %3815 = vmatmul.mubr.msk.bf16.vlgmr.msra.gmra.mrb[16].mxu1 %vm938_vm2, %v1308_v46 }
 0x54b   : > { %v5131_v49 = vpop.eup %4174  ;;  %3825 = vmatpush3.bf16.xpose.msra.mxu1 %v1431_v48  ;;  %3826 = vmatprep.mubr.msk.bf16.mxu1 %vm4562_vm0, %v4561_v0 }
 0x54c   : > { %v1309_v50 = vpack.c.bf16 %v5131_v49, %v5131_v49  ;;  %3836 = vmatprep.subr.bf16.mxu1 %v4561_v0  ;;  %v4177_v63 = vpop.eup %4176 }
 0x54d   : > { %v5153_v1 = vmul.f32 0.0, %v4177_v63  ;;  %v4179_v2 = vpop.eup %4178 }
 0x54e   : > { %3821 = vmatmul.mubr.msk.bf16.vlgmr.msra.gmra.mrb[12].mxu0 %vm938_vm2, %v1309_v50  ;;  %v5158_v13 = vmul.f32 0.0, %v4179_v2 }
 0x54f   : > { %3831 = vmatpush3.bf16.xpose.msra.mxu0 %v1481_v53  ;;  %3832 = vmatprep.mubr.msk.bf16.mxu0 %vm4562_vm0, %v4561_v0 }
 0x550   : > { %3842 = vmatprep.subr.bf16.mxu0 %v4561_v0 }
 0x552   : > { %3827 = vmatmul.mubr.msk.bf16.vlgmr.msra.gmra.mrb[20].mxu1 %vm938_vm2, %v1424_v51 }
 0x553   : > { %3837 = vmatpush3.bf16.msra.mxu1 %v1561_v55  ;;  %3838 = vmatprep.mubr.msk.bf16.mxu1 %vm4562_vm0, %v4561_v0 }
 0x554   : > { %3848 = vmatprep.subr.bf16.mxu1 %v4561_v0 }
 0x556   : > { %3833 = vmatmul.mubr.msk.bf16.vlgmr.msra.gmra.mrb[16].mxu0 %vm938_vm2, %v1474_v47 }
 0x557   : > { %3843 = vmatpush3.bf16.msra.mxu0 %v1609_v58  ;;  %3844 = vmatprep.mubr.msk.bf16.mxu0 %vm4562_vm0, %v4561_v0 }
 0x558   : > { %3854 = vmatprep.subr.bf16.mxu0 %v4561_v0 }
 0x61d   : > { %v1352_v5 = vpop.f32.mrb[16].mxu1 }
 0x61e   : > { %v5156_v6 = vadd.f32 %v1352_v5, %v5153_v1  ;;  %v3816_v8 = vpop.f32.mrb[17].mxu1 }
 0x61f   : > { %v1355_v9 = vpop.f32.mrb[18].mxu1 }
 0x620   : > { %v3817_v12 = vpop.f32.mrb[19].mxu1 }
 0x621   : > { %v1400_v15 = vpop.f32.mrb[12].mxu0 }
 0x622   : > { %v5161_v19 = vadd.f32 %v1400_v15, %v5158_v13  ;;  %v3822_v21 = vpop.f32.mrb[13].mxu0 }
 0x623   : > { %v1403_v22 = vpop.f32.mrb[14].mxu0 }
 0x624   : > { %v3823_v23 = vpop.f32.mrb[15].mxu0 }
 0x625   : > { %v1467_v24 = vpop.f32.mrb[20].mxu1 }
 0x626   : > { %v1523_v25 = vsel %vm5055_vm4, %v1467_v24, -1e+30  ;;  %v3828_v26 = vpop.f32.mrb[21].mxu1 }
 0x627   : > { %v1470_v27 = vpop.f32.mrb[22].mxu1  ;;  %v1525_v29 = vsel %vm938_vm2, %v1523_v25, -inf }
 0x628   : > { %1526 = vmax.xlane.f32.xlu1 %v1525_v29  ;;  %v3829_v30 = vpop.f32.mrb[23].mxu1 }
 0x629   : > { %v1517_v31 = vpop.f32.mrb[16].mxu0 }
 0x62a   : > { %v1524_v32 = vsel %vm5055_vm4, %v1517_v31, -1e+30  ;;  %v3834_v33 = vpop.f32.mrb[17].mxu0 }
 0x62b   : > { %v1520_v34 = vpop.f32.mrb[18].mxu0  ;;  %v1528_v35 = vsel %vm938_vm2, %v1524_v32, -inf }
 0x62c   : > { %1529 = vmax.xlane.f32.xlu0 %v1528_v35  ;;  %v3835_v36 = vpop.f32.mrb[19].mxu0 }
 0x639   : > { %1670 = vrot.lane.b32.xlu1 %v5017_v11, %s5699_s1 }
 0x63d   : > { %1668 = vrot.lane.b32.xlu1 %v5031_v16, %s4572_s4 }
 0x642   : > { %1720 = vrot.lane.b32.xlu0 %v5021_v14, %s5699_s1  ;;  %s5747_s1 = sld [smem:[#allocation26_spill]] }
 0x646   : > { %1718 = vrot.lane.b32.xlu0 %v5035_v18, %s4572_s4 }
 0x6b5   : > { %v1527_v37 = vpop.xlane.xlu1 %1526 }
 0x6b6   : > { %v1537_v38 = vsub.f32 %v1523_v25, %v1527_v37  ;;  %v1531_v54 = vsub.f32 -inf, %v1527_v37  ;;  %v1300_v37 = vsel %vm938_vm2, %v5125_v44, 0.0 }
 0x6b8   : > { %v1539_v39 = vmul.f32 1.442695, %v1537_v38  ;;  %v1533_v55 = vmul.f32 1.442695, %v1531_v54  ;;  %v1303_v38 = vsel %vm938_vm2, %v5131_v49, 0.0  ;;  %v1066_v54 = vsel %vm938_vm2, %v5077_v56, 0.0 }
 0x6b9   : > { %v1530_v40 = vpop.xlane.xlu0 %1529  ;;  %v1671_v45 = vpop.permute.xlu1 %1670 }
 0x6ba   : > { %v1538_v41 = vsub.f32 %v1524_v32, %v1530_v40  ;;  %4180 = vpow2.f32 %v1539_v39  ;;  %v1676_v46 = vsel %vm938_vm2, %v1671_v45, 0  ;;  %v1532_v57 = vsub.f32 -inf, %v1530_v40 }
 0x6bc   : > { %v1541_v42 = vmul.f32 1.442695, %v1538_v41  ;;  %v1535_v58 = vmul.f32 1.442695, %v1532_v57 }
 0x6bd   : > { %v1721_v18 = vpop.permute.xlu0 %1720  ;;  %v1669_v51 = vpop.permute.xlu1 %1668 }
 0x6be   : > { %4182 = vpow2.f32 %v1541_v42  ;;  %v1726_v50 = vsel %vm938_vm2, %v1721_v18, 0 }
 0x6bf   : > { %4184 = vpow2.f32 %v1533_v55 }
 0x6c0   : > { %4186 = vpow2.f32 %v1535_v58 }
 0x6c1   : > { %v1719_v53 = vpop.permute.xlu0 %1718 }
 0x6c4   : > { %v5177_v43 = vpop.eup %4180 }
 0x6c5   : > { %v1553_v16 = vpack.c.bf16 %v5177_v43, %v5177_v43  ;;  %v1545_v39 = vsel %vm938_vm2, %v5177_v43, 0.0 }
 0x6c7   : > { %3839 = vmatmul.mubr.msk.bf16.vlgmr.msra.gmra.mrb[24].mxu1 %vm938_vm2, %v1553_v16 }
 0x6c8   : > { %v4183_v47 = vpop.eup %4182  ;;  %3849 = vmatpush3.bf16.xpose.msra.mxu1 %v1676_v46  ;;  %3850 = vmatprep.mubr.msk.bf16.mxu1 %vm4562_vm0, %v4561_v0 }
 0x6c9   : > { %v1554_v48 = vpack.c.bf16 %v4183_v47, %v4183_v47  ;;  %3860 = vmatprep.subr.bf16.mxu1 %v4561_v0  ;;  %v4185_v59 = vpop.eup %4184  ;;  %v1548_v28 = vsel %vm938_vm2, %v4183_v47, 0.0 }
 0x6ca   : > { %v5197_v60 = vmul.f32 0.0, %v4185_v59  ;;  %v4187_v61 = vpop.eup %4186 }
 0x6cb   : > { %3845 = vmatmul.mubr.msk.bf16.vlgmr.msra.gmra.mrb[20].mxu0 %vm938_vm2, %v1554_v48  ;;  %v5202_v9 = vmul.f32 0.0, %v4187_v61 }
 0x6cc   : > { %3855 = vmatpush3.bf16.xpose.msra.mxu0 %v1726_v50  ;;  %3856 = vmatprep.mubr.msk.bf16.mxu0 %vm4562_vm0, %v4561_v0 }
 0x6cd   : > { %3866 = vmatprep.subr.bf16.mxu0 %v4561_v0 }
 0x6cf   : > { %3851 = vmatmul.mubr.msk.bf16.vlgmr.msra.gmra.mrb[28].mxu1 %vm938_vm2, %v1669_v51  ;;  %v1063_v51 = vsel %vm938_vm2, %v5071_v52, 0.0 }
 0x6d0   : > { %3862 = vmatprep.mubr.msk.bf16.mxu1 %vm4562_vm0, %v4561_v0 }
 0x6d3   : > { %3857 = vmatmul.mubr.msk.bf16.vlgmr.msra.gmra.mrb[24].mxu0 %vm938_vm2, %v1719_v53 }
 0x6d4   : > { %3868 = vmatprep.mubr.msk.bf16.mxu0 %vm4562_vm0, %v4561_v0 }
 0x79a   : > { %v1597_v62 = vpop.f32.mrb[24].mxu1 }
 0x79b   : > { %v5200_v63 = vadd.f32 %v1597_v62, %v5197_v60  ;;  %v3840_v2 = vpop.f32.mrb[25].mxu1 }
 0x79c   : > { %v1600_v5 = vpop.f32.mrb[26].mxu1 }
 0x79d   : > { %v3841_v8 = vpop.f32.mrb[27].mxu1 }
 0x79e   : > { %v1645_v12 = vpop.f32.mrb[20].mxu0 }
 0x79f   : > { %v5205_v15 = vadd.f32 %v1645_v12, %v5202_v9  ;;  %v3846_v21 = vpop.f32.mrb[21].mxu0 }
 0x7a0   : > { %v1648_v22 = vpop.f32.mrb[22].mxu0 }
 0x7a1   : > { %v3847_v23 = vpop.f32.mrb[23].mxu0 }
 0x7a2   : > { %v1712_v24 = vpop.f32.mrb[28].mxu1 }
 0x7a3   : > { %v1768_v25 = vsel %vm5055_vm4, %v1712_v24, -1e+30  ;;  %v3852_v26 = vpop.f32.mrb[29].mxu1 }
 0x7a4   : > { %v1715_v27 = vpop.f32.mrb[30].mxu1  ;;  %v1770_v29 = vsel %vm938_vm2, %v1768_v25, -inf }
 0x7a5   : > { %1771 = vmax.xlane.f32.xlu1 %v1770_v29  ;;  %v3853_v30 = vpop.f32.mrb[31].mxu1 }
 0x7a6   : > { %v1762_v31 = vpop.f32.mrb[24].mxu0 }
 0x7a7   : > { %v1769_v32 = vsel %vm5055_vm4, %v1762_v31, -1e+30  ;;  %v3858_v33 = vpop.f32.mrb[25].mxu0 }
 0x7a8   : > { %v1765_v34 = vpop.f32.mrb[26].mxu0  ;;  %v1773_v35 = vsel %vm938_vm2, %v1769_v32, -inf }
 0x7a9   : > { %1774 = vmax.xlane.f32.xlu0 %v1773_v35  ;;  %v3859_v36 = vpop.f32.mrb[27].mxu0 }
 0x7b6   : > { %1848 = vrot.lane.b32.xlu1 %v5021_v14, %s4573_s22 }
 0x7bf   : > { %1800 = vrot.lane.b32.xlu0 %v5017_v11, %s4573_s22  ;;  %s4576_s22 = smov 24  }
 0x7da   : > { %1301 = vadd.xlane.f32.xlu1 %v1300_v37 }
 0x7de   : > { %1304 = vadd.xlane.f32.xlu0 %v1303_v38  ;;  %1549 = vadd.xlane.f32.xlu1 %v1548_v28  ;;  %v4150_v38 = vld [vmem:[#allocation6] sm:$0xff]   ;;  %v4151_v28 = vld [vmem:[#allocation6 + $0x8] sm:$0xff]  }
 0x7e2   : > { %1546 = vadd.xlane.f32.xlu0 %v1545_v39 }
 0x832   : > { %v5222_v40 = vpop.xlane.xlu1 %1771 }
 0x833   : > { %v1782_v14 = vsub.f32 %v1768_v25, %v5222_v40 }
 0x835   : > { %v1784_v11 = vmul.f32 1.442695, %v1782_v14 }
 0x836   : > { %v5225_v41 = vpop.xlane.xlu0 %1774  ;;  %v1849_v44 = vpop.permute.xlu1 %1848 }
 0x837   : > { %v1783_v42 = vsub.f32 %v1769_v32, %v5225_v41  ;;  %v1854_v49 = vsel %vm1078_vm3, %v1849_v44, 0  ;;  %4188 = vpow2.f32 %v1784_v11 }
 0x838   : > { %3867 = vmatpush3.bf16.msra.mxu0 %v1854_v49 }
 0x839   : > { %v1786_v45 = vmul.f32 1.442695, %v1783_v42  ;;  %3880 = vmatprep.subr.bf16.mxu0 %v4561_v0 }
 0x83a   : > { %v1801_v16 = vpop.permute.xlu0 %1800 }
 0x83b   : > { %v1806_v43 = vsel %vm1078_vm3, %v1801_v16, 0  ;;  %4190 = vpow2.f32 %v1786_v45 }
 0x83c   : > { %3861 = vmatpush3.bf16.msra.mxu1 %v1806_v43 }
 0x83d   : > { %3872 = vmatprep.subr.bf16.mxu1 %v4561_v0 }
 0x841   : > { %v4189_v46 = vpop.eup %4188 }
 0x842   : > { %v1790_v47 = vsel %vm938_vm2, %v4189_v46, 0.0  ;;  %v1798_v18 = vpack.c.bf16 %v4189_v46, %v4189_v46 }
 0x843   : > { %1791 = vadd.xlane.f32.xlu0 %v1790_v47 }
 0x844   : > { %3863 = vmatmul.mubr.msk.bf16.vlgmr.msra.gmra.mrb[32].mxu1 %vm938_vm2, %v1798_v18 }
 0x845   : > { %v4191_v48 = vpop.eup %4190  ;;  %3876 = vmatprep.mubr.msk.bf16.mxu1 %vm4562_vm0, %v4561_v0  ;;  %3873 = vmatpush3.bf16.msra.mxu1 %v4150_v38 }
 0x846   : > { %v1793_v50 = vsel %vm938_vm2, %v4191_v48, 0.0  ;;  %v1799_v53 = vpack.c.bf16 %v4191_v48, %v4191_v48  ;;  %3874 = vmatprep.subr.bf16.mxu1 %v4561_v0 }
 0x847   : > { %1794 = vadd.xlane.f32.xlu1 %v1793_v50  ;;  %1064 = vadd.xlane.f32.xlu0 %v1063_v51 }
 0x848   : > { %3869 = vmatmul.mubr.msk.bf16.vlgmr.msra.gmra.mrb[28].mxu0 %vm938_vm2, %v1799_v53 }
 0x849   : > { %3884 = vmatprep.mubr.msk.bf16.mxu0 %vm4562_vm0, %v4561_v0  ;;  %3875 = vmatpush3.bf16.msra.mxu1 %v4151_v28 }
 0x84a   : > { %3888 = vmatprep.subr.bf16.mxu1 %v4561_v0 }
 0x84b   : > { %1067 = vadd.xlane.f32.xlu1 %v1066_v54 }
 0x867   : > { %v1302_v55 = vpop.xlane.xlu1 %1301 }
 0x868   : > { %v1306_v57 = vadd.f32 %v1302_v55, %v5153_v1  ;;  %v3614_v55 = vld [vmem:[%s5747_s1] ss:$0 sm:$0xff]  ;;  %s5754_s1 = sld [smem:[#allocation30_spill]] }
 0x86a   : > { %4192 = vrcp.f32 %v1306_v57 }
 0x86b   : > { %v1305_v58 = vpop.xlane.xlu0 %1304  ;;  %v1550_v59 = vpop.xlane.xlu1 %1549 }
 0x86c   : > { %v1307_v52 = vadd.f32 %v1305_v58, %v5158_v13  ;;  %v1552_v61 = vadd.f32 %v1550_v59, %v5202_v9 }
 0x86e   : > { %4194 = vrcp.f32 %v1307_v52 }
 0x86f   : > { %4196 = vrcp.f32 %v1552_v61  ;;  %v1547_v62 = vpop.xlane.xlu0 %1546 }
 0x870   : > { %v1551_v2 = vadd.f32 %v1547_v62, %v5197_v60 }
 0x872   : > { %4198 = vrcp.f32 %v1551_v2 }
 0x874   : > { %v4193_v5 = vpop.eup %4192 }
 0x875   : > { %v1410_v56 = vmul.f32 %v4193_v5, %v5156_v6 }
 0x877   : > { %1414 = vrot.lane.b32.xlu0 %v1410_v56, %s5697_s27 }
 0x878   : > { %v4195_v1 = vpop.eup %4194 }
 0x879   : > { %v4197_v8 = vpop.eup %4196  ;;  %v1411_v12 = vmul.f32 %v4195_v1, %v5161_v19 }
 0x87a   : > { %v1656_v13 = vmul.f32 %v4197_v8, %v5205_v15 }
 0x87b   : > { %1416 = vrot.lane.b32.xlu1 %v1411_v12, %s5697_s27  ;;  %s3680_s27 = sshll.u32 %s4715_s23, 8  ;;  %s3412_s23 = scalar_lea.sflag [#allocation5], %s4963_s6 }
 0x87c   : > { %v4199_v9 = vpop.eup %4198  ;;  %1661 = vrot.lane.b32.xlu0 %v1656_v13, %s5695_s18 }
 0x87d   : > { %v1655_v60 = vmul.f32 %v4199_v9, %v5200_v63 }
 0x87f   : > { %1659 = vrot.lane.b32.xlu1 %v1655_v60, %s5695_s18  ;;  %s5755_s18 = sld [smem:[#allocation32_spill]] }
 0x8d0   : > { %v1792_v6 = vpop.xlane.xlu0 %1791 }
 0x8d4   : > { %v1065_v21 = vpop.xlane.xlu0 %1064  ;;  %v1795_v22 = vpop.xlane.xlu1 %1794 }
 0x8d5   : > { %v1069_v23 = vadd.f32 %v1065_v21, %v5099_v7 }
 0x8d7   : > { %4200 = vrcp.f32 %v1069_v23 }
 0x8d8   : > { %v1068_v24 = vpop.xlane.xlu1 %1067 }
 0x8d9   : > { %v1070_v19 = vadd.f32 %v1068_v24, %v5104_v17  ;;  %v4153_v24 = vld [vmem:[#allocation11 + $0x8] sm:$0xff]  }
 0x8db   : > { %4202 = vrcp.f32 %v1070_v19  ;;  %v857_v19 = vld [vmem:[%s4969_s26] sm:$0xff] }
 0x8e1   : > { %v4201_v15 = vpop.eup %4200 }
 0x8e2   : > { %v1174_v25 = vmul.f32 %v4201_v15, %v5102_v10  ;;  %v1776_v10 = vsub.f32 -inf, %v5222_v40  ;;  %v858_v15 = vld [vmem:[%s4969_s26 + $0x8] sm:$0xff]  ;;  %s5752_s26 = sld [smem:[#allocation33_spill]] }
 0x8e4   : > { %1176 = vst.msk [vmem:[#allocation2] sm:$0xff] %vm938_vm2, %v1174_v25  ;;  %v1778_v30 = vmul.f32 1.442695, %v1776_v10  ;;  %v2086_v25 = vpack.c.bf16 %v858_v15, %v857_v19 }
 0x8e5   : > { %v4203_v26 = vpop.eup %4202 }
 0x8e6   : > { %v1175_v63 = vmul.f32 %v4203_v26, %v5107_v20  ;;  %v1777_v20 = vsub.f32 -inf, %v5225_v41  ;;  %4204 = vpow2.f32 %v1778_v30  ;;  %v4154_v26 = vld [vmem:[#allocation8] sm:$0xff]  }
 0x8e7   : > { %3881 = vmatpush3.bf16.msra.mxu0 %v4154_v26 }
 0x8e8   : > { %1177 = vst.msk [vmem:[#allocation2 + $0x8] sm:$0xff] %vm938_vm2, %v1175_v63  ;;  %v1780_v31 = vmul.f32 1.442695, %v1777_v20  ;;  %v4155_v63 = vld [vmem:[#allocation8 + $0x8] sm:$0xff]   ;;  %3882 = vmatprep.subr.bf16.mxu0 %v4561_v0 }
 0x8e9   : > { %v1415_v27 = vpop.permute.xlu0 %1414 }
 0x8ea   : > { %1421 = vst.msk [vmem:[#allocation2] sm:$0xff] %vm1420_vm5, %v1415_v27  ;;  %4206 = vpow2.f32 %v1780_v31  ;;  %v3618_v31 = vld [vmem:[%s5672_s16] ss:$0 sm:$0xff] }
 0x8eb   : > { %3883 = vmatpush3.bf16.msra.mxu0 %v4155_v63 }
 0x8ec   : > { %3896 = vmatprep.subr.bf16.mxu0 %v4561_v0 }
 0x8ed   : > { %v1417_v7 = vpop.permute.xlu1 %1416 }
 0x8ee   : > { %v1662_v29 = vpop.permute.xlu0 %1661  ;;  %1422 = vst.msk [vmem:[#allocation2 + $0x8] sm:$0xff] %vm1420_vm5, %v1417_v7 }
 0x8ef   : > { %1667 = vst.msk [vmem:[#allocation2 + $0x8] sm:$0xff] %vm1665_vm6, %v1662_v29 }
 0x8f0   : > { %v4205_v32 = vpop.eup %4204 }
 0x8f1   : > { %v1660_v17 = vpop.permute.xlu1 %1659  ;;  %v1788_v33 = vmul.f32 0.0, %v4205_v32 }
 0x8f2   : > { %1666 = vst.msk [vmem:[#allocation2] sm:$0xff] %vm1665_vm6, %v1660_v17 }
 0x8f3   : > { %v1796_v35 = vadd.f32 %v1792_v6, %v1788_v33 }
 0x8f4   : > { %v4207_v34 = vpop.eup %4206 }
 0x8f5   : > { %v1789_v36 = vmul.f32 0.0, %v4207_v34  ;;  %4208 = vrcp.f32 %v1796_v35 }
 0x8f7   : > { %v1797_v37 = vadd.f32 %v1795_v22, %v1789_v36 }
 0x8f9   : > { %4210 = vrcp.f32 %v1797_v37 }
 0x8ff   : > { %v4209_v11 = vpop.eup %4208 }
 0x903   : > { %v4211_v43 = vpop.eup %4210 }
 0x917   : > { %v1842_v39 = vpop.f32.mrb[32].mxu1 }
 0x918   : > { %v1896_v40 = vadd.f32 %v1842_v39, %v1788_v33  ;;  %v3864_v14 = vpop.f32.mrb[33].mxu1 }
 0x919   : > { %v1845_v41 = vpop.f32.mrb[34].mxu1 }
 0x91a   : > { %v1900_v44 = vmul.f32 %v4209_v11, %v1896_v40  ;;  %v3865_v42 = vpop.f32.mrb[35].mxu1  ;;  %v3624_v40 = vld [vmem:[#allocation12] ss:$0 sm:$0xff] }
 0x91b   : > { %v1890_v49 = vpop.f32.mrb[28].mxu0 }
 0x91c   : > { %v1897_v45 = vadd.f32 %v1890_v49, %v1789_v36  ;;  %v3870_v16 = vpop.f32.mrb[29].mxu0  ;;  %1904 = vrot.lane.b32.xlu1 %v1900_v44, %s4576_s22  ;;  %v3619_v36 = vld [vmem:[%s5673_s17] ss:$0 sm:$0xff] }
 0x91d   : > { %v1893_v46 = vpop.f32.mrb[30].mxu0 }
 0x91e   : > { %v1901_v47 = vmul.f32 %v4211_v43, %v1897_v45  ;;  %v3871_v18 = vpop.f32.mrb[31].mxu0 }
 0x920   : > { %1906 = vrot.lane.b32.xlu0 %v1901_v47, %s4576_s22  ;;  %v3620_v47 = vld [vmem:[#allocation9] ss:$0 sm:$0xff] }
 0x98e   : > { %v1905_v48 = vpop.permute.xlu1 %1904 }
 0x98f   : > { %1911 = vst.msk [vmem:[#allocation2] sm:$0xff] %vm1910_vm7, %v1905_v48 }
 0x992   : > { %v1907_v50 = vpop.permute.xlu0 %1906 }
 0x993   : > { %1912 = vst.msk [vmem:[#allocation2 + $0x8] sm:$0xff] %vm1910_vm7, %v1907_v50 }
 0x996   : > { %v1913_v51 = vld [vmem:[#allocation2] sm:$0xff] }
 0x99a   : > { %v1914_v53 = vld [vmem:[#allocation2 + $0x8] sm:$0xff] }
 0x99b   : > { %v1915_v54 = vpack.c.bf16 %v1914_v53, %v1913_v51 }
 0x99d   : > { %3877 = vmatmul.mubr.msk.bf16.vlgmr.msra.gmra.mrb[36].mxu1 %vm878_vm1, %v1915_v54 }
 0x99e   : > { %3892 = vmatprep.mubr.msk.bf16.mxu1 %vm4562_vm0, %v4561_v0 }
 0xa70   : > { %v1971_v57 = vpop.f32.mrb[36].mxu1 }
 0xa71   : > { %v1972_v58 = vadd.f32 %v3614_v55, %v1971_v57  ;;  %v3878_v59 = vpop.f32.mrb[37].mxu1 }
 0xa72   : > { %v1974_v52 = vpop.f32.mrb[38].mxu1 }
 0xa73   : > { %v1975_v61 = vadd.f32 %v3614_v55, %v1974_v52  ;;  %v3879_v62 = vpop.f32.mrb[39].mxu1  ;;  %v1978_v2 = vadd.f32 %v1972_v58, %v5003_v3 }
 0xa75   : > { %v1980_v5 = vsel %vm878_vm1, %v1978_v2, 0.0  ;;  %v1979_v56 = vadd.f32 %v1975_v61, %v5005_v4  ;;  %v4152_v4 = vld [vmem:[#allocation11] sm:$0xff]  }
 0xa76   : > { %1981 = vadd.xlane.f32.xlu1 %v1980_v5  ;;  %3889 = vmatpush3.bf16.msra.mxu1 %v4152_v4 }
 0xa77   : > { %v1983_v1 = vsel %vm878_vm1, %v1979_v56, 0.0  ;;  %3890 = vmatprep.subr.bf16.mxu1 %v4561_v0 }
 0xa78   : > { %1984 = vadd.xlane.f32.xlu0 %v1983_v1 }
 0xa7a   : > { %3891 = vmatpush3.bf16.msra.mxu1 %v4153_v24 }
 0xa7b   : > { %3902 = vmatprep.subr.bf16.mxu1 %v4561_v0 }
 0xa7d   : > { %3893 = vmatmul.mubr.msk.bf16.vlgmr.msra.gmra.mrb[40].mxu1 %vm878_vm1, %v2086_v25 }
 0xa7e   : > { %3904 = vmatprep.mubr.msk.bf16.mxu1 %vm4562_vm0, %v4561_v0 }
 0xb03   : > { %v1982_v8 = vpop.xlane.xlu1 %1981 }
 0xb04   : > { %v1987_v12 = vmul.f32 0.03125, %v1982_v8 }
 0xb05   : > { %v1985_v13 = vpop.xlane.xlu0 %1984 }
 0xb06   : > { %v1989_v9 = vsub.f32 %v1978_v2, %v1987_v12  ;;  %v1988_v60 = vmul.f32 0.03125, %v1985_v13 }
 0xb08   : > { %v1990_v6 = vsub.f32 %v1979_v56, %v1988_v60  ;;  %v1991_v21 = vmul.f32 %v1989_v9, %v1989_v9 }
 0xb0a   : > { %v1993_v22 = vsel %vm878_vm1, %v1991_v21, 0.0  ;;  %v1992_v3 = vmul.f32 %v1990_v6, %v1990_v6 }
 0xb0b   : > { %1994 = vadd.xlane.f32.xlu0 %v1993_v22 }
 0xb0c   : > { %v1996_v23 = vsel %vm878_vm1, %v1992_v3, 0.0 }
 0xb0d   : > { %1997 = vadd.xlane.f32.xlu1 %v1996_v23 }
 0xb50   : > { %v2142_v14 = vpop.f32.mrb[40].mxu1 }
 0xb51   : > { %v2143_v11 = vadd.f32 %v3624_v40, %v2142_v14  ;;  %v3894_v41 = vpop.f32.mrb[41].mxu1 }
 0xb52   : > { %v2145_v44 = vpop.f32.mrb[42].mxu1 }
 0xb53   : > { %v5310_v42 = vpack.c.bf16 %v2143_v11, %v2143_v11  ;;  %v2146_v49 = vadd.f32 %v3624_v40, %v2145_v44  ;;  %v3895_v45 = vpop.f32.mrb[43].mxu1 }
 0xb55   : > { %v5312_v16 = vpack.c.bf16 %v2146_v49, %v2146_v49  ;;  %2285 = vrot.lane.b32.xlu0 %v5310_v42, %s4563_s21  ;;  %v2167_v43 = vsel %vm938_vm2, %v5310_v42, 0 }
 0xb57   : > { %2333 = vrot.lane.b32.xlu1 %v5312_v16, %s4563_s21  ;;  %v2213_v46 = vsel %vm938_vm2, %v5312_v16, 0  ;;  %s5748_s21 = smov 72  }
 0xb58   : > { %3903 = vmatpush3.bf16.xpose.msra.mxu1 %v2213_v46 }
 0xb59   : > { %3914 = vmatprep.subr.bf16.mxu1 %v4561_v0 }
 0xb98   : > { %v1995_v27 = vpop.xlane.xlu0 %1994 }
 0xb99   : > { %v1999_v7 = vmul.f32 0.03125, %v1995_v27 }
 0xb9a   : > { %v1998_v29 = vpop.xlane.xlu1 %1997 }
 0xb9b   : > { %v2001_v17 = vadd.f32 1e-05, %v1999_v7  ;;  %v2000_v10 = vmul.f32 0.03125, %v1998_v29 }
 0xb9d   : > { %4212 = vrsqrt.f32 %v2001_v17  ;;  %v2002_v30 = vadd.f32 1e-05, %v2000_v10 }
 0xb9f   : > { %4214 = vrsqrt.f32 %v2002_v30 }
 0xba7   : > { %v4213_v20 = vpop.eup %4212 }
 0xba8   : > { %v2005_v32 = vmul.f32 %v4213_v20, %v1989_v9 }
 0xba9   : > { %v4215_v33 = vpop.eup %4214 }
 0xbaa   : > { %v2013_v34 = vmul.f32 %v3618_v31, %v2005_v32  ;;  %v2006_v35 = vmul.f32 %v4215_v33, %v1990_v6 }
 0xbac   : > { %v2014_v37 = vmul.f32 %v3618_v31, %v2006_v35  ;;  %v5301_v38 = vadd.f32 %v3619_v36, %v2013_v34 }
 0xbae   : > { %v5303_v28 = vadd.f32 %v3619_v36, %v2014_v37 }
 0xbb0   : > { %v2023_v39 = vpack.c.bf16 %v5303_v28, %v5301_v38 }
 0xbb2   : > { %3885 = vmatmul.mubr.msk.bf16.vlgmr.msra.gmra.mrb[32].mxu0 %vm878_vm1, %v2023_v39 }
 0xbb3   : > { %3898 = vmatprep.mubr.msk.bf16.mxu0 %vm4562_vm0, %v4561_v0  ;;  %3897 = vmatpush3.bf16.xpose.msra.mxu0 %v2167_v43 }
 0xbb4   : > { %3908 = vmatprep.subr.bf16.mxu0 %v4561_v0 }
 0xbc7   : > { %v2286_v53 = vpop.permute.xlu0 %2285 }
 0xbc8   : > { %v2291_v61 = vsel %vm1078_vm3, %v2286_v53, 0 }
 0xbc9   : > { %v2334_v58 = vpop.permute.xlu1 %2333 }
 0xbca   : > { %v2339_v2 = vsel %vm1078_vm3, %v2334_v58, 0 }
 0xc85   : > { %v2079_v18 = vpop.f32.mrb[32].mxu0 }
 0xc86   : > { %v2080_v48 = vadd.f32 %v3620_v47, %v2079_v18  ;;  %v3886_v50 = vpop.f32.mrb[33].mxu0 }
 0xc87   : > { %v2082_v51 = vpop.f32.mrb[34].mxu0 }
 0xc88   : > { %v2149_v54 = vmul.f32 0.35355338, %v2080_v48  ;;  %v2083_v55 = vadd.f32 %v3620_v47, %v2082_v51  ;;  %v3887_v57 = vpop.f32.mrb[35].mxu0 }
 0xc8a   : > { %v5324_v59 = vpack.c.bf16 %v2149_v54, %v2149_v54  ;;  %v2150_v52 = vmul.f32 0.35355338, %v2083_v55 }
 0xc8c   : > { %v5327_v62 = vpack.c.bf16 %v2150_v52, %v2150_v52  ;;  %3899 = vmatmul.mubr.msk.bf16.vlgmr.msra.gmra.mrb[36].mxu0 %vm938_vm2, %v5324_v59 }
 0xc8d   : > { %3909 = vmatpush3.bf16.msra.mxu0 %v2291_v61  ;;  %3910 = vmatprep.mubr.msk.bf16.mxu0 %vm4562_vm0, %v4561_v0 }
 0xc8e   : > { %3905 = vmatmul.mubr.msk.bf16.vlgmr.msra.gmra.mrb[44].mxu1 %vm938_vm2, %v5327_v62  ;;  %3920 = vmatprep.subr.bf16.mxu0 %v4561_v0 }
 0xc8f   : > { %3915 = vmatpush3.bf16.msra.mxu1 %v2339_v2  ;;  %3916 = vmatprep.mubr.msk.bf16.mxu1 %vm4562_vm0, %v4561_v0 }
 0xc90   : > { %3926 = vmatprep.subr.bf16.mxu1 %v4561_v0 }
 0xd5f   : > { %v2203_v5 = vpop.f32.mrb[36].mxu0 }
 0xd60   : > { %v3900_v56 = vpop.f32.mrb[37].mxu0  ;;  %v2255_v1 = vsel %vm938_vm2, %v2203_v5, -inf }
 0xd61   : > { %2256 = vmax.xlane.f32.xlu0 %v2255_v1  ;;  %v2206_v8 = vpop.f32.mrb[38].mxu0  ;;  %v2249_v12 = vpop.f32.mrb[44].mxu1 }
 0xd62   : > { %v3901_v13 = vpop.f32.mrb[39].mxu0  ;;  %v3906_v9 = vpop.f32.mrb[45].mxu1  ;;  %v2258_v60 = vsel %vm938_vm2, %v2249_v12, -inf }
 0xd63   : > { %2259 = vmax.xlane.f32.xlu1 %v2258_v60  ;;  %v2252_v6 = vpop.f32.mrb[46].mxu1 }
 0xd64   : > { %v3907_v21 = vpop.f32.mrb[47].mxu1 }
 0xd74   : > { %2391 = vrot.lane.b32.xlu1 %v5310_v42, %s4566_s2 }
 0xd77   : > { %2441 = vrot.lane.b32.xlu0 %v5312_v16, %s4566_s2 }
 0xd78   : > { %2389 = vrot.lane.b32.xlu1 %v5324_v59, %s4566_s2 }
 0xd7b   : > { %2439 = vrot.lane.b32.xlu0 %v5327_v62, %s4566_s2  ;;  %s5750_s2 = smov 16  }
 0xd7c   : > { %2567 = vrot.lane.b32.xlu1 %v5312_v16, %s4565_s19 }
 0xd7f   : > { %2519 = vrot.lane.b32.xlu0 %v5310_v42, %s4565_s19  ;;  %s5749_s19 = smov 8  }
 0xdee   : > { %v2257_v22 = vpop.xlane.xlu0 %2256 }
 0xdef   : > { %v2267_v3 = vsub.f32 %v2203_v5, %v2257_v22  ;;  %v2261_v34 = vsub.f32 -inf, %v2257_v22 }
 0xdf0   : > { %v2260_v23 = vpop.xlane.xlu1 %2259 }
 0xdf1   : > { %v2269_v4 = vmul.f32 1.442695, %v2267_v3  ;;  %v2268_v24 = vsub.f32 %v2249_v12, %v2260_v23  ;;  %v2262_v35 = vsub.f32 -inf, %v2260_v23  ;;  %v2263_v36 = vmul.f32 1.442695, %v2261_v34 }
 0xdf2   : > { %v2442_v15 = vpop.permute.xlu0 %2441 }
 0xdf3   : > { %v2271_v19 = vmul.f32 1.442695, %v2268_v24  ;;  %4216 = vpow2.f32 %v2269_v4  ;;  %v2447_v30 = vsel %vm938_vm2, %v2442_v15, 0  ;;  %v2265_v37 = vmul.f32 1.442695, %v2262_v35 }
 0xdf4   : > { %v2392_v25 = vpop.permute.xlu1 %2391 }
 0xdf5   : > { %4218 = vpow2.f32 %v2271_v19  ;;  %v2397_v29 = vsel %vm938_vm2, %v2392_v25, 0 }
 0xdf6   : > { %v2440_v7 = vpop.permute.xlu0 %2439  ;;  %4220 = vpow2.f32 %v2263_v36 }
 0xdf7   : > { %4222 = vpow2.f32 %v2265_v37 }
 0xdf8   : > { %v2390_v10 = vpop.permute.xlu1 %2389 }
 0xdfa   : > { %v2520_v20 = vpop.permute.xlu0 %2519 }
 0xdfb   : > { %v2525_v32 = vsel %vm1078_vm3, %v2520_v20, 0 }
 0xdfc   : > { %v2568_v31 = vpop.permute.xlu1 %2567 }
 0xdfd   : > { %v5354_v26 = vpop.eup %4216  ;;  %v2573_v33 = vsel %vm1078_vm3, %v2568_v31, 0 }
 0xdfe   : > { %v2283_v63 = vpack.c.bf16 %v5354_v26, %v5354_v26 }
 0xdff   : > { %v5358_v27 = vpop.eup %4218 }
 0xe00   : > { %3911 = vmatmul.mubr.msk.bf16.vlgmr.msra.gmra.mrb[40].mxu0 %vm938_vm2, %v2283_v63  ;;  %v2284_v17 = vpack.c.bf16 %v5358_v27, %v5358_v27  ;;  %v4221_v39 = vpop.eup %4220 }
 0xe01   : > { %3921 = vmatpush3.bf16.xpose.msra.mxu0 %v2397_v29  ;;  %3922 = vmatprep.mubr.msk.bf16.mxu0 %vm4562_vm0, %v4561_v0  ;;  %v4223_v40 = vpop.eup %4222  ;;  %v5382_v14 = vmul.f32 0.0, %v4221_v39 }
 0xe02   : > { %3917 = vmatmul.mubr.msk.bf16.vlgmr.msra.gmra.mrb[48].mxu1 %vm938_vm2, %v2284_v17  ;;  %3932 = vmatprep.subr.bf16.mxu0 %v4561_v0  ;;  %v5387_v49 = vmul.f32 0.0, %v4223_v40 }
 0xe03   : > { %3927 = vmatpush3.bf16.xpose.msra.mxu1 %v2447_v30  ;;  %3928 = vmatprep.mubr.msk.bf16.mxu1 %vm4562_vm0, %v4561_v0 }
 0xe04   : > { %3938 = vmatprep.subr.bf16.mxu1 %v4561_v0 }
 0xe08   : > { %3923 = vmatmul.mubr.msk.bf16.vlgmr.msra.gmra.mrb[44].mxu0 %vm938_vm2, %v2390_v10 }
 0xe09   : > { %3933 = vmatpush3.bf16.msra.mxu0 %v2525_v32  ;;  %3934 = vmatprep.mubr.msk.bf16.mxu0 %vm4562_vm0, %v4561_v0 }
 0xe0a   : > { %3929 = vmatmul.mubr.msk.bf16.vlgmr.msra.gmra.mrb[52].mxu1 %vm938_vm2, %v2440_v7  ;;  %3944 = vmatprep.subr.bf16.mxu0 %v4561_v0 }
 0xe0b   : > { %3939 = vmatpush3.bf16.msra.mxu1 %v2573_v33  ;;  %3940 = vmatprep.mubr.msk.bf16.mxu1 %vm4562_vm0, %v4561_v0 }
 0xe0c   : > { %3950 = vmatprep.subr.bf16.mxu1 %v4561_v0 }
 0xed3   : > { %v2327_v11 = vpop.f32.mrb[40].mxu0 }
 0xed4   : > { %v5385_v41 = vadd.f32 %v2327_v11, %v5382_v14  ;;  %v3912_v44 = vpop.f32.mrb[41].mxu0 }
 0xed5   : > { %v2330_v45 = vpop.f32.mrb[42].mxu0  ;;  %v2375_v43 = vpop.f32.mrb[48].mxu1 }
 0xed6   : > { %v5390_v46 = vadd.f32 %v2375_v43, %v5387_v49  ;;  %v3913_v47 = vpop.f32.mrb[43].mxu0  ;;  %v3918_v18 = vpop.f32.mrb[49].mxu1 }
 0xed7   : > { %v2378_v48 = vpop.f32.mrb[50].mxu1 }
 0xed8   : > { %v3919_v50 = vpop.f32.mrb[51].mxu1 }
 0xedb   : > { %v2433_v51 = vpop.f32.mrb[44].mxu0 }
 0xedc   : > { %v3924_v53 = vpop.f32.mrb[45].mxu0  ;;  %v2489_v54 = vsel %vm938_vm2, %v2433_v51, -inf }
 0xedd   : > { %2490 = vmax.xlane.f32.xlu1 %v2489_v54  ;;  %v2436_v55 = vpop.f32.mrb[46].mxu0  ;;  %v2483_v57 = vpop.f32.mrb[52].mxu1 }
 0xede   : > { %v3925_v58 = vpop.f32.mrb[47].mxu0  ;;  %v3930_v52 = vpop.f32.mrb[53].mxu1  ;;  %v2492_v61 = vsel %vm938_vm2, %v2483_v57, -inf }
 0xedf   : > { %2493 = vmax.xlane.f32.xlu0 %v2492_v61  ;;  %v2486_v2 = vpop.f32.mrb[54].mxu1 }
 0xee0   : > { %v3931_v5 = vpop.f32.mrb[55].mxu1 }
 0xeee   : > { %2633 = vrot.lane.b32.xlu1 %v5310_v42, %s4569_s14 }
 0xef2   : > { %2631 = vrot.lane.b32.xlu1 %v5324_v59, %s4569_s14 }
 0xef5   : > { %2683 = vrot.lane.b32.xlu0 %v5312_v16, %s4569_s14 }
 0xef6   : > { %2809 = vrot.lane.b32.xlu1 %v5312_v16, %s4568_s15 }
 0xef9   : > { %2681 = vrot.lane.b32.xlu0 %v5327_v62, %s4569_s14  ;;  %s5756_s14 = sld [smem:[#allocation35_spill]] }
 0xefd   : > { %2761 = vrot.lane.b32.xlu0 %v5310_v42, %s4568_s15 }
 0xf6a   : > { %v2491_v56 = vpop.xlane.xlu1 %2490 }
 0xf6b   : > { %v2501_v1 = vsub.f32 %v2433_v51, %v2491_v56  ;;  %v2495_v17 = vsub.f32 -inf, %v2491_v56 }
 0xf6c   : > { %v2494_v8 = vpop.xlane.xlu0 %2493 }
 0xf6d   : > { %v2503_v12 = vmul.f32 1.442695, %v2501_v1  ;;  %v2502_v13 = vsub.f32 %v2483_v57, %v2494_v8  ;;  %v2496_v10 = vsub.f32 -inf, %v2494_v8  ;;  %v2497_v30 = vmul.f32 1.442695, %v2495_v17 }
 0xf6e   : > { %v2634_v6 = vpop.permute.xlu1 %2633 }
 0xf6f   : > { %v2505_v9 = vmul.f32 1.442695, %v2502_v13  ;;  %4224 = vpow2.f32 %v2503_v12  ;;  %v2639_v4 = vsel %vm938_vm2, %v2634_v6, 0  ;;  %v2499_v20 = vmul.f32 1.442695, %v2496_v10 }
 0xf70   : > { %v2684_v60 = vpop.permute.xlu0 %2683 }
 0xf71   : > { %4226 = vpow2.f32 %v2505_v9  ;;  %v2689_v15 = vsel %vm938_vm2, %v2684_v60, 0 }
 0xf72   : > { %v2632_v19 = vpop.permute.xlu1 %2631  ;;  %4228 = vpow2.f32 %v2497_v30 }
 0xf73   : > { %4230 = vpow2.f32 %v2499_v20 }
 0xf74   : > { %v2682_v23 = vpop.permute.xlu0 %2681 }
 0xf76   : > { %v2810_v63 = vpop.permute.xlu1 %2809 }
 0xf77   : > { %v2815_v29 = vsel %vm1078_vm3, %v2810_v63, 0 }
 0xf78   : > { %v2762_v25 = vpop.permute.xlu0 %2761 }
 0xf79   : > { %v5406_v21 = vpop.eup %4224  ;;  %v2767_v7 = vsel %vm1078_vm3, %v2762_v25, 0 }
 0xf7a   : > { %v2517_v22 = vpack.c.bf16 %v5406_v21, %v5406_v21 }
 0xf7b   : > { %v5410_v3 = vpop.eup %4226 }
 0xf7c   : > { %3935 = vmatmul.mubr.msk.bf16.vlgmr.msra.gmra.mrb[48].mxu0 %vm938_vm2, %v2517_v22  ;;  %v2518_v24 = vpack.c.bf16 %v5410_v3, %v5410_v3  ;;  %v4229_v31 = vpop.eup %4228 }
 0xf7d   : > { %3945 = vmatpush3.bf16.xpose.msra.mxu0 %v2639_v4  ;;  %3946 = vmatprep.mubr.msk.bf16.mxu0 %vm4562_vm0, %v4561_v0  ;;  %v4231_v32 = vpop.eup %4230  ;;  %v5434_v33 = vmul.f32 0.0, %v4229_v31 }
 0xf7e   : > { %3941 = vmatmul.mubr.msk.bf16.vlgmr.msra.gmra.mrb[56].mxu1 %vm938_vm2, %v2518_v24  ;;  %3956 = vmatprep.subr.bf16.mxu0 %v4561_v0  ;;  %v5439_v37 = vmul.f32 0.0, %v4231_v32 }
 0xf7f   : > { %3951 = vmatpush3.bf16.xpose.msra.mxu1 %v2689_v15  ;;  %3952 = vmatprep.mubr.msk.bf16.mxu1 %vm4562_vm0, %v4561_v0 }
 0xf80   : > { %3962 = vmatprep.subr.bf16.mxu1 %v4561_v0 }
 0xf84   : > { %3947 = vmatmul.mubr.msk.bf16.vlgmr.msra.gmra.mrb[52].mxu0 %vm938_vm2, %v2632_v19 }
 0xf85   : > { %3957 = vmatpush3.bf16.msra.mxu0 %v2767_v7  ;;  %3958 = vmatprep.mubr.msk.bf16.mxu0 %vm4562_vm0, %v4561_v0 }
 0xf86   : > { %3953 = vmatmul.mubr.msk.bf16.vlgmr.msra.gmra.mrb[60].mxu1 %vm938_vm2, %v2682_v23  ;;  %3968 = vmatprep.subr.bf16.mxu0 %v4561_v0 }
 0xf87   : > { %3963 = vmatpush3.bf16.msra.mxu1 %v2815_v29  ;;  %3964 = vmatprep.mubr.msk.bf16.mxu1 %vm4562_vm0, %v4561_v0 }
 0xf88   : > { %3974 = vmatprep.subr.bf16.mxu1 %v4561_v0 }
0x104f   : > { %v2561_v34 = vpop.f32.mrb[48].mxu0 }
0x1050   : > { %v5437_v35 = vadd.f32 %v2561_v34, %v5434_v33  ;;  %v3936_v36 = vpop.f32.mrb[49].mxu0 }
0x1051   : > { %v2564_v39 = vpop.f32.mrb[50].mxu0  ;;  %v2609_v40 = vpop.f32.mrb[56].mxu1 }
0x1052   : > { %v5442_v11 = vadd.f32 %v2609_v40, %v5439_v37  ;;  %v3937_v44 = vpop.f32.mrb[51].mxu0  ;;  %v3942_v45 = vpop.f32.mrb[57].mxu1 }
0x1053   : > { %v2612_v43 = vpop.f32.mrb[58].mxu1 }
0x1054   : > { %v3943_v47 = vpop.f32.mrb[59].mxu1 }
0x1057   : > { %v2675_v18 = vpop.f32.mrb[52].mxu0 }
0x1058   : > { %v3948_v48 = vpop.f32.mrb[53].mxu0  ;;  %v2731_v50 = vsel %vm938_vm2, %v2675_v18, -inf }
0x1059   : > { %2732 = vmax.xlane.f32.xlu1 %v2731_v50  ;;  %v2678_v51 = vpop.f32.mrb[54].mxu0  ;;  %v2725_v53 = vpop.f32.mrb[60].mxu1 }
0x105a   : > { %v3949_v54 = vpop.f32.mrb[55].mxu0  ;;  %v3954_v55 = vpop.f32.mrb[61].mxu1  ;;  %v2734_v57 = vsel %vm938_vm2, %v2725_v53, -inf }
0x105b   : > { %2735 = vmax.xlane.f32.xlu0 %v2734_v57  ;;  %v2728_v58 = vpop.f32.mrb[62].mxu1  ;;  %v2509_v57 = vsel %vm938_vm2, %v5406_v21, 0.0 }
0x105c   : > { %v3955_v52 = vpop.f32.mrb[63].mxu1  ;;  %v2512_v58 = vsel %vm938_vm2, %v5410_v3, 0.0 }
0x106a   : > { %2875 = vrot.lane.b32.xlu1 %v5310_v42, %s4572_s4 }
0x106e   : > { %2873 = vrot.lane.b32.xlu1 %v5324_v59, %s4572_s4 }
0x1071   : > { %2925 = vrot.lane.b32.xlu0 %v5312_v16, %s4572_s4 }
0x1075   : > { %2923 = vrot.lane.b32.xlu0 %v5327_v62, %s4572_s4  ;;  %s4577_s4 = smov [#allocation15]  }
0x1076   : > { %s4474_s7 = sshll.u32 %s4577_s4, 4  ;;  %s4475_s7 = int_to_ptr.vmem [resolvable:$false] %s4474_s7 }
0x1077   : > { %s4476_s8 = scalar_lea.vmem %s4475_s7, 512 }
0x10e6   : > { %v2733_v61 = vpop.xlane.xlu1 %2732 }
0x10e7   : > { %v2743_v2 = vsub.f32 %v2675_v18, %v2733_v61  ;;  %v2737_v24 = vsub.f32 -inf, %v2733_v61 }
0x10e8   : > { %v2736_v5 = vpop.xlane.xlu0 %2735 }
0x10e9   : > { %v2745_v56 = vmul.f32 1.442695, %v2743_v2  ;;  %v2744_v1 = vsub.f32 %v2725_v53, %v2736_v5  ;;  %v2738_v19 = vsub.f32 -inf, %v2736_v5  ;;  %v2739_v15 = vmul.f32 1.442695, %v2737_v24 }
0x10ea   : > { %v2876_v13 = vpop.permute.xlu1 %2875 }
0x10eb   : > { %v2747_v8 = vmul.f32 1.442695, %v2744_v1  ;;  %4232 = vpow2.f32 %v2745_v56  ;;  %v2881_v59 = vsel %vm938_vm2, %v2876_v13, 0  ;;  %v2741_v25 = vmul.f32 1.442695, %v2738_v19 }
0x10ec   : > { %v2926_v6 = vpop.permute.xlu0 %2925 }
0x10ed   : > { %4234 = vpow2.f32 %v2747_v8  ;;  %v2931_v62 = vsel %vm938_vm2, %v2926_v6, 0 }
0x10ee   : > { %v2874_v23 = vpop.permute.xlu1 %2873  ;;  %4236 = vpow2.f32 %v2739_v15 }
0x10ef   : > { %4238 = vpow2.f32 %v2741_v25 }
0x10f0   : > { %v2924_v4 = vpop.permute.xlu0 %2923 }
0x10f5   : > { %v4233_v12 = vpop.eup %4232 }
0x10f6   : > { %v2759_v9 = vpack.c.bf16 %v4233_v12, %v4233_v12  ;;  %v2751_v61 = vsel %vm938_vm2, %v4233_v12, 0.0 }
0x10f7   : > { %v4235_v60 = vpop.eup %4234 }
0x10f8   : > { %3959 = vmatmul.mubr.msk.bf16.vlgmr.msra.gmra.mrb[56].mxu0 %vm938_vm2, %v2759_v9  ;;  %v2760_v22 = vpack.c.bf16 %v4235_v60, %v4235_v60  ;;  %v4237_v63 = vpop.eup %4236  ;;  %v2754_v52 = vsel %vm938_vm2, %v4235_v60, 0.0 }
0x10f9   : > { %3969 = vmatpush3.bf16.xpose.msra.mxu0 %v2881_v59  ;;  %3970 = vmatprep.mubr.msk.bf16.mxu0 %vm4562_vm0, %v4561_v0  ;;  %v4239_v7 = vpop.eup %4238  ;;  %v5470_v29 = vmul.f32 0.0, %v4237_v63 }
0x10fa   : > { %3965 = vmatmul.mubr.msk.bf16.vlgmr.msra.gmra.mrb[64].mxu1 %vm938_vm2, %v2760_v22  ;;  %3980 = vmatprep.subr.bf16.mxu0 %v4561_v0  ;;  %v5475_v20 = vmul.f32 0.0, %v4239_v7 }
0x10fb   : > { %3975 = vmatpush3.bf16.xpose.msra.mxu1 %v2931_v62  ;;  %3976 = vmatprep.mubr.msk.bf16.mxu1 %vm4562_vm0, %v4561_v0  ;;  %v2275_v62 = vsel %vm938_vm2, %v5354_v26, 0.0 }
0x10fc   : > { %3986 = vmatprep.subr.bf16.mxu1 %v4561_v0 }
0x1100   : > { %3971 = vmatmul.mubr.msk.bf16.vlgmr.msra.gmra.mrb[60].mxu0 %vm938_vm2, %v2874_v23  ;;  %v2278_v23 = vsel %vm938_vm2, %v5358_v27, 0.0 }
0x1101   : > { %3982 = vmatprep.mubr.msk.bf16.mxu0 %vm4562_vm0, %v4561_v0 }
0x1102   : > { %3977 = vmatmul.mubr.msk.bf16.vlgmr.msra.gmra.mrb[68].mxu1 %vm938_vm2, %v2924_v4 }
0x1103   : > { %3988 = vmatprep.mubr.msk.bf16.mxu1 %vm4562_vm0, %v4561_v0 }
0x11cb   : > { %v2803_v17 = vpop.f32.mrb[56].mxu0 }
0x11cc   : > { %v5473_v10 = vadd.f32 %v2803_v17, %v5470_v29  ;;  %v3960_v30 = vpop.f32.mrb[57].mxu0 }
0x11cd   : > { %v2806_v31 = vpop.f32.mrb[58].mxu0  ;;  %v2851_v32 = vpop.f32.mrb[64].mxu1 }
0x11ce   : > { %v5478_v34 = vadd.f32 %v2851_v32, %v5475_v20  ;;  %v3961_v36 = vpop.f32.mrb[59].mxu0  ;;  %v3966_v39 = vpop.f32.mrb[65].mxu1 }
0x11cf   : > { %v2854_v40 = vpop.f32.mrb[66].mxu1 }
0x11d0   : > { %v3967_v44 = vpop.f32.mrb[67].mxu1 }
0x11d3   : > { %v2917_v45 = vpop.f32.mrb[60].mxu0 }
0x11d4   : > { %v3972_v43 = vpop.f32.mrb[61].mxu0  ;;  %v2973_v47 = vsel %vm938_vm2, %v2917_v45, -inf }
0x11d5   : > { %2974 = vmax.xlane.f32.xlu1 %v2973_v47  ;;  %v2920_v18 = vpop.f32.mrb[62].mxu0  ;;  %v2967_v48 = vpop.f32.mrb[68].mxu1 }
0x11d6   : > { %v3973_v50 = vpop.f32.mrb[63].mxu0  ;;  %v3978_v51 = vpop.f32.mrb[69].mxu1  ;;  %v2976_v53 = vsel %vm938_vm2, %v2967_v48, -inf }
0x11d7   : > { %2977 = vmax.xlane.f32.xlu0 %v2976_v53  ;;  %v2970_v54 = vpop.f32.mrb[70].mxu1 }
0x11d8   : > { %v3979_v55 = vpop.f32.mrb[71].mxu1 }
0x11e6   : > { %3051 = vrot.lane.b32.xlu1 %v5312_v16, %s5748_s21 }
0x11ed   : > { %3003 = vrot.lane.b32.xlu0 %v5310_v42, %s5748_s21  ;;  %s5751_s21 = sld [smem:[#allocation31_spill]] }
0x120a   : > { %2510 = vadd.xlane.f32.xlu1 %v2509_v57 }
0x120c   : > { %2513 = vadd.xlane.f32.xlu0 %v2512_v58  ;;  %v4156_v58 = vld [vmem:[%s5666_s10] sm:$0xff]  }
0x120e   : > { %2755 = vadd.xlane.f32.xlu1 %v2754_v52  ;;  %v4157_v52 = vld [vmem:[%s5666_s10 + $0x8] sm:$0xff]  }
0x1210   : > { %2752 = vadd.xlane.f32.xlu0 %v2751_v61 }
0x1262   : > { %v5492_v2 = vpop.xlane.xlu1 %2974 }
0x1263   : > { %v2985_v16 = vsub.f32 %v2917_v45, %v5492_v2 }
0x1264   : > { %v5495_v5 = vpop.xlane.xlu0 %2977 }
0x1265   : > { %v2987_v42 = vmul.f32 1.442695, %v2985_v16  ;;  %v2986_v21 = vsub.f32 %v2967_v48, %v5495_v5  ;;  %v2980_v18 = vsub.f32 -inf, %v5495_v5 }
0x1266   : > { %v3052_v56 = vpop.permute.xlu1 %3051 }
0x1267   : > { %v2989_v1 = vmul.f32 1.442695, %v2986_v21  ;;  %v3057_v3 = vsel %vm1078_vm3, %v3052_v56, 0  ;;  %4240 = vpow2.f32 %v2987_v42 }
0x1268   : > { %3987 = vmatpush3.bf16.msra.mxu1 %v3057_v3  ;;  %v3004_v8 = vpop.permute.xlu0 %3003 }
0x1269   : > { %v3009_v13 = vsel %vm1078_vm3, %v3004_v8, 0  ;;  %4000 = vmatprep.subr.bf16.mxu1 %v4561_v0  ;;  %4242 = vpow2.f32 %v2989_v1 }
0x126a   : > { %3981 = vmatpush3.bf16.msra.mxu0 %v3009_v13 }
0x126b   : > { %3992 = vmatprep.subr.bf16.mxu0 %v4561_v0 }
0x1271   : > { %v4241_v12 = vpop.eup %4240 }
0x1272   : > { %v2993_v9 = vsel %vm938_vm2, %v4241_v12, 0.0  ;;  %v3001_v60 = vpack.c.bf16 %v4241_v12, %v4241_v12 }
0x1273   : > { %v4243_v6 = vpop.eup %4242  ;;  %2994 = vadd.xlane.f32.xlu0 %v2993_v9 }
0x1274   : > { %3983 = vmatmul.mubr.msk.bf16.vlgmr.msra.gmra.mrb[64].mxu0 %vm938_vm2, %v3001_v60  ;;  %v2996_v59 = vsel %vm938_vm2, %v4243_v6, 0.0  ;;  %v3002_v22 = vpack.c.bf16 %v4243_v6, %v4243_v6 }
0x1275   : > { %2997 = vadd.xlane.f32.xlu1 %v2996_v59  ;;  %3996 = vmatprep.mubr.msk.bf16.mxu0 %vm4562_vm0, %v4561_v0 }
0x1276   : > { %3989 = vmatmul.mubr.msk.bf16.vlgmr.msra.gmra.mrb[72].mxu1 %vm938_vm2, %v3002_v22  ;;  %3993 = vmatpush3.bf16.msra.mxu0 %v4156_v58  ;;  %v4162_v58 = vld [vmem:[%s5751_s21 + $0x10] sm:$0xff]  }
0x1277   : > { %2276 = vadd.xlane.f32.xlu0 %v2275_v62  ;;  %4004 = vmatprep.mubr.msk.bf16.mxu1 %vm4562_vm0, %v4561_v0 }
0x1278   : > { %3994 = vmatprep.subr.bf16.mxu0 %v4561_v0 }
0x1279   : > { %2279 = vadd.xlane.f32.xlu1 %v2278_v23 }
0x127a   : > { %3995 = vmatpush3.bf16.msra.mxu0 %v4157_v52  ;;  %v4163_v52 = vld [vmem:[%s5751_s21 + $0x18] sm:$0xff]  }
0x127b   : > { %4008 = vmatprep.subr.bf16.mxu0 %v4561_v0 }
0x1297   : > { %v2511_v4 = vpop.xlane.xlu1 %2510 }
0x1298   : > { %v2515_v24 = vadd.f32 %v2511_v4, %v5434_v33  ;;  %v3648_v4 = vld [vmem:[%s5667_s11] ss:$0 sm:$0xff] }
0x1299   : > { %v2514_v19 = vpop.xlane.xlu0 %2513 }
0x129a   : > { %4244 = vrcp.f32 %v2515_v24  ;;  %v2516_v15 = vadd.f32 %v2514_v19, %v5439_v37 }
0x129b   : > { %v2756_v25 = vpop.xlane.xlu1 %2755 }
0x129c   : > { %4246 = vrcp.f32 %v2516_v15  ;;  %v2758_v63 = vadd.f32 %v2756_v25, %v5475_v20 }
0x129d   : > { %v2753_v26 = vpop.xlane.xlu0 %2752 }
0x129e   : > { %4248 = vrcp.f32 %v2758_v63  ;;  %v2757_v7 = vadd.f32 %v2753_v26, %v5470_v29 }
0x12a0   : > { %4250 = vrcp.f32 %v2757_v7 }
0x12a4   : > { %v4245_v17 = vpop.eup %4244 }
0x12a5   : > { %v2619_v27 = vmul.f32 %v4245_v17, %v5437_v35 }
0x12a6   : > { %v4247_v30 = vpop.eup %4246 }
0x12a7   : > { %2623 = vrot.lane.b32.xlu0 %v2619_v27, %s5749_s19  ;;  %v2620_v33 = vmul.f32 %v4247_v30, %v5442_v11 }
0x12a8   : > { %v4249_v31 = vpop.eup %4248 }
0x12a9   : > { %2625 = vrot.lane.b32.xlu1 %v2620_v33, %s5749_s19  ;;  %v2862_v37 = vmul.f32 %v4249_v31, %v5478_v34 }
0x12aa   : > { %v4251_v32 = vpop.eup %4250 }
0x12ab   : > { %2867 = vrot.lane.b32.xlu0 %v2862_v37, %s5750_s2  ;;  %v2861_v20 = vmul.f32 %v4251_v32, %v5473_v10 }
0x12ad   : > { %2865 = vrot.lane.b32.xlu1 %v2861_v20, %s5750_s2  ;;  %s5759_s2 = sld [smem:[#allocation37_spill]] }
0x12b3   : > { %s5607_s15 = scalar_lea.hbm %s5759_s2, %s3680_s27 }
0x1300   : > { %v2995_v29 = vpop.xlane.xlu0 %2994 }
0x1302   : > { %v2998_v36 = vpop.xlane.xlu1 %2997 }
0x1304   : > { %v2277_v35 = vpop.xlane.xlu0 %2276 }
0x1305   : > { %v2281_v39 = vadd.f32 %v2277_v35, %v5382_v14 }
0x1306   : > { %v2280_v40 = vpop.xlane.xlu1 %2279 }
0x1307   : > { %4252 = vrcp.f32 %v2281_v39  ;;  %v2282_v11 = vadd.f32 %v2280_v40, %v5387_v49  ;;  %v4158_v40 = vld [vmem:[#allocation14] sm:$0xff]  }
0x1308   : > { %4001 = vmatpush3.bf16.msra.mxu1 %v4158_v40 }
0x1309   : > { %4254 = vrcp.f32 %v2282_v11  ;;  %4002 = vmatprep.subr.bf16.mxu1 %v4561_v0  ;;  %v4160_v11 = vld [vmem:[%s5751_s21] sm:$0xff]  }
0x1311   : > { %v4253_v44 = vpop.eup %4252 }
0x1312   : > { %v2385_v34 = vmul.f32 %v4253_v44, %v5385_v41  ;;  %v2979_v41 = vsub.f32 -inf, %v5492_v2  ;;  %v4161_v44 = vld [vmem:[%s5751_s21 + $0x8] sm:$0xff]  }
0x1313   : > { %v4255_v45 = vpop.eup %4254 }
0x1314   : > { %2387 = vst.msk [vmem:[#allocation2] sm:$0xff] %vm938_vm2, %v2385_v34  ;;  %v2386_v10 = vmul.f32 %v4255_v45, %v5390_v46  ;;  %v2981_v48 = vmul.f32 1.442695, %v2979_v41  ;;  %v2983_v46 = vmul.f32 1.442695, %v2980_v18 }
0x1315   : > { %v3652_v41 = vld [vmem:[%s5752_s26] ss:$0 sm:$0xff] }
0x1316   : > { %2388 = vst.msk [vmem:[#allocation2 + $0x8] sm:$0xff] %vm938_vm2, %v2386_v10  ;;  %4256 = vpow2.f32 %v2981_v48 }
0x1317   : > { %4258 = vpow2.f32 %v2983_v46 }
0x1319   : > { %v2624_v43 = vpop.permute.xlu0 %2623 }
0x131a   : > { %2629 = vst.msk [vmem:[#allocation2] sm:$0xff] %vm1420_vm5, %v2624_v43 }
0x131b   : > { %v2626_v47 = vpop.permute.xlu1 %2625 }
0x131c   : > { %2630 = vst.msk [vmem:[#allocation2 + $0x8] sm:$0xff] %vm1420_vm5, %v2626_v47 }
0x131d   : > { %v2868_v14 = vpop.permute.xlu0 %2867 }
0x131e   : > { %2872 = vst.msk [vmem:[#allocation2 + $0x8] sm:$0xff] %vm1665_vm6, %v2868_v14 }
0x131f   : > { %v2866_v49 = vpop.permute.xlu1 %2865 }
0x1320   : > { %2871 = vst.msk [vmem:[#allocation2] sm:$0xff] %vm1665_vm6, %v2866_v49  ;;  %v4257_v50 = vpop.eup %4256 }
0x1321   : > { %v4259_v51 = vpop.eup %4258  ;;  %v2991_v53 = vmul.f32 0.0, %v4257_v50 }
0x1322   : > { %v2992_v55 = vmul.f32 0.0, %v4259_v51 }
0x1323   : > { %v2999_v54 = vadd.f32 %v2995_v29, %v2991_v53 }
0x1324   : > { %v3000_v57 = vadd.f32 %v2998_v36, %v2992_v55 }
0x1325   : > { %4260 = vrcp.f32 %v2999_v54 }
0x1326   : > { %4262 = vrcp.f32 %v3000_v57 }
0x132f   : > { %v4261_v5 = vpop.eup %4260 }
0x1330   : > { %v4263_v13 = vpop.eup %4262 }
0x1347   : > { %v3045_v61 = vpop.f32.mrb[64].mxu0 }
0x1348   : > { %v3099_v2 = vadd.f32 %v3045_v61, %v2991_v53  ;;  %v3984_v16 = vpop.f32.mrb[65].mxu0  ;;  %v3654_v61 = vld [vmem:[%s5754_s1] ss:$0 sm:$0xff]  ;;  %s5757_s1 = sld [smem:[#allocation36_spill]] }
0x1349   : > { %v3048_v42 = vpop.f32.mrb[66].mxu0  ;;  %v3093_v21 = vpop.f32.mrb[72].mxu1 }
0x134a   : > { %v3103_v56 = vmul.f32 %v4261_v5, %v3099_v2  ;;  %v3100_v1 = vadd.f32 %v3093_v21, %v2992_v55  ;;  %v3985_v3 = vpop.f32.mrb[67].mxu0  ;;  %v3990_v8 = vpop.f32.mrb[73].mxu1 }
0x134b   : > { %v3096_v12 = vpop.f32.mrb[74].mxu1 }
0x134c   : > { %v3104_v9 = vmul.f32 %v4263_v13, %v3100_v1  ;;  %3107 = vrot.lane.b32.xlu1 %v3103_v56, %s4576_s22  ;;  %v3991_v60 = vpop.f32.mrb[75].mxu1 }
0x134e   : > { %3109 = vrot.lane.b32.xlu0 %v3104_v9, %s4576_s22  ;;  %s5753_s22 = sld [smem:[#allocation34_spill]]  ;;  %v3665_v40 = vld [vmem:[%s5757_s1] ss:$0 sm:$0xff] }
0x1354   : > { %v3653_v51 = vld [vmem:[%s5753_s22] ss:$0 sm:$0xff]  ;;  %s5758_s22 = sshll.u32 %s4963_s6, 4 }
0x13be   : > { %v3108_v6 = vpop.permute.xlu1 %3107 }
0x13bf   : > { %3113 = vst.msk [vmem:[#allocation2] sm:$0xff] %vm1910_vm7, %v3108_v6 }
0x13c0   : > { %v3110_v59 = vpop.permute.xlu0 %3109 }
0x13c1   : > { %3114 = vst.msk [vmem:[#allocation2 + $0x8] sm:$0xff] %vm1910_vm7, %v3110_v59 }
0x13c6   : > { %v3115_v22 = vld [vmem:[#allocation2] sm:$0xff] }
0x13c8   : > { %v3116_v62 = vld [vmem:[#allocation2 + $0x8] sm:$0xff] }
0x13c9   : > { %v3117_v23 = vpack.c.bf16 %v3116_v62, %v3115_v22 }
0x13cb   : > { %3997 = vmatmul.mubr.msk.bf16.vlgmr.msra.gmra.mrb[68].mxu0 %vm878_vm1, %v3117_v23 }
0x13cc   : > { %4016 = vmatprep.mubr.msk.bf16.mxu0 %vm4562_vm0, %v4561_v0  ;;  %4009 = vmatpush3.bf16.msra.mxu0 %v4160_v11 }
0x13cd   : > { %4010 = vmatprep.subr.bf16.mxu0 %v4561_v0 }
0x13d0   : > { %4011 = vmatpush3.bf16.msra.mxu0 %v4161_v44 }
0x13d1   : > { %4012 = vmatprep.subr.bf16.mxu0 %v4561_v0 }
0x13d4   : > { %4013 = vmatpush3.bf16.msra.mxu0 %v4162_v58 }
0x13d5   : > { %4014 = vmatprep.subr.bf16.mxu0 %v4561_v0  ;;  %v3658_v0 = vld [vmem:[%s5755_s18] ss:$0 sm:$0xff]  ;;  %s800_s18 = scalar_lea.vmem [#allocation15], %s5758_s22 }
0x13d6   : > { %s3425_s0 = sshll.u32 %s800_s18, 4  ;;  %s5610_s0 = int_to_ptr.vmem [resolvable:$true] %s3425_s0 }
0x13d7   : > { %p4477_p0 = scmp.lt.s32.totalorder %s5610_s0, %s4475_s7 }
0x13d8   : > { %4015 = vmatpush3.bf16.msra.mxu0 %v4163_v52 }
0x149e   : > { %v3173_v24 = vpop.f32.mrb[68].mxu0 }
0x149f   : > { %v3174_v19 = vadd.f32 %v3648_v4, %v3173_v24  ;;  %v3998_v15 = vpop.f32.mrb[69].mxu0 }
0x14a0   : > { %v3176_v25 = vpop.f32.mrb[70].mxu0 }
0x14a1   : > { %v3177_v63 = vadd.f32 %v3648_v4, %v3176_v25  ;;  %v3999_v26 = vpop.f32.mrb[71].mxu0  ;;  %v3180_v7 = vadd.f32 %v3174_v19, %v5301_v38 }
0x14a3   : > { %v3182_v17 = vsel %vm878_vm1, %v3180_v7, 0.0  ;;  %v3181_v27 = vadd.f32 %v3177_v63, %v5303_v28  ;;  %v4159_v28 = vld [vmem:[#allocation14 + $0x8] sm:$0xff]  }
0x14a4   : > { %3183 = vadd.xlane.f32.xlu1 %v3182_v17  ;;  %4003 = vmatpush3.bf16.msra.mxu1 %v4159_v28 }
0x14a5   : > { %v3185_v30 = vsel %vm878_vm1, %v3181_v27, 0.0 }
0x14a6   : > { %3186 = vadd.xlane.f32.xlu0 %v3185_v30 }
0x1531   : > { %v3184_v33 = vpop.xlane.xlu1 %3183 }
0x1532   : > { %v3188_v31 = vmul.f32 0.03125, %v3184_v33 }
0x1533   : > { %v3187_v37 = vpop.xlane.xlu0 %3186 }
0x1534   : > { %v3190_v32 = vsub.f32 %v3180_v7, %v3188_v31  ;;  %v3189_v20 = vmul.f32 0.03125, %v3187_v37 }
0x1536   : > { %v3191_v29 = vsub.f32 %v3181_v27, %v3189_v20  ;;  %v3192_v36 = vmul.f32 %v3190_v32, %v3190_v32 }
0x1538   : > { %v3194_v35 = vsel %vm878_vm1, %v3192_v36, 0.0  ;;  %v3193_v39 = vmul.f32 %v3191_v29, %v3191_v29 }
0x1539   : > { %3195 = vadd.xlane.f32.xlu0 %v3194_v35  ;;  %v3664_v35 = vld [vmem:[%s5756_s14] ss:$0 sm:$0xff]  ;;  %s4470_s14 = scalar_lea.vmem %s5610_s0, 256 }
0x153a   : > { %v3197_v38 = vsel %vm878_vm1, %v3193_v39, 0.0  ;;  %p4471_p9 = scmp.ne.s32.totalorder %s5610_s0, %s4470_s14  ;;  %p4478_p2 = scmp.lt.s32.totalorder %s4476_s8, %s4470_s14 }
0x153b   : > { %3198 = vadd.xlane.f32.xlu1 %v3197_v38 }
0x153c   : > { %p4472_p1 = pnand %p4471_p9, %p5760_p12  ;;  %p4479_p8 = por %p4478_p2, %p4477_p0 }
0x153e   : > { %p4473_p13 = pneg %p4472_p1 }
0x1540   : > { %p4480_p4 = pnand %p4479_p8, %p4473_p13 }
0x15c6   : > { %v3196_v34 = vpop.xlane.xlu0 %3195 }
0x15c7   : > { %v3200_v45 = vmul.f32 0.03125, %v3196_v34 }
0x15c8   : > { %v3199_v10 = vpop.xlane.xlu1 %3198 }
0x15c9   : > { %v3202_v43 = vadd.f32 1e-05, %v3200_v45  ;;  %v3201_v47 = vmul.f32 0.03125, %v3199_v10 }
0x15cb   : > { %4264 = vrsqrt.f32 %v3202_v43  ;;  %v3203_v14 = vadd.f32 1e-05, %v3201_v47 }
0x15cd   : > { %4266 = vrsqrt.f32 %v3203_v14 }
0x15d5   : > { %v4265_v49 = vpop.eup %4264 }
0x15d6   : > { %v3206_v18 = vmul.f32 %v4265_v49, %v3190_v32 }
0x15d7   : > { %v4267_v48 = vpop.eup %4266 }
0x15d8   : > { %v3214_v46 = vmul.f32 %v3652_v41, %v3206_v18  ;;  %v3207_v50 = vmul.f32 %v4267_v48, %v3191_v29 }
0x15da   : > { %v3215_v53 = vmul.f32 %v3652_v41, %v3207_v50  ;;  %v3222_v54 = vadd.f32 %v3653_v51, %v3214_v46 }
0x15dc   : > { %v3223_v55 = vadd.f32 %v3653_v51, %v3215_v53 }
0x15de   : > { %v3224_v57 = vpack.c.bf16 %v3223_v55, %v3222_v54 }
0x15e0   : > { %4005 = vmatmul.mubr.msk.bf16.vlgmr.msra.gmra.mrb[76].mxu1 %vm878_vm1, %v3224_v57 }
0x16b3   : > { %v3280_v2 = vpop.f32.mrb[76].mxu1 }
0x16b4   : > { %v3281_v16 = vadd.f32 %v3654_v61, %v3280_v2  ;;  %v4006_v5 = vpop.f32.mrb[77].mxu1 }
0x16b5   : > { %v3283_v42 = vpop.f32.mrb[78].mxu1 }
0x16b6   : > { %v3284_v21 = vadd.f32 %v3654_v61, %v3283_v42  ;;  %v4007_v56 = vpop.f32.mrb[79].mxu1  ;;  %v3287_v1 = vmax.f32 %v3281_v16, 0.0 }
0x16b8   : > { %v3288_v3 = vmax.f32 %v3284_v21, 0.0 }
0x16ba   : > { %v3289_v8 = vpack.c.bf16 %v3288_v3, %v3287_v1 }
0x16bc   : > { %4017 = vmatmul.mubr.msk.bf16.vlgmr.msra.gmra.mrb[72].mxu0 %vm3320_vm8, %v3289_v8 }
0x178f   : > { %v3358_v13 = vpop.f32.mrb[72].mxu0 }
0x1790   : > { %v3359_v12 = vadd.f32 %v3658_v0, %v3358_v13  ;;  %v4018_v9 = vpop.f32.mrb[73].mxu0 }
0x1791   : > { %v3361_v60 = vpop.f32.mrb[74].mxu0 }
0x1792   : > { %v3365_v6 = vadd.f32 %v3359_v12, %v3222_v54  ;;  %v3362_v59 = vadd.f32 %v3658_v0, %v3361_v60  ;;  %v4019_v22 = vpop.f32.mrb[75].mxu0 }
0x1794   : > { %v3367_v62 = vsel %vm878_vm1, %v3365_v6, 0.0  ;;  %v3366_v23 = vadd.f32 %v3362_v59, %v3223_v55 }
0x1795   : > { %3368 = vadd.xlane.f32.xlu0 %v3367_v62 }
0x1796   : > { %v3370_v4 = vsel %vm878_vm1, %v3366_v23, 0.0 }
0x1797   : > { %3371 = vadd.xlane.f32.xlu1 %v3370_v4 }
0x1822   : > { %v3369_v24 = vpop.xlane.xlu0 %3368 }
0x1823   : > { %v3373_v19 = vmul.f32 0.03125, %v3369_v24 }
0x1824   : > { %v3372_v15 = vpop.xlane.xlu1 %3371 }
0x1825   : > { %v3375_v25 = vsub.f32 %v3365_v6, %v3373_v19  ;;  %v3374_v63 = vmul.f32 0.03125, %v3372_v15 }
0x1827   : > { %v3376_v26 = vsub.f32 %v3366_v23, %v3374_v63  ;;  %v3377_v7 = vmul.f32 %v3375_v25, %v3375_v25 }
0x1829   : > { %v3379_v17 = vsel %vm878_vm1, %v3377_v7, 0.0  ;;  %v3378_v27 = vmul.f32 %v3376_v26, %v3376_v26 }
0x182a   : > { %3380 = vadd.xlane.f32.xlu0 %v3379_v17 }
0x182b   : > { %v3382_v30 = vsel %vm878_vm1, %v3378_v27, 0.0 }
0x182c   : > { %3383 = vadd.xlane.f32.xlu1 %v3382_v30 }
0x18b7   : > { %v3381_v33 = vpop.xlane.xlu0 %3380 }
0x18b8   : > { %v3385_v31 = vmul.f32 0.03125, %v3381_v33 }
0x18b9   : > { %v3384_v37 = vpop.xlane.xlu1 %3383 }
0x18ba   : > { %v3387_v32 = vadd.f32 1e-05, %v3385_v31  ;;  %v3386_v20 = vmul.f32 0.03125, %v3384_v37 }
0x18bc   : > { %4268 = vrsqrt.f32 %v3387_v32  ;;  %v3388_v29 = vadd.f32 1e-05, %v3386_v20 }
0x18be   : > { %4270 = vrsqrt.f32 %v3388_v29 }
0x18c6   : > { %v4269_v36 = vpop.eup %4268 }
0x18c7   : > { %v3391_v39 = vmul.f32 %v4269_v36, %v3375_v25 }
0x18c8   : > { %v4271_v38 = vpop.eup %4270 }
0x18c9   : > { %v3399_v28 = vmul.f32 %v3664_v35, %v3391_v39  ;;  %v3392_v11 = vmul.f32 %v4271_v38, %v3376_v26 }
0x18cb   : > { %v3407_v44 = vadd.f32 %v3665_v40, %v3399_v28  ;;  %v3400_v34 = vmul.f32 %v3664_v35, %v3392_v11 }
0x18cd   : > { %v3408_v45 = vadd.f32 %v3665_v40, %v3400_v34  ;;  %3409 = vst.msk [vmem:[%s800_s18] sm:$0xff] %vm878_vm1, %v3407_v44 }
0x18cf   : > { %3410 = vst.msk [vmem:[%s800_s18 + $0x8] sm:$0xff] %vm878_vm1, %v3408_v45 }
0x18d0   : > { %4483 = shalt.err (!%p4480_p4)
}
0x18d1   : > { %s4484_s26 = scalar_lea.hbm %s5607_s15, 256  ;;  %s4488_s22 = scalar_lea.hbm %s5759_s2, 512 }
0x18d2   : > { %p4485_p10 = scmp.ne.s32.totalorder %s5607_s15, %s4484_s26  ;;  %p4489_p5 = scmp.lt.u32.totalorder %s5607_s15, %s5759_s2 }
0x18d3   : > { %p4490_p7 = scmp.lt.u32.totalorder %s4488_s22, %s4484_s26  ;;  %p4492_p9 = scmp.lt.u32.totalorder %s4484_s26, %s5607_s15 }
0x18d4   : > { %p4486_p11 = pnand %p4485_p10, %p5760_p12 }
0x18d5   : > { %p4491_p6 = por %p4490_p7, %p4489_p5 }
0x18d6   : > { %p4487_p3 = pneg %p4486_p11 }
0x18d7   : > { %p4493_p1 = por %p4492_p9, %p4491_p6 }
0x18d9   : > { %p4494_p13 = pnand %p4493_p1, %p4487_p3 }
0x18db   : > { %4497 = shalt.err (!%p4494_p13)
}
0x18dc   : > { %s4578_s14 = smov 128  }
0x18dd   : > { %4046 = dma.vmem_to_hbm [thread:$0]  (%p5760_p12), %s5610_s0, 256, %s5607_s15, %s3412_s23, %s4578_s14, %s4578_s14, %s5749_s19  }
0x18de PF: > { %s3440_s7 = sand.u32 1, %s4536_s3   ;;  %p5761_p0 = scmp.ne.s32.totalorder %s5732_s13, 0 }
0x18df   : > { %p5762_p2 = scmp.ge.s32.totalorder %s4548_s30, 2  ;;  %s3441_s8 = scalar_lea.sflag [#allocation5], %s3440_s7 }
0x18e1   : > { %p4072_p8 = pnand %p5762_p2, %p5761_p0 }
0x18e3   : > { %4531 = dma.done.wait (!%p4072_p8), %s3441_s8, 256  }
0x18e4   : > { %4533 = vsyncadd (!%p4072_p8), %s3441_s8, 4294967040  ;;  %p38_p4 = scmp.ge.s32.totalorder %s4884_s5, 4   ;;  %s5763_s3 = smov %s4540_s28 }
0x18e5   : > { %s5764_s28 = smov %s4544_s29  ;;  %s5765_s29 = smov %s4895_s20 }
0x18e6   : > { %s5766_s30 = smov %s4884_s5  ;;  %40 = sbr.rel (!%p38_p4) target bundleno = 26 (0x1a), region = 180 }
0x18ed   :  { %3446 = vsyncpa [#allocation4], 1 }
0x18ee   :  { %3448 = vsyncpa [#allocation4 + $0x1], 1 }
0x18ef   :  { %3449 = vsyncpa [#allocation7], 1 }
0x18f0   :  { %3450 = vsyncpa [#allocation10], 1 }
0x18f1   :  { %3451 = vsyncpa [#allocation13], 1 }
0x18f2   :  { %3452 = vsyncpa [#allocation5], 1 }
0x18f3   :  { %3454 = vsyncpa [#allocation5 + $0x1], 1 }

</bundles_post_ra>
